<compile_context>
chip_gen: v6e
topology: v6e:2x2x1
jax: 0.10.0
libtpu: 0.0.40
codegen_flags: <defaults>
</compile_context>

<pallas_src>
import functools

import jax
import jax.numpy as jnp
from jax import lax
from jax.experimental import pallas as pl
from jax.experimental.pallas import tpu as pltpu

NEG_SLOPE = 0.01   # nn.LeakyReLU() default negative_slope
BN_EPS = 1e-5      # nn.BatchNorm default eps

_VMEM = pl.BlockSpec(memory_space=pltpu.MemorySpace.VMEM)
_ANY = pl.BlockSpec(memory_space=pl.ANY)


# ---------------------------------------------------------------------------
# Kernel-side helpers
# ---------------------------------------------------------------------------
def _batchnorm(y, gamma, beta, inv_m):
    """Training-mode BatchNorm: two-pass stats, affine folded to scale/shift."""
    mu = jnp.sum(y, axis=0, keepdims=True) * inv_m
    d = y - mu
    var = jnp.sum(d * d, axis=0, keepdims=True) * inv_m
    scale = gamma * lax.rsqrt(var + BN_EPS)           # rsqrt -> EUP
    return y * scale + (beta - mu * scale)


# ---------------------------------------------------------------------------
# Pallas kernels
# ---------------------------------------------------------------------------
def _conv_act_bn_kernel(p_ref, w_ref, bgb_ref, o_ref):
    """One Conv2DLeakyReLUBN stage on im2col patches.

    p_ref  : (M, K)  bf16 im2col patches, M = N*OH*OW, K = KH*KW*Cin (real Cin)
    w_ref  : (K, C)  bf16 conv weight as matmul RHS (real Cout, no padding)
    bgb_ref: (3, C)  f32 rows = [conv bias; BN gamma; BN beta]
    o_ref  : (M, C)  f32 conv -> LeakyReLU -> BatchNorm2d (stats over all rows)
    """
    y = jnp.dot(p_ref[...], w_ref[...], preferred_element_type=jnp.float32)
    y = y + bgb_ref[0:1, :]                       # conv bias
    y = jnp.where(y > 0, y, NEG_SLOPE * y)        # LeakyReLU (before BN)
    o_ref[...] = _batchnorm(y, bgb_ref[1:2, :], bgb_ref[2:3, :],
                            1.0 / y.shape[0])


def _conv3_head_kernel(p_ref, w3_ref, bgb3_ref, w1_hbm, a1bgb_ref, w2_ref,
                       vw_ref, b2v_ref, o_ref, w1_vmem, y_ref, feat_ref,
                       w1_sem, *, batch, action_size):
    """Fused conv3 stage + dueling head.

    p_ref   : (S*N, K3) bf16 conv3 im2col patches, rows ordered spatial-major
              (s = oh*OW + ow) / batch-minor so the flatten below is a plain
              block copy.  S = OH*OW = 16, K3 = 3*3*64 = 576.
    w3_ref  : (K3, 128) bf16 conv3 weight.
    bgb3_ref: (3, 128)  f32 [conv3 bias; BN gamma; BN beta].
    w1_hbm  : (S*128, 512) bf16 adv Linear-1 weight, left in HBM (pl.ANY),
              copied with a manual DMA that overlaps the conv3 compute.
    a1bgb_ref: (3, 512) f32 [Linear-1 bias; BN1d gamma; BN1d beta].
    w2_ref  : (512, 128) bf16 adv Linear-2 weight, action_size cols zero-padded.
    vw_ref  : (1, S*128) f32 value Linear weight (flattened feature order).
    b2v_ref : (2, 128) f32 row0 = adv Linear-2 bias (padded), row1 = value bias
              replicated across lanes.
    o_ref   : (N, 128) f32 Q padded to 128 lanes.  Only [:action_size] is real;
              the padded lanes hold val - mean(adv), NOT zeros.
    """
    # Kick off the 2 MB adv-Linear-1 weight DMA immediately so it overlaps the
    # conv3 matmul + BatchNorm below instead of serializing before the head.
    w1_copy = pltpu.make_async_copy(w1_hbm, w1_vmem, w1_sem.at[0])
    w1_copy.start()

    # conv3: matmul + bias + LeakyReLU + BatchNorm2d over all S*N rows.
    y = jnp.dot(p_ref[...], w3_ref[...], preferred_element_type=jnp.float32)
    y = y + bgb3_ref[0:1, :]
    y = jnp.where(y > 0, y, NEG_SLOPE * y)
    y_ref[...] = _batchnorm(y, bgb3_ref[1:2, :], bgb3_ref[2:3, :],
                            1.0 / y.shape[0])

    # "Flatten" inside VMEM: feat[n, s*128 + c] = y[s*N + n, c].
    c3 = y_ref.shape[1]
    n_blocks = y_ref.shape[0] // batch
    for s in range(n_blocks):                     # static 16-iteration loop
        feat_ref[:, s * c3:(s + 1) * c3] = y_ref[s * batch:(s + 1) * batch, :]
    feats = feat_ref[...]

    # Value stream Linear(F, 1): VPU multiply + lane reduction in f32.
    val = jnp.sum(feats * vw_ref[...], axis=-1, keepdims=True)

    # Advantage stream: Linear -> BatchNorm1d -> LeakyReLU -> Linear.
    w1_copy.wait()
    h = jnp.dot(feats.astype(jnp.bfloat16), w1_vmem[...],
                preferred_element_type=jnp.float32)
    h = h + a1bgb_ref[0:1, :]                     # Linear-1 bias
    h = _batchnorm(h, a1bgb_ref[1:2, :], a1bgb_ref[2:3, :], 1.0 / batch)
    h = jnp.where(h > 0, h, NEG_SLOPE * h)        # LeakyReLU AFTER BN (spec)

    adv = jnp.dot(h.astype(jnp.bfloat16), w2_ref[...],
                  preferred_element_type=jnp.float32)
    adv = adv + b2v_ref[0:1, :]                   # padded lanes stay exactly 0

    # Q = V + (A - mean(A)); padded adv lanes are 0, so the full lane sum
    # equals the sum over the real action_size columns.
    adv_mean = jnp.sum(adv, axis=-1, keepdims=True) * (1.0 / action_size)
    o_ref[...] = (val + b2v_ref[1:2, :]) + adv - adv_mean


# ---------------------------------------------------------------------------
# Wrappers
# ---------------------------------------------------------------------------
def _im2col(x, kh, kw, stride, *, spatial_major=False):
    """(N, H, W, C) -> (rows, KH*KW*C) conv patches via XLA strided slices.

    Rows are batch-major (N*OH*OW) by default, or spatial-major (OH*OW*N) when
    spatial_major=True (used by the fused conv3+head kernel).
    """
    n, h, w, c = x.shape
    oh = (h - kh) // stride + 1
    ow = (w - kw) // stride + 1
    cols = []
    for ky in range(kh):
        for kx in range(kw):
            cols.append(lax.slice(
                x, (0, ky, kx, 0),
                (n, ky + (oh - 1) * stride + 1, kx + (ow - 1) * stride + 1, c),
                (1, stride, stride, 1)))
    patches = jnp.concatenate(cols, axis=-1)            # (N, OH, OW, KH*KW*C)
    if spatial_major:
        patches = patches.transpose(1, 2, 0, 3)
        return patches.reshape(oh * ow * n, kh * kw * c), oh, ow
    return patches.reshape(n * oh * ow, kh * kw * c), oh, ow


def _conv_stage(patches, w_mat, bgb):
    m = patches.shape[0]
    c = w_mat.shape[1]
    return pl.pallas_call(
        _conv_act_bn_kernel,
        out_shape=jax.ShapeDtypeStruct((m, c), jnp.float32),
        in_specs=[_VMEM, _VMEM, _VMEM],
        out_specs=_VMEM,
    )(patches, w_mat, bgb)


@functools.partial(jax.jit, static_argnames=("action_size",))
def dueling_qnet_forward(x_nhwc, kp, action_size):
    """Forward pass of DuelingVizQNet.  x_nhwc: (N, H, W, state_size) f32."""
    n = x_nhwc.shape[0]
    assert action_size <= 128, "head output is padded to 128 lanes"

    # conv1 (k=8, s=4): im2col in XLA, matmul + act + BN in Pallas.
    p1, oh, ow = _im2col(x_nhwc, 8, 8, 4)
    y1 = _conv_stage(p1.astype(jnp.bfloat16), kp["c1_w"], kp["c1_bgb"])
    y1 = y1.reshape(n, oh, ow, -1)

    # conv2 (k=4, s=2)
    p2, oh, ow = _im2col(y1, 4, 4, 2)
    y2 = _conv_stage(p2.astype(jnp.bfloat16), kp["c2_w"], kp["c2_bgb"])
    y2 = y2.reshape(n, oh, ow, -1)

    # conv3 (k=3, s=2) fused with the whole dueling head.  Patches are ordered
    # spatial-major so the in-kernel flatten matches the NHWC feature order.
    p3, oh, ow = _im2col(y2, 3, 3, 2, spatial_major=True)
    feat_dim = oh * ow * kp["c3_w"].shape[1]
    assert feat_dim == kp["a1_w"].shape[0], (
        f"flatten size {feat_dim} != adv Linear-1 fan-in {kp['a1_w'].shape[0]}"
        " (the 128*4*4 head hard-codes 84x84 inputs)")

    q_pad = pl.pallas_call(
        functools.partial(_conv3_head_kernel, batch=n, action_size=action_size),
        out_shape=jax.ShapeDtypeStruct((n, 128), jnp.float32),
        in_specs=[_VMEM, _VMEM, _VMEM, _ANY, _VMEM, _VMEM, _VMEM, _VMEM],
        out_specs=_VMEM,
        scratch_shapes=[
            pltpu.VMEM(kp["a1_w"].shape, jnp.bfloat16),                    # w1
            pltpu.VMEM((p3.shape[0], kp["c3_w"].shape[1]), jnp.float32),   # y3
            pltpu.VMEM((n, feat_dim), jnp.float32),                        # feats
            pltpu.SemaphoreType.DMA((1,)),                                 # w1 sem
        ],
    )(p3.astype(jnp.bfloat16), kp["c3_w"], kp["c3_bgb"], kp["a1_w"],
      kp["a1_bgb"], kp["a2_w"], kp["v_w"], kp["b2v"])
    return q_pad[:, :action_size]


# ---------------------------------------------------------------------------
# Parameters
# ---------------------------------------------------------------------------
def init_params(state_size, action_size, seed=0):
    """Unpadded f32 params (conv weights HWIO, linear weights (in, out))."""
    key = jax.random.PRNGKey(seed)

    def split():
        nonlocal key
        key, k = jax.random.split(key)
        return k

    def conv_init(kh, kw, cin, cout):
        bound = 1.0 / (kh * kw * cin) ** 0.5
        return dict(
            w=jax.random.uniform(split(), (kh, kw, cin, cout), jnp.float32, -bound, bound),
            b=jax.random.uniform(split(), (cout,), jnp.float32, -bound, bound),
            g=jax.random.uniform(split(), (cout,), jnp.float32, 0.5, 1.5),
            be=jax.random.uniform(split(), (cout,), jnp.float32, -0.5, 0.5))

    def lin_init(cin, cout):
        bound = 1.0 / cin ** 0.5
        return (jax.random.uniform(split(), (cin, cout), jnp.float32, -bound, bound),
                jax.random.uniform(split(), (cout,), jnp.float32, -bound, bound))

    p = {}
    p["c1"] = conv_init(8, 8, state_size, 32)
    p["c2"] = conv_init(4, 4, 32, 64)
    p["c3"] = conv_init(3, 3, 64, 128)
    p["a1_w"], p["a1_b"] = lin_init(128 * 4 * 4, 512)
    p["a1_g"] = jax.random.uniform(split(), (512,), jnp.float32, 0.5, 1.5)
    p["a1_be"] = jax.random.uniform(split(), (512,), jnp.float32, -0.5, 0.5)
    p["a2_w"], p["a2_b"] = lin_init(512, action_size)
    p["v_w"], p["v_b"] = lin_init(128 * 4 * 4, 1)
    return p


def pack_params(p, action_size):
    """Pack kernel params: bf16 matmul weights (real channel counts, no Cin
    padding), f32 [bias; gamma; beta] slabs, head output padded to 128 lanes."""
    wdt = jnp.bfloat16

    def pack_conv(c):
        kh, kw, cin, cout = c["w"].shape
        w = c["w"].reshape(kh * kw * cin, cout).astype(wdt)
        bgb = jnp.stack([c["b"], c["g"], c["be"]], axis=0)     # (3, cout) f32
        return w, bgb

    kp = {}
    kp["c1_w"], kp["c1_bgb"] = pack_conv(p["c1"])
    kp["c2_w"], kp["c2_bgb"] = pack_conv(p["c2"])
    kp["c3_w"], kp["c3_bgb"] = pack_conv(p["c3"])

    kp["a1_w"] = p["a1_w"].astype(wdt)                         # (2048, 512)
    kp["a1_bgb"] = jnp.stack([p["a1_b"], p["a1_g"], p["a1_be"]], axis=0)

    hidden = p["a2_w"].shape[0]
    kp["a2_w"] = (jnp.zeros((hidden, 128), wdt)
                  .at[:, :action_size].set(p["a2_w"].astype(wdt)))
    kp["v_w"] = p["v_w"].reshape(1, -1)                        # (1, 2048) f32
    b2v = jnp.zeros((2, 128), jnp.float32)
    b2v = b2v.at[0, :action_size].set(p["a2_b"]).at[1, :].set(p["v_b"][0])
    kp["b2v"] = b2v
    return kp


# ---------------------------------------------------------------------------
# Pure-JAX reference with matched (bf16 operand / f32 accumulate) precision.
# Note: the flatten uses NHWC order in both kernel and reference; since the
# weights are initialized in-script this is the same module up to a fixed
# permutation of the Linear fan-in (relevant only when porting real weights).
# ---------------------------------------------------------------------------
def reference_forward(x_nhwc, p):
    bf = jnp.bfloat16

    def conv_block(x, c, stride):
        y = lax.conv_general_dilated(
            x.astype(bf), c["w"].astype(bf), (stride, stride), "VALID",
            dimension_numbers=("NHWC", "HWIO", "NHWC"),
            preferred_element_type=jnp.float32)
        y = y + c["b"]
        y = jnp.where(y > 0, y, NEG_SLOPE * y)                 # act before BN
        mu = jnp.mean(y, axis=(0, 1, 2), keepdims=True)
        var = jnp.mean((y - mu) ** 2, axis=(0, 1, 2), keepdims=True)
        return (y - mu) / jnp.sqrt(var + BN_EPS) * c["g"] + c["be"]

    y = conv_block(x_nhwc, p["c1"], 4)
    y = conv_block(y, p["c2"], 2)
    y = conv_block(y, p["c3"], 2)
    f = y.reshape(y.shape[0], -1)

    h = jnp.dot(f.astype(bf), p["a1_w"].astype(bf),
                preferred_element_type=jnp.float32) + p["a1_b"]
    mu = jnp.mean(h, axis=0, keepdims=True)
    var = jnp.mean((h - mu) ** 2, axis=0, keepdims=True)
    h = (h - mu) / jnp.sqrt(var + BN_EPS) * p["a1_g"] + p["a1_be"]
    h = jnp.where(h > 0, h, NEG_SLOPE * h)                     # BN before act

    adv = jnp.dot(h.astype(bf), p["a2_w"].astype(bf),
                  preferred_element_type=jnp.float32) + p["a2_b"]
    val = f @ p["v_w"] + p["v_b"]
    return val + (adv - jnp.mean(adv, axis=-1, keepdims=True))


if __name__ == "__main__":
    STATE_SIZE = 4     # conv input channels (e.g. stacked frames)
    ACTION_SIZE = 4
    BATCH = 2
    H = W = 84         # the hardcoded 128*4*4 flatten implies 84x84 inputs

    params = init_params(STATE_SIZE, ACTION_SIZE, seed=0)
    kparams = pack_params(params, ACTION_SIZE)

    x_nchw = jax.random.normal(jax.random.PRNGKey(0),
                               (BATCH, STATE_SIZE, H, W), jnp.float32)
    x_nhwc = jnp.transpose(x_nchw, (0, 2, 3, 1))

    q = dueling_qnet_forward(x_nhwc, kparams, action_size=ACTION_SIZE)
    q = jax.block_until_ready(q)
    assert q.shape == (BATCH, ACTION_SIZE), q.shape

    ref = jax.jit(reference_forward)(x_nhwc, params)
    # Matched-precision comparison (both paths use bf16 matmul operands with
    # f32 accumulation).  Residual slack covers accumulation-order differences
    # amplified by the ill-conditioned batch-2 BatchNorm1d (var can be ~1e-3).
    err = float(jnp.max(jnp.abs(q - ref)))
    assert err < 2e-2, f"max abs err {err}"
    print("KERNEL_OK")
</pallas_src>

<mosaic_0001>
module attributes {stable_mosaic.version = 11 : i64} {
  func.func @_conv_act_bn_kernel(%arg0: memref<800x256xbf16, #tpu.memory_space<vmem>>, %arg1: memref<256x32xbf16, #tpu.memory_space<vmem>>, %arg2: memref<3x32xf32, #tpu.memory_space<vmem>>, %arg3: memref<800x32xf32, #tpu.memory_space<vmem>>) attributes {dimension_semantics = [], scalar_prefetch = 0 : i64, scratch_operands = 0 : i64, tpu.core_type = #tpu.core_type<tc>} {
    %c0 = arith.constant 0 : index
    %c0_0 = arith.constant 0 : index
    %0 = vector.load %arg0[%c0, %c0_0] : memref<800x256xbf16, #tpu.memory_space<vmem>>, vector<800x256xbf16>
    %c0_1 = arith.constant 0 : index
    %c0_2 = arith.constant 0 : index
    %1 = vector.load %arg1[%c0_1, %c0_2] : memref<256x32xbf16, #tpu.memory_space<vmem>>, vector<256x32xbf16>
    %cst = arith.constant dense<0.000000e+00> : vector<800x32xf32>
    %2 = tpu.matmul %0, %1, %cst {dimension_numbers = #tpu.dot_dimension_numbers<[1], [0], [0], [1], [0, 0, 1, 1], [], []>} : vector<800x256xbf16>, vector<256x32xbf16>, vector<800x32xf32> -> vector<800x32xf32>
    %c0_3 = arith.constant 0 : index
    %c0_4 = arith.constant 0 : index
    %3 = vector.load %arg2[%c0_3, %c0_4] : memref<3x32xf32, #tpu.memory_space<vmem>>, vector<1x32xf32>
    %4 = vector.broadcast %3 : vector<1x32xf32> to vector<800x32xf32>
    %5 = arith.addf %2, %4 : vector<800x32xf32>
    %cst_5 = arith.constant 0.000000e+00 : f32
    %6 = vector.broadcast %cst_5 : f32 to vector<800x32xf32>
    %7 = arith.cmpf ogt, %5, %6 : vector<800x32xf32>
    %cst_6 = arith.constant 0.00999999977 : f32
    %8 = vector.broadcast %cst_6 : f32 to vector<800x32xf32>
    %9 = arith.mulf %8, %5 : vector<800x32xf32>
    %10 = arith.select %7, %5, %9 : vector<800x32xi1>, vector<800x32xf32>
    %c1 = arith.constant 1 : index
    %c0_7 = arith.constant 0 : index
    %11 = vector.load %arg2[%c1, %c0_7] : memref<3x32xf32, #tpu.memory_space<vmem>>, vector<1x32xf32>
    %c2 = arith.constant 2 : index
    %c0_8 = arith.constant 0 : index
    %12 = vector.load %arg2[%c2, %c0_8] : memref<3x32xf32, #tpu.memory_space<vmem>>, vector<1x32xf32>
    %cst_9 = arith.constant dense<0.000000e+00> : vector<32xf32>
    %13 = vector.multi_reduction <add>, %10, %cst_9 [0] : vector<800x32xf32> to vector<32xf32>
    %14 = vector.shape_cast %13 : vector<32xf32> to vector<1x32xf32>
    %cst_10 = arith.constant 1.250000e-03 : f32
    %15 = vector.broadcast %cst_10 : f32 to vector<1x32xf32>
    %16 = arith.mulf %14, %15 : vector<1x32xf32>
    %17 = vector.broadcast %16 : vector<1x32xf32> to vector<800x32xf32>
    %18 = arith.subf %10, %17 : vector<800x32xf32>
    %19 = arith.mulf %18, %18 : vector<800x32xf32>
    %cst_11 = arith.constant dense<0.000000e+00> : vector<32xf32>
    %20 = vector.multi_reduction <add>, %19, %cst_11 [0] : vector<800x32xf32> to vector<32xf32>
    %21 = vector.shape_cast %20 : vector<32xf32> to vector<1x32xf32>
    %cst_12 = arith.constant 1.250000e-03 : f32
    %22 = vector.broadcast %cst_12 : f32 to vector<1x32xf32>
    %23 = arith.mulf %21, %22 : vector<1x32xf32>
    %cst_13 = arith.constant 9.99999974E-6 : f32
    %24 = vector.broadcast %cst_13 : f32 to vector<1x32xf32>
    %25 = arith.addf %23, %24 : vector<1x32xf32>
    %26 = math.rsqrt %25 : vector<1x32xf32>
    %27 = arith.mulf %11, %26 : vector<1x32xf32>
    %28 = vector.broadcast %27 : vector<1x32xf32> to vector<800x32xf32>
    %29 = arith.mulf %10, %28 : vector<800x32xf32>
    %30 = arith.mulf %16, %27 : vector<1x32xf32>
    %31 = arith.subf %12, %30 : vector<1x32xf32>
    %32 = vector.broadcast %31 : vector<1x32xf32> to vector<800x32xf32>
    %33 = arith.addf %29, %32 : vector<800x32xf32>
    %c0_14 = arith.constant 0 : index
    %c0_15 = arith.constant 0 : index
    %34 = vector.load %arg3[%c0_14, %c0_15] : memref<800x32xf32, #tpu.memory_space<vmem>>, vector<800x32xf32>
    tpu.vector_store %arg3[%c0_14, %c0_15], %33 {strides = array<i32>} : memref<800x32xf32, #tpu.memory_space<vmem>>, vector<800x32xf32>,
    return
  }
}

module attributes {stable_mosaic.version = 11 : i64} {
  func.func @_conv_act_bn_kernel(%arg0: memref<162x512xbf16, #tpu.memory_space<vmem>>, %arg1: memref<512x64xbf16, #tpu.memory_space<vmem>>, %arg2: memref<3x64xf32, #tpu.memory_space<vmem>>, %arg3: memref<162x64xf32, #tpu.memory_space<vmem>>) attributes {dimension_semantics = [], scalar_prefetch = 0 : i64, scratch_operands = 0 : i64, tpu.core_type = #tpu.core_type<tc>} {
    %c0 = arith.constant 0 : index
    %c0_0 = arith.constant 0 : index
    %0 = vector.load %arg0[%c0, %c0_0] : memref<162x512xbf16, #tpu.memory_space<vmem>>, vector<162x512xbf16>
    %c0_1 = arith.constant 0 : index
    %c0_2 = arith.constant 0 : index
    %1 = vector.load %arg1[%c0_1, %c0_2] : memref<512x64xbf16, #tpu.memory_space<vmem>>, vector<512x64xbf16>
    %cst = arith.constant dense<0.000000e+00> : vector<162x64xf32>
    %2 = tpu.matmul %0, %1, %cst {dimension_numbers = #tpu.dot_dimension_numbers<[1], [0], [0], [1], [0, 0, 1, 1], [], []>} : vector<162x512xbf16>, vector<512x64xbf16>, vector<162x64xf32> -> vector<162x64xf32>
    %c0_3 = arith.constant 0 : index
    %c0_4 = arith.constant 0 : index
    %3 = vector.load %arg2[%c0_3, %c0_4] : memref<3x64xf32, #tpu.memory_space<vmem>>, vector<1x64xf32>
    %4 = vector.broadcast %3 : vector<1x64xf32> to vector<162x64xf32>
    %5 = arith.addf %2, %4 : vector<162x64xf32>
    %cst_5 = arith.constant 0.000000e+00 : f32
    %6 = vector.broadcast %cst_5 : f32 to vector<162x64xf32>
    %7 = arith.cmpf ogt, %5, %6 : vector<162x64xf32>
    %cst_6 = arith.constant 0.00999999977 : f32
    %8 = vector.broadcast %cst_6 : f32 to vector<162x64xf32>
    %9 = arith.mulf %8, %5 : vector<162x64xf32>
    %10 = arith.select %7, %5, %9 : vector<162x64xi1>, vector<162x64xf32>
    %c1 = arith.constant 1 : index
    %c0_7 = arith.constant 0 : index
    %11 = vector.load %arg2[%c1, %c0_7] : memref<3x64xf32, #tpu.memory_space<vmem>>, vector<1x64xf32>
    %c2 = arith.constant 2 : index
    %c0_8 = arith.constant 0 : index
    %12 = vector.load %arg2[%c2, %c0_8] : memref<3x64xf32, #tpu.memory_space<vmem>>, vector<1x64xf32>
    %cst_9 = arith.constant dense<0.000000e+00> : vector<64xf32>
    %13 = vector.multi_reduction <add>, %10, %cst_9 [0] : vector<162x64xf32> to vector<64xf32>
    %14 = vector.shape_cast %13 : vector<64xf32> to vector<1x64xf32>
    %cst_10 = arith.constant 0.00617283955 : f32
    %15 = vector.broadcast %cst_10 : f32 to vector<1x64xf32>
    %16 = arith.mulf %14, %15 : vector<1x64xf32>
    %17 = vector.broadcast %16 : vector<1x64xf32> to vector<162x64xf32>
    %18 = arith.subf %10, %17 : vector<162x64xf32>
    %19 = arith.mulf %18, %18 : vector<162x64xf32>
    %cst_11 = arith.constant dense<0.000000e+00> : vector<64xf32>
    %20 = vector.multi_reduction <add>, %19, %cst_11 [0] : vector<162x64xf32> to vector<64xf32>
    %21 = vector.shape_cast %20 : vector<64xf32> to vector<1x64xf32>
    %cst_12 = arith.constant 0.00617283955 : f32
    %22 = vector.broadcast %cst_12 : f32 to vector<1x64xf32>
    %23 = arith.mulf %21, %22 : vector<1x64xf32>
    %cst_13 = arith.constant 9.99999974E-6 : f32
    %24 = vector.broadcast %cst_13 : f32 to vector<1x64xf32>
    %25 = arith.addf %23, %24 : vector<1x64xf32>
    %26 = math.rsqrt %25 : vector<1x64xf32>
    %27 = arith.mulf %11, %26 : vector<1x64xf32>
    %28 = vector.broadcast %27 : vector<1x64xf32> to vector<162x64xf32>
    %29 = arith.mulf %10, %28 : vector<162x64xf32>
    %30 = arith.mulf %16, %27 : vector<1x64xf32>
    %31 = arith.subf %12, %30 : vector<1x64xf32>
    %32 = vector.broadcast %31 : vector<1x64xf32> to vector<162x64xf32>
    %33 = arith.addf %29, %32 : vector<162x64xf32>
    %c0_14 = arith.constant 0 : index
    %c0_15 = arith.constant 0 : index
    %34 = vector.load %arg3[%c0_14, %c0_15] : memref<162x64xf32, #tpu.memory_space<vmem>>, vector<162x64xf32>
    tpu.vector_store %arg3[%c0_14, %c0_15], %33 {strides = array<i32>} : memref<162x64xf32, #tpu.memory_space<vmem>>, vector<162x64xf32>,
    return
  }
}

module attributes {stable_mosaic.version = 11 : i64} {
  func.func @_conv3_head_kernel(%arg0: memref<32x576xbf16, #tpu.memory_space<vmem>>, %arg1: memref<576x128xbf16, #tpu.memory_space<vmem>>, %arg2: memref<3x128xf32, #tpu.memory_space<vmem>>, %arg3: memref<2048x512xbf16, #tpu.memory_space<any>>, %arg4: memref<3x512xf32, #tpu.memory_space<vmem>>, %arg5: memref<512x128xbf16, #tpu.memory_space<vmem>>, %arg6: memref<1x2048xf32, #tpu.memory_space<vmem>>, %arg7: memref<2x128xf32, #tpu.memory_space<vmem>>, %arg8: memref<2x128xf32, #tpu.memory_space<vmem>>, %arg9: memref<2048x512xbf16, #tpu.memory_space<vmem>>, %arg10: memref<32x128xf32, #tpu.memory_space<vmem>>, %arg11: memref<2x2048xf32, #tpu.memory_space<vmem>>, %arg12: memref<1x!tpu.dma_semaphore, #tpu.memory_space<semaphore_mem>>) attributes {dimension_semantics = [], scalar_prefetch = 0 : i64, scratch_operands = 4 : i64, tpu.core_type = #tpu.core_type<tc>} {
    %c0_i32 = arith.constant 0 : i32
    %0 = tpu.memref_slice %arg12[%c0_i32] : memref<1x!tpu.dma_semaphore, #tpu.memory_space<semaphore_mem>> -> memref<1x!tpu.dma_semaphore, #tpu.memory_space<semaphore_mem>>
    %1 = tpu.memref_squeeze %0 : memref<1x!tpu.dma_semaphore, #tpu.memory_space<semaphore_mem>> -> memref<!tpu.dma_semaphore, #tpu.memory_space<semaphore_mem>>
    tpu.enqueue_dma source(%arg3 : memref<2048x512xbf16, #tpu.memory_space<any>>) target(%arg9 : memref<2048x512xbf16, #tpu.memory_space<vmem>>) target_semaphore(%1 : memref<!tpu.dma_semaphore, #tpu.memory_space<semaphore_mem>>)
    %c0 = arith.constant 0 : index
    %c0_0 = arith.constant 0 : index
    %2 = vector.load %arg0[%c0, %c0_0] : memref<32x576xbf16, #tpu.memory_space<vmem>>, vector<32x576xbf16>
    %c0_1 = arith.constant 0 : index
    %c0_2 = arith.constant 0 : index
    %3 = vector.load %arg1[%c0_1, %c0_2] : memref<576x128xbf16, #tpu.memory_space<vmem>>, vector<576x128xbf16>
    %cst = arith.constant dense<0.000000e+00> : vector<32x128xf32>
    %4 = tpu.matmul %2, %3, %cst {dimension_numbers = #tpu.dot_dimension_numbers<[1], [0], [0], [1], [0, 0, 1, 1], [], []>} : vector<32x576xbf16>, vector<576x128xbf16>, vector<32x128xf32> -> vector<32x128xf32>
    %c0_3 = arith.constant 0 : index
    %c0_4 = arith.constant 0 : index
    %5 = vector.load %arg2[%c0_3, %c0_4] : memref<3x128xf32, #tpu.memory_space<vmem>>, vector<1x128xf32>
    %6 = vector.broadcast %5 : vector<1x128xf32> to vector<32x128xf32>
    %7 = arith.addf %4, %6 : vector<32x128xf32>
    %cst_5 = arith.constant 0.000000e+00 : f32
    %8 = vector.broadcast %cst_5 : f32 to vector<32x128xf32>
    %9 = arith.cmpf ogt, %7, %8 : vector<32x128xf32>
    %cst_6 = arith.constant 0.00999999977 : f32
    %10 = vector.broadcast %cst_6 : f32 to vector<32x128xf32>
    %11 = arith.mulf %10, %7 : vector<32x128xf32>
    %12 = arith.select %9, %7, %11 : vector<32x128xi1>, vector<32x128xf32>
    %c1 = arith.constant 1 : index
    %c0_7 = arith.constant 0 : index
    %13 = vector.load %arg2[%c1, %c0_7] : memref<3x128xf32, #tpu.memory_space<vmem>>, vector<1x128xf32>
    %c2 = arith.constant 2 : index
    %c0_8 = arith.constant 0 : index
    %14 = vector.load %arg2[%c2, %c0_8] : memref<3x128xf32, #tpu.memory_space<vmem>>, vector<1x128xf32>
    %cst_9 = arith.constant dense<0.000000e+00> : vector<128xf32>
    %15 = vector.multi_reduction <add>, %12, %cst_9 [0] : vector<32x128xf32> to vector<128xf32>
    %16 = vector.shape_cast %15 : vector<128xf32> to vector<1x128xf32>
    %cst_10 = arith.constant 3.125000e-02 : f32
    %17 = vector.broadcast %cst_10 : f32 to vector<1x128xf32>
    %18 = arith.mulf %16, %17 : vector<1x128xf32>
    %19 = vector.broadcast %18 : vector<1x128xf32> to vector<32x128xf32>
    %20 = arith.subf %12, %19 : vector<32x128xf32>
    %21 = arith.mulf %20, %20 : vector<32x128xf32>
    %cst_11 = arith.constant dense<0.000000e+00> : vector<128xf32>
    %22 = vector.multi_reduction <add>, %21, %cst_11 [0] : vector<32x128xf32> to vector<128xf32>
    %23 = vector.shape_cast %22 : vector<128xf32> to vector<1x128xf32>
    %cst_12 = arith.constant 3.125000e-02 : f32
    %24 = vector.broadcast %cst_12 : f32 to vector<1x128xf32>
    %25 = arith.mulf %23, %24 : vector<1x128xf32>
    %cst_13 = arith.constant 9.99999974E-6 : f32
    %26 = vector.broadcast %cst_13 : f32 to vector<1x128xf32>
    %27 = arith.addf %25, %26 : vector<1x128xf32>
    %28 = math.rsqrt %27 : vector<1x128xf32>
    %29 = arith.mulf %13, %28 : vector<1x128xf32>
    %30 = vector.broadcast %29 : vector<1x128xf32> to vector<32x128xf32>
    %31 = arith.mulf %12, %30 : vector<32x128xf32>
    %32 = arith.mulf %18, %29 : vector<1x128xf32>
    %33 = arith.subf %14, %32 : vector<1x128xf32>
    %34 = vector.broadcast %33 : vector<1x128xf32> to vector<32x128xf32>
    %35 = arith.addf %31, %34 : vector<32x128xf32>
    %c0_14 = arith.constant 0 : index
    %c0_15 = arith.constant 0 : index
    %36 = vector.load %arg10[%c0_14, %c0_15] : memref<32x128xf32, #tpu.memory_space<vmem>>, vector<32x128xf32>
    tpu.vector_store %arg10[%c0_14, %c0_15], %35 {strides = array<i32>} : memref<32x128xf32, #tpu.memory_space<vmem>>, vector<32x128xf32>,
    %c0_16 = arith.constant 0 : index
    %c0_17 = arith.constant 0 : index
    %37 = vector.load %arg10[%c0_16, %c0_17] : memref<32x128xf32, #tpu.memory_space<vmem>>, vector<2x128xf32>
    %c0_18 = arith.constant 0 : index
    %c0_19 = arith.constant 0 : index
    %38 = vector.load %arg11[%c0_18, %c0_19] : memref<2x2048xf32, #tpu.memory_space<vmem>>, vector<2x128xf32>
    tpu.vector_store %arg11[%c0_18, %c0_19], %37 {strides = array<i32>} : memref<2x2048xf32, #tpu.memory_space<vmem>>, vector<2x128xf32>,
    %c2_20 = arith.constant 2 : index
    %c0_21 = arith.constant 0 : index
    %39 = vector.load %arg10[%c2_20, %c0_21] : memref<32x128xf32, #tpu.memory_space<vmem>>, vector<2x128xf32>
    %c0_22 = arith.constant 0 : index
    %c128 = arith.constant 128 : index
    %40 = vector.load %arg11[%c0_22, %c128] : memref<2x2048xf32, #tpu.memory_space<vmem>>, vector<2x128xf32>
    tpu.vector_store %arg11[%c0_22, %c128], %39 {strides = array<i32>} : memref<2x2048xf32, #tpu.memory_space<vmem>>, vector<2x128xf32>,
    %c4 = arith.constant 4 : index
    %c0_23 = arith.constant 0 : index
    %41 = vector.load %arg10[%c4, %c0_23] : memref<32x128xf32, #tpu.memory_space<vmem>>, vector<2x128xf32>
    %c0_24 = arith.constant 0 : index
    %c256 = arith.constant 256 : index
    %42 = vector.load %arg11[%c0_24, %c256] : memref<2x2048xf32, #tpu.memory_space<vmem>>, vector<2x128xf32>
    tpu.vector_store %arg11[%c0_24, %c256], %41 {strides = array<i32>} : memref<2x2048xf32, #tpu.memory_space<vmem>>, vector<2x128xf32>,
    %c6 = arith.constant 6 : index
    %c0_25 = arith.constant 0 : index
    %43 = vector.load %arg10[%c6, %c0_25] : memref<32x128xf32, #tpu.memory_space<vmem>>, vector<2x128xf32>
    %c0_26 = arith.constant 0 : index
    %c384 = arith.constant 384 : index
    %44 = vector.load %arg11[%c0_26, %c384] : memref<2x2048xf32, #tpu.memory_space<vmem>>, vector<2x128xf32>
    tpu.vector_store %arg11[%c0_26, %c384], %43 {strides = array<i32>} : memref<2x2048xf32, #tpu.memory_space<vmem>>, vector<2x128xf32>,
    %c8 = arith.constant 8 : index
    %c0_27 = arith.constant 0 : index
    %45 = vector.load %arg10[%c8, %c0_27] : memref<32x128xf32, #tpu.memory_space<vmem>>, vector<2x128xf32>
    %c0_28 = arith.constant 0 : index
    %c512 = arith.constant 512 : index
    %46 = vector.load %arg11[%c0_28, %c512] : memref<2x2048xf32, #tpu.memory_space<vmem>>, vector<2x128xf32>
    tpu.vector_store %arg11[%c0_28, %c512], %45 {strides = array<i32>} : memref<2x2048xf32, #tpu.memory_space<vmem>>, vector<2x128xf32>,
    %c10 = arith.constant 10 : index
    %c0_29 = arith.constant 0 : index
    %47 = vector.load %arg10[%c10, %c0_29] : memref<32x128xf32, #tpu.memory_space<vmem>>, vector<2x128xf32>
    %c0_30 = arith.constant 0 : index
    %c640 = arith.constant 640 : index
    %48 = vector.load %arg11[%c0_30, %c640] : memref<2x2048xf32, #tpu.memory_space<vmem>>, vector<2x128xf32>
    tpu.vector_store %arg11[%c0_30, %c640], %47 {strides = array<i32>} : memref<2x2048xf32, #tpu.memory_space<vmem>>, vector<2x128xf32>,
    %c12 = arith.constant 12 : index
    %c0_31 = arith.constant 0 : index
    %49 = vector.load %arg10[%c12, %c0_31] : memref<32x128xf32, #tpu.memory_space<vmem>>, vector<2x128xf32>
    %c0_32 = arith.constant 0 : index
    %c768 = arith.constant 768 : index
    %50 = vector.load %arg11[%c0_32, %c768] : memref<2x2048xf32, #tpu.memory_space<vmem>>, vector<2x128xf32>
    tpu.vector_store %arg11[%c0_32, %c768], %49 {strides = array<i32>} : memref<2x2048xf32, #tpu.memory_space<vmem>>, vector<2x128xf32>,
    %c14 = arith.constant 14 : index
    %c0_33 = arith.constant 0 : index
    %51 = vector.load %arg10[%c14, %c0_33] : memref<32x128xf32, #tpu.memory_space<vmem>>, vector<2x128xf32>
    %c0_34 = arith.constant 0 : index
    %c896 = arith.constant 896 : index
    %52 = vector.load %arg11[%c0_34, %c896] : memref<2x2048xf32, #tpu.memory_space<vmem>>, vector<2x128xf32>
    tpu.vector_store %arg11[%c0_34, %c896], %51 {strides = array<i32>} : memref<2x2048xf32, #tpu.memory_space<vmem>>, vector<2x128xf32>,
    %c16 = arith.constant 16 : index
    %c0_35 = arith.constant 0 : index
    %53 = vector.load %arg10[%c16, %c0_35] : memref<32x128xf32, #tpu.memory_space<vmem>>, vector<2x128xf32>
    %c0_36 = arith.constant 0 : index
    %c1024 = arith.constant 1024 : index
    %54 = vector.load %arg11[%c0_36, %c1024] : memref<2x2048xf32, #tpu.memory_space<vmem>>, vector<2x128xf32>
    tpu.vector_store %arg11[%c0_36, %c1024], %53 {strides = array<i32>} : memref<2x2048xf32, #tpu.memory_space<vmem>>, vector<2x128xf32>,
    %c18 = arith.constant 18 : index
    %c0_37 = arith.constant 0 : index
    %55 = vector.load %arg10[%c18, %c0_37] : memref<32x128xf32, #tpu.memory_space<vmem>>, vector<2x128xf32>
    %c0_38 = arith.constant 0 : index
    %c1152 = arith.constant 1152 : index
    %56 = vector.load %arg11[%c0_38, %c1152] : memref<2x2048xf32, #tpu.memory_space<vmem>>, vector<2x128xf32>
    tpu.vector_store %arg11[%c0_38, %c1152], %55 {strides = array<i32>} : memref<2x2048xf32, #tpu.memory_space<vmem>>, vector<2x128xf32>,
    %c20 = arith.constant 20 : index
    %c0_39 = arith.constant 0 : index
    %57 = vector.load %arg10[%c20, %c0_39] : memref<32x128xf32, #tpu.memory_space<vmem>>, vector<2x128xf32>
    %c0_40 = arith.constant 0 : index
    %c1280 = arith.constant 1280 : index
    %58 = vector.load %arg11[%c0_40, %c1280] : memref<2x2048xf32, #tpu.memory_space<vmem>>, vector<2x128xf32>
    tpu.vector_store %arg11[%c0_40, %c1280], %57 {strides = array<i32>} : memref<2x2048xf32, #tpu.memory_space<vmem>>, vector<2x128xf32>,
    %c22 = arith.constant 22 : index
    %c0_41 = arith.constant 0 : index
    %59 = vector.load %arg10[%c22, %c0_41] : memref<32x128xf32, #tpu.memory_space<vmem>>, vector<2x128xf32>
    %c0_42 = arith.constant 0 : index
    %c1408 = arith.constant 1408 : index
    %60 = vector.load %arg11[%c0_42, %c1408] : memref<2x2048xf32, #tpu.memory_space<vmem>>, vector<2x128xf32>
    tpu.vector_store %arg11[%c0_42, %c1408], %59 {strides = array<i32>} : memref<2x2048xf32, #tpu.memory_space<vmem>>, vector<2x128xf32>,
    %c24 = arith.constant 24 : index
    %c0_43 = arith.constant 0 : index
    %61 = vector.load %arg10[%c24, %c0_43] : memref<32x128xf32, #tpu.memory_space<vmem>>, vector<2x128xf32>
    %c0_44 = arith.constant 0 : index
    %c1536 = arith.constant 1536 : index
    %62 = vector.load %arg11[%c0_44, %c1536] : memref<2x2048xf32, #tpu.memory_space<vmem>>, vector<2x128xf32>
    tpu.vector_store %arg11[%c0_44, %c1536], %61 {strides = array<i32>} : memref<2x2048xf32, #tpu.memory_space<vmem>>, vector<2x128xf32>,
    %c26 = arith.constant 26 : index
    %c0_45 = arith.constant 0 : index
    %63 = vector.load %arg10[%c26, %c0_45] : memref<32x128xf32, #tpu.memory_space<vmem>>, vector<2x128xf32>
    %c0_46 = arith.constant 0 : index
    %c1664 = arith.constant 1664 : index
    %64 = vector.load %arg11[%c0_46, %c1664] : memref<2x2048xf32, #tpu.memory_space<vmem>>, vector<2x128xf32>
    tpu.vector_store %arg11[%c0_46, %c1664], %63 {strides = array<i32>} : memref<2x2048xf32, #tpu.memory_space<vmem>>, vector<2x128xf32>,
    %c28 = arith.constant 28 : index
    %c0_47 = arith.constant 0 : index
    %65 = vector.load %arg10[%c28, %c0_47] : memref<32x128xf32, #tpu.memory_space<vmem>>, vector<2x128xf32>
    %c0_48 = arith.constant 0 : index
    %c1792 = arith.constant 1792 : index
    %66 = vector.load %arg11[%c0_48, %c1792] : memref<2x2048xf32, #tpu.memory_space<vmem>>, vector<2x128xf32>
    tpu.vector_store %arg11[%c0_48, %c1792], %65 {strides = array<i32>} : memref<2x2048xf32, #tpu.memory_space<vmem>>, vector<2x128xf32>,
    %c30 = arith.constant 30 : index
    %c0_49 = arith.constant 0 : index
    %67 = vector.load %arg10[%c30, %c0_49] : memref<32x128xf32, #tpu.memory_space<vmem>>, vector<2x128xf32>
    %c0_50 = arith.constant 0 : index
    %c1920 = arith.constant 1920 : index
    %68 = vector.load %arg11[%c0_50, %c1920] : memref<2x2048xf32, #tpu.memory_space<vmem>>, vector<2x128xf32>
    tpu.vector_store %arg11[%c0_50, %c1920], %67 {strides = array<i32>} : memref<2x2048xf32, #tpu.memory_space<vmem>>, vector<2x128xf32>,
    %c0_51 = arith.constant 0 : index
    %c0_52 = arith.constant 0 : index
    %69 = vector.load %arg11[%c0_51, %c0_52] : memref<2x2048xf32, #tpu.memory_space<vmem>>, vector<2x2048xf32>
    %c0_53 = arith.constant 0 : index
    %c0_54 = arith.constant 0 : index
    %70 = vector.load %arg6[%c0_53, %c0_54] : memref<1x2048xf32, #tpu.memory_space<vmem>>, vector<1x2048xf32>
    %71 = vector.broadcast %70 : vector<1x2048xf32> to vector<2x2048xf32>
    %72 = arith.mulf %69, %71 : vector<2x2048xf32>
    %cst_55 = arith.constant dense<0.000000e+00> : vector<2xf32>
    %73 = vector.multi_reduction <add>, %72, %cst_55 [1] : vector<2x2048xf32> to vector<2xf32>
    %74 = vector.shape_cast %73 : vector<2xf32> to vector<2x1xf32>
    %c0_i32_56 = arith.constant 0 : i32
    %75 = tpu.memref_slice %arg12[%c0_i32_56] : memref<1x!tpu.dma_semaphore, #tpu.memory_space<semaphore_mem>> -> memref<1x!tpu.dma_semaphore, #tpu.memory_space<semaphore_mem>>
    %76 = tpu.memref_squeeze %75 : memref<1x!tpu.dma_semaphore, #tpu.memory_space<semaphore_mem>> -> memref<!tpu.dma_semaphore, #tpu.memory_space<semaphore_mem>>
    tpu.wait_dma2 semaphore(%76 : memref<!tpu.dma_semaphore, #tpu.memory_space<semaphore_mem>>) src(%arg3 : memref<2048x512xbf16, #tpu.memory_space<any>>) dst(%arg9 : memref<2048x512xbf16, #tpu.memory_space<vmem>>)
    %77 = arith.truncf %69 : vector<2x2048xf32> to vector<2x2048xbf16>
    %c0_57 = arith.constant 0 : index
    %c0_58 = arith.constant 0 : index
    %78 = vector.load %arg9[%c0_57, %c0_58] : memref<2048x512xbf16, #tpu.memory_space<vmem>>, vector<2048x512xbf16>
    %cst_59 = arith.constant dense<0.000000e+00> : vector<2x512xf32>
    %79 = tpu.matmul %77, %78, %cst_59 {dimension_numbers = #tpu.dot_dimension_numbers<[1], [0], [0], [1], [0, 0, 1, 1], [], []>} : vector<2x2048xbf16>, vector<2048x512xbf16>, vector<2x512xf32> -> vector<2x512xf32>
    %c0_60 = arith.constant 0 : index
    %c0_61 = arith.constant 0 : index
    %80 = vector.load %arg4[%c0_60, %c0_61] : memref<3x512xf32, #tpu.memory_space<vmem>>, vector<1x512xf32>
    %81 = vector.broadcast %80 : vector<1x512xf32> to vector<2x512xf32>
    %82 = arith.addf %79, %81 : vector<2x512xf32>
    %c1_62 = arith.constant 1 : index
    %c0_63 = arith.constant 0 : index
    %83 = vector.load %arg4[%c1_62, %c0_63] : memref<3x512xf32, #tpu.memory_space<vmem>>, vector<1x512xf32>
    %c2_64 = arith.constant 2 : index
    %c0_65 = arith.constant 0 : index
    %84 = vector.load %arg4[%c2_64, %c0_65] : memref<3x512xf32, #tpu.memory_space<vmem>>, vector<1x512xf32>
    %cst_66 = arith.constant dense<0.000000e+00> : vector<512xf32>
    %85 = vector.multi_reduction <add>, %82, %cst_66 [0] : vector<2x512xf32> to vector<512xf32>
    %86 = vector.shape_cast %85 : vector<512xf32> to vector<1x512xf32>
    %cst_67 = arith.constant 5.000000e-01 : f32
    %87 = vector.broadcast %cst_67 : f32 to vector<1x512xf32>
    %88 = arith.mulf %86, %87 : vector<1x512xf32>
    %89 = vector.broadcast %88 : vector<1x512xf32> to vector<2x512xf32>
    %90 = arith.subf %82, %89 : vector<2x512xf32>
    %91 = arith.mulf %90, %90 : vector<2x512xf32>
    %cst_68 = arith.constant dense<0.000000e+00> : vector<512xf32>
    %92 = vector.multi_reduction <add>, %91, %cst_68 [0] : vector<2x512xf32> to vector<512xf32>
    %93 = vector.shape_cast %92 : vector<512xf32> to vector<1x512xf32>
    %cst_69 = arith.constant 5.000000e-01 : f32
    %94 = vector.broadcast %cst_69 : f32 to vector<1x512xf32>
    %95 = arith.mulf %93, %94 : vector<1x512xf32>
    %cst_70 = arith.constant 9.99999974E-6 : f32
    %96 = vector.broadcast %cst_70 : f32 to vector<1x512xf32>
    %97 = arith.addf %95, %96 : vector<1x512xf32>
    %98 = math.rsqrt %97 : vector<1x512xf32>
    %99 = arith.mulf %83, %98 : vector<1x512xf32>
    %100 = vector.broadcast %99 : vector<1x512xf32> to vector<2x512xf32>
    %101 = arith.mulf %82, %100 : vector<2x512xf32>
    %102 = arith.mulf %88, %99 : vector<1x512xf32>
    %103 = arith.subf %84, %102 : vector<1x512xf32>
    %104 = vector.broadcast %103 : vector<1x512xf32> to vector<2x512xf32>
    %105 = arith.addf %101, %104 : vector<2x512xf32>
    %cst_71 = arith.constant 0.000000e+00 : f32
    %106 = vector.broadcast %cst_71 : f32 to vector<2x512xf32>
    %107 = arith.cmpf ogt, %105, %106 : vector<2x512xf32>
    %cst_72 = arith.constant 0.00999999977 : f32
    %108 = vector.broadcast %cst_72 : f32 to vector<2x512xf32>
    %109 = arith.mulf %108, %105 : vector<2x512xf32>
    %110 = arith.select %107, %105, %109 : vector<2x512xi1>, vector<2x512xf32>
    %111 = arith.truncf %110 : vector<2x512xf32> to vector<2x512xbf16>
    %c0_73 = arith.constant 0 : index
    %c0_74 = arith.constant 0 : index
    %112 = vector.load %arg5[%c0_73, %c0_74] : memref<512x128xbf16, #tpu.memory_space<vmem>>, vector<512x128xbf16>
    %cst_75 = arith.constant dense<0.000000e+00> : vector<2x128xf32>
    %113 = tpu.matmul %111, %112, %cst_75 {dimension_numbers = #tpu.dot_dimension_numbers<[1], [0], [0], [1], [0, 0, 1, 1], [], []>} : vector<2x512xbf16>, vector<512x128xbf16>, vector<2x128xf32> -> vector<2x128xf32>
    %c0_76 = arith.constant 0 : index
    %c0_77 = arith.constant 0 : index
    %114 = vector.load %arg7[%c0_76, %c0_77] : memref<2x128xf32, #tpu.memory_space<vmem>>, vector<1x128xf32>
    %115 = vector.broadcast %114 : vector<1x128xf32> to vector<2x128xf32>
    %116 = arith.addf %113, %115 : vector<2x128xf32>
    %cst_78 = arith.constant dense<0.000000e+00> : vector<2xf32>
    %117 = vector.multi_reduction <add>, %116, %cst_78 [1] : vector<2x128xf32> to vector<2xf32>
    %118 = vector.shape_cast %117 : vector<2xf32> to vector<2x1xf32>
    %cst_79 = arith.constant 2.500000e-01 : f32
    %119 = vector.broadcast %cst_79 : f32 to vector<2x1xf32>
    %120 = arith.mulf %118, %119 : vector<2x1xf32>
    %c1_80 = arith.constant 1 : index
    %c0_81 = arith.constant 0 : index
    %121 = vector.load %arg7[%c1_80, %c0_81] : memref<2x128xf32, #tpu.memory_space<vmem>>, vector<1x128xf32>
    %122 = vector.broadcast %74 : vector<2x1xf32> to vector<2x128xf32>
    %123 = vector.broadcast %121 : vector<1x128xf32> to vector<2x128xf32>
    %124 = arith.addf %122, %123 : vector<2x128xf32>
    %125 = arith.addf %124, %116 : vector<2x128xf32>
    %126 = vector.broadcast %120 : vector<2x1xf32> to vector<2x128xf32>
    %127 = arith.subf %125, %126 : vector<2x128xf32>
    %c0_82 = arith.constant 0 : index
    %c0_83 = arith.constant 0 : index
    %128 = vector.load %arg8[%c0_82, %c0_83] : memref<2x128xf32, #tpu.memory_space<vmem>>, vector<2x128xf32>
    tpu.vector_store %arg8[%c0_82, %c0_83], %127 {strides = array<i32>} : memref<2x128xf32, #tpu.memory_space<vmem>>, vector<2x128xf32>,
    return
  }
}

</mosaic_0001>

<bundles_post_ra>
// kernel: dueling_qnet_forward.3
= control target key start
LH: loop header
LB: loop body
LE: loop exit
PB: predicated region body
PF: predicated region fallthrough
CT: control target
= control target key end

     0   :  { %v2732_v0 = vmov 0   ;;  %vm1483_vm3 = vcmask 261120   ;;  %s5231_s1 = inlined_call_operand.vmem [shape: bf16[256,32], index: 1, kind: input, shape index: {}]   ;;  %s5232_s0 = inlined_call_operand.vmem [shape: bf16[800,256], index: 0, kind: input, shape index: {}]   ;;  %s5233_s2 = inlined_call_operand.vmem [shape: f32[3,32], index: 2, kind: input, shape index: {}]   ;;  %s5234_s3 = inlined_call_operand.vmem [shape: f32[800,32], index: 3, kind: output, shape index: {}]  }
   0x1   :  { %748 = vmatprep.subr.bf16.mxu0 %v2732_v0  ;;  %v2563_v1 = vld [vmem:[%s5231_s1 + $0x38] sm:$0xff]   ;;  %2530 = vmatprep.subr.bf16.mxu1 %v2732_v0  ;;  %v2564_v2 = vld [vmem:[%s5231_s1 + $0x30] sm:$0xff]   ;;  %v2565_v3 = vld [vmem:[%s5231_s1 + $0x28] sm:$0xff]  }
   0x2   :  { %749 = vmatpush1.bf16.msra.mxu0 %v2563_v1  ;;  %2546 = vmatpush1.bf16.msra.mxu1 %v2563_v1  ;;  %v2566_v4 = vld [vmem:[%s5231_s1 + $0x20] sm:$0xff]   ;;  %v2567_v5 = vld [vmem:[%s5231_s1 + $0x18] sm:$0xff]   ;;  %v2568_v7 = vld [vmem:[%s5231_s1 + $0x10] sm:$0xff]  }
   0x3   :  { %750 = vmatprep.subr.bf16.mxu0 %v2732_v0  ;;  %2531 = vmatprep.subr.bf16.mxu1 %v2732_v0  ;;  %v2581_v6 = vld [vmem:[%s5232_s0 + $0x4] ss:$8 sps:$4 sm:$0xff]   ;;  %v2571_v10 = vld [vmem:[%s5231_s1 + $0x78] sm:$0xff]   ;;  %v2572_v12 = vld [vmem:[%s5231_s1 + $0x70] sm:$0xff]  }
   0x4   :  { %780 = vmatprep.mubr.bf16.mxu0 %v2581_v6  ;;  %v2569_v8 = vld [vmem:[%s5231_s1 + $0x8] sm:$0xff]   ;;  %v2570_v9 = vld [vmem:[%s5231_s1] sm:$0xff]   ;;  %v2617_v11 = vld [vmem:[%s5232_s0 + $0x194] ss:$8 sps:$4 sm:$0xff]  }
   0x5   :  { %980 = vmatprep.mubr.bf16.mxu1 %v2617_v11  ;;  %v2573_v13 = vld [vmem:[%s5231_s1 + $0x68] sm:$0xff]   ;;  %v2574_v14 = vld [vmem:[%s5231_s1 + $0x60] sm:$0xff]   ;;  %v2575_v15 = vld [vmem:[%s5231_s1 + $0x58] sm:$0xff]  }
   0x6   :  { %751 = vmatpush1.bf16.msra.mxu0 %v2564_v2  ;;  %2547 = vmatpush1.bf16.msra.mxu1 %v2564_v2  ;;  %v2576_v16 = vld [vmem:[%s5231_s1 + $0x50] sm:$0xff]   ;;  %v2577_v17 = vld [vmem:[%s5231_s1 + $0x48] sm:$0xff]   ;;  %v2578_v18 = vld [vmem:[%s5231_s1 + $0x40] sm:$0xff]  }
   0x7   :  { %752 = vmatprep.subr.bf16.mxu0 %v2732_v0  ;;  %2532 = vmatprep.subr.bf16.mxu1 %v2732_v0  ;;  %v2579_v19 = vld [vmem:[%s5232_s0] ss:$8 sps:$4 sm:$0xff]   ;;  %v2615_v20 = vld [vmem:[%s5232_s0 + $0x190] ss:$8 sps:$4 sm:$0xff]   ;;  %v2582_v21 = vld [vmem:[%s5232_s0 + $0x14] ss:$8 sps:$4 sm:$0xff]  }
   0x8   :  { %v2621_v22 = vld [vmem:[%s5232_s0 + $0x1a4] ss:$8 sps:$4 sm:$0xff]   ;;  %v2584_v23 = vld [vmem:[%s5232_s0 + $0x10] ss:$8 sps:$4 sm:$0xff]   ;;  %v2623_v24 = vld [vmem:[%s5232_s0 + $0x1a0] ss:$8 sps:$4 sm:$0xff]  }
   0x9   :  { %v2585_v25 = vld [vmem:[%s5232_s0 + $0x24] ss:$8 sps:$4 sm:$0xff]   ;;  %v2627_v26 = vld [vmem:[%s5232_s0 + $0x1b4] ss:$8 sps:$4 sm:$0xff]   ;;  %v2587_v27 = vld [vmem:[%s5232_s0 + $0x20] ss:$8 sps:$4 sm:$0xff]  }
   0xa   :  { %753 = vmatpush1.bf16.msra.mxu0 %v2565_v3  ;;  %2548 = vmatpush1.bf16.msra.mxu1 %v2565_v3  ;;  %v2629_v28 = vld [vmem:[%s5232_s0 + $0x1b0] ss:$8 sps:$4 sm:$0xff]   ;;  %v2588_v29 = vld [vmem:[%s5232_s0 + $0x34] ss:$8 sps:$4 sm:$0xff]   ;;  %v2633_v30 = vld [vmem:[%s5232_s0 + $0x1c4] ss:$8 sps:$4 sm:$0xff]  }
   0xb   :  { %754 = vmatprep.subr.bf16.mxu0 %v2732_v0  ;;  %2533 = vmatprep.subr.bf16.mxu1 %v2732_v0  ;;  %v2590_v31 = vld [vmem:[%s5232_s0 + $0x30] ss:$8 sps:$4 sm:$0xff]   ;;  %v2635_v32 = vld [vmem:[%s5232_s0 + $0x1c0] ss:$8 sps:$4 sm:$0xff]   ;;  %v2591_v33 = vld [vmem:[%s5232_s0 + $0x44] ss:$8 sps:$4 sm:$0xff]  }
   0xc   :  { %v2639_v34 = vld [vmem:[%s5232_s0 + $0x1d4] ss:$8 sps:$4 sm:$0xff]   ;;  %v2593_v35 = vld [vmem:[%s5232_s0 + $0x40] ss:$8 sps:$4 sm:$0xff]   ;;  %v2641_v36 = vld [vmem:[%s5232_s0 + $0x1d0] ss:$8 sps:$4 sm:$0xff]  }
   0xd   :  { %v2594_v37 = vld [vmem:[%s5232_s0 + $0x54] ss:$8 sps:$4 sm:$0xff]   ;;  %v2645_v38 = vld [vmem:[%s5232_s0 + $0x1e4] ss:$8 sps:$4 sm:$0xff]   ;;  %v2596_v39 = vld [vmem:[%s5232_s0 + $0x50] ss:$8 sps:$4 sm:$0xff]  }
   0xe   :  { %755 = vmatpush1.bf16.msra.mxu0 %v2566_v4  ;;  %2549 = vmatpush1.bf16.msra.mxu1 %v2566_v4  ;;  %v2647_v40 = vld [vmem:[%s5232_s0 + $0x1e0] ss:$8 sps:$4 sm:$0xff]   ;;  %v2597_v41 = vld [vmem:[%s5232_s0 + $0x64] ss:$8 sps:$4 sm:$0xff]   ;;  %v2651_v42 = vld [vmem:[%s5232_s0 + $0x1f4] ss:$8 sps:$4 sm:$0xff]  }
   0xf   :  { %756 = vmatprep.subr.bf16.mxu0 %v2732_v0  ;;  %2534 = vmatprep.subr.bf16.mxu1 %v2732_v0  ;;  %v2599_v43 = vld [vmem:[%s5232_s0 + $0x60] ss:$8 sps:$4 sm:$0xff]   ;;  %v2653_v44 = vld [vmem:[%s5232_s0 + $0x1f0] ss:$8 sps:$4 sm:$0xff]   ;;  %v2600_v45 = vld [vmem:[%s5232_s0 + $0x74] ss:$8 sps:$4 sm:$0xff]  }
  0x10   :  { %v2657_v46 = vld [vmem:[%s5232_s0 + $0x204] ss:$8 sps:$4 sm:$0xff]   ;;  %v2602_v47 = vld [vmem:[%s5232_s0 + $0x70] ss:$8 sps:$4 sm:$0xff]   ;;  %v2659_v48 = vld [vmem:[%s5232_s0 + $0x200] ss:$8 sps:$4 sm:$0xff]  }
  0x11   :  { %v2603_v49 = vld [vmem:[%s5232_s0 + $0x84] ss:$8 sps:$4 sm:$0xff]   ;;  %v2663_v50 = vld [vmem:[%s5232_s0 + $0x214] ss:$8 sps:$4 sm:$0xff]   ;;  %v2605_v51 = vld [vmem:[%s5232_s0 + $0x80] ss:$8 sps:$4 sm:$0xff]  }
  0x12   :  { %757 = vmatpush1.bf16.msra.mxu0 %v2567_v5  ;;  %2550 = vmatpush1.bf16.msra.mxu1 %v2567_v5  ;;  %v2665_v52 = vld [vmem:[%s5232_s0 + $0x210] ss:$8 sps:$4 sm:$0xff]   ;;  %v2606_v53 = vld [vmem:[%s5232_s0 + $0x94] ss:$8 sps:$4 sm:$0xff]   ;;  %v2669_v54 = vld [vmem:[%s5232_s0 + $0x224] ss:$8 sps:$4 sm:$0xff]  }
  0x13   :  { %758 = vmatprep.subr.bf16.mxu0 %v2732_v0  ;;  %2535 = vmatprep.subr.bf16.mxu1 %v2732_v0  ;;  %v2608_v55 = vld [vmem:[%s5232_s0 + $0x90] ss:$8 sps:$4 sm:$0xff]   ;;  %v2671_v56 = vld [vmem:[%s5232_s0 + $0x220] ss:$8 sps:$4 sm:$0xff]   ;;  %v2609_v57 = vld [vmem:[%s5232_s0 + $0xa4] ss:$8 sps:$4 sm:$0xff]  }
  0x14   :  { %v2675_v58 = vld [vmem:[%s5232_s0 + $0x234] ss:$8 sps:$4 sm:$0xff]   ;;  %v2611_v59 = vld [vmem:[%s5232_s0 + $0xa0] ss:$8 sps:$4 sm:$0xff]   ;;  %v2677_v60 = vld [vmem:[%s5232_s0 + $0x230] ss:$8 sps:$4 sm:$0xff]  }
  0x15   :  { %v2612_v61 = vld [vmem:[%s5232_s0 + $0xb4] ss:$8 sps:$4 sm:$0xff]   ;;  %v2681_v62 = vld [vmem:[%s5232_s0 + $0x244] ss:$8 sps:$4 sm:$0xff]   ;;  %v2614_v63 = vld [vmem:[%s5232_s0 + $0xb0] ss:$8 sps:$4 sm:$0xff]  }
  0x16   :  { %759 = vmatpush1.bf16.msra.mxu0 %v2568_v7  ;;  %2551 = vmatpush1.bf16.msra.mxu1 %v2568_v7  ;;  %v2618_v1 = vld [vmem:[%s5232_s0 + $0xc4] ss:$8 sps:$4 sm:$0xff]   ;;  %v2687_v2 = vld [vmem:[%s5232_s0 + $0x254] ss:$8 sps:$4 sm:$0xff]   ;;  %v2620_v3 = vld [vmem:[%s5232_s0 + $0xc0] ss:$8 sps:$4 sm:$0xff]  }
  0x17   :  { %760 = vmatprep.subr.bf16.mxu0 %v2732_v0  ;;  %2536 = vmatprep.subr.bf16.mxu1 %v2732_v0  ;;  %v2689_v4 = vld [vmem:[%s5232_s0 + $0x250] ss:$8 sps:$4 sm:$0xff]   ;;  %v2624_v5 = vld [vmem:[%s5232_s0 + $0xd4] ss:$8 sps:$4 sm:$0xff]   ;;  %v2693_v6 = vld [vmem:[%s5232_s0 + $0x264] ss:$8 sps:$4 sm:$0xff]  }
  0x18   :  { %v2626_v7 = vld [vmem:[%s5232_s0 + $0xd0] ss:$8 sps:$4 sm:$0xff]   ;;  %v2632_v11 = vld [vmem:[%s5232_s0 + $0xe0] ss:$8 sps:$4 sm:$0xff]  }
  0x1a   :  { %761 = vmatpush1.bf16.msra.mxu0 %v2569_v8  ;;  %2552 = vmatpush1.bf16.msra.mxu1 %v2569_v8  ;;  %v2695_v8 = vld [vmem:[%s5232_s0 + $0x260] ss:$8 sps:$4 sm:$0xff]  }
  0x1b   :  { %762 = vmatprep.subr.bf16.mxu0 %v2732_v0  ;;  %2537 = vmatprep.subr.bf16.mxu1 %v2732_v0 }
  0x1e   :  { %763 = vmatpush1.bf16.msra.mxu0 %v2570_v9  ;;  %2553 = vmatpush1.bf16.msra.mxu1 %v2570_v9  ;;  %v2630_v9 = vld [vmem:[%s5232_s0 + $0xe4] ss:$8 sps:$4 sm:$0xff]  }
  0x1f   :  { %764 = vmatprep.subr.bf16.mxu0 %v2732_v0  ;;  %2538 = vmatprep.subr.bf16.mxu1 %v2732_v0 }
  0x22   :  { %765 = vmatpush2.bf16.msra.mxu0 %v2571_v10  ;;  %2554 = vmatpush2.bf16.msra.mxu1 %v2571_v10  ;;  %v2696_v10 = vld [vmem:[%s5232_s0 + $0x274] ss:$8 sps:$4 sm:$0xff]  }
  0x23   :  { %766 = vmatprep.subr.bf16.mxu0 %v2732_v0  ;;  %2539 = vmatprep.subr.bf16.mxu1 %v2732_v0 }
  0x26   :  { %767 = vmatpush2.bf16.msra.mxu0 %v2572_v12  ;;  %2555 = vmatpush2.bf16.msra.mxu1 %v2572_v12  ;;  %v2698_v12 = vld [vmem:[%s5232_s0 + $0x270] ss:$8 sps:$4 sm:$0xff]  }
  0x27   :  { %768 = vmatprep.subr.bf16.mxu0 %v2732_v0  ;;  %2540 = vmatprep.subr.bf16.mxu1 %v2732_v0 }
  0x2a   :  { %769 = vmatpush2.bf16.msra.mxu0 %v2573_v13  ;;  %2556 = vmatpush2.bf16.msra.mxu1 %v2573_v13  ;;  %v2636_v13 = vld [vmem:[%s5232_s0 + $0xf4] ss:$8 sps:$4 sm:$0xff]  }
  0x2b   :  { %770 = vmatprep.subr.bf16.mxu0 %v2732_v0  ;;  %2541 = vmatprep.subr.bf16.mxu1 %v2732_v0 }
  0x2e   :  { %771 = vmatpush2.bf16.msra.mxu0 %v2574_v14  ;;  %2557 = vmatpush2.bf16.msra.mxu1 %v2574_v14  ;;  %v2699_v14 = vld [vmem:[%s5232_s0 + $0x284] ss:$8 sps:$4 sm:$0xff]  }
  0x2f   :  { %772 = vmatprep.subr.bf16.mxu0 %v2732_v0  ;;  %2542 = vmatprep.subr.bf16.mxu1 %v2732_v0 }
  0x32   :  { %773 = vmatpush2.bf16.msra.mxu0 %v2575_v15  ;;  %2558 = vmatpush2.bf16.msra.mxu1 %v2575_v15  ;;  %v2638_v15 = vld [vmem:[%s5232_s0 + $0xf0] ss:$8 sps:$4 sm:$0xff]  }
  0x33   :  { %774 = vmatprep.subr.bf16.mxu0 %v2732_v0  ;;  %2543 = vmatprep.subr.bf16.mxu1 %v2732_v0 }
  0x36   :  { %775 = vmatpush2.bf16.msra.mxu0 %v2576_v16  ;;  %2559 = vmatpush2.bf16.msra.mxu1 %v2576_v16  ;;  %v2701_v16 = vld [vmem:[%s5232_s0 + $0x280] ss:$8 sps:$4 sm:$0xff]  }
  0x37   :  { %776 = vmatprep.subr.bf16.mxu0 %v2732_v0  ;;  %2544 = vmatprep.subr.bf16.mxu1 %v2732_v0 }
  0x3a   :  { %777 = vmatpush2.bf16.msra.mxu0 %v2577_v17  ;;  %2560 = vmatpush2.bf16.msra.mxu1 %v2577_v17  ;;  %v2642_v17 = vld [vmem:[%s5232_s0 + $0x104] ss:$8 sps:$4 sm:$0xff]  }
  0x3b   :  { %778 = vmatprep.subr.bf16.mxu0 %v2732_v0  ;;  %2545 = vmatprep.subr.bf16.mxu1 %v2732_v0  ;;  %v2683_v0 = vld [vmem:[%s5232_s0 + $0x240] ss:$8 sps:$4 sm:$0xff]  }
  0x3e   :  { %779 = vmatpush2.bf16.msra.mxu0 %v2578_v18  ;;  %2561 = vmatpush2.bf16.msra.mxu1 %v2578_v18  ;;  %v2702_v18 = vld [vmem:[%s5232_s0 + $0x294] ss:$8 sps:$4 sm:$0xff]  }
  0x41   :  { %781 = vmatmul.mubr.bf16.vlgmr.msra.gmra.mxu0 %v2579_v19  ;;  %981 = vmatmul.mubr.bf16.vlgmr.msra.gmra.mxu1 %v2615_v20  ;;  %v2644_v19 = vld [vmem:[%s5232_s0 + $0x100] ss:$8 sps:$4 sm:$0xff]   ;;  %v2704_v20 = vld [vmem:[%s5232_s0 + $0x290] ss:$8 sps:$4 sm:$0xff]  }
  0x42   :  { %788 = vmatprep.mubr.bf16.mxu0 %v2582_v21  ;;  %988 = vmatprep.mubr.bf16.mxu1 %v2621_v22  ;;  %v2648_v21 = vld [vmem:[%s5232_s0 + $0x114] ss:$8 sps:$4 sm:$0xff]   ;;  %v2705_v22 = vld [vmem:[%s5232_s0 + $0x2a4] ss:$8 sps:$4 sm:$0xff]  }
  0x49   :  { %789 = vmatmul.mubr.bf16.gmra.mxu0 %v2584_v23  ;;  %989 = vmatmul.mubr.bf16.gmra.mxu1 %v2623_v24  ;;  %v2650_v23 = vld [vmem:[%s5232_s0 + $0x110] ss:$8 sps:$4 sm:$0xff]   ;;  %v2707_v24 = vld [vmem:[%s5232_s0 + $0x2a0] ss:$8 sps:$4 sm:$0xff]  }
  0x4a   :  { %796 = vmatprep.mubr.bf16.mxu0 %v2585_v25  ;;  %996 = vmatprep.mubr.bf16.mxu1 %v2627_v26  ;;  %v2654_v25 = vld [vmem:[%s5232_s0 + $0x124] ss:$8 sps:$4 sm:$0xff]   ;;  %v2708_v26 = vld [vmem:[%s5232_s0 + $0x2b4] ss:$8 sps:$4 sm:$0xff]  }
  0x51   :  { %797 = vmatmul.mubr.bf16.gmra.mxu0 %v2587_v27  ;;  %997 = vmatmul.mubr.bf16.gmra.mxu1 %v2629_v28  ;;  %v2656_v27 = vld [vmem:[%s5232_s0 + $0x120] ss:$8 sps:$4 sm:$0xff]   ;;  %v2710_v28 = vld [vmem:[%s5232_s0 + $0x2b0] ss:$8 sps:$4 sm:$0xff]  }
  0x52   :  { %804 = vmatprep.mubr.bf16.mxu0 %v2588_v29  ;;  %1004 = vmatprep.mubr.bf16.mxu1 %v2633_v30  ;;  %v2660_v29 = vld [vmem:[%s5232_s0 + $0x134] ss:$8 sps:$4 sm:$0xff]   ;;  %v2711_v30 = vld [vmem:[%s5232_s0 + $0x2c4] ss:$8 sps:$4 sm:$0xff]  }
  0x59   :  { %805 = vmatmul.mubr.bf16.gmra.mxu0 %v2590_v31  ;;  %1005 = vmatmul.mubr.bf16.gmra.mxu1 %v2635_v32  ;;  %v2662_v31 = vld [vmem:[%s5232_s0 + $0x130] ss:$8 sps:$4 sm:$0xff]   ;;  %v2713_v32 = vld [vmem:[%s5232_s0 + $0x2c0] ss:$8 sps:$4 sm:$0xff]  }
  0x5a   :  { %812 = vmatprep.mubr.bf16.mxu0 %v2591_v33  ;;  %1012 = vmatprep.mubr.bf16.mxu1 %v2639_v34  ;;  %v2666_v33 = vld [vmem:[%s5232_s0 + $0x144] ss:$8 sps:$4 sm:$0xff]   ;;  %v2714_v34 = vld [vmem:[%s5232_s0 + $0x2d4] ss:$8 sps:$4 sm:$0xff]  }
  0x61   :  { %813 = vmatmul.mubr.bf16.gmra.mxu0 %v2593_v35  ;;  %1013 = vmatmul.mubr.bf16.gmra.mxu1 %v2641_v36  ;;  %v2668_v35 = vld [vmem:[%s5232_s0 + $0x140] ss:$8 sps:$4 sm:$0xff]   ;;  %v2716_v36 = vld [vmem:[%s5232_s0 + $0x2d0] ss:$8 sps:$4 sm:$0xff]  }
  0x62   :  { %820 = vmatprep.mubr.bf16.mxu0 %v2594_v37  ;;  %1020 = vmatprep.mubr.bf16.mxu1 %v2645_v38  ;;  %v2672_v37 = vld [vmem:[%s5232_s0 + $0x154] ss:$8 sps:$4 sm:$0xff]   ;;  %v2717_v38 = vld [vmem:[%s5232_s0 + $0x2e4] ss:$8 sps:$4 sm:$0xff]  }
  0x69   :  { %821 = vmatmul.mubr.bf16.gmra.mxu0 %v2596_v39  ;;  %1021 = vmatmul.mubr.bf16.gmra.mxu1 %v2647_v40  ;;  %v2674_v39 = vld [vmem:[%s5232_s0 + $0x150] ss:$8 sps:$4 sm:$0xff]   ;;  %v2719_v40 = vld [vmem:[%s5232_s0 + $0x2e0] ss:$8 sps:$4 sm:$0xff]  }
  0x6a   :  { %828 = vmatprep.mubr.bf16.mxu0 %v2597_v41  ;;  %1028 = vmatprep.mubr.bf16.mxu1 %v2651_v42  ;;  %v2678_v41 = vld [vmem:[%s5232_s0 + $0x164] ss:$8 sps:$4 sm:$0xff]   ;;  %v2720_v42 = vld [vmem:[%s5232_s0 + $0x2f4] ss:$8 sps:$4 sm:$0xff]  }
  0x71   :  { %829 = vmatmul.mubr.bf16.gmra.mxu0 %v2599_v43  ;;  %1029 = vmatmul.mubr.bf16.gmra.mxu1 %v2653_v44  ;;  %v2680_v43 = vld [vmem:[%s5232_s0 + $0x160] ss:$8 sps:$4 sm:$0xff]   ;;  %v2722_v44 = vld [vmem:[%s5232_s0 + $0x2f0] ss:$8 sps:$4 sm:$0xff]  }
  0x72   :  { %836 = vmatprep.mubr.bf16.mxu0 %v2600_v45  ;;  %1036 = vmatprep.mubr.bf16.mxu1 %v2657_v46  ;;  %v2684_v45 = vld [vmem:[%s5232_s0 + $0x174] ss:$8 sps:$4 sm:$0xff]   ;;  %v2723_v46 = vld [vmem:[%s5232_s0 + $0x304] ss:$8 sps:$4 sm:$0xff]  }
  0x79   :  { %837 = vmatmul.mubr.bf16.gmra.mxu0 %v2602_v47  ;;  %1037 = vmatmul.mubr.bf16.gmra.mxu1 %v2659_v48  ;;  %v2686_v47 = vld [vmem:[%s5232_s0 + $0x170] ss:$8 sps:$4 sm:$0xff]   ;;  %v2725_v48 = vld [vmem:[%s5232_s0 + $0x300] ss:$8 sps:$4 sm:$0xff]  }
  0x7a   :  { %844 = vmatprep.mubr.bf16.mxu0 %v2603_v49  ;;  %1044 = vmatprep.mubr.bf16.mxu1 %v2663_v50  ;;  %v2690_v49 = vld [vmem:[%s5232_s0 + $0x184] ss:$8 sps:$4 sm:$0xff]   ;;  %v2726_v50 = vld [vmem:[%s5232_s0 + $0x314] ss:$8 sps:$4 sm:$0xff]  }
  0x81   :  { %845 = vmatmul.mubr.bf16.gmra.mxu0 %v2605_v51  ;;  %1045 = vmatmul.mubr.bf16.gmra.mxu1 %v2665_v52  ;;  %v2692_v51 = vld [vmem:[%s5232_s0 + $0x180] ss:$8 sps:$4 sm:$0xff]   ;;  %v2728_v52 = vld [vmem:[%s5232_s0 + $0x310] ss:$8 sps:$4 sm:$0xff]  }
  0x82   :  { %852 = vmatprep.mubr.bf16.mxu0 %v2606_v53  ;;  %1052 = vmatprep.mubr.bf16.mxu1 %v2669_v54 }
  0x89   :  { %853 = vmatmul.mubr.bf16.gmra.mxu0 %v2608_v55  ;;  %1053 = vmatmul.mubr.bf16.gmra.mxu1 %v2671_v56 }
  0x8a   :  { %860 = vmatprep.mubr.bf16.mxu0 %v2609_v57  ;;  %1060 = vmatprep.mubr.bf16.mxu1 %v2675_v58 }
  0x91   :  { %861 = vmatmul.mubr.bf16.gmra.mxu0 %v2611_v59  ;;  %1061 = vmatmul.mubr.bf16.gmra.mxu1 %v2677_v60 }
  0x92   :  { %868 = vmatprep.mubr.bf16.mxu0 %v2612_v61  ;;  %1068 = vmatprep.mubr.bf16.mxu1 %v2681_v62 }
  0x99   :  { %869 = vmatmul.mubr.bf16.gmra.mxu0 %v2614_v63  ;;  %1069 = vmatmul.mubr.bf16.gmra.mxu1 %v2683_v0 }
  0x9a   :  { %876 = vmatprep.mubr.bf16.mxu0 %v2618_v1  ;;  %1076 = vmatprep.mubr.bf16.mxu1 %v2687_v2 }
  0xa1   :  { %877 = vmatmul.mubr.bf16.gmra.mxu0 %v2620_v3  ;;  %1077 = vmatmul.mubr.bf16.gmra.mxu1 %v2689_v4 }
  0xa2   :  { %884 = vmatprep.mubr.bf16.mxu0 %v2624_v5  ;;  %1084 = vmatprep.mubr.bf16.mxu1 %v2693_v6 }
  0xa9   :  { %885 = vmatmul.mubr.bf16.gmra.mxu0 %v2626_v7  ;;  %1085 = vmatmul.mubr.bf16.gmra.mxu1 %v2695_v8 }
  0xaa   :  { %892 = vmatprep.mubr.bf16.mxu0 %v2630_v9  ;;  %1092 = vmatprep.mubr.bf16.mxu1 %v2696_v10 }
  0xb1   :  { %893 = vmatmul.mubr.bf16.gmra.mxu0 %v2632_v11  ;;  %1093 = vmatmul.mubr.bf16.gmra.mxu1 %v2698_v12 }
  0xb2   :  { %900 = vmatprep.mubr.bf16.mxu0 %v2636_v13  ;;  %1100 = vmatprep.mubr.bf16.mxu1 %v2699_v14 }
  0xb9   :  { %901 = vmatmul.mubr.bf16.gmra.mxu0 %v2638_v15  ;;  %1101 = vmatmul.mubr.bf16.gmra.mxu1 %v2701_v16 }
  0xba   :  { %908 = vmatprep.mubr.bf16.mxu0 %v2642_v17  ;;  %1108 = vmatprep.mubr.bf16.mxu1 %v2702_v18 }
  0xc1   :  { %909 = vmatmul.mubr.bf16.gmra.mxu0 %v2644_v19  ;;  %1109 = vmatmul.mubr.bf16.gmra.mxu1 %v2704_v20 }
  0xc2   :  { %916 = vmatprep.mubr.bf16.mxu0 %v2648_v21  ;;  %1116 = vmatprep.mubr.bf16.mxu1 %v2705_v22 }
  0xc9   :  { %917 = vmatmul.mubr.bf16.gmra.mxu0 %v2650_v23  ;;  %1117 = vmatmul.mubr.bf16.gmra.mxu1 %v2707_v24 }
  0xca   :  { %924 = vmatprep.mubr.bf16.mxu0 %v2654_v25  ;;  %1124 = vmatprep.mubr.bf16.mxu1 %v2708_v26 }
  0xd1   :  { %925 = vmatmul.mubr.bf16.gmra.mxu0 %v2656_v27  ;;  %1125 = vmatmul.mubr.bf16.gmra.mxu1 %v2710_v28 }
  0xd2   :  { %932 = vmatprep.mubr.bf16.mxu0 %v2660_v29  ;;  %1132 = vmatprep.mubr.bf16.mxu1 %v2711_v30 }
  0xd9   :  { %933 = vmatmul.mubr.bf16.gmra.mxu0 %v2662_v31  ;;  %1133 = vmatmul.mubr.bf16.gmra.mxu1 %v2713_v32 }
  0xda   :  { %940 = vmatprep.mubr.bf16.mxu0 %v2666_v33  ;;  %1140 = vmatprep.mubr.bf16.mxu1 %v2714_v34 }
  0xe1   :  { %941 = vmatmul.mubr.bf16.gmra.mxu0 %v2668_v35  ;;  %1141 = vmatmul.mubr.bf16.gmra.mxu1 %v2716_v36 }
  0xe2   :  { %948 = vmatprep.mubr.bf16.mxu0 %v2672_v37  ;;  %1148 = vmatprep.mubr.bf16.mxu1 %v2717_v38 }
  0xe9   :  { %949 = vmatmul.mubr.bf16.gmra.mxu0 %v2674_v39  ;;  %1149 = vmatmul.mubr.bf16.gmra.mxu1 %v2719_v40 }
  0xea   :  { %956 = vmatprep.mubr.bf16.mxu0 %v2678_v41  ;;  %1156 = vmatprep.mubr.bf16.mxu1 %v2720_v42 }
  0xf1   :  { %957 = vmatmul.mubr.bf16.gmra.mxu0 %v2680_v43  ;;  %1157 = vmatmul.mubr.bf16.gmra.mxu1 %v2722_v44 }
  0xf2   :  { %964 = vmatprep.mubr.bf16.mxu0 %v2684_v45  ;;  %1164 = vmatprep.mubr.bf16.mxu1 %v2723_v46 }
  0xf9   :  { %965 = vmatmul.mubr.bf16.gmra.mxu0 %v2686_v47  ;;  %1165 = vmatmul.mubr.bf16.gmra.mxu1 %v2725_v48 }
  0xfa   :  { %972 = vmatprep.mubr.bf16.mxu0 %v2690_v49  ;;  %1172 = vmatprep.mubr.bf16.mxu1 %v2726_v50 }
 0x101   :  { %v3133_v53 = vpop.f32.mrf.mxu0  ;;  %973 = vmatmul.mubr.bf16.gmra.mxu0 %v2692_v51  ;;  %v3135_v54 = vpop.f32.mrf.mxu1  ;;  %1173 = vmatmul.mubr.bf16.gmra.mxu1 %v2728_v52 }
 0x103   :  { %v784_v55 = vpop.f32.mrf.mxu0  ;;  %v984_v56 = vpop.f32.mrf.mxu1 }
 0x105   :  { %v3137_v57 = vpop.f32.mrf.mxu0  ;;  %v3139_v58 = vpop.f32.mrf.mxu1 }
 0x107   :  { %v787_v59 = vpop.f32.mrf.mxu0  ;;  %v987_v60 = vpop.f32.mrf.mxu1 }
 0x109   :  { %v3141_v61 = vpop.f32.mrf.mxu0  ;;  %v3143_v62 = vpop.f32.mrf.mxu1 }
 0x10b   :  { %v792_v63 = vpop.f32.mrf.mxu0  ;;  %v992_v0 = vpop.f32.mrf.mxu1 }
 0x10d   :  { %v3145_v1 = vpop.f32.mrf.mxu0  ;;  %v3147_v2 = vpop.f32.mrf.mxu1 }
 0x10f   :  { %v795_v3 = vpop.f32.mrf.mxu0  ;;  %v995_v4 = vpop.f32.mrf.mxu1 }
 0x111   :  { %v3149_v5 = vpop.f32.mrf.mxu0  ;;  %v3151_v6 = vpop.f32.mrf.mxu1 }
 0x113   :  { %v800_v7 = vpop.f32.mrf.mxu0  ;;  %v1000_v8 = vpop.f32.mrf.mxu1 }
 0x115   :  { %v3153_v9 = vpop.f32.mrf.mxu0  ;;  %v3155_v10 = vpop.f32.mrf.mxu1 }
 0x117   :  { %v803_v11 = vpop.f32.mrf.mxu0  ;;  %v1003_v12 = vpop.f32.mrf.mxu1 }
 0x119   :  { %v3157_v13 = vpop.f32.mrf.mxu0  ;;  %v3159_v14 = vpop.f32.mrf.mxu1 }
 0x11b   :  { %v808_v15 = vpop.f32.mrf.mxu0  ;;  %v1008_v16 = vpop.f32.mrf.mxu1 }
 0x11d   :  { %v3161_v17 = vpop.f32.mrf.mxu0  ;;  %v3163_v18 = vpop.f32.mrf.mxu1 }
 0x11f   :  { %v811_v19 = vpop.f32.mrf.mxu0  ;;  %v1011_v20 = vpop.f32.mrf.mxu1 }
 0x121   :  { %v3165_v21 = vpop.f32.mrf.mxu0  ;;  %v3167_v22 = vpop.f32.mrf.mxu1 }
 0x123   :  { %v816_v23 = vpop.f32.mrf.mxu0  ;;  %v1016_v24 = vpop.f32.mrf.mxu1 }
 0x125   :  { %v3169_v25 = vpop.f32.mrf.mxu0  ;;  %v3171_v26 = vpop.f32.mrf.mxu1 }
 0x127   :  { %v819_v27 = vpop.f32.mrf.mxu0  ;;  %v1019_v28 = vpop.f32.mrf.mxu1 }
 0x129   :  { %v3173_v29 = vpop.f32.mrf.mxu0  ;;  %v3175_v30 = vpop.f32.mrf.mxu1 }
 0x12b   :  { %v824_v31 = vpop.f32.mrf.mxu0  ;;  %v1024_v32 = vpop.f32.mrf.mxu1 }
 0x12d   :  { %v3177_v33 = vpop.f32.mrf.mxu0  ;;  %v3179_v34 = vpop.f32.mrf.mxu1 }
 0x12f   :  { %v827_v35 = vpop.f32.mrf.mxu0  ;;  %v1027_v36 = vpop.f32.mrf.mxu1 }
 0x131   :  { %v3181_v37 = vpop.f32.mrf.mxu0  ;;  %v3183_v38 = vpop.f32.mrf.mxu1 }
 0x133   :  { %v832_v39 = vpop.f32.mrf.mxu0  ;;  %v1032_v40 = vpop.f32.mrf.mxu1 }
 0x135   :  { %v3185_v41 = vpop.f32.mrf.mxu0  ;;  %v3187_v42 = vpop.f32.mrf.mxu1 }
 0x137   :  { %v835_v43 = vpop.f32.mrf.mxu0  ;;  %v1035_v44 = vpop.f32.mrf.mxu1 }
 0x139   :  { %v3189_v45 = vpop.f32.mrf.mxu0  ;;  %v3191_v46 = vpop.f32.mrf.mxu1 }
 0x13b   :  { %v840_v47 = vpop.f32.mrf.mxu0  ;;  %v1040_v48 = vpop.f32.mrf.mxu1 }
 0x13c   :  { %v3228_v47 = vld [vmem:[%s5233_s2] ss:$0 sm:$0xff] }
 0x13d   :  { %v3193_v49 = vpop.f32.mrf.mxu0  ;;  %v3195_v50 = vpop.f32.mrf.mxu1 }
 0x13f   :  { %v843_v51 = vpop.f32.mrf.mxu0  ;;  %v1043_v52 = vpop.f32.mrf.mxu1 }
 0x140   :  { %v786_v52 = vadd.f32 %v3228_v47, %v3137_v57 }
 0x141   :  { %v3197_v55 = vpop.f32.mrf.mxu0  ;;  %v3199_v56 = vpop.f32.mrf.mxu1 }
 0x142   :  { %vm1182_vm0 = vcmp.gt.f32.partialorder %v786_v52, 0.0 }
 0x143   :  { %v848_v59 = vpop.f32.mrf.mxu0  ;;  %v1048_v60 = vpop.f32.mrf.mxu1 }
 0x145   :  { %v3201_v63 = vpop.f32.mrf.mxu0  ;;  %v3203_v0 = vpop.f32.mrf.mxu1 }
 0x147   :  { %v851_v3 = vpop.f32.mrf.mxu0  ;;  %v1051_v4 = vpop.f32.mrf.mxu1 }
 0x148   :  { %v783_v3 = vadd.f32 %v3228_v47, %v3133_v53  ;;  %v791_v4 = vadd.f32 %v3228_v47, %v3141_v61 }
 0x149   :  { %v3205_v7 = vpop.f32.mrf.mxu0  ;;  %v3207_v8 = vpop.f32.mrf.mxu1 }
 0x14a   :  { %v1281_v57 = vmul.f32 0.01, %v783_v3  ;;  %vm1181_vm1 = vcmp.gt.f32.partialorder %v783_v3, 0.0  ;;  %vm1183_vm2 = vcmp.gt.f32.partialorder %v791_v4, 0.0 }
 0x14b   :  { %v856_v11 = vpop.f32.mrf.mxu0  ;;  %v1056_v12 = vpop.f32.mrf.mxu1 }
 0x14d   :  { %v3209_v15 = vpop.f32.mrf.mxu0  ;;  %v3211_v16 = vpop.f32.mrf.mxu1 }
 0x14f   :  { %v859_v19 = vpop.f32.mrf.mxu0  ;;  %v1059_v20 = vpop.f32.mrf.mxu1 }
 0x150   :  { %v1282_v19 = vmul.f32 0.01, %v786_v52  ;;  %v794_v20 = vadd.f32 %v3228_v47, %v3145_v1  ;;  %v802_v1 = vadd.f32 %v3228_v47, %v3153_v9 }
 0x151   :  { %v3213_v23 = vpop.f32.mrf.mxu0  ;;  %v3215_v24 = vpop.f32.mrf.mxu1 }
 0x152   :  { %vm1184_vm4 = vcmp.gt.f32.partialorder %v794_v20, 0.0  ;;  %vm1186_vm6 = vcmp.gt.f32.partialorder %v802_v1, 0.0 }
 0x153   :  { %v864_v27 = vpop.f32.mrf.mxu0  ;;  %v1064_v28 = vpop.f32.mrf.mxu1 }
 0x155   :  { %v3217_v31 = vpop.f32.mrf.mxu0  ;;  %v3219_v32 = vpop.f32.mrf.mxu1 }
 0x157   :  { %v867_v35 = vpop.f32.mrf.mxu0  ;;  %v1067_v36 = vpop.f32.mrf.mxu1 }
 0x158   :  { %v1283_v35 = vmul.f32 0.01, %v791_v4  ;;  %v799_v36 = vadd.f32 %v3228_v47, %v3149_v5 }
 0x159   :  { %v3221_v39 = vpop.f32.mrf.mxu0  ;;  %v3223_v40 = vpop.f32.mrf.mxu1 }
 0x15a   :  { %v1285_v5 = vmul.f32 0.01, %v799_v36  ;;  %vm1185_vm5 = vcmp.gt.f32.partialorder %v799_v36, 0.0 }
 0x15b   :  { %v872_v43 = vpop.f32.mrf.mxu0  ;;  %v1072_v44 = vpop.f32.mrf.mxu1 }
 0x15c   :  { %v3252_v43 = vsel %vm1182_vm0, %v786_v52, %v1282_v19  ;;  %v1284_v44 = vmul.f32 0.01, %v794_v20 }
 0x15d   :  { %v3230_v48 = vpop.f32.mrf.mxu0  ;;  %v3232_v51 = vpop.f32.mrf.mxu1  ;;  %5361 = vst [vmem:[#allocation5_spill] sm:$0xff] %v3252_v43  ;;  %v1485_v52 = vsel %vm1483_vm3, %v3252_v43, 0.0  ;;  %v3276_v43 = vsel %vm1185_vm5, %v799_v36, %v1285_v5  ;;  %v818_v36 = vadd.f32 %v3228_v47, %v3169_v25 }
 0x15e   :  { %5358 = vst [vmem:[#allocation2_spill] sm:$0xff] %v3232_v51  ;;  %v3268_v9 = vsel %vm1184_vm4, %v794_v20, %v1284_v44  ;;  %5366 = vst [vmem:[#allocation10_spill] sm:$0xff] %v3276_v43  ;;  %v815_v20 = vadd.f32 %v3228_v47, %v3165_v21  ;;  %v1491_v5 = vsel %vm1483_vm3, %v3276_v43, 0.0  ;;  %v831_v43 = vadd.f32 %v3228_v47, %v3181_v37 }
 0x15f   :  { %v875_v59 = vpop.f32.mrf.mxu0  ;;  %v1075_v60 = vpop.f32.mrf.mxu1  ;;  %5365 = vst [vmem:[#allocation9_spill] sm:$0xff] %v3268_v9  ;;  %v1489_v44 = vsel %vm1483_vm3, %v3268_v9, 0.0  ;;  %vm1190_vm10 = vcmp.gt.f32.partialorder %v818_v36, 0.0 }
 0x160   :  { %v1289_v9 = vmul.f32 0.01, %v815_v20  ;;  %vm1189_vm9 = vcmp.gt.f32.partialorder %v815_v20, 0.0  ;;  %vm1193_vm13 = vcmp.gt.f32.partialorder %v831_v43, 0.0 }
 0x161   :  { %v3240_v11 = vpop.f32.mrf.mxu0  ;;  %v3242_v12 = vpop.f32.mrf.mxu1 }
 0x162   :  { %5359 = vst [vmem:[#allocation3_spill] sm:$0xff] %v3242_v12  ;;  %v807_v12 = vadd.f32 %v3228_v47, %v3157_v13 }
 0x163   :  { %v880_v27 = vpop.f32.mrf.mxu0  ;;  %v1080_v28 = vpop.f32.mrf.mxu1 }
 0x164   :  { %v3256_v27 = vsel %vm1181_vm1, %v783_v3, %v1281_v57  ;;  %v3258_v28 = vsel %vm1183_vm2, %v791_v4, %v1283_v35  ;;  %v810_v3 = vadd.f32 %v3228_v47, %v3161_v17  ;;  %v1287_v51 = vmul.f32 0.01, %v807_v12 }
 0x165   :  { %v3248_v53 = vpop.f32.mrf.mxu0  ;;  %v3250_v61 = vpop.f32.mrf.mxu1  ;;  %5362 = vst [vmem:[#allocation6_spill] sm:$0xff] %v3256_v27  ;;  %5363 = vst [vmem:[#allocation7_spill] sm:$0xff] %v3258_v28  ;;  %v1484_v4 = vsel %vm1483_vm3, %v3256_v27, 0.0  ;;  %v1487_v13 = vsel %vm1483_vm3, %v3258_v28, 0.0  ;;  %vm1187_vm7 = vcmp.gt.f32.partialorder %v807_v12, 0.0 }
 0x166   :  { %5360 = vst [vmem:[#allocation4_spill] sm:$0xff] %v3250_v61  ;;  %vm1188_vm8 = vcmp.gt.f32.partialorder %v810_v3, 0.0 }
 0x167   :  { %v883_v59 = vpop.f32.mrf.mxu0  ;;  %v1083_v60 = vpop.f32.mrf.mxu1 }
 0x168   :  { %v1286_v59 = vmul.f32 0.01, %v802_v1  ;;  %v1486_v60 = vadd.f32 %v1485_v52, %v1484_v4 }
 0x169   :  { %v3264_v19 = vpop.f32.mrf.mxu0  ;;  %v3266_v61 = vpop.f32.mrf.mxu1 }
 0x16a   :  { %5364 = vst [vmem:[#allocation8_spill] sm:$0xff] %v3266_v61  ;;  %v1488_v61 = vadd.f32 %v1487_v13, %v1486_v60  ;;  %v3286_v28 = vsel %vm1186_vm6, %v802_v1, %v1286_v59 }
 0x16b   :  { %v888_v57 = vpop.f32.mrf.mxu0  ;;  %v1088_v35 = vpop.f32.mrf.mxu1  ;;  %5368 = vst [vmem:[#allocation12_spill] sm:$0xff] %v3286_v28  ;;  %v1493_v1 = vsel %vm1483_vm3, %v3286_v28, 0.0 }
 0x16c   :  { %v1288_v57 = vmul.f32 0.01, %v810_v3  ;;  %v1490_v4 = vadd.f32 %v1489_v44, %v1488_v61  ;;  %v3292_v35 = vsel %vm1187_vm7, %v807_v12, %v1287_v51  ;;  %v826_v51 = vadd.f32 %v3228_v47, %v3177_v33 }
 0x16d   :  { %v3282_v17 = vpop.f32.mrf.mxu0  ;;  %v3284_v27 = vpop.f32.mrf.mxu1  ;;  %5369 = vst [vmem:[#allocation13_spill] sm:$0xff] %v3292_v35  ;;  %v1495_v12 = vsel %vm1483_vm3, %v3292_v35, 0.0  ;;  %v839_v35 = vadd.f32 %v3228_v47, %v3189_v45 }
 0x16e   :  { %5367 = vst [vmem:[#allocation11_spill] sm:$0xff] %v3284_v27  ;;  %v823_v27 = vadd.f32 %v3228_v47, %v3173_v29  ;;  %v1492_v13 = vadd.f32 %v1491_v5, %v1490_v4  ;;  %v3302_v60 = vsel %vm1188_vm8, %v810_v3, %v1288_v57  ;;  %vm1192_vm12 = vcmp.gt.f32.partialorder %v826_v51, 0.0 }
 0x16f   :  { %v891_v21 = vpop.f32.mrf.mxu0  ;;  %v1091_v52 = vpop.f32.mrf.mxu1  ;;  %5370 = vst [vmem:[#allocation14_spill] sm:$0xff] %v3302_v60  ;;  %v1497_v3 = vsel %vm1483_vm3, %v3302_v60, 0.0  ;;  %v1293_v60 = vmul.f32 0.01, %v831_v43  ;;  %vm1195_vm15 = vcmp.gt.f32.partialorder %v839_v35, 0.0 }
 0x170   :  { %v1290_v21 = vmul.f32 0.01, %v818_v36  ;;  %v1494_v44 = vadd.f32 %v1493_v1, %v1492_v13  ;;  %v3308_v52 = vsel %vm1189_vm9, %v815_v20, %v1289_v9  ;;  %v1291_v28 = vmul.f32 0.01, %v823_v27 }
 0x171   :  { %v3298_v59 = vpop.f32.mrf.mxu0  ;;  %v3300_v25 = vpop.f32.mrf.mxu1  ;;  %5371 = vst [vmem:[#allocation15_spill] sm:$0xff] %v3308_v52  ;;  %vm1191_vm11 = vcmp.gt.f32.partialorder %v823_v27, 0.0  ;;  %v834_v9 = vadd.f32 %v3228_v47, %v3185_v41  ;;  %v1499_v20 = vsel %vm1483_vm3, %v3308_v52, 0.0  ;;  %v847_v52 = vadd.f32 %v3228_v47, %v3197_v55 }
 0x172   :  { %v1496_v5 = vadd.f32 %v1495_v12, %v1494_v44  ;;  %v3318_v4 = vsel %vm1190_vm10, %v818_v36, %v1290_v21 }
 0x173   :  { %v896_v29 = vpop.f32.mrf.mxu0  ;;  %v1096_v61 = vpop.f32.mrf.mxu1  ;;  %5372 = vst [vmem:[#allocation16_spill] sm:$0xff] %v3318_v4  ;;  %v1501_v36 = vsel %vm1483_vm3, %v3318_v4, 0.0  ;;  %vm1194_vm14 = vcmp.gt.f32.partialorder %v834_v9, 0.0  ;;  %v1295_v4 = vmul.f32 0.01, %v839_v35  ;;  %vm1197_vm1 = vcmp.gt.f32.partialorder %v847_v52, 0.0 }
 0x174   :  { %v1292_v29 = vmul.f32 0.01, %v826_v51  ;;  %v1498_v13 = vadd.f32 %v1497_v3, %v1496_v5  ;;  %v3324_v61 = vsel %vm1191_vm11, %v823_v27, %v1291_v28  ;;  %v842_v27 = vadd.f32 %v3228_v47, %v3193_v49 }
 0x175   :  { %v3314_v57 = vpop.f32.mrf.mxu0  ;;  %v3316_v33 = vpop.f32.mrf.mxu1  ;;  %5373 = vst [vmem:[#allocation17_spill] sm:$0xff] %v3324_v61  ;;  %v1503_v28 = vsel %vm1483_vm3, %v3324_v61, 0.0  ;;  %v855_v61 = vadd.f32 %v3228_v47, %v3205_v7 }
 0x176   :  { %v1500_v12 = vadd.f32 %v1499_v20, %v1498_v13  ;;  %v3334_v44 = vsel %vm1192_vm12, %v826_v51, %v1292_v29  ;;  %vm1196_vm0 = vcmp.gt.f32.partialorder %v842_v27, 0.0 }
 0x177   :  { %v899_v37 = vpop.f32.mrf.mxu0  ;;  %v1099_v1 = vpop.f32.mrf.mxu1  ;;  %5374 = vst [vmem:[#allocation18_spill] sm:$0xff] %v3334_v44  ;;  %v1505_v51 = vsel %vm1483_vm3, %v3334_v44, 0.0  ;;  %v1297_v44 = vmul.f32 0.01, %v847_v52  ;;  %vm1199_vm4 = vcmp.gt.f32.partialorder %v855_v61, 0.0 }
 0x178   :  { %v1294_v37 = vmul.f32 0.01, %v834_v9  ;;  %v1502_v5 = vadd.f32 %v1501_v36, %v1500_v12  ;;  %v3340_v1 = vsel %vm1193_vm13, %v831_v43, %v1293_v60  ;;  %v850_v43 = vadd.f32 %v3228_v47, %v3201_v63 }
 0x179   :  { %v3330_v21 = vpop.f32.mrf.mxu0  ;;  %v3332_v41 = vpop.f32.mrf.mxu1  ;;  %5375 = vst [vmem:[#allocation19_spill] sm:$0xff] %v3340_v1  ;;  %v1507_v60 = vsel %vm1483_vm3, %v3340_v1, 0.0  ;;  %v863_v1 = vadd.f32 %v3228_v47, %v3213_v23 }
 0x17a   :  { %v1504_v20 = vadd.f32 %v1503_v28, %v1502_v5  ;;  %v3350_v13 = vsel %vm1194_vm14, %v834_v9, %v1294_v37  ;;  %vm1198_vm2 = vcmp.gt.f32.partialorder %v850_v43, 0.0 }
 0x17b   :  { %v904_v45 = vpop.f32.mrf.mxu0  ;;  %v1104_v3 = vpop.f32.mrf.mxu1  ;;  %5376 = vst [vmem:[#allocation20_spill] sm:$0xff] %v3350_v13  ;;  %v1509_v9 = vsel %vm1483_vm3, %v3350_v13, 0.0  ;;  %v1299_v13 = vmul.f32 0.01, %v855_v61  ;;  %vm1201_vm6 = vcmp.gt.f32.partialorder %v863_v1, 0.0 }
 0x17c   :  { %v1296_v45 = vmul.f32 0.01, %v842_v27  ;;  %v1506_v12 = vadd.f32 %v1505_v51, %v1504_v20  ;;  %v3356_v3 = vsel %vm1195_vm15, %v839_v35, %v1295_v4  ;;  %v858_v35 = vadd.f32 %v3228_v47, %v3209_v15 }
 0x17d   :  { %v3346_v29 = vpop.f32.mrf.mxu0  ;;  %v3348_v49 = vpop.f32.mrf.mxu1  ;;  %5377 = vst [vmem:[#allocation21_spill] sm:$0xff] %v3356_v3  ;;  %v1511_v4 = vsel %vm1483_vm3, %v3356_v3, 0.0  ;;  %v871_v3 = vadd.f32 %v3228_v47, %v3221_v39 }
 0x17e   :  { %v1508_v28 = vadd.f32 %v1507_v60, %v1506_v12  ;;  %v3366_v5 = vsel %vm1196_vm0, %v842_v27, %v1296_v45  ;;  %vm1200_vm5 = vcmp.gt.f32.partialorder %v858_v35, 0.0 }
 0x17f   :  { %v907_v55 = vpop.f32.mrf.mxu0  ;;  %v1107_v36 = vpop.f32.mrf.mxu1  ;;  %5378 = vst [vmem:[#allocation22_spill] sm:$0xff] %v3366_v5  ;;  %v1513_v27 = vsel %vm1483_vm3, %v3366_v5, 0.0  ;;  %v1301_v5 = vmul.f32 0.01, %v863_v1  ;;  %vm1203_vm8 = vcmp.gt.f32.partialorder %v871_v3, 0.0 }
 0x180   :  { %v1298_v55 = vmul.f32 0.01, %v850_v43  ;;  %v1510_v20 = vadd.f32 %v1509_v9, %v1508_v28  ;;  %v3372_v36 = vsel %vm1197_vm1, %v847_v52, %v1297_v44  ;;  %v866_v52 = vadd.f32 %v3228_v47, %v3217_v31 }
 0x181   :  { %v3362_v37 = vpop.f32.mrf.mxu0  ;;  %v3364_v63 = vpop.f32.mrf.mxu1  ;;  %5379 = vst [vmem:[#allocation23_spill] sm:$0xff] %v3372_v36  ;;  %v1515_v44 = vsel %vm1483_vm3, %v3372_v36, 0.0  ;;  %v879_v36 = vadd.f32 %v3228_v47, %v3240_v11 }
 0x182   :  { %v1512_v60 = vadd.f32 %v1511_v4, %v1510_v20  ;;  %v3382_v12 = vsel %vm1198_vm2, %v850_v43, %v1298_v55  ;;  %vm1202_vm7 = vcmp.gt.f32.partialorder %v866_v52, 0.0 }
 0x183   :  { %v912_v7 = vpop.f32.mrf.mxu0  ;;  %v1112_v51 = vpop.f32.mrf.mxu1  ;;  %5380 = vst [vmem:[#allocation24_spill] sm:$0xff] %v3382_v12  ;;  %v1517_v43 = vsel %vm1483_vm3, %v3382_v12, 0.0  ;;  %v1303_v12 = vmul.f32 0.01, %v871_v3  ;;  %vm1205_vm10 = vcmp.gt.f32.partialorder %v879_v36, 0.0 }
 0x184   :  { %v1300_v7 = vmul.f32 0.01, %v858_v35  ;;  %v1514_v28 = vadd.f32 %v1513_v27, %v1512_v60  ;;  %v3388_v51 = vsel %vm1199_vm4, %v855_v61, %v1299_v13  ;;  %v874_v61 = vadd.f32 %v3228_v47, %v3230_v48 }
 0x185   :  { %v3378_v45 = vpop.f32.mrf.mxu0  ;;  %v3380_v15 = vpop.f32.mrf.mxu1  ;;  %5381 = vst [vmem:[#allocation25_spill] sm:$0xff] %v3388_v51  ;;  %v1519_v13 = vsel %vm1483_vm3, %v3388_v51, 0.0  ;;  %v887_v51 = vadd.f32 %v3228_v47, %v3264_v19 }
 0x186   :  { %v1516_v4 = vadd.f32 %v1515_v44, %v1514_v28  ;;  %v3398_v20 = vsel %vm1200_vm5, %v858_v35, %v1300_v7  ;;  %vm1204_vm9 = vcmp.gt.f32.partialorder %v874_v61, 0.0 }
 0x187   :  { %v915_v23 = vpop.f32.mrf.mxu0  ;;  %v1115_v9 = vpop.f32.mrf.mxu1  ;;  %5382 = vst [vmem:[#allocation26_spill] sm:$0xff] %v3398_v20  ;;  %v1521_v35 = vsel %vm1483_vm3, %v3398_v20, 0.0  ;;  %v1305_v20 = vmul.f32 0.01, %v879_v36  ;;  %vm1207_vm12 = vcmp.gt.f32.partialorder %v887_v51, 0.0 }
 0x188   :  { %v1302_v23 = vmul.f32 0.01, %v866_v52  ;;  %v1518_v60 = vadd.f32 %v1517_v43, %v1516_v4  ;;  %v3404_v9 = vsel %vm1201_vm6, %v863_v1, %v1301_v5  ;;  %v882_v1 = vadd.f32 %v3228_v47, %v3248_v53 }
 0x189   :  { %v3394_v55 = vpop.f32.mrf.mxu0  ;;  %v3396_v31 = vpop.f32.mrf.mxu1  ;;  %5383 = vst [vmem:[#allocation27_spill] sm:$0xff] %v3404_v9  ;;  %v1523_v5 = vsel %vm1483_vm3, %v3404_v9, 0.0  ;;  %v895_v9 = vadd.f32 %v3228_v47, %v3298_v59 }
 0x18a   :  { %v1520_v44 = vadd.f32 %v1519_v13, %v1518_v60  ;;  %v3414_v28 = vsel %vm1202_vm7, %v866_v52, %v1302_v23  ;;  %vm1206_vm11 = vcmp.gt.f32.partialorder %v882_v1, 0.0 }
 0x18b   :  { %v920_v39 = vpop.f32.mrf.mxu0  ;;  %v1120_v27 = vpop.f32.mrf.mxu1  ;;  %5384 = vst [vmem:[#allocation28_spill] sm:$0xff] %v3414_v28  ;;  %v1525_v52 = vsel %vm1483_vm3, %v3414_v28, 0.0  ;;  %v1307_v28 = vmul.f32 0.01, %v887_v51  ;;  %vm1209_vm14 = vcmp.gt.f32.partialorder %v895_v9, 0.0 }
 0x18c   :  { %v1304_v39 = vmul.f32 0.01, %v874_v61  ;;  %v1522_v4 = vadd.f32 %v1521_v35, %v1520_v44  ;;  %v3420_v27 = vsel %vm1203_vm8, %v871_v3, %v1303_v12  ;;  %v890_v3 = vadd.f32 %v3228_v47, %v3282_v17 }
 0x18d   :  { %v3410_v7 = vpop.f32.mrf.mxu0  ;;  %v3412_v48 = vpop.f32.mrf.mxu1  ;;  %5385 = vst [vmem:[#allocation29_spill] sm:$0xff] %v3420_v27  ;;  %v1527_v12 = vsel %vm1483_vm3, %v3420_v27, 0.0  ;;  %v903_v27 = vadd.f32 %v3228_v47, %v3330_v21 }
 0x18e   :  { %v1524_v13 = vadd.f32 %v1523_v5, %v1522_v4  ;;  %v3430_v60 = vsel %vm1204_vm9, %v874_v61, %v1304_v39  ;;  %vm1208_vm13 = vcmp.gt.f32.partialorder %v890_v3, 0.0 }
 0x18f   :  { %v923_v11 = vpop.f32.mrf.mxu0  ;;  %v1123_v43 = vpop.f32.mrf.mxu1  ;;  %5386 = vst [vmem:[#allocation30_spill] sm:$0xff] %v3430_v60  ;;  %v1529_v61 = vsel %vm1483_vm3, %v3430_v60, 0.0  ;;  %v1309_v60 = vmul.f32 0.01, %v895_v9  ;;  %vm1211_vm0 = vcmp.gt.f32.partialorder %v903_v27, 0.0 }
 0x190   :  { %v1306_v11 = vmul.f32 0.01, %v882_v1  ;;  %v1526_v44 = vadd.f32 %v1525_v52, %v1524_v13  ;;  %v3436_v43 = vsel %vm1205_vm10, %v879_v36, %v1305_v20  ;;  %v898_v36 = vadd.f32 %v3228_v47, %v3314_v57 }
 0x191   :  { %v3426_v23 = vpop.f32.mrf.mxu0  ;;  %v3428_v53 = vpop.f32.mrf.mxu1  ;;  %5387 = vst [vmem:[#allocation31_spill] sm:$0xff] %v3436_v43  ;;  %v1531_v20 = vsel %vm1483_vm3, %v3436_v43, 0.0 }
 0x192   :  { %v1528_v5 = vadd.f32 %v1527_v12, %v1526_v44  ;;  %v3446_v4 = vsel %vm1206_vm11, %v882_v1, %v1306_v11  ;;  %v1310_v43 = vmul.f32 0.01, %v898_v36  ;;  %vm1210_vm15 = vcmp.gt.f32.partialorder %v898_v36, 0.0 }
 0x193   :  { %v928_v19 = vpop.f32.mrf.mxu0  ;;  %v1128_v35 = vpop.f32.mrf.mxu1  ;;  %5388 = vst [vmem:[#allocation32_spill] sm:$0xff] %v3446_v4  ;;  %v1533_v1 = vsel %vm1483_vm3, %v3446_v4, 0.0  ;;  %v911_v4 = vadd.f32 %v3228_v47, %v3362_v37 }
 0x194   :  { %v1308_v19 = vmul.f32 0.01, %v890_v3  ;;  %v1530_v13 = vadd.f32 %v1529_v61, %v1528_v5  ;;  %v3452_v35 = vsel %vm1207_vm12, %v887_v51, %v1307_v28  ;;  %v906_v61 = vadd.f32 %v3228_v47, %v3346_v29 }
 0x195   :  { %v3442_v39 = vpop.f32.mrf.mxu0  ;;  %v3444_v17 = vpop.f32.mrf.mxu1  ;;  %5389 = vst [vmem:[#allocation33_spill] sm:$0xff] %v3452_v35  ;;  %v1535_v51 = vsel %vm1483_vm3, %v3452_v35, 0.0  ;;  %vm1213_vm2 = vcmp.gt.f32.partialorder %v911_v4, 0.0 }
 0x196   :  { %v1532_v57 = vadd.f32 %v1531_v20, %v1530_v13  ;;  %v3460_v44 = vsel %vm1208_vm13, %v890_v3, %v1308_v19  ;;  %v3474_v13 = vsel %vm1210_vm15, %v898_v36, %v1310_v43  ;;  %v1312_v35 = vmul.f32 0.01, %v906_v61 }
 0x197   :  { %v931_v59 = vpop.f32.mrf.mxu0  ;;  %v1131_v52 = vpop.f32.mrf.mxu1  ;;  %5390 = vst [vmem:[#allocation34_spill] sm:$0xff] %v3460_v44  ;;  %v1537_v3 = vsel %vm1483_vm3, %v3460_v44, 0.0  ;;  %5392 = vst [vmem:[#allocation36_spill] sm:$0xff] %v3474_v13  ;;  %vm1212_vm1 = vcmp.gt.f32.partialorder %v906_v61, 0.0  ;;  %v919_v44 = vadd.f32 %v3228_v47, %v3394_v55  ;;  %v1541_v43 = vsel %vm1483_vm3, %v3474_v13, 0.0 }
 0x198   :  { %v1534_v5 = vadd.f32 %v1533_v1, %v1532_v57  ;;  %v3466_v59 = vsel %vm1209_vm14, %v895_v9, %v1309_v60  ;;  %v1311_v52 = vmul.f32 0.01, %v903_v27  ;;  %v914_v1 = vadd.f32 %v3228_v47, %v3378_v45 }
 0x199   :  { %v934_v11 = vpop.f32.mrf.mxu0  ;;  %v3458_v12 = vpop.f32.mrf.mxu1  ;;  %5391 = vst [vmem:[#allocation35_spill] sm:$0xff] %v3466_v59  ;;  %v1539_v9 = vsel %vm1483_vm3, %v3466_v59, 0.0  ;;  %v927_v13 = vadd.f32 %v3228_v47, %v3426_v23  ;;  %vm1215_vm5 = vcmp.gt.f32.partialorder %v919_v44, 0.0 }
 0x19a   :  { %v1536_v29 = vadd.f32 %v1535_v51, %v1534_v5  ;;  %v3488_v5 = vsel %vm1212_vm1, %v906_v61, %v1312_v35  ;;  %v1314_v59 = vmul.f32 0.01, %v914_v1  ;;  %vm1214_vm4 = vcmp.gt.f32.partialorder %v914_v1, 0.0 }
 0x19b   :  { %v936_v28 = vpop.f32.mrf.mxu0  ;;  %v1136_v21 = vpop.f32.mrf.mxu1  ;;  %5394 = vst [vmem:[#allocation38_spill] sm:$0xff] %v3488_v5  ;;  %v1545_v35 = vsel %vm1483_vm3, %v3488_v5, 0.0  ;;  %v935_v5 = vadd.f32 %v3228_v47, %v934_v11  ;;  %vm1217_vm7 = vcmp.gt.f32.partialorder %v927_v13, 0.0 }
 0x19c   :  { %v1538_v57 = vadd.f32 %v1537_v3, %v1536_v29  ;;  %v3480_v28 = vsel %vm1211_vm0, %v903_v27, %v1311_v52  ;;  %v1313_v21 = vmul.f32 0.01, %v911_v4  ;;  %v922_v3 = vadd.f32 %v3228_v47, %v3410_v7 }
 0x19d   :  { %v937_v19 = vpop.f32.mrf.mxu0  ;;  %v3472_v20 = vpop.f32.mrf.mxu1  ;;  %5393 = vst [vmem:[#allocation37_spill] sm:$0xff] %v3480_v28  ;;  %v1543_v27 = vsel %vm1483_vm3, %v3480_v28, 0.0  ;;  %vm1219_vm9 = vcmp.gt.f32.partialorder %v935_v5, 0.0 }
 0x19e   :  { %v1540_v45 = vadd.f32 %v1539_v9, %v1538_v57  ;;  %v3502_v57 = vsel %vm1214_vm4, %v914_v1, %v1314_v59  ;;  %v1316_v28 = vmul.f32 0.01, %v922_v3  ;;  %vm1216_vm6 = vcmp.gt.f32.partialorder %v922_v3, 0.0 }
 0x19f   :  { %v939_v60 = vpop.f32.mrf.mxu0  ;;  %v1139_v37 = vpop.f32.mrf.mxu1  ;;  %5396 = vst [vmem:[#allocation40_spill] sm:$0xff] %v3502_v57  ;;  %v1549_v59 = vsel %vm1483_vm3, %v3502_v57, 0.0 }
 0x1a0   :  { %v1542_v29 = vadd.f32 %v1541_v43, %v1540_v45  ;;  %v3494_v60 = vsel %vm1213_vm2, %v911_v4, %v1313_v21  ;;  %v1315_v37 = vmul.f32 0.01, %v919_v44  ;;  %v930_v43 = vadd.f32 %v3228_v47, %v3442_v39 }
 0x1a1   :  { %v942_v36 = vpop.f32.mrf.mxu0  ;;  %v3486_v51 = vpop.f32.mrf.mxu1  ;;  %5395 = vst [vmem:[#allocation39_spill] sm:$0xff] %v3494_v60  ;;  %v1547_v4 = vsel %vm1483_vm3, %v3494_v60, 0.0 }
 0x1a2   :  { %v1544_v7 = vadd.f32 %v1543_v27, %v1542_v29  ;;  %v3515_v29 = vsel %vm1216_vm6, %v922_v3, %v1316_v28  ;;  %v1318_v60 = vmul.f32 0.01, %v930_v43  ;;  %vm1218_vm8 = vcmp.gt.f32.partialorder %v930_v43, 0.0 }
 0x1a3   :  { %v944_v52 = vpop.f32.mrf.mxu0  ;;  %v1144_v55 = vpop.f32.mrf.mxu1  ;;  %5398 = vst [vmem:[#allocation42_spill] sm:$0xff] %v3515_v29  ;;  %v943_v57 = vadd.f32 %v3228_v47, %v942_v36 }
 0x1a4   :  { %v1546_v45 = vadd.f32 %v1545_v35, %v1544_v7  ;;  %v3508_v52 = vsel %vm1215_vm5, %v919_v44, %v1315_v37  ;;  %v1317_v55 = vmul.f32 0.01, %v927_v13 }
 0x1a5   :  { %v945_v61 = vpop.f32.mrf.mxu0  ;;  %v3500_v9 = vpop.f32.mrf.mxu1  ;;  %5397 = vst [vmem:[#allocation41_spill] sm:$0xff] %v3508_v52  ;;  %v1551_v44 = vsel %vm1483_vm3, %v3508_v52, 0.0  ;;  %vm1221_vm11 = vcmp.gt.f32.partialorder %v943_v57, 0.0 }
 0x1a6   :  { %v1548_v39 = vadd.f32 %v1547_v4, %v1546_v45  ;;  %v3520_v7 = vsel %vm1217_vm7, %v927_v13, %v1317_v55  ;;  %v1553_v4 = vsel %vm1483_vm3, %v3515_v29, 0.0  ;;  %v3527_v45 = vsel %vm1218_vm8, %v930_v43, %v1318_v60 }
 0x1a7   :  { %v947_v21 = vpop.f32.mrf.mxu0  ;;  %v1147_v23 = vpop.f32.mrf.mxu1  ;;  %5399 = vst [vmem:[#allocation43_spill] sm:$0xff] %v3520_v7  ;;  %5400 = vst [vmem:[#allocation44_spill] sm:$0xff] %v3527_v45  ;;  %v1555_v13 = vsel %vm1483_vm3, %v3520_v7, 0.0 }
 0x1a8   :  { %v938_v21 = vadd.f32 %v3228_v47, %v937_v19  ;;  %v1550_v11 = vadd.f32 %v1549_v59, %v1548_v39  ;;  %v1319_v23 = vmul.f32 0.01, %v935_v5 }
 0x1a9   :  { %v950_v1 = vpop.f32.mrf.mxu0  ;;  %v3513_v27 = vpop.f32.mrf.mxu1 }
 0x1aa   :  { %v1552_v19 = vadd.f32 %v1551_v44, %v1550_v11  ;;  %v1320_v52 = vmul.f32 0.01, %v938_v21  ;;  %vm1220_vm10 = vcmp.gt.f32.partialorder %v938_v21, 0.0  ;;  %v3532_v39 = vsel %vm1219_vm9, %v935_v5, %v1319_v23 }
 0x1ab   :  { %v952_v37 = vpop.f32.mrf.mxu0  ;;  %v1152_v35 = vpop.f32.mrf.mxu1  ;;  %5401 = vst [vmem:[#allocation45_spill] sm:$0xff] %v3532_v39  ;;  %v951_v29 = vadd.f32 %v3228_v47, %v950_v1  ;;  %v1557_v44 = vsel %vm1483_vm3, %v3527_v45, 0.0  ;;  %v1559_v5 = vsel %vm1483_vm3, %v3532_v39, 0.0 }
 0x1ac   :  { %v946_v37 = vadd.f32 %v3228_v47, %v945_v61  ;;  %v1554_v36 = vadd.f32 %v1553_v4, %v1552_v19  ;;  %v1321_v35 = vmul.f32 0.01, %v943_v57  ;;  %v3539_v11 = vsel %vm1220_vm10, %v938_v21, %v1320_v52 }
 0x1ad   :  { %v953_v28 = vpop.f32.mrf.mxu0  ;;  %v3525_v3 = vpop.f32.mrf.mxu1  ;;  %5402 = vst [vmem:[#allocation46_spill] sm:$0xff] %v3539_v11  ;;  %vm1223_vm13 = vcmp.gt.f32.partialorder %v951_v29, 0.0 }
 0x1ae   :  { %v1556_v61 = vadd.f32 %v1555_v13, %v1554_v36  ;;  %v1322_v7 = vmul.f32 0.01, %v946_v37  ;;  %vm1222_vm12 = vcmp.gt.f32.partialorder %v946_v37, 0.0  ;;  %v3544_v19 = vsel %vm1221_vm11, %v943_v57, %v1321_v35 }
 0x1af   :  { %v955_v55 = vpop.f32.mrf.mxu0  ;;  %v1155_v59 = vpop.f32.mrf.mxu1  ;;  %5403 = vst [vmem:[#allocation47_spill] sm:$0xff] %v3544_v19  ;;  %v1561_v13 = vsel %vm1483_vm3, %v3539_v11, 0.0  ;;  %v1563_v57 = vsel %vm1483_vm3, %v3544_v19, 0.0 }
 0x1b0   :  { %v954_v55 = vadd.f32 %v3228_v47, %v953_v28  ;;  %v1558_v1 = vadd.f32 %v1557_v44, %v1556_v61  ;;  %v1323_v59 = vmul.f32 0.01, %v951_v29  ;;  %v3551_v36 = vsel %vm1222_vm12, %v946_v37, %v1322_v7 }
 0x1b1   :  { %v958_v60 = vpop.f32.mrf.mxu0  ;;  %v3537_v43 = vpop.f32.mrf.mxu1  ;;  %5404 = vst [vmem:[#allocation48_spill] sm:$0xff] %v3551_v36  ;;  %v1565_v11 = vsel %vm1483_vm3, %v3551_v36, 0.0 }
 0x1b2   :  { %v959_v45 = vadd.f32 %v3228_v47, %v958_v60  ;;  %v1560_v28 = vadd.f32 %v1559_v5, %v1558_v1  ;;  %v1324_v39 = vmul.f32 0.01, %v954_v55  ;;  %vm1224_vm14 = vcmp.gt.f32.partialorder %v954_v55, 0.0 }
 0x1b3   :  { %v960_v23 = vpop.f32.mrf.mxu0  ;;  %v1160_v4 = vpop.f32.mrf.mxu1  ;;  %v3556_v61 = vsel %vm1223_vm13, %v951_v29, %v1323_v59 }
 0x1b4   :  { %v1562_v60 = vadd.f32 %v1561_v13, %v1560_v28  ;;  %5405 = vst [vmem:[#allocation49_spill] sm:$0xff] %v3556_v61  ;;  %v1325_v4 = vmul.f32 0.01, %v959_v45  ;;  %vm1225_vm15 = vcmp.gt.f32.partialorder %v959_v45, 0.0  ;;  %v3562_v1 = vsel %vm1224_vm14, %v954_v55, %v1324_v39 }
 0x1b5   :  { %v961_v52 = vpop.f32.mrf.mxu0  ;;  %v3549_v21 = vpop.f32.mrf.mxu1  ;;  %5406 = vst [vmem:[#allocation50_spill] sm:$0xff] %v3562_v1  ;;  %v1569_v36 = vsel %vm1483_vm3, %v3562_v1, 0.0  ;;  %v983_v1 = vadd.f32 %v3228_v47, %v3135_v54 }
 0x1b6   :  { %v962_v23 = vadd.f32 %v3228_v47, %v961_v52  ;;  %v1564_v37 = vadd.f32 %v1563_v57, %v1562_v60  ;;  %v3567_v28 = vsel %vm1225_vm15, %v959_v45, %v1325_v4 }
 0x1b7   :  { %v963_v35 = vpop.f32.mrf.mxu0  ;;  %v1163_v44 = vpop.f32.mrf.mxu1  ;;  %5407 = vst [vmem:[#allocation51_spill] sm:$0xff] %v3567_v28  ;;  %vm1231_vm5 = vcmp.gt.f32.partialorder %v983_v1, 0.0 }
 0x1b8   :  { %v1326_v52 = vmul.f32 0.01, %v962_v23  ;;  %v1567_v35 = vsel %vm1483_vm3, %v3556_v61, 0.0  ;;  %vm1226_vm0 = vcmp.gt.f32.partialorder %v962_v23, 0.0  ;;  %v1566_v13 = vadd.f32 %v1565_v11, %v1564_v37 }
 0x1b9   :  { %v966_v5 = vpop.f32.mrf.mxu0  ;;  %v3560_v7 = vpop.f32.mrf.mxu1 }
 0x1ba   :  { %v967_v19 = vadd.f32 %v3228_v47, %v966_v5  ;;  %v1568_v55 = vadd.f32 %v1567_v35, %v1566_v13  ;;  %v3573_v60 = vsel %vm1226_vm0, %v962_v23, %v1326_v52 }
 0x1bb   :  { %v968_v29 = vpop.f32.mrf.mxu0  ;;  %v1168_v59 = vpop.f32.mrf.mxu1  ;;  %5408 = vst [vmem:[#allocation52_spill] sm:$0xff] %v3573_v60  ;;  %v1573_v35 = vsel %vm1483_vm3, %v3573_v60, 0.0  ;;  %v1331_v60 = vmul.f32 0.01, %v983_v1 }
 0x1bc   :  { %v1327_v44 = vmul.f32 0.01, %v967_v19  ;;  %vm1227_vm1 = vcmp.gt.f32.partialorder %v967_v19, 0.0  ;;  %v1571_v29 = vsel %vm1483_vm3, %v3567_v28, 0.0  ;;  %v1570_v45 = vadd.f32 %v1569_v36, %v1568_v55 }
 0x1bd   :  { %v969_v57 = vpop.f32.mrf.mxu0  ;;  %v3571_v39 = vpop.f32.mrf.mxu1 }
 0x1be   :  { %v970_v5 = vadd.f32 %v3228_v47, %v969_v57  ;;  %v3578_v4 = vsel %vm1227_vm1, %v967_v19, %v1327_v44  ;;  %v1572_v13 = vadd.f32 %v1571_v29, %v1570_v45  ;;  %v986_v19 = vadd.f32 %v3228_v47, %v3139_v58 }
 0x1bf   :  { %v971_v59 = vpop.f32.mrf.mxu0  ;;  %v1171_v11 = vpop.f32.mrf.mxu1  ;;  %5409 = vst [vmem:[#allocation53_spill] sm:$0xff] %v3578_v4  ;;  %v1575_v36 = vsel %vm1483_vm3, %v3578_v4, 0.0 }
 0x1c0   :  { %vm1228_vm2 = vcmp.gt.f32.partialorder %v970_v5, 0.0  ;;  %v1328_v37 = vmul.f32 0.01, %v970_v5  ;;  %v1574_v54 = vadd.f32 %v1573_v35, %v1572_v13  ;;  %vm1232_vm7 = vcmp.gt.f32.partialorder %v986_v19, 0.0 }
 0x1c1   :  { %v974_v23 = vpop.f32.mrf.mxu0  ;;  %v3584_v52 = vpop.f32.mrf.mxu1 }
 0x1c2   :  { %v3586_v57 = vsel %vm1228_vm2, %v970_v5, %v1328_v37  ;;  %v975_v59 = vadd.f32 %v3228_v47, %v974_v23  ;;  %v991_v37 = vadd.f32 %v3228_v47, %v3143_v62  ;;  %v1576_v58 = vadd.f32 %v1575_v36, %v1574_v54 }
 0x1c3   :  { %5410 = vst [vmem:[#allocation54_spill] sm:$0xff] %v3586_v57  ;;  %v976_v44 = vpop.f32.mrf.mxu0  ;;  %v1176_v55 = vpop.f32.mrf.mxu1  ;;  %v1577_v29 = vsel %vm1483_vm3, %v3586_v57, 0.0  ;;  %v994_v57 = vadd.f32 %v3228_v47, %v3147_v2 }
 0x1c4   :  { %vm1229_vm4 = vcmp.gt.f32.partialorder %v975_v59, 0.0  ;;  %v1329_v11 = vmul.f32 0.01, %v975_v59  ;;  %v1332_v55 = vmul.f32 0.01, %v986_v19  ;;  %v1578_v28 = vadd.f32 %v1577_v29, %v1576_v58 }
 0x1c5   :  { %v977_v5 = vpop.f32.mrf.mxu0  ;;  %v3595_v45 = vpop.f32.mrf.mxu1  ;;  %v1333_v62 = vmul.f32 0.01, %v991_v37  ;;  %vm1233_vm8 = vcmp.gt.f32.partialorder %v991_v37, 0.0  ;;  %v1334_v2 = vmul.f32 0.01, %v994_v57  ;;  %v1002_v29 = vadd.f32 %v3228_v47, %v3155_v10 }
 0x1c6   :  { %5411 = vst [vmem:[#allocation55_spill] sm:$0xff] %v3595_v45  ;;  %v3599_v23 = vsel %vm1229_vm4, %v975_v59, %v1329_v11  ;;  %v978_v44 = vadd.f32 %v3228_v47, %v977_v5  ;;  %v3607_v45 = vsel %vm1231_vm5, %v983_v1, %v1331_v60  ;;  %v999_v59 = vadd.f32 %v3228_v47, %v3151_v6 }
 0x1c7   :  { %v1579_v35 = vsel %vm1483_vm3, %v3599_v23, 0.0  ;;  %v979_v13 = vpop.f32.mrf.mxu0  ;;  %v1179_v4 = vpop.f32.mrf.mxu1  ;;  %v3615_v11 = vsel %vm1232_vm7, %v986_v19, %v1332_v55  ;;  %v1583_v60 = vsel %vm1483_vm3, %v3607_v45, 0.0  ;;  %vm1234_vm9 = vcmp.gt.f32.partialorder %v994_v57, 0.0 }
 0x1c8   :  { %vm1230_vm6 = vcmp.gt.f32.partialorder %v978_v44, 0.0  ;;  %v1330_v61 = vmul.f32 0.01, %v978_v44  ;;  %v1580_v36 = vadd.f32 %v1579_v35, %v1578_v28  ;;  %v3621_v5 = vsel %vm1233_vm8, %v991_v37, %v1333_v62 }
 0x1c9   :  { %v1335_v6 = vmul.f32 0.01, %v999_v59  ;;  %v1585_v19 = vsel %vm1483_vm3, %v3615_v11, 0.0  ;;  %vm1235_vm10 = vcmp.gt.f32.partialorder %v999_v59, 0.0  ;;  %v3627_v58 = vsel %vm1234_vm9, %v994_v57, %v1334_v2 }
 0x1ca   :  { %v3611_v54 = vsel %vm1230_vm6, %v978_v44, %v1330_v61  ;;  %v1007_v61 = vadd.f32 %v3228_v47, %v3159_v14  ;;  %v1336_v44 = vmul.f32 0.01, %v1002_v29  ;;  %v1010_v10 = vadd.f32 %v3228_v47, %v3163_v18 }
 0x1cb   :  { %v1581_v4 = vsel %vm1483_vm3, %v3611_v54, 0.0  ;;  %v1587_v37 = vsel %vm1483_vm3, %v3621_v5, 0.0  ;;  %vm1236_vm11 = vcmp.gt.f32.partialorder %v1002_v29, 0.0  ;;  %v3633_v35 = vsel %vm1235_vm10, %v999_v59, %v1335_v6 }
 0x1cc   :  { %v1582_v1 = vadd.f32 %v1581_v4, %v1580_v36  ;;  %v1337_v13 = vmul.f32 0.01, %v1007_v61  ;;  %v1015_v14 = vadd.f32 %v3228_v47, %v3167_v22  ;;  %v1589_v57 = vsel %vm1483_vm3, %v3627_v58, 0.0 }
 0x1cd   :  { %vm1237_vm12 = vcmp.gt.f32.partialorder %v1007_v61, 0.0  ;;  %v3639_v36 = vsel %vm1236_vm11, %v1002_v29, %v1336_v44  ;;  %v1338_v4 = vmul.f32 0.01, %v1010_v10  ;;  %v1018_v18 = vadd.f32 %v3228_v47, %v3171_v26 }
 0x1ce   :  { %v1584_v28 = vadd.f32 %v1583_v60, %v1582_v1  ;;  %v1591_v59 = vsel %vm1483_vm3, %v3633_v35, 0.0  ;;  %vm1238_vm13 = vcmp.gt.f32.partialorder %v1010_v10, 0.0  ;;  %v3645_v1 = vsel %vm1237_vm12, %v1007_v61, %v1337_v13 }
 0x1cf   :  { %v1339_v60 = vmul.f32 0.01, %v1015_v14  ;;  %v1023_v22 = vadd.f32 %v3228_v47, %v3175_v30  ;;  %v1593_v29 = vsel %vm1483_vm3, %v3639_v36, 0.0  ;;  %vm1239_vm14 = vcmp.gt.f32.partialorder %v1015_v14, 0.0 }
 0x1d0   :  { %v1586_v55 = vadd.f32 %v1585_v19, %v1584_v28  ;;  %v3651_v28 = vsel %vm1238_vm13, %v1010_v10, %v1338_v4  ;;  %v1340_v19 = vmul.f32 0.01, %v1018_v18  ;;  %v1026_v26 = vadd.f32 %v3228_v47, %v3179_v34 }
 0x1d1   :  { %v1595_v61 = vsel %vm1483_vm3, %v3645_v1, 0.0  ;;  %vm1240_vm15 = vcmp.gt.f32.partialorder %v1018_v18, 0.0  ;;  %v1031_v30 = vadd.f32 %v3228_v47, %v3183_v38  ;;  %v1597_v10 = vsel %vm1483_vm3, %v3651_v28, 0.0 }
 0x1d2   :  { %v1588_v62 = vadd.f32 %v1587_v37, %v1586_v55  ;;  %v3657_v55 = vsel %vm1239_vm14, %v1015_v14, %v1339_v60  ;;  %v1341_v37 = vmul.f32 0.01, %v1023_v22  ;;  %vm1241_vm0 = vcmp.gt.f32.partialorder %v1023_v22, 0.0 }
 0x1d3   :  { %v1034_v34 = vadd.f32 %v3228_v47, %v3187_v42  ;;  %v1599_v14 = vsel %vm1483_vm3, %v3657_v55, 0.0  ;;  %vm1242_vm1 = vcmp.gt.f32.partialorder %v1026_v26, 0.0  ;;  %v1039_v38 = vadd.f32 %v3228_v47, %v3191_v46 }
 0x1d4   :  { %v1590_v2 = vadd.f32 %v1589_v57, %v1588_v62  ;;  %v3663_v62 = vsel %vm1240_vm15, %v1018_v18, %v1340_v19  ;;  %v1342_v57 = vmul.f32 0.01, %v1026_v26  ;;  %vm1243_vm2 = vcmp.gt.f32.partialorder %v1031_v30, 0.0 }
 0x1d5   :  { %v1601_v18 = vsel %vm1483_vm3, %v3663_v62, 0.0  ;;  %v1042_v42 = vadd.f32 %v3228_v47, %v3195_v50  ;;  %vm1244_vm4 = vcmp.gt.f32.partialorder %v1034_v34, 0.0  ;;  %v1047_v46 = vadd.f32 %v3228_v47, %v3199_v56 }
 0x1d6   :  { %v1592_v6 = vadd.f32 %v1591_v59, %v1590_v2  ;;  %v3669_v2 = vsel %vm1241_vm0, %v1023_v22, %v1341_v37  ;;  %v1343_v59 = vmul.f32 0.01, %v1031_v30  ;;  %vm1245_vm5 = vcmp.gt.f32.partialorder %v1039_v38, 0.0 }
 0x1d7   :  { %v1603_v22 = vsel %vm1483_vm3, %v3669_v2, 0.0  ;;  %v1050_v50 = vadd.f32 %v3228_v47, %v3203_v0  ;;  %vm1246_vm6 = vcmp.gt.f32.partialorder %v1042_v42, 0.0  ;;  %v1055_v56 = vadd.f32 %v3228_v47, %v3207_v8  ;;  %v3710_v8 = vld [vmem:[%s5233_s2] ss:$0 sm:$0xff] }
 0x1d8   :  { %v1594_v44 = vadd.f32 %v1593_v29, %v1592_v6  ;;  %v3675_v6 = vsel %vm1242_vm1, %v1026_v26, %v1342_v57  ;;  %v1344_v29 = vmul.f32 0.01, %v1034_v34  ;;  %vm1247_vm7 = vcmp.gt.f32.partialorder %v1047_v46, 0.0 }
 0x1d9   :  { %v1605_v26 = vsel %vm1483_vm3, %v3675_v6, 0.0  ;;  %v1058_v0 = vadd.f32 %v3228_v47, %v3211_v16  ;;  %vm1248_vm8 = vcmp.gt.f32.partialorder %v1050_v50, 0.0  ;;  %vm1249_vm9 = vcmp.gt.f32.partialorder %v1055_v56, 0.0 }
 0x1da   :  { %v1596_v13 = vadd.f32 %v1595_v61, %v1594_v44  ;;  %v3681_v44 = vsel %vm1243_vm2, %v1031_v30, %v1343_v59  ;;  %v1345_v61 = vmul.f32 0.01, %v1039_v38 }
 0x1db   :  { %v1607_v30 = vsel %vm1483_vm3, %v3681_v44, 0.0  ;;  %vm1250_vm10 = vcmp.gt.f32.partialorder %v1058_v0, 0.0 }
 0x1dc   :  { %v1598_v4 = vadd.f32 %v1597_v10, %v1596_v13  ;;  %v3687_v13 = vsel %vm1244_vm4, %v1034_v34, %v1344_v29  ;;  %v1346_v10 = vmul.f32 0.01, %v1042_v42 }
 0x1dd   :  { %v1609_v34 = vsel %vm1483_vm3, %v3687_v13, 0.0 }
 0x1de   :  { %v1600_v60 = vadd.f32 %v1599_v14, %v1598_v4  ;;  %v3693_v4 = vsel %vm1245_vm5, %v1039_v38, %v1345_v61  ;;  %v1347_v14 = vmul.f32 0.01, %v1047_v46 }
 0x1df   :  { %v1611_v38 = vsel %vm1483_vm3, %v3693_v4, 0.0 }
 0x1e0   :  { %v1602_v19 = vadd.f32 %v1601_v18, %v1600_v60  ;;  %v3699_v60 = vsel %vm1246_vm6, %v1042_v42, %v1346_v10  ;;  %v1348_v18 = vmul.f32 0.01, %v1050_v50  ;;  %v1063_v42 = vadd.f32 %v3710_v8, %v3215_v24 }
 0x1e1   :  { %v1613_v16 = vsel %vm1483_vm3, %v3699_v60, 0.0  ;;  %v1071_v24 = vadd.f32 %v3710_v8, %v3223_v40  ;;  %v5417_v40 = vld [vmem:[#allocation3_spill] sm:$0xff] }
 0x1e2   :  { %v1604_v37 = vadd.f32 %v1603_v22, %v1602_v19  ;;  %v3705_v19 = vsel %vm1247_vm7, %v1047_v46, %v1347_v14  ;;  %v1349_v22 = vmul.f32 0.01, %v1055_v56  ;;  %v3716_v47 = vsel %vm1248_vm8, %v1050_v50, %v1348_v18 }
 0x1e3   :  { %5412 = vst [vmem:[#allocation56_spill] sm:$0xff] %v3705_v19  ;;  %5413 = vst [vmem:[#allocation57_spill] sm:$0xff] %v3716_v47  ;;  %v1066_v46 = vadd.f32 %v3710_v8, %v3219_v32  ;;  %v1615_v10 = vsel %vm1483_vm3, %v3705_v19, 0.0  ;;  %v1617_v50 = vsel %vm1483_vm3, %v3716_v47, 0.0  ;;  %vm1251_vm11 = vcmp.gt.f32.partialorder %v1063_v42, 0.0  ;;  %v5415_v32 = vld [vmem:[#allocation2_spill] sm:$0xff] }
 0x1e4   :  { %v1606_v57 = vadd.f32 %v1605_v26, %v1604_v37  ;;  %v1350_v37 = vmul.f32 0.01, %v1058_v0  ;;  %v1074_v18 = vadd.f32 %v3710_v8, %v5415_v32  ;;  %vm1253_vm13 = vcmp.gt.f32.partialorder %v1071_v24, 0.0 }
 0x1e5   :  { %vm1252_vm12 = vcmp.gt.f32.partialorder %v1066_v46, 0.0 }
 0x1e6   :  { %v1608_v59 = vadd.f32 %v1607_v30, %v1606_v57  ;;  %v3722_v57 = vsel %vm1249_vm9, %v1055_v56, %v1349_v22  ;;  %v1351_v30 = vmul.f32 0.01, %v1063_v42  ;;  %v1353_v22 = vmul.f32 0.01, %v1071_v24 }
 0x1e7   :  { %v1619_v56 = vsel %vm1483_vm3, %v3722_v57, 0.0  ;;  %vm1254_vm14 = vcmp.gt.f32.partialorder %v1074_v18, 0.0 }
 0x1e8   :  { %v1610_v29 = vadd.f32 %v1609_v34, %v1608_v59  ;;  %v3728_v59 = vsel %vm1250_vm10, %v1058_v0, %v1350_v37  ;;  %v1352_v34 = vmul.f32 0.01, %v1066_v46 }
 0x1e9   :  { %5414 = vst [vmem:[#allocation58_spill] sm:$0xff] %v3728_v59  ;;  %v1621_v0 = vsel %vm1483_vm3, %v3728_v59, 0.0 }
 0x1ea   :  { %v1612_v61 = vadd.f32 %v1611_v38, %v1610_v29  ;;  %v3734_v38 = vsel %vm1251_vm11, %v1063_v42, %v1351_v30  ;;  %v3740_v37 = vsel %vm1252_vm12, %v1066_v46, %v1352_v34  ;;  %v3746_v30 = vsel %vm1253_vm13, %v1071_v24, %v1353_v22 }
 0x1eb   :  { %5416 = vst [vmem:[#allocation2_spill] sm:$0xff] %v3734_v38  ;;  %v1623_v42 = vsel %vm1483_vm3, %v3734_v38, 0.0  ;;  %v1625_v46 = vsel %vm1483_vm3, %v3740_v37, 0.0  ;;  %v1627_v24 = vsel %vm1483_vm3, %v3746_v30, 0.0 }
 0x1ec   :  { %v1614_v26 = vadd.f32 %v1613_v16, %v1612_v61  ;;  %v1079_v61 = vadd.f32 %v3710_v8, %v5417_v40  ;;  %v5419_v40 = vld [vmem:[#allocation8_spill] sm:$0xff] }
 0x1ee   :  { %v1616_v14 = vadd.f32 %v1615_v10, %v1614_v26  ;;  %v1354_v26 = vmul.f32 0.01, %v1074_v18  ;;  %v5418_v10 = vld [vmem:[#allocation4_spill] sm:$0xff]  ;;  %v1355_v32 = vmul.f32 0.01, %v1079_v61  ;;  %vm1255_vm15 = vcmp.gt.f32.partialorder %v1079_v61, 0.0 }
 0x1f0   :  { %v1618_v29 = vadd.f32 %v1617_v50, %v1616_v14  ;;  %v1082_v14 = vadd.f32 %v3710_v8, %v5418_v10  ;;  %v3752_v34 = vsel %vm1254_vm14, %v1074_v18, %v1354_v26  ;;  %v3758_v22 = vsel %vm1255_vm15, %v1079_v61, %v1355_v32 }
 0x1f1   :  { %v1629_v18 = vsel %vm1483_vm3, %v3752_v34, 0.0  ;;  %v1631_v61 = vsel %vm1483_vm3, %v3758_v22, 0.0 }
 0x1f2   :  { %v1620_v16 = vadd.f32 %v1619_v56, %v1618_v29  ;;  %v1087_v29 = vadd.f32 %v3710_v8, %v5419_v40  ;;  %v1356_v59 = vmul.f32 0.01, %v1082_v14  ;;  %vm1256_vm0 = vcmp.gt.f32.partialorder %v1082_v14, 0.0 }
 0x1f4   :  { %v1622_v50 = vadd.f32 %v1621_v0, %v1620_v16  ;;  %v5420_v16 = vld [vmem:[#allocation11_spill] sm:$0xff]  ;;  %v1357_v38 = vmul.f32 0.01, %v1087_v29  ;;  %vm1257_vm1 = vcmp.gt.f32.partialorder %v1087_v29, 0.0  ;;  %v3764_v26 = vsel %vm1256_vm0, %v1082_v14, %v1356_v59 }
 0x1f5   :  { %v1090_v0 = vadd.f32 %v3710_v8, %v5420_v16  ;;  %v1633_v59 = vsel %vm1483_vm3, %v3764_v26, 0.0 }
 0x1f6   :  { %v1624_v56 = vadd.f32 %v1623_v42, %v1622_v50  ;;  %v1095_v50 = vadd.f32 %v3710_v8, %v3300_v25  ;;  %v3770_v32 = vsel %vm1257_vm1, %v1087_v29, %v1357_v38  ;;  %v1103_v25 = vadd.f32 %v3710_v8, %v3332_v41 }
 0x1f7   :  { %vm1258_vm2 = vcmp.gt.f32.partialorder %v1090_v0, 0.0  ;;  %v1635_v38 = vsel %vm1483_vm3, %v3770_v32, 0.0  ;;  %v1111_v41 = vadd.f32 %v3710_v8, %v3364_v63  ;;  %v1119_v63 = vadd.f32 %v3710_v8, %v3396_v31 }
 0x1f8   :  { %v1626_v10 = vadd.f32 %v1625_v46, %v1624_v56  ;;  %v1358_v56 = vmul.f32 0.01, %v1090_v0  ;;  %v1098_v46 = vadd.f32 %v3710_v8, %v3316_v33  ;;  %v1359_v16 = vmul.f32 0.01, %v1095_v50 }
 0x1f9   :  { %vm1259_vm4 = vcmp.gt.f32.partialorder %v1095_v50, 0.0  ;;  %v1106_v33 = vadd.f32 %v3710_v8, %v3348_v49  ;;  %vm1261_vm6 = vcmp.gt.f32.partialorder %v1103_v25, 0.0  ;;  %v1114_v49 = vadd.f32 %v3710_v8, %v3380_v15 }
 0x1fa   :  { %v1628_v40 = vadd.f32 %v1627_v24, %v1626_v10  ;;  %v3776_v24 = vsel %vm1258_vm2, %v1090_v0, %v1358_v56  ;;  %vm1260_vm5 = vcmp.gt.f32.partialorder %v1098_v46, 0.0  ;;  %vm1263_vm8 = vcmp.gt.f32.partialorder %v1111_v41, 0.0 }
 0x1fb   :  { %vm1262_vm7 = vcmp.gt.f32.partialorder %v1106_v33, 0.0  ;;  %v1122_v15 = vadd.f32 %v3710_v8, %v3412_v48  ;;  %vm1264_vm9 = vcmp.gt.f32.partialorder %v1114_v49, 0.0  ;;  %v1127_v31 = vadd.f32 %v3710_v8, %v3428_v53 }
 0x1fc   :  { %v1630_v42 = vadd.f32 %v1629_v18, %v1628_v40  ;;  %v1360_v40 = vmul.f32 0.01, %v1098_v46  ;;  %v3782_v18 = vsel %vm1259_vm4, %v1095_v50, %v1359_v16  ;;  %vm1265_vm10 = vcmp.gt.f32.partialorder %v1119_v63, 0.0 }
 0x1fd   :  { %vm1266_vm11 = vcmp.gt.f32.partialorder %v1122_v15, 0.0  ;;  %vm1267_vm12 = vcmp.gt.f32.partialorder %v1127_v31, 0.0 }
 0x1fe   :  { %v1632_v10 = vadd.f32 %v1631_v61, %v1630_v42  ;;  %v1361_v42 = vmul.f32 0.01, %v1103_v25  ;;  %v1637_v61 = vsel %vm1483_vm3, %v3776_v24, 0.0  ;;  %v3788_v56 = vsel %vm1260_vm5, %v1098_v46, %v1360_v40 }
 0x200   :  { %v1634_v14 = vadd.f32 %v1633_v59, %v1632_v10  ;;  %v1362_v10 = vmul.f32 0.01, %v1106_v33  ;;  %v1639_v59 = vsel %vm1483_vm3, %v3782_v18, 0.0  ;;  %v3794_v16 = vsel %vm1261_vm6, %v1103_v25, %v1361_v42 }
 0x202   :  { %v1636_v29 = vadd.f32 %v1635_v38, %v1634_v14  ;;  %v1363_v14 = vmul.f32 0.01, %v1111_v41  ;;  %v1641_v38 = vsel %vm1483_vm3, %v3788_v56, 0.0  ;;  %v3800_v40 = vsel %vm1262_vm7, %v1106_v33, %v1362_v10 }
 0x204   :  { %v1638_v0 = vadd.f32 %v1637_v61, %v1636_v29  ;;  %v1364_v29 = vmul.f32 0.01, %v1114_v49  ;;  %v1643_v61 = vsel %vm1483_vm3, %v3794_v16, 0.0  ;;  %v3806_v42 = vsel %vm1263_vm8, %v1111_v41, %v1363_v14 }
 0x205   :  { %v1647_v48 = vsel %vm1483_vm3, %v3806_v42, 0.0  ;;  %v1367_v41 = vmul.f32 0.01, %v1127_v31  ;;  %v1130_v14 = vadd.f32 %v3710_v8, %v3444_v17 }
 0x206   :  { %v1640_v50 = vadd.f32 %v1639_v59, %v1638_v0  ;;  %v1365_v0 = vmul.f32 0.01, %v1119_v63  ;;  %v1645_v59 = vsel %vm1483_vm3, %v3800_v40, 0.0  ;;  %v3812_v10 = vsel %vm1264_vm9, %v1114_v49, %v1364_v29 }
 0x207   :  { %v1649_v53 = vsel %vm1483_vm3, %v3812_v10, 0.0  ;;  %vm1268_vm13 = vcmp.gt.f32.partialorder %v1130_v14, 0.0 }
 0x208   :  { %v1642_v46 = vadd.f32 %v1641_v38, %v1640_v50  ;;  %v1366_v50 = vmul.f32 0.01, %v1122_v15 }
 0x20a   :  { %v1644_v25 = vadd.f32 %v1643_v61, %v1642_v46  ;;  %v3816_v46 = vsel %vm1265_vm10, %v1119_v63, %v1365_v0  ;;  %v1135_v63 = vadd.f32 %v3710_v8, %v3458_v12 }
 0x20b   :  { %v1651_v49 = vsel %vm1483_vm3, %v3816_v46, 0.0 }
 0x20c   :  { %v1646_v33 = vadd.f32 %v1645_v59, %v1644_v25  ;;  %v3822_v25 = vsel %vm1266_vm11, %v1122_v15, %v1366_v50  ;;  %v3826_v59 = vsel %vm1267_vm12, %v1127_v31, %v1367_v41  ;;  %v1138_v31 = vadd.f32 %v3710_v8, %v3472_v20 }
 0x20d   :  { %v1653_v17 = vsel %vm1483_vm3, %v3822_v25, 0.0  ;;  %vm1269_vm14 = vcmp.gt.f32.partialorder %v1135_v63, 0.0  ;;  %v1146_v20 = vadd.f32 %v3710_v8, %v3500_v9  ;;  %v1154_v9 = vadd.f32 %v3710_v8, %v3525_v3 }
 0x20e   :  { %v1648_v38 = vadd.f32 %v1647_v48, %v1646_v33  ;;  %v1368_v33 = vmul.f32 0.01, %v1130_v14  ;;  %v1655_v48 = vsel %vm1483_vm3, %v3826_v59, 0.0  ;;  %vm1270_vm15 = vcmp.gt.f32.partialorder %v1138_v31, 0.0 }
 0x20f   :  { %vm1272_vm1 = vcmp.gt.f32.partialorder %v1146_v20, 0.0  ;;  %vm1274_vm4 = vcmp.gt.f32.partialorder %v1154_v9, 0.0  ;;  %v1162_v3 = vadd.f32 %v3710_v8, %v3549_v21  ;;  %v1170_v21 = vadd.f32 %v3710_v8, %v3571_v39  ;;  %v5431_v39 = vld [vmem:[#allocation55_spill] sm:$0xff] }
 0x210   :  { %v1650_v61 = vadd.f32 %v1649_v53, %v1648_v38  ;;  %v3834_v50 = vsel %vm1268_vm13, %v1130_v14, %v1368_v33  ;;  %v1369_v38 = vmul.f32 0.01, %v1135_v63 }
 0x211   :  { %v1657_v41 = vsel %vm1483_vm3, %v3834_v50, 0.0  ;;  %vm1276_vm6 = vcmp.gt.f32.partialorder %v1162_v3, 0.0  ;;  %vm1278_vm8 = vcmp.gt.f32.partialorder %v1170_v21, 0.0 }
 0x212   :  { %v1652_v29 = vadd.f32 %v1651_v49, %v1650_v61  ;;  %v3840_v53 = vsel %vm1269_vm14, %v1135_v63, %v1369_v38  ;;  %v1370_v61 = vmul.f32 0.01, %v1138_v31  ;;  %v1143_v49 = vadd.f32 %v3710_v8, %v3486_v51 }
 0x213   :  { %5421 = vst [vmem:[#allocation3_spill] sm:$0xff] %v3840_v53  ;;  %v1659_v14 = vsel %vm1483_vm3, %v3840_v53, 0.0  ;;  %v1151_v51 = vadd.f32 %v3710_v8, %v3513_v27  ;;  %v1159_v27 = vadd.f32 %v3710_v8, %v3537_v43  ;;  %v1167_v43 = vadd.f32 %v3710_v8, %v3560_v7 }
 0x214   :  { %v1654_v0 = vadd.f32 %v1653_v17, %v1652_v29  ;;  %v3846_v33 = vsel %vm1270_vm15, %v1138_v31, %v1370_v61  ;;  %v1371_v17 = vmul.f32 0.01, %v1143_v49  ;;  %vm1271_vm0 = vcmp.gt.f32.partialorder %v1143_v49, 0.0 }
 0x215   :  { %5422 = vst [vmem:[#allocation4_spill] sm:$0xff] %v3846_v33  ;;  %v1661_v63 = vsel %vm1483_vm3, %v3846_v33, 0.0  ;;  %vm1273_vm2 = vcmp.gt.f32.partialorder %v1151_v51, 0.0  ;;  %vm1275_vm5 = vcmp.gt.f32.partialorder %v1159_v27, 0.0  ;;  %vm1277_vm7 = vcmp.gt.f32.partialorder %v1167_v43, 0.0 }
 0x216   :  { %v1656_v15 = vadd.f32 %v1655_v48, %v1654_v0  ;;  %v3852_v48 = vsel %vm1271_vm0, %v1143_v49, %v1371_v17  ;;  %v1175_v7 = vadd.f32 %v3710_v8, %v3584_v52 }
 0x217   :  { %5423 = vst [vmem:[#allocation8_spill] sm:$0xff] %v3852_v48  ;;  %v1663_v38 = vsel %vm1483_vm3, %v3852_v48, 0.0 }
 0x218   :  { %v1658_v12 = vadd.f32 %v1657_v41, %v1656_v15  ;;  %v1372_v15 = vmul.f32 0.01, %v1146_v20  ;;  %vm1279_vm9 = vcmp.gt.f32.partialorder %v1175_v7, 0.0 }
 0x21a   :  { %v1660_v29 = vadd.f32 %v1659_v14, %v1658_v12  ;;  %v3858_v41 = vsel %vm1272_vm1, %v1146_v20, %v1372_v15  ;;  %v1373_v12 = vmul.f32 0.01, %v1151_v51 }
 0x21b   :  { %5424 = vst [vmem:[#allocation11_spill] sm:$0xff] %v3858_v41  ;;  %v1665_v61 = vsel %vm1483_vm3, %v3858_v41, 0.0 }
 0x21c   :  { %v1662_v0 = vadd.f32 %v1661_v63, %v1660_v29  ;;  %v3864_v14 = vsel %vm1273_vm2, %v1151_v51, %v1373_v12  ;;  %v1374_v29 = vmul.f32 0.01, %v1154_v9 }
 0x21d   :  { %5425 = vst [vmem:[#allocation59_spill] sm:$0xff] %v3864_v14  ;;  %v1667_v17 = vsel %vm1483_vm3, %v3864_v14, 0.0 }
 0x21e   :  { %v1664_v31 = vadd.f32 %v1663_v38, %v1662_v0  ;;  %v3870_v63 = vsel %vm1274_vm4, %v1154_v9, %v1374_v29  ;;  %v1375_v0 = vmul.f32 0.01, %v1159_v27 }
 0x21f   :  { %5426 = vst [vmem:[#allocation60_spill] sm:$0xff] %v3870_v63  ;;  %v1669_v15 = vsel %vm1483_vm3, %v3870_v63, 0.0 }
 0x220   :  { %v1666_v49 = vadd.f32 %v1665_v61, %v1664_v31  ;;  %v3876_v38 = vsel %vm1275_vm5, %v1159_v27, %v1375_v0  ;;  %v1376_v31 = vmul.f32 0.01, %v1162_v3 }
 0x221   :  { %5427 = vst [vmem:[#allocation61_spill] sm:$0xff] %v3876_v38  ;;  %v1671_v12 = vsel %vm1483_vm3, %v3876_v38, 0.0 }
 0x222   :  { %v1668_v20 = vadd.f32 %v1667_v17, %v1666_v49  ;;  %v3882_v61 = vsel %vm1276_vm6, %v1162_v3, %v1376_v31  ;;  %v1377_v49 = vmul.f32 0.01, %v1167_v43  ;;  %v1178_v31 = vadd.f32 %v3710_v8, %v5431_v39 }
 0x223   :  { %5428 = vst [vmem:[#allocation62_spill] sm:$0xff] %v3882_v61  ;;  %v1673_v29 = vsel %vm1483_vm3, %v3882_v61, 0.0 }
 0x224   :  { %v1670_v51 = vadd.f32 %v1669_v15, %v1668_v20  ;;  %v3888_v17 = vsel %vm1277_vm7, %v1167_v43, %v1377_v49  ;;  %v1378_v20 = vmul.f32 0.01, %v1170_v21  ;;  %v1380_v49 = vmul.f32 0.01, %v1178_v31 }
 0x225   :  { %5429 = vst [vmem:[#allocation63_spill] sm:$0xff] %v3888_v17  ;;  %v1675_v0 = vsel %vm1483_vm3, %v3888_v17, 0.0  ;;  %vm1280_vm10 = vcmp.gt.f32.partialorder %v1178_v31, 0.0 }
 0x226   :  { %v1672_v9 = vadd.f32 %v1671_v12, %v1670_v51  ;;  %v3894_v15 = vsel %vm1278_vm8, %v1170_v21, %v1378_v20  ;;  %v1379_v51 = vmul.f32 0.01, %v1175_v7 }
 0x227   :  { %5430 = vst [vmem:[#allocation64_spill] sm:$0xff] %v3894_v15  ;;  %v1677_v43 = vsel %vm1483_vm3, %v3894_v15, 0.0 }
 0x228   :  { %v1674_v27 = vadd.f32 %v1673_v29, %v1672_v9  ;;  %v3900_v9 = vsel %vm1279_vm9, %v1175_v7, %v1379_v51  ;;  %v5434_v51 = vld [vmem:[#allocation6_spill] sm:$0xff] }
 0x229   :  { %5432 = vst [vmem:[#allocation55_spill] sm:$0xff] %v3900_v9  ;;  %v1679_v52 = vsel %vm1483_vm3, %v3900_v9, 0.0  ;;  %v5435_v9 = vld [vmem:[#allocation5_spill] sm:$0xff] }
 0x22a   :  { %v1676_v3 = vadd.f32 %v1675_v0, %v1674_v27  ;;  %v3904_v27 = vsel %vm1280_vm10, %v1178_v31, %v1380_v49  ;;  %v5436_v31 = vld [vmem:[#allocation7_spill] sm:$0xff] }
 0x22b   :  { %5433 = vst [vmem:[#allocation65_spill] sm:$0xff] %v3904_v27  ;;  %v1681_v21 = vsel %vm1483_vm3, %v3904_v27, 0.0 }
 0x22c   :  { %v1678_v12 = vadd.f32 %v1677_v43, %v1676_v3 }
 0x22e   :  { %v1680_v29 = vadd.f32 %v1679_v52, %v1678_v12  ;;  %v5437_v52 = vld [vmem:[#allocation9_spill] sm:$0xff] }
 0x230   :  { %v1682_v20 = vadd.f32 %v1681_v21, %v1680_v29 }
 0x232   :  { %v1683_v8 = vrot.slane %v1682_v20, 4 }
 0x234   :  { %v1684_v0 = vadd.f32 %v1683_v8, %v1682_v20  ;;  %v5438_v8 = vld [vmem:[#allocation10_spill] sm:$0xff] }
 0x236   :  { %v1685_v39 = vrot.slane %v1684_v0, 2 }
 0x238   :  { %v1686_v17 = vadd.f32 %v1685_v39, %v1684_v0 }
 0x23a   :  { %v1687_v15 = vrot.slane %v1686_v17, 1 }
 0x23c   :  { %v1688_v3 = vadd.f32 %v1687_v15, %v1686_v17  ;;  %v5439_v15 = vld [vmem:[#allocation12_spill] sm:$0xff] }
 0x23e   :  { %v3908_v7 = vmul.f32 0.00125, %v1688_v3 }
 0x240   :  { %v1690_v43 = vsub.f32 %v5434_v51, %v3908_v7  ;;  %v1691_v12 = vsub.f32 %v5435_v9, %v3908_v7  ;;  %v1692_v49 = vsub.f32 %v5436_v31, %v3908_v7  ;;  %v1693_v29 = vsub.f32 %v5437_v52, %v3908_v7  ;;  %v5440_v31 = vld [vmem:[#allocation13_spill] sm:$0xff]  ;;  %v5441_v52 = vld [vmem:[#allocation14_spill] sm:$0xff] }
 0x241   :  { %v1694_v0 = vsub.f32 %v5438_v8, %v3908_v7  ;;  %v1695_v39 = vsub.f32 %v5439_v15, %v3908_v7  ;;  %v1696_v61 = vsub.f32 %v5440_v31, %v3908_v7  ;;  %v1697_v8 = vsub.f32 %v5441_v52, %v3908_v7 }
 0x242   :  { %v1790_v21 = vmul.f32 %v1690_v43, %v1690_v43  ;;  %v1791_v20 = vmul.f32 %v1691_v12, %v1691_v12  ;;  %v1792_v17 = vmul.f32 %v1692_v49, %v1692_v49  ;;  %v1793_v3 = vmul.f32 %v1693_v29, %v1693_v29  ;;  %v5442_v29 = vld [vmem:[#allocation15_spill] sm:$0xff] }
 0x243   :  { %v1794_v38 = vmul.f32 %v1694_v0, %v1694_v0  ;;  %v1795_v49 = vmul.f32 %v1695_v39, %v1695_v39  ;;  %v1796_v14 = vmul.f32 %v1696_v61, %v1696_v61  ;;  %v1797_v31 = vmul.f32 %v1697_v8, %v1697_v8 }
 0x244   :  { %v1890_v51 = vsel %vm1483_vm3, %v1790_v21, 0.0  ;;  %v1891_v9 = vsel %vm1483_vm3, %v1791_v20, 0.0  ;;  %v1893_v43 = vsel %vm1483_vm3, %v1792_v17, 0.0  ;;  %v1895_v63 = vsel %vm1483_vm3, %v1793_v3, 0.0  ;;  %v5443_v20 = vld [vmem:[#allocation16_spill] sm:$0xff] }
 0x245   :  { %v1892_v27 = vadd.f32 %v1891_v9, %v1890_v51  ;;  %v1698_v21 = vsub.f32 %v5442_v29, %v3908_v7  ;;  %v1897_v9 = vsel %vm1483_vm3, %v1794_v38, 0.0  ;;  %v1699_v0 = vsub.f32 %v5443_v20, %v3908_v7 }
 0x246   :  { %v1903_v38 = vsel %vm1483_vm3, %v1797_v31, 0.0 }
 0x247   :  { %v1894_v12 = vadd.f32 %v1893_v43, %v1892_v27  ;;  %v1899_v27 = vsel %vm1483_vm3, %v1795_v49, 0.0  ;;  %v5444_v43 = vld [vmem:[#allocation17_spill] sm:$0xff]  ;;  %v1798_v52 = vmul.f32 %v1698_v21, %v1698_v21  ;;  %v1799_v29 = vmul.f32 %v1699_v0, %v1699_v0 }
 0x248   :  { %v1700_v39 = vsub.f32 %v5444_v43, %v3908_v7 }
 0x249   :  { %v1896_v15 = vadd.f32 %v1895_v63, %v1894_v12  ;;  %v1901_v63 = vsel %vm1483_vm3, %v1796_v14, 0.0  ;;  %v5445_v12 = vld [vmem:[#allocation18_spill] sm:$0xff]  ;;  %v1905_v49 = vsel %vm1483_vm3, %v1798_v52, 0.0  ;;  %v1907_v14 = vsel %vm1483_vm3, %v1799_v29, 0.0 }
 0x24a   :  { %v1701_v61 = vsub.f32 %v5445_v12, %v3908_v7  ;;  %v1800_v20 = vmul.f32 %v1700_v39, %v1700_v39 }
 0x24b   :  { %v1898_v51 = vadd.f32 %v1897_v9, %v1896_v15  ;;  %v5446_v9 = vld [vmem:[#allocation19_spill] sm:$0xff] }
 0x24c   :  { %v1702_v8 = vsub.f32 %v5446_v9, %v3908_v7  ;;  %v1801_v43 = vmul.f32 %v1701_v61, %v1701_v61  ;;  %v1909_v31 = vsel %vm1483_vm3, %v1800_v20, 0.0 }
 0x24d   :  { %v1900_v17 = vadd.f32 %v1899_v27, %v1898_v51  ;;  %v5447_v27 = vld [vmem:[#allocation20_spill] sm:$0xff] }
 0x24e   :  { %v1703_v21 = vsub.f32 %v5447_v27, %v3908_v7  ;;  %v1802_v12 = vmul.f32 %v1702_v8, %v1702_v8  ;;  %v1911_v52 = vsel %vm1483_vm3, %v1801_v43, 0.0 }
 0x24f   :  { %v1902_v3 = vadd.f32 %v1901_v63, %v1900_v17  ;;  %v5448_v63 = vld [vmem:[#allocation21_spill] sm:$0xff] }
 0x250   :  { %v1704_v0 = vsub.f32 %v5448_v63, %v3908_v7  ;;  %v1803_v9 = vmul.f32 %v1703_v21, %v1703_v21  ;;  %v1913_v29 = vsel %vm1483_vm3, %v1802_v12, 0.0 }
 0x251   :  { %v1904_v15 = vadd.f32 %v1903_v38, %v1902_v3  ;;  %v5449_v38 = vld [vmem:[#allocation22_spill] sm:$0xff] }
 0x252   :  { %v1705_v39 = vsub.f32 %v5449_v38, %v3908_v7  ;;  %v1804_v27 = vmul.f32 %v1704_v0, %v1704_v0  ;;  %v1915_v20 = vsel %vm1483_vm3, %v1803_v9, 0.0 }
 0x253   :  { %v1906_v51 = vadd.f32 %v1905_v49, %v1904_v15  ;;  %v5450_v49 = vld [vmem:[#allocation23_spill] sm:$0xff] }
 0x254   :  { %v1706_v61 = vsub.f32 %v5450_v49, %v3908_v7  ;;  %v1805_v63 = vmul.f32 %v1705_v39, %v1705_v39  ;;  %v1917_v43 = vsel %vm1483_vm3, %v1804_v27, 0.0 }
 0x255   :  { %v1908_v17 = vadd.f32 %v1907_v14, %v1906_v51  ;;  %v5451_v14 = vld [vmem:[#allocation24_spill] sm:$0xff] }
 0x256   :  { %v1707_v8 = vsub.f32 %v5451_v14, %v3908_v7  ;;  %v1806_v38 = vmul.f32 %v1706_v61, %v1706_v61  ;;  %v1919_v12 = vsel %vm1483_vm3, %v1805_v63, 0.0 }
 0x257   :  { %v1910_v3 = vadd.f32 %v1909_v31, %v1908_v17  ;;  %v5452_v31 = vld [vmem:[#allocation25_spill] sm:$0xff] }
 0x258   :  { %v1708_v21 = vsub.f32 %v5452_v31, %v3908_v7  ;;  %v1807_v49 = vmul.f32 %v1707_v8, %v1707_v8  ;;  %v1921_v9 = vsel %vm1483_vm3, %v1806_v38, 0.0 }
 0x259   :  { %v1912_v15 = vadd.f32 %v1911_v52, %v1910_v3  ;;  %v5453_v52 = vld [vmem:[#allocation26_spill] sm:$0xff] }
 0x25a   :  { %v1709_v0 = vsub.f32 %v5453_v52, %v3908_v7  ;;  %v1808_v14 = vmul.f32 %v1708_v21, %v1708_v21  ;;  %v1923_v27 = vsel %vm1483_vm3, %v1807_v49, 0.0 }
 0x25b   :  { %v1914_v51 = vadd.f32 %v1913_v29, %v1912_v15  ;;  %v5454_v29 = vld [vmem:[#allocation27_spill] sm:$0xff] }
 0x25c   :  { %v1710_v39 = vsub.f32 %v5454_v29, %v3908_v7  ;;  %v1809_v31 = vmul.f32 %v1709_v0, %v1709_v0  ;;  %v1925_v63 = vsel %vm1483_vm3, %v1808_v14, 0.0 }
 0x25d   :  { %v1916_v17 = vadd.f32 %v1915_v20, %v1914_v51  ;;  %v5455_v20 = vld [vmem:[#allocation28_spill] sm:$0xff] }
 0x25e   :  { %v1711_v61 = vsub.f32 %v5455_v20, %v3908_v7  ;;  %v1810_v52 = vmul.f32 %v1710_v39, %v1710_v39  ;;  %v1927_v38 = vsel %vm1483_vm3, %v1809_v31, 0.0 }
 0x25f   :  { %v1918_v3 = vadd.f32 %v1917_v43, %v1916_v17  ;;  %v5456_v43 = vld [vmem:[#allocation29_spill] sm:$0xff] }
 0x260   :  { %v1712_v8 = vsub.f32 %v5456_v43, %v3908_v7  ;;  %v1811_v29 = vmul.f32 %v1711_v61, %v1711_v61  ;;  %v1929_v49 = vsel %vm1483_vm3, %v1810_v52, 0.0 }
 0x261   :  { %v1920_v15 = vadd.f32 %v1919_v12, %v1918_v3  ;;  %v5457_v12 = vld [vmem:[#allocation30_spill] sm:$0xff] }
 0x262   :  { %v1713_v21 = vsub.f32 %v5457_v12, %v3908_v7  ;;  %v1812_v20 = vmul.f32 %v1712_v8, %v1712_v8  ;;  %v1931_v14 = vsel %vm1483_vm3, %v1811_v29, 0.0 }
 0x263   :  { %v1922_v51 = vadd.f32 %v1921_v9, %v1920_v15  ;;  %v5458_v9 = vld [vmem:[#allocation31_spill] sm:$0xff] }
 0x264   :  { %v1714_v0 = vsub.f32 %v5458_v9, %v3908_v7  ;;  %v1813_v43 = vmul.f32 %v1713_v21, %v1713_v21  ;;  %v1933_v31 = vsel %vm1483_vm3, %v1812_v20, 0.0 }
 0x265   :  { %v1924_v17 = vadd.f32 %v1923_v27, %v1922_v51  ;;  %v5459_v27 = vld [vmem:[#allocation32_spill] sm:$0xff] }
 0x266   :  { %v1715_v39 = vsub.f32 %v5459_v27, %v3908_v7  ;;  %v1814_v12 = vmul.f32 %v1714_v0, %v1714_v0  ;;  %v1935_v52 = vsel %vm1483_vm3, %v1813_v43, 0.0 }
 0x267   :  { %v1926_v3 = vadd.f32 %v1925_v63, %v1924_v17  ;;  %v5460_v63 = vld [vmem:[#allocation33_spill] sm:$0xff] }
 0x268   :  { %v1716_v61 = vsub.f32 %v5460_v63, %v3908_v7  ;;  %v1815_v9 = vmul.f32 %v1715_v39, %v1715_v39  ;;  %v1937_v29 = vsel %vm1483_vm3, %v1814_v12, 0.0 }
 0x269   :  { %v1928_v15 = vadd.f32 %v1927_v38, %v1926_v3  ;;  %v5461_v38 = vld [vmem:[#allocation34_spill] sm:$0xff] }
 0x26a   :  { %v1717_v8 = vsub.f32 %v5461_v38, %v3908_v7  ;;  %v1816_v27 = vmul.f32 %v1716_v61, %v1716_v61  ;;  %v1939_v20 = vsel %vm1483_vm3, %v1815_v9, 0.0 }
 0x26b   :  { %v1930_v51 = vadd.f32 %v1929_v49, %v1928_v15  ;;  %v5462_v49 = vld [vmem:[#allocation35_spill] sm:$0xff] }
 0x26c   :  { %v1718_v21 = vsub.f32 %v5462_v49, %v3908_v7  ;;  %v1817_v63 = vmul.f32 %v1717_v8, %v1717_v8  ;;  %v1941_v43 = vsel %vm1483_vm3, %v1816_v27, 0.0 }
 0x26d   :  { %v1932_v17 = vadd.f32 %v1931_v14, %v1930_v51  ;;  %v5463_v14 = vld [vmem:[#allocation36_spill] sm:$0xff] }
 0x26e   :  { %v1719_v0 = vsub.f32 %v5463_v14, %v3908_v7  ;;  %v1818_v38 = vmul.f32 %v1718_v21, %v1718_v21  ;;  %v1943_v12 = vsel %vm1483_vm3, %v1817_v63, 0.0 }
 0x26f   :  { %v1934_v3 = vadd.f32 %v1933_v31, %v1932_v17  ;;  %v5464_v31 = vld [vmem:[#allocation37_spill] sm:$0xff] }
 0x270   :  { %v1720_v39 = vsub.f32 %v5464_v31, %v3908_v7  ;;  %v1819_v49 = vmul.f32 %v1719_v0, %v1719_v0  ;;  %v1945_v9 = vsel %vm1483_vm3, %v1818_v38, 0.0 }
 0x271   :  { %v1936_v15 = vadd.f32 %v1935_v52, %v1934_v3  ;;  %v5465_v52 = vld [vmem:[#allocation38_spill] sm:$0xff] }
 0x272   :  { %v1721_v61 = vsub.f32 %v5465_v52, %v3908_v7  ;;  %v1820_v14 = vmul.f32 %v1720_v39, %v1720_v39  ;;  %v1947_v27 = vsel %vm1483_vm3, %v1819_v49, 0.0 }
 0x273   :  { %v1938_v51 = vadd.f32 %v1937_v29, %v1936_v15  ;;  %v5466_v29 = vld [vmem:[#allocation39_spill] sm:$0xff] }
 0x274   :  { %v1722_v8 = vsub.f32 %v5466_v29, %v3908_v7  ;;  %v1821_v31 = vmul.f32 %v1721_v61, %v1721_v61  ;;  %v1949_v63 = vsel %vm1483_vm3, %v1820_v14, 0.0 }
 0x275   :  { %v1940_v17 = vadd.f32 %v1939_v20, %v1938_v51  ;;  %v5467_v20 = vld [vmem:[#allocation40_spill] sm:$0xff] }
 0x276   :  { %v1723_v21 = vsub.f32 %v5467_v20, %v3908_v7  ;;  %v1822_v52 = vmul.f32 %v1722_v8, %v1722_v8  ;;  %v1951_v38 = vsel %vm1483_vm3, %v1821_v31, 0.0 }
 0x277   :  { %v1942_v3 = vadd.f32 %v1941_v43, %v1940_v17  ;;  %v5468_v43 = vld [vmem:[#allocation41_spill] sm:$0xff] }
 0x278   :  { %v1724_v0 = vsub.f32 %v5468_v43, %v3908_v7  ;;  %v1823_v29 = vmul.f32 %v1723_v21, %v1723_v21  ;;  %v1953_v49 = vsel %vm1483_vm3, %v1822_v52, 0.0 }
 0x279   :  { %v1944_v15 = vadd.f32 %v1943_v12, %v1942_v3  ;;  %v5469_v12 = vld [vmem:[#allocation42_spill] sm:$0xff] }
 0x27a   :  { %v1725_v39 = vsub.f32 %v5469_v12, %v3908_v7  ;;  %v1824_v20 = vmul.f32 %v1724_v0, %v1724_v0  ;;  %v1955_v14 = vsel %vm1483_vm3, %v1823_v29, 0.0 }
 0x27b   :  { %v1946_v51 = vadd.f32 %v1945_v9, %v1944_v15  ;;  %v5470_v9 = vld [vmem:[#allocation43_spill] sm:$0xff] }
 0x27c   :  { %v1726_v61 = vsub.f32 %v5470_v9, %v3908_v7  ;;  %v1825_v43 = vmul.f32 %v1725_v39, %v1725_v39  ;;  %v1957_v31 = vsel %vm1483_vm3, %v1824_v20, 0.0 }
 0x27d   :  { %v1948_v17 = vadd.f32 %v1947_v27, %v1946_v51  ;;  %v5471_v27 = vld [vmem:[#allocation44_spill] sm:$0xff] }
 0x27e   :  { %v1727_v8 = vsub.f32 %v5471_v27, %v3908_v7  ;;  %v1826_v12 = vmul.f32 %v1726_v61, %v1726_v61  ;;  %v1959_v52 = vsel %vm1483_vm3, %v1825_v43, 0.0 }
 0x27f   :  { %v1950_v3 = vadd.f32 %v1949_v63, %v1948_v17  ;;  %v5472_v63 = vld [vmem:[#allocation45_spill] sm:$0xff] }
 0x280   :  { %v1728_v21 = vsub.f32 %v5472_v63, %v3908_v7  ;;  %v1827_v9 = vmul.f32 %v1727_v8, %v1727_v8  ;;  %v1961_v29 = vsel %vm1483_vm3, %v1826_v12, 0.0 }
 0x281   :  { %v1952_v15 = vadd.f32 %v1951_v38, %v1950_v3  ;;  %v5473_v38 = vld [vmem:[#allocation46_spill] sm:$0xff] }
 0x282   :  { %v1729_v0 = vsub.f32 %v5473_v38, %v3908_v7  ;;  %v1828_v27 = vmul.f32 %v1728_v21, %v1728_v21  ;;  %v1963_v20 = vsel %vm1483_vm3, %v1827_v9, 0.0 }
 0x283   :  { %v1954_v51 = vadd.f32 %v1953_v49, %v1952_v15  ;;  %v5474_v49 = vld [vmem:[#allocation47_spill] sm:$0xff] }
 0x284   :  { %v1730_v39 = vsub.f32 %v5474_v49, %v3908_v7  ;;  %v1829_v63 = vmul.f32 %v1729_v0, %v1729_v0  ;;  %v1965_v43 = vsel %vm1483_vm3, %v1828_v27, 0.0 }
 0x285   :  { %v1956_v17 = vadd.f32 %v1955_v14, %v1954_v51  ;;  %v5475_v14 = vld [vmem:[#allocation48_spill] sm:$0xff] }
 0x286   :  { %v1731_v61 = vsub.f32 %v5475_v14, %v3908_v7  ;;  %v1830_v38 = vmul.f32 %v1730_v39, %v1730_v39  ;;  %v1967_v12 = vsel %vm1483_vm3, %v1829_v63, 0.0 }
 0x287   :  { %v1958_v3 = vadd.f32 %v1957_v31, %v1956_v17  ;;  %v5476_v31 = vld [vmem:[#allocation49_spill] sm:$0xff] }
 0x288   :  { %v1732_v8 = vsub.f32 %v5476_v31, %v3908_v7  ;;  %v1831_v49 = vmul.f32 %v1731_v61, %v1731_v61  ;;  %v1969_v9 = vsel %vm1483_vm3, %v1830_v38, 0.0 }
 0x289   :  { %v1960_v15 = vadd.f32 %v1959_v52, %v1958_v3  ;;  %v5477_v52 = vld [vmem:[#allocation50_spill] sm:$0xff] }
 0x28a   :  { %v1733_v21 = vsub.f32 %v5477_v52, %v3908_v7  ;;  %v1832_v14 = vmul.f32 %v1732_v8, %v1732_v8  ;;  %v1971_v27 = vsel %vm1483_vm3, %v1831_v49, 0.0 }
 0x28b   :  { %v1962_v51 = vadd.f32 %v1961_v29, %v1960_v15  ;;  %v5478_v29 = vld [vmem:[#allocation51_spill] sm:$0xff] }
 0x28c   :  { %v1734_v0 = vsub.f32 %v5478_v29, %v3908_v7  ;;  %v1833_v31 = vmul.f32 %v1733_v21, %v1733_v21  ;;  %v1973_v63 = vsel %vm1483_vm3, %v1832_v14, 0.0  ;;  %v1738_v21 = vsub.f32 %v3599_v23, %v3908_v7 }
 0x28d   :  { %v1964_v17 = vadd.f32 %v1963_v20, %v1962_v51  ;;  %v5479_v20 = vld [vmem:[#allocation52_spill] sm:$0xff] }
 0x28e   :  { %v1735_v39 = vsub.f32 %v5479_v20, %v3908_v7  ;;  %v1834_v52 = vmul.f32 %v1734_v0, %v1734_v0  ;;  %v1975_v38 = vsel %vm1483_vm3, %v1833_v31, 0.0  ;;  %v1739_v0 = vsub.f32 %v3611_v54, %v3908_v7 }
 0x28f   :  { %v1966_v3 = vadd.f32 %v1965_v43, %v1964_v17  ;;  %v5480_v43 = vld [vmem:[#allocation53_spill] sm:$0xff] }
 0x290   :  { %v1736_v61 = vsub.f32 %v5480_v43, %v3908_v7  ;;  %v1835_v29 = vmul.f32 %v1735_v39, %v1735_v39  ;;  %v1977_v49 = vsel %vm1483_vm3, %v1834_v52, 0.0  ;;  %v1740_v39 = vsub.f32 %v3607_v45, %v3908_v7 }
 0x291   :  { %v1968_v15 = vadd.f32 %v1967_v12, %v1966_v3  ;;  %v5481_v12 = vld [vmem:[#allocation54_spill] sm:$0xff] }
 0x292   :  { %v1737_v8 = vsub.f32 %v5481_v12, %v3908_v7  ;;  %v1979_v14 = vsel %vm1483_vm3, %v1835_v29, 0.0 }
 0x293   :  { %v1970_v51 = vadd.f32 %v1969_v9, %v1968_v15  ;;  %v1836_v9 = vmul.f32 %v1736_v61, %v1736_v61  ;;  %v1741_v61 = vsub.f32 %v3615_v11, %v3908_v7 }
 0x295   :  { %v1972_v17 = vadd.f32 %v1971_v27, %v1970_v51  ;;  %v1837_v27 = vmul.f32 %v1737_v8, %v1737_v8  ;;  %v1981_v31 = vsel %vm1483_vm3, %v1836_v9, 0.0  ;;  %v1742_v8 = vsub.f32 %v3621_v5, %v3908_v7 }
 0x297   :  { %v1974_v3 = vadd.f32 %v1973_v63, %v1972_v17  ;;  %v1838_v63 = vmul.f32 %v1738_v21, %v1738_v21  ;;  %v1983_v52 = vsel %vm1483_vm3, %v1837_v27, 0.0  ;;  %v1743_v21 = vsub.f32 %v3627_v58, %v3908_v7 }
 0x299   :  { %v1976_v15 = vadd.f32 %v1975_v38, %v1974_v3  ;;  %v1839_v38 = vmul.f32 %v1739_v0, %v1739_v0  ;;  %v1985_v29 = vsel %vm1483_vm3, %v1838_v63, 0.0  ;;  %v1744_v0 = vsub.f32 %v3633_v35, %v3908_v7 }
 0x29b   :  { %v1978_v51 = vadd.f32 %v1977_v49, %v1976_v15  ;;  %v1840_v49 = vmul.f32 %v1740_v39, %v1740_v39  ;;  %v1987_v9 = vsel %vm1483_vm3, %v1839_v38, 0.0  ;;  %v1745_v39 = vsub.f32 %v3639_v36, %v3908_v7 }
 0x29d   :  { %v1980_v17 = vadd.f32 %v1979_v14, %v1978_v51  ;;  %v1841_v14 = vmul.f32 %v1741_v61, %v1741_v61  ;;  %v1989_v27 = vsel %vm1483_vm3, %v1840_v49, 0.0  ;;  %v1746_v61 = vsub.f32 %v3645_v1, %v3908_v7 }
 0x29f   :  { %v1982_v3 = vadd.f32 %v1981_v31, %v1980_v17  ;;  %v1842_v31 = vmul.f32 %v1742_v8, %v1742_v8  ;;  %v1991_v63 = vsel %vm1483_vm3, %v1841_v14, 0.0  ;;  %v1747_v8 = vsub.f32 %v3651_v28, %v3908_v7 }
 0x2a1   :  { %v1984_v15 = vadd.f32 %v1983_v52, %v1982_v3  ;;  %v1843_v52 = vmul.f32 %v1743_v21, %v1743_v21  ;;  %v1993_v38 = vsel %vm1483_vm3, %v1842_v31, 0.0  ;;  %v1748_v21 = vsub.f32 %v3657_v55, %v3908_v7 }
 0x2a3   :  { %v1986_v51 = vadd.f32 %v1985_v29, %v1984_v15  ;;  %v1844_v29 = vmul.f32 %v1744_v0, %v1744_v0  ;;  %v1995_v49 = vsel %vm1483_vm3, %v1843_v52, 0.0  ;;  %v1749_v0 = vsub.f32 %v3663_v62, %v3908_v7 }
 0x2a5   :  { %v1988_v17 = vadd.f32 %v1987_v9, %v1986_v51  ;;  %v1845_v9 = vmul.f32 %v1745_v39, %v1745_v39  ;;  %v1997_v14 = vsel %vm1483_vm3, %v1844_v29, 0.0  ;;  %v1750_v39 = vsub.f32 %v3669_v2, %v3908_v7 }
 0x2a7   :  { %v1990_v3 = vadd.f32 %v1989_v27, %v1988_v17  ;;  %v1846_v27 = vmul.f32 %v1746_v61, %v1746_v61  ;;  %v1999_v31 = vsel %vm1483_vm3, %v1845_v9, 0.0  ;;  %v1751_v61 = vsub.f32 %v3675_v6, %v3908_v7 }
 0x2a9   :  { %v1992_v15 = vadd.f32 %v1991_v63, %v1990_v3  ;;  %v1847_v63 = vmul.f32 %v1747_v8, %v1747_v8  ;;  %v2001_v52 = vsel %vm1483_vm3, %v1846_v27, 0.0  ;;  %v1752_v8 = vsub.f32 %v3681_v44, %v3908_v7 }
 0x2ab   :  { %v1994_v51 = vadd.f32 %v1993_v38, %v1992_v15  ;;  %v1848_v38 = vmul.f32 %v1748_v21, %v1748_v21  ;;  %v2003_v29 = vsel %vm1483_vm3, %v1847_v63, 0.0  ;;  %v1753_v21 = vsub.f32 %v3687_v13, %v3908_v7 }
 0x2ad   :  { %v1996_v17 = vadd.f32 %v1995_v49, %v1994_v51  ;;  %v1849_v49 = vmul.f32 %v1749_v0, %v1749_v0  ;;  %v2005_v9 = vsel %vm1483_vm3, %v1848_v38, 0.0  ;;  %v1754_v0 = vsub.f32 %v3693_v4, %v3908_v7 }
 0x2af   :  { %v1998_v3 = vadd.f32 %v1997_v14, %v1996_v17  ;;  %v1850_v14 = vmul.f32 %v1750_v39, %v1750_v39  ;;  %v2007_v27 = vsel %vm1483_vm3, %v1849_v49, 0.0  ;;  %v1755_v39 = vsub.f32 %v3699_v60, %v3908_v7 }
 0x2b1   :  { %v2000_v15 = vadd.f32 %v1999_v31, %v1998_v3  ;;  %v1851_v31 = vmul.f32 %v1751_v61, %v1751_v61  ;;  %v2009_v63 = vsel %vm1483_vm3, %v1850_v14, 0.0  ;;  %v1756_v61 = vsub.f32 %v3705_v19, %v3908_v7 }
 0x2b3   :  { %v2002_v51 = vadd.f32 %v2001_v52, %v2000_v15  ;;  %v1852_v52 = vmul.f32 %v1752_v8, %v1752_v8  ;;  %v2011_v38 = vsel %vm1483_vm3, %v1851_v31, 0.0  ;;  %v1757_v8 = vsub.f32 %v3716_v47, %v3908_v7 }
 0x2b5   :  { %v2004_v17 = vadd.f32 %v2003_v29, %v2002_v51  ;;  %v1853_v29 = vmul.f32 %v1753_v21, %v1753_v21  ;;  %v2013_v49 = vsel %vm1483_vm3, %v1852_v52, 0.0  ;;  %v1758_v21 = vsub.f32 %v3722_v57, %v3908_v7 }
 0x2b6   :  { %v1857_v19 = vmul.f32 %v1757_v8, %v1757_v8  ;;  %v1762_v8 = vsub.f32 %v3746_v30, %v3908_v7 }
 0x2b7   :  { %v2006_v3 = vadd.f32 %v2005_v9, %v2004_v17  ;;  %v1854_v9 = vmul.f32 %v1754_v0, %v1754_v0  ;;  %v2015_v14 = vsel %vm1483_vm3, %v1853_v29, 0.0  ;;  %v1858_v47 = vmul.f32 %v1758_v21, %v1758_v21 }
 0x2b8   :  { %v1763_v21 = vsub.f32 %v3752_v34, %v3908_v7 }
 0x2b9   :  { %v2008_v15 = vadd.f32 %v2007_v27, %v2006_v3  ;;  %v1855_v27 = vmul.f32 %v1755_v39, %v1755_v39  ;;  %v2017_v31 = vsel %vm1483_vm3, %v1854_v9, 0.0  ;;  %v2023_v9 = vsel %vm1483_vm3, %v1857_v19, 0.0 }
 0x2bb   :  { %v2010_v51 = vadd.f32 %v2009_v63, %v2008_v15  ;;  %v1856_v63 = vmul.f32 %v1756_v61, %v1756_v61  ;;  %v2019_v52 = vsel %vm1483_vm3, %v1855_v27, 0.0  ;;  %v1761_v61 = vsub.f32 %v3740_v37, %v3908_v7 }
 0x2bc   :  { %v2025_v27 = vsel %vm1483_vm3, %v1858_v47, 0.0 }
 0x2bd   :  { %v2012_v17 = vadd.f32 %v2011_v38, %v2010_v51  ;;  %v5482_v38 = vld [vmem:[#allocation58_spill] sm:$0xff]  ;;  %v2021_v29 = vsel %vm1483_vm3, %v1856_v63, 0.0 }
 0x2be   :  { %v1759_v0 = vsub.f32 %v5482_v38, %v3908_v7 }
 0x2bf   :  { %v2014_v3 = vadd.f32 %v2013_v49, %v2012_v17  ;;  %v5483_v49 = vld [vmem:[#allocation2_spill] sm:$0xff] }
 0x2c0   :  { %v1760_v39 = vsub.f32 %v5483_v49, %v3908_v7 }
 0x2c1   :  { %v2016_v15 = vadd.f32 %v2015_v14, %v2014_v3  ;;  %v1859_v14 = vmul.f32 %v1759_v0, %v1759_v0  ;;  %v1764_v0 = vsub.f32 %v3758_v22, %v3908_v7 }
 0x2c3   :  { %v2018_v51 = vadd.f32 %v2017_v31, %v2016_v15  ;;  %v1860_v31 = vmul.f32 %v1760_v39, %v1760_v39  ;;  %v2027_v63 = vsel %vm1483_vm3, %v1859_v14, 0.0  ;;  %v1765_v39 = vsub.f32 %v3764_v26, %v3908_v7 }
 0x2c5   :  { %v2020_v17 = vadd.f32 %v2019_v52, %v2018_v51  ;;  %v1861_v52 = vmul.f32 %v1761_v61, %v1761_v61  ;;  %v2029_v19 = vsel %vm1483_vm3, %v1860_v31, 0.0  ;;  %v1766_v61 = vsub.f32 %v3770_v32, %v3908_v7 }
 0x2c7   :  { %v2022_v3 = vadd.f32 %v2021_v29, %v2020_v17  ;;  %v1862_v29 = vmul.f32 %v1762_v8, %v1762_v8  ;;  %v2031_v47 = vsel %vm1483_vm3, %v1861_v52, 0.0  ;;  %v1767_v8 = vsub.f32 %v3776_v24, %v3908_v7 }
 0x2c9   :  { %v2024_v15 = vadd.f32 %v2023_v9, %v2022_v3  ;;  %v1863_v9 = vmul.f32 %v1763_v21, %v1763_v21  ;;  %v2033_v14 = vsel %vm1483_vm3, %v1862_v29, 0.0  ;;  %v1768_v21 = vsub.f32 %v3782_v18, %v3908_v7 }
 0x2cb   :  { %v2026_v51 = vadd.f32 %v2025_v27, %v2024_v15  ;;  %v1864_v27 = vmul.f32 %v1764_v0, %v1764_v0  ;;  %v2035_v31 = vsel %vm1483_vm3, %v1863_v9, 0.0  ;;  %v1769_v0 = vsub.f32 %v3788_v56, %v3908_v7 }
 0x2cd   :  { %v2028_v17 = vadd.f32 %v2027_v63, %v2026_v51  ;;  %v1865_v63 = vmul.f32 %v1765_v39, %v1765_v39  ;;  %v2037_v52 = vsel %vm1483_vm3, %v1864_v27, 0.0  ;;  %v1770_v39 = vsub.f32 %v3794_v16, %v3908_v7 }
 0x2cf   :  { %v2030_v3 = vadd.f32 %v2029_v19, %v2028_v17  ;;  %v1866_v19 = vmul.f32 %v1766_v61, %v1766_v61  ;;  %v2039_v29 = vsel %vm1483_vm3, %v1865_v63, 0.0  ;;  %v1771_v61 = vsub.f32 %v3800_v40, %v3908_v7 }
 0x2d1   :  { %v2032_v15 = vadd.f32 %v2031_v47, %v2030_v3  ;;  %v1867_v47 = vmul.f32 %v1767_v8, %v1767_v8  ;;  %v2041_v9 = vsel %vm1483_vm3, %v1866_v19, 0.0  ;;  %v1772_v8 = vsub.f32 %v3806_v42, %v3908_v7 }
 0x2d3   :  { %v2034_v51 = vadd.f32 %v2033_v14, %v2032_v15  ;;  %v1868_v14 = vmul.f32 %v1768_v21, %v1768_v21  ;;  %v2043_v27 = vsel %vm1483_vm3, %v1867_v47, 0.0  ;;  %v1773_v21 = vsub.f32 %v3812_v10, %v3908_v7 }
 0x2d5   :  { %v2036_v17 = vadd.f32 %v2035_v31, %v2034_v51  ;;  %v1869_v31 = vmul.f32 %v1769_v0, %v1769_v0  ;;  %v2045_v63 = vsel %vm1483_vm3, %v1868_v14, 0.0  ;;  %v1774_v0 = vsub.f32 %v3816_v46, %v3908_v7 }
 0x2d7   :  { %v2038_v3 = vadd.f32 %v2037_v52, %v2036_v17  ;;  %v1870_v52 = vmul.f32 %v1770_v39, %v1770_v39  ;;  %v2047_v19 = vsel %vm1483_vm3, %v1869_v31, 0.0  ;;  %v1775_v39 = vsub.f32 %v3822_v25, %v3908_v7 }
 0x2d9   :  { %v2040_v15 = vadd.f32 %v2039_v29, %v2038_v3  ;;  %v1871_v29 = vmul.f32 %v1771_v61, %v1771_v61  ;;  %v2049_v47 = vsel %vm1483_vm3, %v1870_v52, 0.0  ;;  %v1776_v61 = vsub.f32 %v3826_v59, %v3908_v7 }
 0x2db   :  { %v2042_v51 = vadd.f32 %v2041_v9, %v2040_v15  ;;  %v1872_v9 = vmul.f32 %v1772_v8, %v1772_v8  ;;  %v2051_v14 = vsel %vm1483_vm3, %v1871_v29, 0.0  ;;  %v1777_v8 = vsub.f32 %v3834_v50, %v3908_v7 }
 0x2dd   :  { %v2044_v17 = vadd.f32 %v2043_v27, %v2042_v51  ;;  %v1873_v27 = vmul.f32 %v1773_v21, %v1773_v21  ;;  %v2053_v31 = vsel %vm1483_vm3, %v1872_v9, 0.0  ;;  %v1778_v21 = vsub.f32 %v3840_v53, %v3908_v7 }
 0x2df   :  { %v2046_v3 = vadd.f32 %v2045_v63, %v2044_v17  ;;  %v1874_v63 = vmul.f32 %v1774_v0, %v1774_v0  ;;  %v2055_v52 = vsel %vm1483_vm3, %v1873_v27, 0.0  ;;  %v1779_v0 = vsub.f32 %v3846_v33, %v3908_v7 }
 0x2e1   :  { %v2048_v15 = vadd.f32 %v2047_v19, %v2046_v3  ;;  %v1875_v19 = vmul.f32 %v1775_v39, %v1775_v39  ;;  %v2057_v29 = vsel %vm1483_vm3, %v1874_v63, 0.0  ;;  %v1780_v39 = vsub.f32 %v3852_v48, %v3908_v7 }
 0x2e3   :  { %v2050_v51 = vadd.f32 %v2049_v47, %v2048_v15  ;;  %v1876_v47 = vmul.f32 %v1776_v61, %v1776_v61  ;;  %v2059_v9 = vsel %vm1483_vm3, %v1875_v19, 0.0  ;;  %v1781_v61 = vsub.f32 %v3858_v41, %v3908_v7 }
 0x2e4   :  { %v1880_v33 = vmul.f32 %v1780_v39, %v1780_v39 }
 0x2e5   :  { %v2052_v17 = vadd.f32 %v2051_v14, %v2050_v51  ;;  %v1877_v14 = vmul.f32 %v1777_v8, %v1777_v8  ;;  %v2061_v27 = vsel %vm1483_vm3, %v1876_v47, 0.0  ;;  %v1881_v48 = vmul.f32 %v1781_v61, %v1781_v61 }
 0x2e7   :  { %v2054_v3 = vadd.f32 %v2053_v31, %v2052_v17  ;;  %v1878_v31 = vmul.f32 %v1778_v21, %v1778_v21  ;;  %v2063_v63 = vsel %vm1483_vm3, %v1877_v14, 0.0  ;;  %v2069_v14 = vsel %vm1483_vm3, %v1880_v33, 0.0 }
 0x2e9   :  { %v2056_v15 = vadd.f32 %v2055_v52, %v2054_v3  ;;  %v1879_v52 = vmul.f32 %v1779_v0, %v1779_v0  ;;  %v2065_v19 = vsel %vm1483_vm3, %v1878_v31, 0.0  ;;  %v2071_v31 = vsel %vm1483_vm3, %v1881_v48, 0.0 }
 0x2eb   :  { %v2058_v51 = vadd.f32 %v2057_v29, %v2056_v15  ;;  %v5484_v29 = vld [vmem:[#allocation59_spill] sm:$0xff]  ;;  %v2067_v47 = vsel %vm1483_vm3, %v1879_v52, 0.0 }
 0x2ec   :  { %v1782_v8 = vsub.f32 %v5484_v29, %v3908_v7 }
 0x2ed   :  { %v2060_v17 = vadd.f32 %v2059_v9, %v2058_v51  ;;  %v5485_v9 = vld [vmem:[#allocation60_spill] sm:$0xff] }
 0x2ee   :  { %v1783_v21 = vsub.f32 %v5485_v9, %v3908_v7  ;;  %v1882_v41 = vmul.f32 %v1782_v8, %v1782_v8 }
 0x2ef   :  { %v2062_v3 = vadd.f32 %v2061_v27, %v2060_v17  ;;  %v5486_v27 = vld [vmem:[#allocation61_spill] sm:$0xff] }
 0x2f0   :  { %v1784_v0 = vsub.f32 %v5486_v27, %v3908_v7  ;;  %v1883_v29 = vmul.f32 %v1783_v21, %v1783_v21  ;;  %v2073_v52 = vsel %vm1483_vm3, %v1882_v41, 0.0 }
 0x2f1   :  { %v2064_v15 = vadd.f32 %v2063_v63, %v2062_v3  ;;  %v5487_v63 = vld [vmem:[#allocation62_spill] sm:$0xff] }
 0x2f2   :  { %v1785_v39 = vsub.f32 %v5487_v63, %v3908_v7  ;;  %v1884_v9 = vmul.f32 %v1784_v0, %v1784_v0  ;;  %v2075_v33 = vsel %vm1483_vm3, %v1883_v29, 0.0 }
 0x2f3   :  { %v2066_v51 = vadd.f32 %v2065_v19, %v2064_v15  ;;  %v5488_v19 = vld [vmem:[#allocation63_spill] sm:$0xff] }
 0x2f4   :  { %v1786_v61 = vsub.f32 %v5488_v19, %v3908_v7  ;;  %v1885_v27 = vmul.f32 %v1785_v39, %v1785_v39  ;;  %v2077_v48 = vsel %vm1483_vm3, %v1884_v9, 0.0 }
 0x2f5   :  { %v2068_v17 = vadd.f32 %v2067_v47, %v2066_v51  ;;  %v5489_v47 = vld [vmem:[#allocation64_spill] sm:$0xff] }
 0x2f6   :  { %v1787_v8 = vsub.f32 %v5489_v47, %v3908_v7  ;;  %v1886_v63 = vmul.f32 %v1786_v61, %v1786_v61  ;;  %v2079_v41 = vsel %vm1483_vm3, %v1885_v27, 0.0 }
 0x2f7   :  { %v2070_v3 = vadd.f32 %v2069_v14, %v2068_v17  ;;  %v5490_v14 = vld [vmem:[#allocation55_spill] sm:$0xff] }
 0x2f8   :  { %v1788_v21 = vsub.f32 %v5490_v14, %v3908_v7  ;;  %v1887_v19 = vmul.f32 %v1787_v8, %v1787_v8  ;;  %v2081_v39 = vsel %vm1483_vm3, %v1886_v63, 0.0  ;;  %v2099_v63 = vlaneseq }
 0x2f9   :  { %v2072_v15 = vadd.f32 %v2071_v31, %v2070_v3  ;;  %v5491_v31 = vld [vmem:[#allocation65_spill] sm:$0xff] }
 0x2fa   :  { %v1789_v0 = vsub.f32 %v5491_v31, %v3908_v7 }
 0x2fb   :  { %v2074_v51 = vadd.f32 %v2073_v52, %v2072_v15  ;;  %v1888_v52 = vmul.f32 %v1788_v21, %v1788_v21 }
 0x2fc   :  { %v1889_v29 = vmul.f32 %v1789_v0, %v1789_v0  ;;  %v4210_v0 = vshrl.u32 %v2099_v63, 7 }
 0x2fd   :  { %v2076_v17 = vadd.f32 %v2075_v33, %v2074_v51  ;;  %v2083_v51 = vsel %vm1483_vm3, %v1887_v19, 0.0  ;;  %v2085_v61 = vsel %vm1483_vm3, %v1888_v52, 0.0  ;;  %v1481_v19 = vld [vmem:[%s5233_s2 + $0x1] sm:$0x1] }
 0x2fe   :  { %v2087_v9 = vsel %vm1483_vm3, %v1889_v29, 0.0 }
 0x2ff   :  { %v2078_v3 = vadd.f32 %v2077_v48, %v2076_v17 }
 0x301   :  { %v2080_v15 = vadd.f32 %v2079_v41, %v2078_v3 }
 0x303   :  { %v2082_v47 = vadd.f32 %v2081_v39, %v2080_v15  ;;  %v5357_v15 = vsub.s32 0, %v4210_v0  ;;  %v5493_v39 = vld [vmem:[#allocation5_spill] sm:$0xff] }
 0x305   :  { %v2084_v33 = vadd.f32 %v2083_v51, %v2082_v47 }
 0x307   :  { %v2086_v14 = vadd.f32 %v2085_v61, %v2084_v33  ;;  %v5494_v33 = vld [vmem:[#allocation7_spill] sm:$0xff] }
 0x309   :  { %v2088_v17 = vadd.f32 %v2087_v9, %v2086_v14  ;;  %v5495_v9 = vld [vmem:[#allocation9_spill] sm:$0xff] }
 0x30b   :  { %v2089_v48 = vrot.slane %v2088_v17, 4 }
 0x30d   :  { %v2090_v31 = vadd.f32 %v2089_v48, %v2088_v17  ;;  %v5496_v48 = vld [vmem:[#allocation10_spill] sm:$0xff] }
 0x30f   :  { %v2091_v8 = vrot.slane %v2090_v31, 2 }
 0x311   :  { %v2092_v53 = vadd.f32 %v2091_v8, %v2090_v31  ;;  %v5492_v31 = vld [vmem:[#allocation6_spill] sm:$0xff] }
 0x313   :  { %v2093_v27 = vrot.slane %v2092_v53, 1 }
 0x315   :  { %v2094_v3 = vadd.f32 %v2093_v27, %v2092_v53  ;;  %v5497_v27 = vld [vmem:[#allocation12_spill] sm:$0xff] }
 0x317   :  { %v2095_v21 = vmul.f32 0.00125, %v2094_v3 }
 0x319   :  { %v2096_v41 = vadd.f32 1e-05, %v2095_v21  ;;  %v5498_v21 = vld [vmem:[#allocation13_spill] sm:$0xff] }
 0x31b   :  { %2729 = vrsqrt.f32 %v2096_v41  ;;  %v5499_v41 = vld [vmem:[#allocation14_spill] sm:$0xff] }
 0x328   :  { %v2730_v47 = vpop.eup %2729 }
 0x329   :  { %v2098_v14 = vmul.f32 %v2730_v47, %v1481_v19  ;;  %v5500_v19 = vld [vmem:[#allocation15_spill] sm:$0xff] }
 0x32b   :  { %v4218_v52 = vrot.slane %v2098_v14, %v5357_v15  ;;  %v4229_v51 = vmul.f32 %v2098_v14, %v3908_v7  ;;  %v5501_v14 = vld [vmem:[#allocation16_spill] sm:$0xff]  ;;  %v5511_v15 = vld [vmem:[#allocation21_spill] sm:$0xff] }
 0x32d   :  { %v4222_v53 = vmul.f32 %v4218_v52, %v5492_v31  ;;  %v4226_v29 = vmul.f32 %v4218_v52, %v5493_v39  ;;  %v4233_v61 = vmul.f32 %v4218_v52, %v5494_v33  ;;  %v4237_v17 = vmul.f32 %v4218_v52, %v5495_v9  ;;  %v5503_v39 = vld [vmem:[#allocation17_spill] sm:$0xff]  ;;  %v5505_v9 = vld [vmem:[#allocation18_spill] sm:$0xff] }
 0x32e   :  { %v4241_v8 = vmul.f32 %v4218_v52, %v5496_v48  ;;  %v4245_v3 = vmul.f32 %v4218_v52, %v5497_v27  ;;  %v4249_v7 = vmul.f32 %v4218_v52, %v5498_v21  ;;  %v4253_v63 = vmul.f32 %v4218_v52, %v5499_v41  ;;  %v5507_v27 = vld [vmem:[#allocation19_spill] sm:$0xff]  ;;  %v5509_v41 = vld [vmem:[#allocation20_spill] sm:$0xff] }
 0x32f   :  { %v4257_v47 = vmul.f32 %v4218_v52, %v5500_v19  ;;  %v4261_v31 = vmul.f32 %v4218_v52, %v5501_v14  ;;  %v4265_v33 = vmul.f32 %v4218_v52, %v5503_v39  ;;  %v4269_v48 = vmul.f32 %v4218_v52, %v5505_v9 }
 0x330   :  { %v4273_v21 = vmul.f32 %v4218_v52, %v5507_v27  ;;  %v4277_v19 = vmul.f32 %v4218_v52, %v5509_v41  ;;  %v4281_v14 = vmul.f32 %v4218_v52, %v5511_v15 }
 0x331   :  { %5502 = vst [vmem:[#allocation52_spill] sm:$0xff] %v4261_v31  ;;  %5504 = vst [vmem:[#allocation53_spill] sm:$0xff] %v4265_v33  ;;  %v5513_v31 = vld [vmem:[#allocation22_spill] sm:$0xff]  ;;  %v5515_v33 = vld [vmem:[#allocation23_spill] sm:$0xff] }
 0x332   :  { %5506 = vst [vmem:[#allocation54_spill] sm:$0xff] %v4269_v48  ;;  %5508 = vst [vmem:[#allocation58_spill] sm:$0xff] %v4273_v21  ;;  %v4285_v39 = vmul.f32 %v4218_v52, %v5513_v31  ;;  %v4289_v9 = vmul.f32 %v4218_v52, %v5515_v33  ;;  %v5517_v48 = vld [vmem:[#allocation24_spill] sm:$0xff]  ;;  %v5519_v21 = vld [vmem:[#allocation25_spill] sm:$0xff] }
 0x333   :  { %5510 = vst [vmem:[#allocation2_spill] sm:$0xff] %v4277_v19  ;;  %5512 = vst [vmem:[#allocation6_spill] sm:$0xff] %v4281_v14  ;;  %v4293_v27 = vmul.f32 %v4218_v52, %v5517_v48  ;;  %v4297_v41 = vmul.f32 %v4218_v52, %v5519_v21  ;;  %v5521_v19 = vld [vmem:[#allocation26_spill] sm:$0xff]  ;;  %v5523_v14 = vld [vmem:[#allocation27_spill] sm:$0xff] }
 0x334   :  { %5514 = vst [vmem:[#allocation5_spill] sm:$0xff] %v4285_v39  ;;  %5516 = vst [vmem:[#allocation7_spill] sm:$0xff] %v4289_v9  ;;  %v4301_v15 = vmul.f32 %v4218_v52, %v5521_v19  ;;  %v4305_v31 = vmul.f32 %v4218_v52, %v5523_v14  ;;  %v5525_v39 = vld [vmem:[#allocation28_spill] sm:$0xff]  ;;  %v5527_v9 = vld [vmem:[#allocation29_spill] sm:$0xff] }
 0x335   :  { %5518 = vst [vmem:[#allocation9_spill] sm:$0xff] %v4293_v27  ;;  %5520 = vst [vmem:[#allocation10_spill] sm:$0xff] %v4297_v41  ;;  %v4309_v33 = vmul.f32 %v4218_v52, %v5525_v39  ;;  %v4313_v48 = vmul.f32 %v4218_v52, %v5527_v9  ;;  %v5529_v27 = vld [vmem:[#allocation30_spill] sm:$0xff]  ;;  %v5531_v41 = vld [vmem:[#allocation31_spill] sm:$0xff] }
 0x336   :  { %5522 = vst [vmem:[#allocation12_spill] sm:$0xff] %v4301_v15  ;;  %5524 = vst [vmem:[#allocation13_spill] sm:$0xff] %v4305_v31  ;;  %v4317_v21 = vmul.f32 %v4218_v52, %v5529_v27  ;;  %v4321_v19 = vmul.f32 %v4218_v52, %v5531_v41  ;;  %v5533_v15 = vld [vmem:[#allocation32_spill] sm:$0xff]  ;;  %v5535_v31 = vld [vmem:[#allocation33_spill] sm:$0xff] }
 0x337   :  { %5526 = vst [vmem:[#allocation14_spill] sm:$0xff] %v4309_v33  ;;  %5528 = vst [vmem:[#allocation15_spill] sm:$0xff] %v4313_v48  ;;  %v4325_v14 = vmul.f32 %v4218_v52, %v5533_v15  ;;  %v4329_v39 = vmul.f32 %v4218_v52, %v5535_v31  ;;  %v5537_v33 = vld [vmem:[#allocation34_spill] sm:$0xff]  ;;  %v5539_v48 = vld [vmem:[#allocation35_spill] sm:$0xff] }
 0x338   :  { %5530 = vst [vmem:[#allocation16_spill] sm:$0xff] %v4317_v21  ;;  %5532 = vst [vmem:[#allocation17_spill] sm:$0xff] %v4321_v19  ;;  %v4333_v9 = vmul.f32 %v4218_v52, %v5537_v33  ;;  %v4337_v27 = vmul.f32 %v4218_v52, %v5539_v48  ;;  %v5541_v21 = vld [vmem:[#allocation36_spill] sm:$0xff]  ;;  %v5543_v19 = vld [vmem:[#allocation37_spill] sm:$0xff] }
 0x339   :  { %5534 = vst [vmem:[#allocation18_spill] sm:$0xff] %v4325_v14  ;;  %5536 = vst [vmem:[#allocation19_spill] sm:$0xff] %v4329_v39  ;;  %v4341_v41 = vmul.f32 %v4218_v52, %v5541_v21  ;;  %v4345_v15 = vmul.f32 %v4218_v52, %v5543_v19  ;;  %v5545_v14 = vld [vmem:[#allocation38_spill] sm:$0xff]  ;;  %v5547_v39 = vld [vmem:[#allocation39_spill] sm:$0xff] }
 0x33a   :  { %5538 = vst [vmem:[#allocation20_spill] sm:$0xff] %v4333_v9  ;;  %5540 = vst [vmem:[#allocation21_spill] sm:$0xff] %v4337_v27  ;;  %v4349_v31 = vmul.f32 %v4218_v52, %v5545_v14  ;;  %v4353_v33 = vmul.f32 %v4218_v52, %v5547_v39  ;;  %v5549_v9 = vld [vmem:[#allocation40_spill] sm:$0xff]  ;;  %v5551_v27 = vld [vmem:[#allocation41_spill] sm:$0xff] }
 0x33b   :  { %5542 = vst [vmem:[#allocation22_spill] sm:$0xff] %v4341_v41  ;;  %5544 = vst [vmem:[#allocation23_spill] sm:$0xff] %v4345_v15  ;;  %v4357_v48 = vmul.f32 %v4218_v52, %v5549_v9  ;;  %v4361_v21 = vmul.f32 %v4218_v52, %v5551_v27  ;;  %v5553_v41 = vld [vmem:[#allocation42_spill] sm:$0xff]  ;;  %v5555_v15 = vld [vmem:[#allocation43_spill] sm:$0xff] }
 0x33c   :  { %5546 = vst [vmem:[#allocation24_spill] sm:$0xff] %v4349_v31  ;;  %5548 = vst [vmem:[#allocation25_spill] sm:$0xff] %v4353_v33  ;;  %v4365_v19 = vmul.f32 %v4218_v52, %v5553_v41  ;;  %v4369_v14 = vmul.f32 %v4218_v52, %v5555_v15  ;;  %v5557_v31 = vld [vmem:[#allocation44_spill] sm:$0xff]  ;;  %v5559_v33 = vld [vmem:[#allocation45_spill] sm:$0xff] }
 0x33d   :  { %5550 = vst [vmem:[#allocation26_spill] sm:$0xff] %v4357_v48  ;;  %5552 = vst [vmem:[#allocation27_spill] sm:$0xff] %v4361_v21  ;;  %v4373_v39 = vmul.f32 %v4218_v52, %v5557_v31  ;;  %v4377_v9 = vmul.f32 %v4218_v52, %v5559_v33  ;;  %v5561_v48 = vld [vmem:[#allocation46_spill] sm:$0xff]  ;;  %v5562_v21 = vld [vmem:[#allocation47_spill] sm:$0xff] }
 0x33e   :  { %5554 = vst [vmem:[#allocation28_spill] sm:$0xff] %v4365_v19  ;;  %5556 = vst [vmem:[#allocation29_spill] sm:$0xff] %v4369_v14  ;;  %v4381_v27 = vmul.f32 %v4218_v52, %v5561_v48  ;;  %v4385_v41 = vmul.f32 %v4218_v52, %v5562_v21  ;;  %v5563_v19 = vld [vmem:[#allocation48_spill] sm:$0xff]  ;;  %v5564_v14 = vld [vmem:[#allocation49_spill] sm:$0xff]  ;;  %v4405_v21 = vmul.f32 %v4218_v52, %v5479_v20 }
 0x33f   :  { %5558 = vst [vmem:[#allocation30_spill] sm:$0xff] %v4373_v39  ;;  %5560 = vst [vmem:[#allocation31_spill] sm:$0xff] %v4377_v9  ;;  %v4389_v15 = vmul.f32 %v4218_v52, %v5563_v19  ;;  %v4393_v31 = vmul.f32 %v4218_v52, %v5564_v14  ;;  %v5565_v39 = vld [vmem:[#allocation50_spill] sm:$0xff]  ;;  %v5566_v9 = vld [vmem:[#allocation51_spill] sm:$0xff]  ;;  %v4409_v19 = vmul.f32 %v4218_v52, %v5480_v43 }
 0x340   :  { %v4397_v33 = vmul.f32 %v4218_v52, %v5565_v39  ;;  %v4401_v48 = vmul.f32 %v4218_v52, %v5566_v9  ;;  %v4413_v14 = vmul.f32 %v4218_v52, %v5481_v12  ;;  %v4417_v39 = vmul.f32 %v4218_v52, %v3599_v23 }
 0x341   :  { %v4421_v9 = vmul.f32 %v4218_v52, %v3611_v54  ;;  %v4425_v20 = vmul.f32 %v4218_v52, %v3607_v45  ;;  %v4429_v43 = vmul.f32 %v4218_v52, %v3615_v11  ;;  %v4433_v12 = vmul.f32 %v4218_v52, %v3621_v5 }
 0x342   :  { %v4437_v23 = vmul.f32 %v4218_v52, %v3627_v58  ;;  %v4441_v54 = vmul.f32 %v4218_v52, %v3633_v35  ;;  %v4445_v45 = vmul.f32 %v4218_v52, %v3639_v36  ;;  %v4449_v11 = vmul.f32 %v4218_v52, %v3645_v1 }
 0x343   :  { %v4453_v5 = vmul.f32 %v4218_v52, %v3651_v28  ;;  %v4457_v58 = vmul.f32 %v4218_v52, %v3657_v55  ;;  %v4461_v35 = vmul.f32 %v4218_v52, %v3663_v62  ;;  %v4465_v36 = vmul.f32 %v4218_v52, %v3669_v2 }
 0x344   :  { %v4469_v1 = vmul.f32 %v4218_v52, %v3675_v6  ;;  %v4473_v28 = vmul.f32 %v4218_v52, %v3681_v44  ;;  %v4477_v55 = vmul.f32 %v4218_v52, %v3687_v13  ;;  %v4481_v62 = vmul.f32 %v4218_v52, %v3693_v4 }
 0x345   :  { %5567 = vst [vmem:[#allocation32_spill] sm:$0xff] %v4465_v36  ;;  %v4485_v2 = vmul.f32 %v4218_v52, %v3699_v60  ;;  %v5569_v36 = vld [vmem:[#allocation56_spill] sm:$0xff]  ;;  %v4497_v13 = vmul.f32 %v4218_v52, %v3722_v57  ;;  %v4501_v4 = vmul.f32 %v4218_v52, %v5482_v38  ;;  %v4505_v60 = vmul.f32 %v4218_v52, %v5483_v49  ;;  %v1482_v38 = vld [vmem:[%s5233_s2 + $0x2] sm:$0x1] }
 0x346   :  { %5568 = vst [vmem:[#allocation33_spill] sm:$0xff] %v4469_v1  ;;  %v4489_v6 = vmul.f32 %v4218_v52, %v5569_v36  ;;  %v5570_v1 = vld [vmem:[#allocation57_spill] sm:$0xff]  ;;  %v4509_v36 = vmul.f32 %v4218_v52, %v3740_v37  ;;  %v4517_v57 = vmul.f32 %v4218_v52, %v3752_v34  ;;  %v4524_v49 = vmul.f32 %v4218_v52, %v3758_v22 }
 0x347   :  { %v4493_v44 = vmul.f32 %v4218_v52, %v5570_v1  ;;  %v4513_v1 = vmul.f32 %v4218_v52, %v3746_v30  ;;  %v4528_v37 = vmul.f32 %v4218_v52, %v3764_v26  ;;  %v4532_v30 = vmul.f32 %v4218_v52, %v3770_v32 }
 0x348   :  { %5571 = vst [vmem:[#allocation34_spill] sm:$0xff] %v4517_v57  ;;  %v4536_v34 = vmul.f32 %v4218_v52, %v3776_v24  ;;  %v4540_v57 = vmul.f32 %v4218_v52, %v3782_v18  ;;  %v4544_v22 = vmul.f32 %v4218_v52, %v3788_v56  ;;  %v4548_v26 = vmul.f32 %v4218_v52, %v3794_v16 }
 0x349   :  { %v4552_v32 = vmul.f32 %v4218_v52, %v3800_v40  ;;  %v4556_v24 = vmul.f32 %v4218_v52, %v3806_v42  ;;  %v4560_v18 = vmul.f32 %v4218_v52, %v3812_v10  ;;  %v4564_v56 = vmul.f32 %v4218_v52, %v3816_v46  ;;  %v5580_v46 = vld [vmem:[#allocation4_spill] sm:$0xff] }
 0x34a   :  { %v4568_v16 = vmul.f32 %v4218_v52, %v3822_v25  ;;  %v4572_v40 = vmul.f32 %v4218_v52, %v3826_v59  ;;  %v4576_v42 = vmul.f32 %v4218_v52, %v3834_v50  ;;  %v5581_v25 = vld [vmem:[#allocation8_spill] sm:$0xff]  ;;  %v5583_v59 = vld [vmem:[#allocation11_spill] sm:$0xff] }
 0x34b   :  { %5572 = vst [vmem:[#allocation35_spill] sm:$0xff] %v4556_v24  ;;  %5573 = vst [vmem:[#allocation36_spill] sm:$0xff] %v4560_v18  ;;  %v5578_v24 = vld [vmem:[#allocation3_spill] sm:$0xff]  ;;  %v2204_v18 = vsub.f32 %v1482_v38, %v4229_v51  ;;  %v5589_v51 = vld [vmem:[#allocation61_spill] sm:$0xff] }
 0x34c   :  { %5574 = vst [vmem:[#allocation37_spill] sm:$0xff] %v4564_v56  ;;  %5575 = vst [vmem:[#allocation38_spill] sm:$0xff] %v4568_v16  ;;  %v4580_v10 = vmul.f32 %v4218_v52, %v5578_v24  ;;  %v4585_v56 = vmul.f32 %v4218_v52, %v5580_v46  ;;  %v4589_v16 = vmul.f32 %v4218_v52, %v5581_v25  ;;  %v5585_v50 = vld [vmem:[#allocation59_spill] sm:$0xff]  ;;  %v5587_v24 = vld [vmem:[#allocation60_spill] sm:$0xff] }
 0x34d   :  { %5576 = vst [vmem:[#allocation39_spill] sm:$0xff] %v4572_v40  ;;  %5577 = vst [vmem:[#allocation40_spill] sm:$0xff] %v4576_v42  ;;  %v4593_v40 = vmul.f32 %v4218_v52, %v5583_v59  ;;  %v4597_v42 = vmul.f32 %v4218_v52, %v5585_v50  ;;  %v4605_v38 = vmul.f32 %v4218_v52, %v5589_v51  ;;  %v5591_v46 = vld [vmem:[#allocation62_spill] sm:$0xff] }
 0x34e   :  { %5579 = vst [vmem:[#allocation41_spill] sm:$0xff] %v4580_v10  ;;  %5582 = vst [vmem:[#allocation42_spill] sm:$0xff] %v4589_v16  ;;  %v4601_v10 = vmul.f32 %v4218_v52, %v5587_v24  ;;  %v4609_v25 = vmul.f32 %v4218_v52, %v5591_v46  ;;  %v5592_v16 = vsub.s32 0, %v4210_v0 }
 0x34f   :  { %5584 = vst [vmem:[#allocation43_spill] sm:$0xff] %v4593_v40  ;;  %5586 = vst [vmem:[#allocation44_spill] sm:$0xff] %v4597_v42  ;;  %v5593_v40 = vld [vmem:[#allocation63_spill] sm:$0xff]  ;;  %v5594_v42 = vld [vmem:[#allocation64_spill] sm:$0xff] }
 0x350   :  { %5588 = vst [vmem:[#allocation45_spill] sm:$0xff] %v4601_v10  ;;  %5590 = vst [vmem:[#allocation46_spill] sm:$0xff] %v4605_v38  ;;  %v4613_v59 = vrot.slane %v2204_v18, %v5592_v16  ;;  %v4617_v50 = vmul.f32 %v4218_v52, %v5593_v40  ;;  %v4621_v24 = vmul.f32 %v4218_v52, %v5594_v42  ;;  %v5595_v10 = vld [vmem:[#allocation55_spill] sm:$0xff]  ;;  %v5597_v38 = vld [vmem:[#allocation65_spill] sm:$0xff] }
 0x351   :  { %v4625_v51 = vmul.f32 %v4218_v52, %v5595_v10  ;;  %v4629_v46 = vmul.f32 %v4218_v52, %v5597_v38  ;;  %v5599_v38 = vld [vmem:[#allocation52_spill] sm:$0xff] }
 0x352   :  { %v2209_v0 = vadd.f32 %v4613_v59, %v4222_v53  ;;  %v2210_v18 = vadd.f32 %v4613_v59, %v4226_v29  ;;  %v2211_v16 = vadd.f32 %v4613_v59, %v4233_v61  ;;  %v2212_v40 = vadd.f32 %v4613_v59, %v4237_v17 }
 0x353   :  { %5596 = vst [vmem:[#allocation47_spill] sm:$0xff] %v4625_v51  ;;  %5598 = vst [vmem:[#allocation48_spill] sm:$0xff] %v4629_v46  ;;  %v2213_v42 = vadd.f32 %v4613_v59, %v4241_v8  ;;  %v2214_v10 = vadd.f32 %v4613_v59, %v4245_v3  ;;  %v2215_v52 = vadd.f32 %v4613_v59, %v4249_v7  ;;  %v5600_v46 = vld [vmem:[#allocation53_spill] sm:$0xff]  ;;  %v5601_v51 = vld [vmem:[#allocation54_spill] sm:$0xff] }
 0x354   :  { %v2216_v53 = vadd.f32 %v4613_v59, %v4253_v63  ;;  %v2217_v29 = vadd.f32 %v4613_v59, %v4257_v47  ;;  %v2218_v61 = vadd.f32 %v4613_v59, %v5599_v38  ;;  %v2219_v17 = vadd.f32 %v4613_v59, %v5600_v46  ;;  %2309 = vst.msk [vmem:[%s5234_s3] sm:$0xff] %vm1483_vm3, %v2209_v0  ;;  %v5602_v3 = vld [vmem:[#allocation58_spill] sm:$0xff]  ;;  %v5605_v0 = vld [vmem:[#allocation5_spill] sm:$0xff] }
 0x355   :  { %v2220_v8 = vadd.f32 %v4613_v59, %v5601_v51  ;;  %2310 = vst.msk [vmem:[%s5234_s3 + $0x8] sm:$0xff] %vm1483_vm3, %v2210_v18  ;;  %2311 = vst.msk [vmem:[%s5234_s3 + $0x10] sm:$0xff] %vm1483_vm3, %v2211_v16  ;;  %v2221_v7 = vadd.f32 %v4613_v59, %v5602_v3  ;;  %v5603_v63 = vld [vmem:[#allocation2_spill] sm:$0xff]  ;;  %v2224_v18 = vadd.f32 %v4613_v59, %v5605_v0  ;;  %v5606_v16 = vld [vmem:[#allocation7_spill] sm:$0xff] }
 0x356   :  { %2312 = vst.msk [vmem:[%s5234_s3 + $0x18] sm:$0xff] %vm1483_vm3, %v2212_v40  ;;  %v2222_v47 = vadd.f32 %v4613_v59, %v5603_v63  ;;  %v5604_v51 = vld [vmem:[#allocation6_spill] sm:$0xff]  ;;  %2313 = vst.msk [vmem:[%s5234_s3 + $0x20] sm:$0xff] %vm1483_vm3, %v2213_v42  ;;  %v2225_v40 = vadd.f32 %v4613_v59, %v5606_v16  ;;  %v5607_v38 = vld [vmem:[#allocation9_spill] sm:$0xff] }
 0x357   :  { %v2223_v46 = vadd.f32 %v4613_v59, %v5604_v51  ;;  %2314 = vst.msk [vmem:[%s5234_s3 + $0x28] sm:$0xff] %vm1483_vm3, %v2214_v10  ;;  %2315 = vst.msk [vmem:[%s5234_s3 + $0x30] sm:$0xff] %vm1483_vm3, %v2215_v52  ;;  %v2226_v42 = vadd.f32 %v4613_v59, %v5607_v38  ;;  %v5608_v3 = vld [vmem:[#allocation10_spill] sm:$0xff]  ;;  %v5609_v10 = vld [vmem:[#allocation12_spill] sm:$0xff] }
 0x358   :  { %2316 = vst.msk [vmem:[%s5234_s3 + $0x38] sm:$0xff] %vm1483_vm3, %v2216_v53  ;;  %v2227_v63 = vadd.f32 %v4613_v59, %v5608_v3  ;;  %v2228_v51 = vadd.f32 %v4613_v59, %v5609_v10  ;;  %2317 = vst.msk [vmem:[%s5234_s3 + $0x40] sm:$0xff] %vm1483_vm3, %v2217_v29  ;;  %v5610_v52 = vld [vmem:[#allocation13_spill] sm:$0xff]  ;;  %v5611_v0 = vld [vmem:[#allocation14_spill] sm:$0xff] }
 0x359   :  { %2318 = vst.msk [vmem:[%s5234_s3 + $0x48] sm:$0xff] %vm1483_vm3, %v2218_v61  ;;  %2319 = vst.msk [vmem:[%s5234_s3 + $0x50] sm:$0xff] %vm1483_vm3, %v2219_v17  ;;  %v2229_v53 = vadd.f32 %v4613_v59, %v5610_v52  ;;  %v2230_v29 = vadd.f32 %v4613_v59, %v5611_v0  ;;  %v5612_v16 = vld [vmem:[#allocation15_spill] sm:$0xff]  ;;  %v5613_v61 = vld [vmem:[#allocation16_spill] sm:$0xff] }
 0x35a   :  { %2320 = vst.msk [vmem:[%s5234_s3 + $0x58] sm:$0xff] %vm1483_vm3, %v2220_v8  ;;  %v2231_v38 = vadd.f32 %v4613_v59, %v5612_v16  ;;  %v2232_v3 = vadd.f32 %v4613_v59, %v5613_v61  ;;  %2321 = vst.msk [vmem:[%s5234_s3 + $0x60] sm:$0xff] %vm1483_vm3, %v2221_v7  ;;  %v5614_v17 = vld [vmem:[#allocation17_spill] sm:$0xff]  ;;  %v5615_v10 = vld [vmem:[#allocation18_spill] sm:$0xff] }
 0x35b   :  { %2322 = vst.msk [vmem:[%s5234_s3 + $0x68] sm:$0xff] %vm1483_vm3, %v2222_v47  ;;  %2323 = vst.msk [vmem:[%s5234_s3 + $0x70] sm:$0xff] %vm1483_vm3, %v2223_v46  ;;  %v2233_v8 = vadd.f32 %v4613_v59, %v5614_v17  ;;  %v2234_v7 = vadd.f32 %v4613_v59, %v5615_v10  ;;  %v5616_v52 = vld [vmem:[#allocation19_spill] sm:$0xff]  ;;  %v5617_v47 = vld [vmem:[#allocation20_spill] sm:$0xff] }
 0x35c   :  { %2324 = vst.msk [vmem:[%s5234_s3 + $0x78] sm:$0xff] %vm1483_vm3, %v2224_v18  ;;  %v2235_v0 = vadd.f32 %v4613_v59, %v5616_v52  ;;  %v2236_v16 = vadd.f32 %v4613_v59, %v5617_v47  ;;  %2325 = vst.msk [vmem:[%s5234_s3 + $0x80] sm:$0xff] %vm1483_vm3, %v2225_v40  ;;  %v5618_v46 = vld [vmem:[#allocation21_spill] sm:$0xff]  ;;  %v5619_v61 = vld [vmem:[#allocation22_spill] sm:$0xff] }
 0x35d   :  { %2326 = vst.msk [vmem:[%s5234_s3 + $0x88] sm:$0xff] %vm1483_vm3, %v2226_v42  ;;  %2327 = vst.msk [vmem:[%s5234_s3 + $0x90] sm:$0xff] %vm1483_vm3, %v2227_v63  ;;  %v2237_v18 = vadd.f32 %v4613_v59, %v5618_v46  ;;  %v2238_v40 = vadd.f32 %v4613_v59, %v5619_v61  ;;  %v5620_v17 = vld [vmem:[#allocation23_spill] sm:$0xff]  ;;  %v5621_v42 = vld [vmem:[#allocation24_spill] sm:$0xff] }
 0x35e   :  { %2328 = vst.msk [vmem:[%s5234_s3 + $0x98] sm:$0xff] %vm1483_vm3, %v2228_v51  ;;  %v2239_v10 = vadd.f32 %v4613_v59, %v5620_v17  ;;  %v2240_v52 = vadd.f32 %v4613_v59, %v5621_v42  ;;  %2329 = vst.msk [vmem:[%s5234_s3 + $0xa0] sm:$0xff] %vm1483_vm3, %v2229_v53  ;;  %v5622_v63 = vld [vmem:[#allocation25_spill] sm:$0xff]  ;;  %v5623_v47 = vld [vmem:[#allocation26_spill] sm:$0xff] }
 0x35f   :  { %2330 = vst.msk [vmem:[%s5234_s3 + $0xa8] sm:$0xff] %vm1483_vm3, %v2230_v29  ;;  %2331 = vst.msk [vmem:[%s5234_s3 + $0xb0] sm:$0xff] %vm1483_vm3, %v2231_v38  ;;  %v2241_v51 = vadd.f32 %v4613_v59, %v5622_v63  ;;  %v2242_v53 = vadd.f32 %v4613_v59, %v5623_v47  ;;  %v5624_v46 = vld [vmem:[#allocation27_spill] sm:$0xff]  ;;  %v5625_v29 = vld [vmem:[#allocation28_spill] sm:$0xff] }
 0x360   :  { %2332 = vst.msk [vmem:[%s5234_s3 + $0xb8] sm:$0xff] %vm1483_vm3, %v2232_v3  ;;  %v2243_v61 = vadd.f32 %v4613_v59, %v5624_v46  ;;  %v2244_v17 = vadd.f32 %v4613_v59, %v5625_v29  ;;  %2333 = vst.msk [vmem:[%s5234_s3 + $0xc0] sm:$0xff] %vm1483_vm3, %v2233_v8  ;;  %v5626_v38 = vld [vmem:[#allocation29_spill] sm:$0xff]  ;;  %v5627_v42 = vld [vmem:[#allocation30_spill] sm:$0xff]  ;;  %v2288_v46 = vadd.f32 %v4613_v59, %v4544_v22 }
 0x361   :  { %2334 = vst.msk [vmem:[%s5234_s3 + $0xc8] sm:$0xff] %vm1483_vm3, %v2234_v7  ;;  %2335 = vst.msk [vmem:[%s5234_s3 + $0xd0] sm:$0xff] %vm1483_vm3, %v2235_v0  ;;  %v2245_v3 = vadd.f32 %v4613_v59, %v5626_v38  ;;  %v2246_v8 = vadd.f32 %v4613_v59, %v5627_v42  ;;  %v5628_v63 = vld [vmem:[#allocation31_spill] sm:$0xff]  ;;  %v2248_v7 = vadd.f32 %v4613_v59, %v4381_v27 }
 0x362   :  { %2336 = vst.msk [vmem:[%s5234_s3 + $0xd8] sm:$0xff] %vm1483_vm3, %v2236_v16  ;;  %v2247_v47 = vadd.f32 %v4613_v59, %v5628_v63  ;;  %2337 = vst.msk [vmem:[%s5234_s3 + $0xe0] sm:$0xff] %vm1483_vm3, %v2237_v18  ;;  %v2249_v27 = vadd.f32 %v4613_v59, %v4385_v41  ;;  %v2250_v0 = vadd.f32 %v4613_v59, %v4389_v15 }
 0x363   :  { %2338 = vst.msk [vmem:[%s5234_s3 + $0xe8] sm:$0xff] %vm1483_vm3, %v2238_v40  ;;  %2339 = vst.msk [vmem:[%s5234_s3 + $0xf0] sm:$0xff] %vm1483_vm3, %v2239_v10  ;;  %v2251_v16 = vadd.f32 %v4613_v59, %v4393_v31  ;;  %v2252_v18 = vadd.f32 %v4613_v59, %v4397_v33  ;;  %v2253_v41 = vadd.f32 %v4613_v59, %v4401_v48 }
 0x364   :  { %2340 = vst.msk [vmem:[%s5234_s3 + $0xf8] sm:$0xff] %vm1483_vm3, %v2240_v52  ;;  %2341 = vst.msk [vmem:[%s5234_s3 + $0x100] sm:$0xff] %vm1483_vm3, %v2241_v51  ;;  %v2254_v15 = vadd.f32 %v4613_v59, %v4405_v21  ;;  %v2255_v31 = vadd.f32 %v4613_v59, %v4409_v19  ;;  %v2256_v33 = vadd.f32 %v4613_v59, %v4413_v14 }
 0x365   :  { %2342 = vst.msk [vmem:[%s5234_s3 + $0x108] sm:$0xff] %vm1483_vm3, %v2242_v53  ;;  %2343 = vst.msk [vmem:[%s5234_s3 + $0x110] sm:$0xff] %vm1483_vm3, %v2243_v61  ;;  %v2257_v48 = vadd.f32 %v4613_v59, %v4417_v39  ;;  %v2258_v21 = vadd.f32 %v4613_v59, %v4421_v9  ;;  %v2259_v19 = vadd.f32 %v4613_v59, %v4425_v20  ;;  %v5633_v61 = vld [vmem:[#allocation36_spill] sm:$0xff] }
 0x366   :  { %2344 = vst.msk [vmem:[%s5234_s3 + $0x118] sm:$0xff] %vm1483_vm3, %v2244_v17  ;;  %2345 = vst.msk [vmem:[%s5234_s3 + $0x120] sm:$0xff] %vm1483_vm3, %v2245_v3  ;;  %v2260_v14 = vadd.f32 %v4613_v59, %v4429_v43  ;;  %v2261_v39 = vadd.f32 %v4613_v59, %v4433_v12  ;;  %v2262_v9 = vadd.f32 %v4613_v59, %v4437_v23  ;;  %v5635_v17 = vld [vmem:[#allocation38_spill] sm:$0xff]  ;;  %v5636_v3 = vld [vmem:[#allocation39_spill] sm:$0xff] }
 0x367   :  { %2346 = vst.msk [vmem:[%s5234_s3 + $0x128] sm:$0xff] %vm1483_vm3, %v2246_v8  ;;  %2347 = vst.msk [vmem:[%s5234_s3 + $0x130] sm:$0xff] %vm1483_vm3, %v2247_v47  ;;  %v2263_v20 = vadd.f32 %v4613_v59, %v4441_v54  ;;  %v2264_v43 = vadd.f32 %v4613_v59, %v4445_v45  ;;  %v2265_v12 = vadd.f32 %v4613_v59, %v4449_v11  ;;  %v5629_v11 = vld [vmem:[#allocation32_spill] sm:$0xff]  ;;  %v5638_v47 = vld [vmem:[#allocation41_spill] sm:$0xff] }
 0x368   :  { %2348 = vst.msk [vmem:[%s5234_s3 + $0x138] sm:$0xff] %vm1483_vm3, %v2248_v7  ;;  %2349 = vst.msk [vmem:[%s5234_s3 + $0x140] sm:$0xff] %vm1483_vm3, %v2249_v27  ;;  %v2266_v23 = vadd.f32 %v4613_v59, %v4453_v5  ;;  %v2267_v54 = vadd.f32 %v4613_v59, %v4457_v58  ;;  %v2268_v45 = vadd.f32 %v4613_v59, %v4461_v35  ;;  %v5630_v58 = vld [vmem:[#allocation33_spill] sm:$0xff]  ;;  %v5637_v8 = vld [vmem:[#allocation40_spill] sm:$0xff] }
 0x369   :  { %2350 = vst.msk [vmem:[%s5234_s3 + $0x148] sm:$0xff] %vm1483_vm3, %v2250_v0  ;;  %2351 = vst.msk [vmem:[%s5234_s3 + $0x150] sm:$0xff] %vm1483_vm3, %v2251_v16  ;;  %v2269_v5 = vadd.f32 %v4613_v59, %v5629_v11  ;;  %v2270_v35 = vadd.f32 %v4613_v59, %v5630_v58  ;;  %v2271_v40 = vadd.f32 %v4613_v59, %v4473_v28  ;;  %v5639_v0 = vld [vmem:[#allocation42_spill] sm:$0xff] }
 0x36a   :  { %2352 = vst.msk [vmem:[%s5234_s3 + $0x158] sm:$0xff] %vm1483_vm3, %v2252_v18  ;;  %2353 = vst.msk [vmem:[%s5234_s3 + $0x160] sm:$0xff] %vm1483_vm3, %v2253_v41  ;;  %v2272_v10 = vadd.f32 %v4613_v59, %v4477_v55  ;;  %v2273_v28 = vadd.f32 %v4613_v59, %v4481_v62  ;;  %v2274_v55 = vadd.f32 %v4613_v59, %v4485_v2  ;;  %v5640_v18 = vld [vmem:[#allocation43_spill] sm:$0xff] }
 0x36b   :  { %2354 = vst.msk [vmem:[%s5234_s3 + $0x168] sm:$0xff] %vm1483_vm3, %v2254_v15  ;;  %2355 = vst.msk [vmem:[%s5234_s3 + $0x170] sm:$0xff] %vm1483_vm3, %v2255_v31  ;;  %v2275_v52 = vadd.f32 %v4613_v59, %v4489_v6  ;;  %v2276_v51 = vadd.f32 %v4613_v59, %v4493_v44  ;;  %v2277_v62 = vadd.f32 %v4613_v59, %v4497_v13  ;;  %v5642_v31 = vld [vmem:[#allocation45_spill] sm:$0xff] }
 0x36c   :  { %2356 = vst.msk [vmem:[%s5234_s3 + $0x178] sm:$0xff] %vm1483_vm3, %v2256_v33  ;;  %2357 = vst.msk [vmem:[%s5234_s3 + $0x180] sm:$0xff] %vm1483_vm3, %v2257_v48  ;;  %v2278_v2 = vadd.f32 %v4613_v59, %v4501_v4  ;;  %v2279_v6 = vadd.f32 %v4613_v59, %v4505_v60  ;;  %v2280_v44 = vadd.f32 %v4613_v59, %v4509_v36  ;;  %v5631_v4 = vld [vmem:[#allocation34_spill] sm:$0xff] }
 0x36d   :  { %2358 = vst.msk [vmem:[%s5234_s3 + $0x188] sm:$0xff] %vm1483_vm3, %v2258_v21  ;;  %2359 = vst.msk [vmem:[%s5234_s3 + $0x190] sm:$0xff] %vm1483_vm3, %v2259_v19  ;;  %v2281_v13 = vadd.f32 %v4613_v59, %v4513_v1  ;;  %v2282_v60 = vadd.f32 %v4613_v59, %v5631_v4  ;;  %v2283_v36 = vadd.f32 %v4613_v59, %v4524_v49  ;;  %v5643_v48 = vld [vmem:[#allocation46_spill] sm:$0xff] }
 0x36e   :  { %2360 = vst.msk [vmem:[%s5234_s3 + $0x198] sm:$0xff] %vm1483_vm3, %v2260_v14  ;;  %2361 = vst.msk [vmem:[%s5234_s3 + $0x1a0] sm:$0xff] %vm1483_vm3, %v2261_v39  ;;  %v2284_v53 = vadd.f32 %v4613_v59, %v4528_v37  ;;  %v2285_v1 = vadd.f32 %v4613_v59, %v4532_v30  ;;  %v2286_v49 = vadd.f32 %v4613_v59, %v4536_v34  ;;  %v5632_v34 = vld [vmem:[#allocation35_spill] sm:$0xff] }
 0x36f   :  { %2362 = vst.msk [vmem:[%s5234_s3 + $0x1a8] sm:$0xff] %vm1483_vm3, %v2262_v9  ;;  %2363 = vst.msk [vmem:[%s5234_s3 + $0x1b0] sm:$0xff] %vm1483_vm3, %v2263_v20  ;;  %v2287_v37 = vadd.f32 %v4613_v59, %v4540_v57  ;;  %v2289_v57 = vadd.f32 %v4613_v59, %v4548_v26  ;;  %v2290_v30 = vadd.f32 %v4613_v59, %v4552_v32  ;;  %v5634_v26 = vld [vmem:[#allocation37_spill] sm:$0xff]  ;;  %v5644_v39 = vld [vmem:[#allocation47_spill] sm:$0xff] }
 0x370   :  { %2364 = vst.msk [vmem:[%s5234_s3 + $0x1b8] sm:$0xff] %vm1483_vm3, %v2264_v43  ;;  %2365 = vst.msk [vmem:[%s5234_s3 + $0x1c0] sm:$0xff] %vm1483_vm3, %v2265_v12  ;;  %v2291_v22 = vadd.f32 %v4613_v59, %v5632_v34  ;;  %v2292_v29 = vadd.f32 %v4613_v59, %v5633_v61  ;;  %v2293_v32 = vadd.f32 %v4613_v59, %v5634_v26  ;;  %v5645_v20 = vld [vmem:[#allocation48_spill] sm:$0xff] }
 0x371   :  { %2366 = vst.msk [vmem:[%s5234_s3 + $0x1c8] sm:$0xff] %vm1483_vm3, %v2266_v23  ;;  %2367 = vst.msk [vmem:[%s5234_s3 + $0x1d0] sm:$0xff] %vm1483_vm3, %v2267_v54  ;;  %v2294_v38 = vadd.f32 %v4613_v59, %v5635_v17  ;;  %v2295_v42 = vadd.f32 %v4613_v59, %v5636_v3  ;;  %v2296_v63 = vadd.f32 %v4613_v59, %v5637_v8 }
 0x372   :  { %2368 = vst.msk [vmem:[%s5234_s3 + $0x1d8] sm:$0xff] %vm1483_vm3, %v2268_v45  ;;  %2369 = vst.msk [vmem:[%s5234_s3 + $0x1e0] sm:$0xff] %vm1483_vm3, %v2269_v5  ;;  %v2297_v7 = vadd.f32 %v4613_v59, %v5638_v47  ;;  %v2298_v27 = vadd.f32 %v4613_v59, %v4585_v56  ;;  %v2299_v16 = vadd.f32 %v4613_v59, %v5639_v0  ;;  %v5641_v56 = vld [vmem:[#allocation44_spill] sm:$0xff] }
 0x373   :  { %2370 = vst.msk [vmem:[%s5234_s3 + $0x1e8] sm:$0xff] %vm1483_vm3, %v2270_v35  ;;  %2371 = vst.msk [vmem:[%s5234_s3 + $0x1f0] sm:$0xff] %vm1483_vm3, %v2271_v40  ;;  %v2300_v41 = vadd.f32 %v4613_v59, %v5640_v18  ;;  %v2301_v15 = vadd.f32 %v4613_v59, %v5641_v56  ;;  %v2302_v33 = vadd.f32 %v4613_v59, %v5642_v31 }
 0x374   :  { %2372 = vst.msk [vmem:[%s5234_s3 + $0x1f8] sm:$0xff] %vm1483_vm3, %v2272_v10  ;;  %2373 = vst.msk [vmem:[%s5234_s3 + $0x200] sm:$0xff] %vm1483_vm3, %v2273_v28  ;;  %v2303_v21 = vadd.f32 %v4613_v59, %v5643_v48  ;;  %v2304_v19 = vadd.f32 %v4613_v59, %v4609_v25  ;;  %v2305_v25 = vadd.f32 %v4613_v59, %v4617_v50 }
 0x375   :  { %2374 = vst.msk [vmem:[%s5234_s3 + $0x208] sm:$0xff] %vm1483_vm3, %v2274_v55  ;;  %2375 = vst.msk [vmem:[%s5234_s3 + $0x210] sm:$0xff] %vm1483_vm3, %v2275_v52  ;;  %v2306_v14 = vadd.f32 %v4613_v59, %v4621_v24  ;;  %v2307_v9 = vadd.f32 %v4613_v59, %v5644_v39  ;;  %v2308_v43 = vadd.f32 %v4613_v59, %v5645_v20 }
 0x376   :  { %2376 = vst.msk [vmem:[%s5234_s3 + $0x218] sm:$0xff] %vm1483_vm3, %v2276_v51  ;;  %2377 = vst.msk [vmem:[%s5234_s3 + $0x220] sm:$0xff] %vm1483_vm3, %v2277_v62 }
 0x377   :  { %2378 = vst.msk [vmem:[%s5234_s3 + $0x228] sm:$0xff] %vm1483_vm3, %v2278_v2  ;;  %2379 = vst.msk [vmem:[%s5234_s3 + $0x230] sm:$0xff] %vm1483_vm3, %v2279_v6 }
 0x378   :  { %2380 = vst.msk [vmem:[%s5234_s3 + $0x238] sm:$0xff] %vm1483_vm3, %v2280_v44  ;;  %2381 = vst.msk [vmem:[%s5234_s3 + $0x240] sm:$0xff] %vm1483_vm3, %v2281_v13 }
 0x379   :  { %2382 = vst.msk [vmem:[%s5234_s3 + $0x248] sm:$0xff] %vm1483_vm3, %v2282_v60  ;;  %2383 = vst.msk [vmem:[%s5234_s3 + $0x250] sm:$0xff] %vm1483_vm3, %v2283_v36 }
 0x37a   :  { %2384 = vst.msk [vmem:[%s5234_s3 + $0x258] sm:$0xff] %vm1483_vm3, %v2284_v53  ;;  %2385 = vst.msk [vmem:[%s5234_s3 + $0x260] sm:$0xff] %vm1483_vm3, %v2285_v1 }
 0x37b   :  { %2386 = vst.msk [vmem:[%s5234_s3 + $0x268] sm:$0xff] %vm1483_vm3, %v2286_v49  ;;  %2387 = vst.msk [vmem:[%s5234_s3 + $0x270] sm:$0xff] %vm1483_vm3, %v2287_v37 }
 0x37c   :  { %2388 = vst.msk [vmem:[%s5234_s3 + $0x278] sm:$0xff] %vm1483_vm3, %v2288_v46  ;;  %2389 = vst.msk [vmem:[%s5234_s3 + $0x280] sm:$0xff] %vm1483_vm3, %v2289_v57 }
 0x37d   :  { %2390 = vst.msk [vmem:[%s5234_s3 + $0x288] sm:$0xff] %vm1483_vm3, %v2290_v30  ;;  %2391 = vst.msk [vmem:[%s5234_s3 + $0x290] sm:$0xff] %vm1483_vm3, %v2291_v22 }
 0x37e   :  { %2392 = vst.msk [vmem:[%s5234_s3 + $0x298] sm:$0xff] %vm1483_vm3, %v2292_v29  ;;  %2393 = vst.msk [vmem:[%s5234_s3 + $0x2a0] sm:$0xff] %vm1483_vm3, %v2293_v32 }
 0x37f   :  { %2394 = vst.msk [vmem:[%s5234_s3 + $0x2a8] sm:$0xff] %vm1483_vm3, %v2294_v38  ;;  %2395 = vst.msk [vmem:[%s5234_s3 + $0x2b0] sm:$0xff] %vm1483_vm3, %v2295_v42 }
 0x380   :  { %2396 = vst.msk [vmem:[%s5234_s3 + $0x2b8] sm:$0xff] %vm1483_vm3, %v2296_v63  ;;  %2397 = vst.msk [vmem:[%s5234_s3 + $0x2c0] sm:$0xff] %vm1483_vm3, %v2297_v7 }
 0x381   :  { %2398 = vst.msk [vmem:[%s5234_s3 + $0x2c8] sm:$0xff] %vm1483_vm3, %v2298_v27  ;;  %2399 = vst.msk [vmem:[%s5234_s3 + $0x2d0] sm:$0xff] %vm1483_vm3, %v2299_v16 }
 0x382   :  { %2400 = vst.msk [vmem:[%s5234_s3 + $0x2d8] sm:$0xff] %vm1483_vm3, %v2300_v41  ;;  %2401 = vst.msk [vmem:[%s5234_s3 + $0x2e0] sm:$0xff] %vm1483_vm3, %v2301_v15 }
 0x383   :  { %2402 = vst.msk [vmem:[%s5234_s3 + $0x2e8] sm:$0xff] %vm1483_vm3, %v2302_v33  ;;  %2403 = vst.msk [vmem:[%s5234_s3 + $0x2f0] sm:$0xff] %vm1483_vm3, %v2303_v21 }
 0x384   :  { %2404 = vst.msk [vmem:[%s5234_s3 + $0x2f8] sm:$0xff] %vm1483_vm3, %v2304_v19  ;;  %2405 = vst.msk [vmem:[%s5234_s3 + $0x300] sm:$0xff] %vm1483_vm3, %v2305_v25 }
 0x385   :  { %2406 = vst.msk [vmem:[%s5234_s3 + $0x308] sm:$0xff] %vm1483_vm3, %v2306_v14  ;;  %2407 = vst.msk [vmem:[%s5234_s3 + $0x310] sm:$0xff] %vm1483_vm3, %v2307_v9 }
 0x386   :  { %2408 = vst.msk [vmem:[%s5234_s3 + $0x318] sm:$0xff] %vm1483_vm3, %v2308_v43 }

// kernel: dueling_qnet_forward.4
= control target key start
LH: loop header
LB: loop body
LE: loop exit
PB: predicated region body
PF: predicated region fallthrough
CT: control target
= control target key end

     0   :  { %vm837_vm4 = vcmask 523264   ;;  %s1928_s1 = inlined_call_operand.vmem [shape: bf16[512,64], index: 1, kind: input, shape index: {}]   ;;  %s1929_s0 = inlined_call_operand.vmem [shape: bf16[162,512], index: 0, kind: input, shape index: {}]   ;;  %s1930_s2 = inlined_call_operand.vmem [shape: f32[3,64], index: 2, kind: input, shape index: {}]   ;;  %s1931_s3 = inlined_call_operand.vmem [shape: f32[162,64], index: 3, kind: output, shape index: {}]  }
   0x1   :  { %v1298_v0 = vld [vmem:[%s1928_s1 + $0x78] sm:$0xff]   ;;  %v1302_v4 = vld [vmem:[%s1928_s1 + $0x70] sm:$0xff]   ;;  %v1306_v8 = vld [vmem:[%s1928_s1 + $0x68] sm:$0xff]  }
   0x2   :  { %v1299_v1 = vld [vmem:[%s1928_s1 + $0xf8] sm:$0xff]   ;;  %1134 = vmatprep.subr.bf16.mxu0 %v1298_v0  ;;  %v1303_v5 = vld [vmem:[%s1928_s1 + $0xf0] sm:$0xff]   ;;  %v1307_v9 = vld [vmem:[%s1928_s1 + $0xe8] sm:$0xff]  }
   0x3   :  { %v1300_v2 = vld [vmem:[%s1928_s1 + $0x38] sm:$0xff]   ;;  %1216 = vmatprep.subr.bf16.mxu1 %v1299_v1  ;;  %v1304_v6 = vld [vmem:[%s1928_s1 + $0x30] sm:$0xff]   ;;  %v1308_v10 = vld [vmem:[%s1928_s1 + $0x28] sm:$0xff]  }
   0x4   :  { %v1301_v3 = vld [vmem:[%s1928_s1 + $0xb8] sm:$0xff]   ;;  %1135 = vmatpush3.bf16.msra.mxu0 %v1300_v2  ;;  %v1305_v7 = vld [vmem:[%s1928_s1 + $0xb0] sm:$0xff]   ;;  %v1309_v11 = vld [vmem:[%s1928_s1 + $0xa8] sm:$0xff]  }
   0x5   :  { %1217 = vmatpush3.bf16.msra.mxu1 %v1301_v3  ;;  %1136 = vmatprep.subr.bf16.mxu0 %v1302_v4  ;;  %v1310_v12 = vld [vmem:[%s1928_s1 + $0x60] sm:$0xff]   ;;  %v1314_v16 = vld [vmem:[%s1928_s1 + $0x58] sm:$0xff]   ;;  %v1318_v20 = vld [vmem:[%s1928_s1 + $0x50] sm:$0xff]  }
   0x6   :  { %1218 = vmatprep.subr.bf16.mxu1 %v1303_v5  ;;  %v1311_v13 = vld [vmem:[%s1928_s1 + $0xe0] sm:$0xff]   ;;  %v1315_v17 = vld [vmem:[%s1928_s1 + $0xd8] sm:$0xff]   ;;  %v1319_v21 = vld [vmem:[%s1928_s1 + $0xd0] sm:$0xff]  }
   0x7   :  { %v1312_v14 = vld [vmem:[%s1928_s1 + $0x20] sm:$0xff]   ;;  %v1316_v18 = vld [vmem:[%s1928_s1 + $0x18] sm:$0xff]   ;;  %v1320_v22 = vld [vmem:[%s1928_s1 + $0x10] sm:$0xff]  }
   0x8   :  { %1137 = vmatpush3.bf16.msra.mxu0 %v1304_v6  ;;  %v1313_v15 = vld [vmem:[%s1928_s1 + $0xa0] sm:$0xff]   ;;  %v1317_v19 = vld [vmem:[%s1928_s1 + $0x98] sm:$0xff]   ;;  %v1321_v23 = vld [vmem:[%s1928_s1 + $0x90] sm:$0xff]  }
   0x9   :  { %1219 = vmatpush3.bf16.msra.mxu1 %v1305_v7  ;;  %1138 = vmatprep.subr.bf16.mxu0 %v1306_v8  ;;  %v1322_v24 = vld [vmem:[%s1928_s1 + $0x48] sm:$0xff]   ;;  %v1326_v28 = vld [vmem:[%s1928_s1 + $0x40] sm:$0xff]  }
   0xa   :  { %1220 = vmatprep.subr.bf16.mxu1 %v1307_v9  ;;  %v1323_v25 = vld [vmem:[%s1928_s1 + $0xc8] sm:$0xff]   ;;  %v1327_v29 = vld [vmem:[%s1928_s1 + $0xc0] sm:$0xff]  }
   0xb   :  { %v1324_v26 = vld [vmem:[%s1928_s1 + $0x8] sm:$0xff]   ;;  %v1328_v30 = vld [vmem:[%s1928_s1] sm:$0xff]  }
   0xc   :  { %1139 = vmatpush3.bf16.msra.mxu0 %v1308_v10  ;;  %v1325_v27 = vld [vmem:[%s1928_s1 + $0x88] sm:$0xff]   ;;  %v1329_v31 = vld [vmem:[%s1928_s1 + $0x80] sm:$0xff]  }
   0xd   :  { %1221 = vmatpush3.bf16.msra.mxu1 %v1309_v11  ;;  %1140 = vmatprep.subr.bf16.mxu0 %v1310_v12  ;;  %v1330_v32 = vld [vmem:[%s1929_s0] ss:$16 sps:$4 sm:$0xff]   ;;  %v1332_v33 = vld [vmem:[%s1929_s0 + $0x4] ss:$16 sps:$4 sm:$0xff]   ;;  %v1333_v34 = vld [vmem:[%s1929_s0 + $0x8] ss:$16 sps:$4 sm:$0xff]  }
   0xe   :  { %1222 = vmatprep.subr.bf16.mxu1 %v1311_v13  ;;  %v1335_v35 = vld [vmem:[%s1929_s0 + $0xc] ss:$16 sps:$4 sm:$0xff]   ;;  %564 = vmatprep.mubr.bf16.mxu0 %v1332_v33  ;;  %v1336_v36 = vld [vmem:[%s1929_s0 + $0x24] ss:$16 sps:$4 sm:$0xff]   ;;  %v1340_v38 = vld [vmem:[%s1929_s0 + $0x20] ss:$16 sps:$4 sm:$0xff]  }
   0xf   :  { %684 = vmatprep.mubr.bf16.mxu1 %v1335_v35  ;;  %v1338_v37 = vld [vmem:[%s1929_s0 + $0x2c] ss:$16 sps:$4 sm:$0xff]   ;;  %v1341_v39 = vld [vmem:[%s1929_s0 + $0x28] ss:$16 sps:$4 sm:$0xff]   ;;  %v1342_v40 = vld [vmem:[%s1929_s0 + $0x44] ss:$16 sps:$4 sm:$0xff]  }
  0x10   :  { %1141 = vmatpush3.bf16.msra.mxu0 %v1312_v14  ;;  %v1344_v41 = vld [vmem:[%s1929_s0 + $0x4c] ss:$16 sps:$4 sm:$0xff]   ;;  %v1346_v42 = vld [vmem:[%s1929_s0 + $0x40] ss:$16 sps:$4 sm:$0xff]   ;;  %v1347_v43 = vld [vmem:[%s1929_s0 + $0x48] ss:$16 sps:$4 sm:$0xff]  }
  0x11   :  { %1223 = vmatpush3.bf16.msra.mxu1 %v1313_v15  ;;  %1142 = vmatprep.subr.bf16.mxu0 %v1314_v16  ;;  %v1348_v44 = vld [vmem:[%s1929_s0 + $0x64] ss:$16 sps:$4 sm:$0xff]   ;;  %v1350_v45 = vld [vmem:[%s1929_s0 + $0x6c] ss:$16 sps:$4 sm:$0xff]   ;;  %v1352_v46 = vld [vmem:[%s1929_s0 + $0x60] ss:$16 sps:$4 sm:$0xff]  }
  0x12   :  { %1224 = vmatprep.subr.bf16.mxu1 %v1315_v17  ;;  %v1353_v47 = vld [vmem:[%s1929_s0 + $0x68] ss:$16 sps:$4 sm:$0xff]   ;;  %v1354_v48 = vld [vmem:[%s1929_s0 + $0x84] ss:$16 sps:$4 sm:$0xff]   ;;  %v1356_v49 = vld [vmem:[%s1929_s0 + $0x8c] ss:$16 sps:$4 sm:$0xff]  }
  0x13   :  { %v1358_v50 = vld [vmem:[%s1929_s0 + $0x80] ss:$16 sps:$4 sm:$0xff]   ;;  %v1359_v51 = vld [vmem:[%s1929_s0 + $0x88] ss:$16 sps:$4 sm:$0xff]   ;;  %v1360_v52 = vld [vmem:[%s1929_s0 + $0xa4] ss:$16 sps:$4 sm:$0xff]  }
  0x14   :  { %1143 = vmatpush3.bf16.msra.mxu0 %v1316_v18  ;;  %v1362_v53 = vld [vmem:[%s1929_s0 + $0xac] ss:$16 sps:$4 sm:$0xff]   ;;  %v1364_v54 = vld [vmem:[%s1929_s0 + $0xa0] ss:$16 sps:$4 sm:$0xff]   ;;  %v1365_v55 = vld [vmem:[%s1929_s0 + $0xa8] ss:$16 sps:$4 sm:$0xff]  }
  0x15   :  { %1225 = vmatpush3.bf16.msra.mxu1 %v1317_v19  ;;  %1144 = vmatprep.subr.bf16.mxu0 %v1318_v20  ;;  %v1366_v56 = vld [vmem:[%s1929_s0 + $0xc4] ss:$16 sps:$4 sm:$0xff]   ;;  %v1368_v57 = vld [vmem:[%s1929_s0 + $0xcc] ss:$16 sps:$4 sm:$0xff]   ;;  %v1370_v58 = vld [vmem:[%s1929_s0 + $0xc0] ss:$16 sps:$4 sm:$0xff]  }
  0x16   :  { %1226 = vmatprep.subr.bf16.mxu1 %v1319_v21  ;;  %v1371_v59 = vld [vmem:[%s1929_s0 + $0xc8] ss:$16 sps:$4 sm:$0xff]   ;;  %v1372_v60 = vld [vmem:[%s1929_s0 + $0xe4] ss:$16 sps:$4 sm:$0xff]   ;;  %v1374_v61 = vld [vmem:[%s1929_s0 + $0xec] ss:$16 sps:$4 sm:$0xff]  }
  0x17   :  { %v1376_v62 = vld [vmem:[%s1929_s0 + $0xe0] ss:$16 sps:$4 sm:$0xff]   ;;  %v1377_v63 = vld [vmem:[%s1929_s0 + $0xe8] ss:$16 sps:$4 sm:$0xff]   ;;  %v1378_v0 = vld [vmem:[%s1929_s0 + $0x104] ss:$16 sps:$4 sm:$0xff]  }
  0x18   :  { %1145 = vmatpush3.bf16.msra.mxu0 %v1320_v22  ;;  %v1380_v1 = vld [vmem:[%s1929_s0 + $0x10c] ss:$16 sps:$4 sm:$0xff]   ;;  %v1382_v2 = vld [vmem:[%s1929_s0 + $0x100] ss:$16 sps:$4 sm:$0xff]   ;;  %v1383_v3 = vld [vmem:[%s1929_s0 + $0x108] ss:$16 sps:$4 sm:$0xff]  }
  0x19   :  { %1227 = vmatpush3.bf16.msra.mxu1 %v1321_v23  ;;  %1146 = vmatprep.subr.bf16.mxu0 %v1322_v24  ;;  %v1384_v4 = vld [vmem:[%s1929_s0 + $0x124] ss:$16 sps:$4 sm:$0xff]   ;;  %v1386_v5 = vld [vmem:[%s1929_s0 + $0x12c] ss:$16 sps:$4 sm:$0xff]   ;;  %v1388_v8 = vld [vmem:[%s1929_s0 + $0x120] ss:$16 sps:$4 sm:$0xff]  }
  0x1a   :  { %1228 = vmatprep.subr.bf16.mxu1 %v1323_v25  ;;  %v55_v6 = vld [vmem:[%s1929_s0 + $0x140] sm:$0x11]  ;;  %v56_v7 = vld [vmem:[%s1929_s0 + $0x148] sm:$0x11] }
  0x1b   :  { %v1389_v9 = vld [vmem:[%s1929_s0 + $0x128] ss:$16 sps:$4 sm:$0xff]   ;;  %v1099_v10 = vcombine.high %v55_v6, %v55_v6  ;;  %v1101_v11 = vcombine.high %v56_v7, %v56_v7  ;;  %v1098_v12 = vcombine.low %v55_v6, %v55_v6  ;;  %v1100_v13 = vcombine.low %v56_v7, %v56_v7 }
  0x1c   :  { %1147 = vmatpush3.bf16.msra.mxu0 %v1324_v26 }
  0x1d   :  { %1229 = vmatpush3.bf16.msra.mxu1 %v1325_v27  ;;  %1148 = vmatprep.subr.bf16.mxu0 %v1326_v28 }
  0x1e   :  { %1230 = vmatprep.subr.bf16.mxu1 %v1327_v29 }
  0x20   :  { %1149 = vmatpush3.bf16.msra.mxu0 %v1328_v30 }
  0x21   :  { %1231 = vmatpush3.bf16.msra.mxu1 %v1329_v31 }
  0x23   :  { %565 = vmatmul.mubr.bf16.vlgmr.msra.gmra.mxu0 %v1330_v32 }
  0x24   :  { %685 = vmatmul.mubr.bf16.vlgmr.msra.gmra.mxu1 %v1333_v34  ;;  %572 = vmatprep.mubr.bf16.mxu0 %v1336_v36 }
  0x25   :  { %692 = vmatprep.mubr.bf16.mxu1 %v1338_v37 }
  0x2b   :  { %573 = vmatmul.mubr.bf16.gmra.mxu0 %v1340_v38 }
  0x2c   :  { %693 = vmatmul.mubr.bf16.gmra.mxu1 %v1341_v39  ;;  %580 = vmatprep.mubr.bf16.mxu0 %v1342_v40  ;;  %v1641_v39 = vld [vmem:[%s1930_s2] ss:$0 sm:$0xff] }
  0x2d   :  { %700 = vmatprep.mubr.bf16.mxu1 %v1344_v41 }
  0x33   :  { %581 = vmatmul.mubr.bf16.gmra.mxu0 %v1346_v42 }
  0x34   :  { %701 = vmatmul.mubr.bf16.gmra.mxu1 %v1347_v43  ;;  %588 = vmatprep.mubr.bf16.mxu0 %v1348_v44 }
  0x35   :  { %708 = vmatprep.mubr.bf16.mxu1 %v1350_v45 }
  0x3b   :  { %589 = vmatmul.mubr.bf16.gmra.mxu0 %v1352_v46 }
  0x3c   :  { %709 = vmatmul.mubr.bf16.gmra.mxu1 %v1353_v47  ;;  %596 = vmatprep.mubr.bf16.mxu0 %v1354_v48 }
  0x3d   :  { %716 = vmatprep.mubr.bf16.mxu1 %v1356_v49 }
  0x43   :  { %597 = vmatmul.mubr.bf16.gmra.mxu0 %v1358_v50 }
  0x44   :  { %717 = vmatmul.mubr.bf16.gmra.mxu1 %v1359_v51  ;;  %604 = vmatprep.mubr.bf16.mxu0 %v1360_v52 }
  0x45   :  { %724 = vmatprep.mubr.bf16.mxu1 %v1362_v53 }
  0x4b   :  { %605 = vmatmul.mubr.bf16.gmra.mxu0 %v1364_v54 }
  0x4c   :  { %725 = vmatmul.mubr.bf16.gmra.mxu1 %v1365_v55  ;;  %612 = vmatprep.mubr.bf16.mxu0 %v1366_v56 }
  0x4d   :  { %732 = vmatprep.mubr.bf16.mxu1 %v1368_v57 }
  0x53   :  { %613 = vmatmul.mubr.bf16.gmra.mxu0 %v1370_v58 }
  0x54   :  { %733 = vmatmul.mubr.bf16.gmra.mxu1 %v1371_v59  ;;  %620 = vmatprep.mubr.bf16.mxu0 %v1372_v60 }
  0x55   :  { %740 = vmatprep.mubr.bf16.mxu1 %v1374_v61 }
  0x5b   :  { %621 = vmatmul.mubr.bf16.gmra.mxu0 %v1376_v62 }
  0x5c   :  { %741 = vmatmul.mubr.bf16.gmra.mxu1 %v1377_v63  ;;  %628 = vmatprep.mubr.bf16.mxu0 %v1378_v0 }
  0x5d   :  { %748 = vmatprep.mubr.bf16.mxu1 %v1380_v1 }
  0x63   :  { %629 = vmatmul.mubr.bf16.gmra.mxu0 %v1382_v2 }
  0x64   :  { %749 = vmatmul.mubr.bf16.gmra.mxu1 %v1383_v3  ;;  %636 = vmatprep.mubr.bf16.mxu0 %v1384_v4 }
  0x65   :  { %756 = vmatprep.mubr.bf16.mxu1 %v1386_v5 }
  0x6b   :  { %637 = vmatmul.mubr.bf16.gmra.mxu0 %v1388_v8 }
  0x6c   :  { %757 = vmatmul.mubr.bf16.gmra.mxu1 %v1389_v9  ;;  %644 = vmatprep.mubr.bf16.mxu0 %v1099_v10 }
  0x6d   :  { %764 = vmatprep.mubr.bf16.mxu1 %v1101_v11 }
  0x73   :  { %645 = vmatmul.mubr.bf16.gmra.mxu0 %v1098_v12 }
  0x74   :  { %765 = vmatmul.mubr.bf16.gmra.mxu1 %v1100_v13 }
  0xe3   :  { %v1150_v14 = vpop.f32.mrf.mxu0 }
  0xe4   :  { %v1232_v15 = vpop.f32.mrf.mxu1 }
  0xe5   :  { %v1151_v16 = vpop.f32.mrf.mxu0 }
  0xe6   :  { %v1233_v17 = vpop.f32.mrf.mxu1  ;;  %v1152_v40 = vadd.f32 %v1151_v16, %v1150_v14 }
  0xe7   :  { %v1153_v18 = vpop.f32.mrf.mxu0  ;;  %v1234_v54 = vadd.f32 %v1233_v17, %v1232_v15 }
  0xe8   :  { %v1235_v19 = vpop.f32.mrf.mxu1  ;;  %v567_v49 = vadd.f32 %v1152_v40, %v1641_v39 }
  0xe9   :  { %v1154_v20 = vpop.f32.mrf.mxu0 }
  0xea   :  { %v1236_v21 = vpop.f32.mrf.mxu1  ;;  %v1155_v35 = vadd.f32 %v1154_v20, %v1153_v18  ;;  %v687_v61 = vadd.f32 %v1234_v54, %v567_v49 }
  0xeb   :  { %v1156_v22 = vpop.f32.mrf.mxu0  ;;  %v1237_v47 = vadd.f32 %v1236_v21, %v1235_v19 }
  0xec   :  { %v1238_v23 = vpop.f32.mrf.mxu1  ;;  %v570_v42 = vadd.f32 %v1155_v35, %v1641_v39  ;;  %vm772_vm1 = vcmp.gt.f32.partialorder %v687_v61, 0.0  ;;  %v793_v12 = vmul.f32 0.01, %v687_v61 }
  0xed   :  { %v1157_v24 = vpop.f32.mrf.mxu0 }
  0xee   :  { %v1239_v25 = vpop.f32.mrf.mxu1  ;;  %v1158_v43 = vadd.f32 %v1157_v24, %v1156_v22  ;;  %v690_v51 = vadd.f32 %v1237_v47, %v570_v42 }
  0xef   :  { %v1159_v26 = vpop.f32.mrf.mxu0  ;;  %v1240_v59 = vadd.f32 %v1239_v25, %v1238_v23  ;;  %v1653_v25 = vsel %vm772_vm1, %v687_v61, %v793_v12 }
  0xf0   :  { %v1241_v27 = vpop.f32.mrf.mxu1  ;;  %v575_v52 = vadd.f32 %v1158_v43, %v1641_v39  ;;  %vm773_vm0 = vcmp.gt.f32.partialorder %v690_v51, 0.0  ;;  %v794_v0 = vmul.f32 0.01, %v690_v51 }
  0xf1   :  { %v1160_v28 = vpop.f32.mrf.mxu0 }
  0xf2   :  { %v1242_v29 = vpop.f32.mrf.mxu1  ;;  %v1161_v45 = vadd.f32 %v1160_v28, %v1159_v26  ;;  %v695_v1 = vadd.f32 %v1240_v59, %v575_v52  ;;  %v1649_v13 = vsel %vm773_vm0, %v690_v51, %v794_v0 }
  0xf3   :  { %v1162_v30 = vpop.f32.mrf.mxu0  ;;  %v1243_v62 = vadd.f32 %v1242_v29, %v1241_v27  ;;  %v839_v26 = vsel %vm837_vm4, %v1649_v13, 0.0 }
  0xf4   :  { %v1244_v31 = vpop.f32.mrf.mxu1  ;;  %v578_v55 = vadd.f32 %v1161_v45, %v1641_v39  ;;  %vm774_vm2 = vcmp.gt.f32.partialorder %v695_v1, 0.0  ;;  %v795_v14 = vmul.f32 0.01, %v695_v1 }
  0xf5   :  { %v1163_v32 = vpop.f32.mrf.mxu0 }
  0xf6   :  { %v1245_v33 = vpop.f32.mrf.mxu1  ;;  %v1164_v56 = vadd.f32 %v1163_v32, %v1162_v30  ;;  %v698_v3 = vadd.f32 %v1243_v62, %v578_v55  ;;  %v1658_v27 = vsel %vm774_vm2, %v695_v1, %v795_v14 }
  0xf7   :  { %v1165_v34 = vpop.f32.mrf.mxu0  ;;  %v1246_v9 = vadd.f32 %v1245_v33, %v1244_v31  ;;  %v841_v42 = vsel %vm837_vm4, %v1658_v27, 0.0 }
  0xf8   :  { %v1247_v36 = vpop.f32.mrf.mxu1  ;;  %v583_v4 = vadd.f32 %v1164_v56, %v1641_v39  ;;  %v796_v16 = vmul.f32 0.01, %v698_v3  ;;  %vm775_vm3 = vcmp.gt.f32.partialorder %v698_v3, 0.0 }
  0xf9   :  { %v1166_v37 = vpop.f32.mrf.mxu0 }
  0xfa   :  { %v1248_v38 = vpop.f32.mrf.mxu1  ;;  %v1167_v57 = vadd.f32 %v1166_v37, %v1165_v34  ;;  %v703_v17 = vadd.f32 %v1246_v9, %v583_v4  ;;  %v1660_v29 = vsel %vm775_vm3, %v698_v3, %v796_v16  ;;  %v838_v37 = vsel %vm837_vm4, %v1653_v25, 0.0 }
  0xfb   :  { %v1168_v41 = vpop.f32.mrf.mxu0  ;;  %v1249_v10 = vadd.f32 %v1248_v38, %v1247_v36  ;;  %v843_v45 = vsel %vm837_vm4, %v1660_v29, 0.0 }
  0xfc   :  { %v1250_v44 = vpop.f32.mrf.mxu1  ;;  %v586_v5 = vadd.f32 %v1167_v57, %v1641_v39  ;;  %v797_v30 = vmul.f32 0.01, %v703_v17  ;;  %vm776_vm5 = vcmp.gt.f32.partialorder %v703_v17, 0.0 }
  0xfd   :  { %v1169_v46 = vpop.f32.mrf.mxu0 }
  0xfe   :  { %v1251_v48 = vpop.f32.mrf.mxu1  ;;  %v1170_v6 = vadd.f32 %v1169_v46, %v1168_v41  ;;  %v706_v18 = vadd.f32 %v1249_v10, %v586_v5  ;;  %v840_v41 = vadd.f32 %v839_v26, %v838_v37  ;;  %v1669_v46 = vsel %vm776_vm5, %v703_v17, %v797_v30 }
  0xff   :  { %v1171_v50 = vpop.f32.mrf.mxu0  ;;  %v1252_v23 = vadd.f32 %v1251_v48, %v1250_v44  ;;  %v845_v57 = vsel %vm837_vm4, %v1669_v46, 0.0 }
 0x100   :  { %v1253_v53 = vpop.f32.mrf.mxu1  ;;  %v591_v19 = vadd.f32 %v1170_v6, %v1641_v39  ;;  %v798_v31 = vmul.f32 0.01, %v706_v18  ;;  %vm777_vm6 = vcmp.gt.f32.partialorder %v706_v18, 0.0  ;;  %v842_v55 = vadd.f32 %v841_v42, %v840_v41 }
 0x101   :  { %v1172_v58 = vpop.f32.mrf.mxu0 }
 0x102   :  { %v1254_v60 = vpop.f32.mrf.mxu1  ;;  %v1173_v21 = vadd.f32 %v1172_v58, %v1171_v50  ;;  %v711_v32 = vadd.f32 %v1252_v23, %v591_v19  ;;  %v1671_v47 = vsel %vm777_vm6, %v706_v18, %v798_v31 }
 0x103   :  { %v1174_v63 = vpop.f32.mrf.mxu0  ;;  %v1255_v43 = vadd.f32 %v1254_v60, %v1253_v53  ;;  %v844_v60 = vadd.f32 %v843_v45, %v842_v55  ;;  %v847_v61 = vsel %vm837_vm4, %v1671_v47, 0.0 }
 0x104   :  { %v1256_v2 = vpop.f32.mrf.mxu1  ;;  %v594_v34 = vadd.f32 %v1173_v21, %v1641_v39  ;;  %v799_v48 = vmul.f32 0.01, %v711_v32  ;;  %vm778_vm7 = vcmp.gt.f32.partialorder %v711_v32, 0.0 }
 0x105   :  { %v1175_v7 = vpop.f32.mrf.mxu0 }
 0x106   :  { %v1257_v8 = vpop.f32.mrf.mxu1  ;;  %v1176_v35 = vadd.f32 %v1175_v7, %v1174_v63  ;;  %v714_v50 = vadd.f32 %v1255_v43, %v594_v34  ;;  %v1679_v62 = vsel %vm778_vm7, %v711_v32, %v799_v48  ;;  %v846_v7 = vadd.f32 %v845_v57, %v844_v60 }
 0x107   :  { %v1177_v11 = vpop.f32.mrf.mxu0  ;;  %v1258_v58 = vadd.f32 %v1257_v8, %v1256_v2  ;;  %v849_v14 = vsel %vm837_vm4, %v1679_v62, 0.0  ;;  %vm877_vm7 = vcmask 517120  }
 0x108   :  { %v1259_v15 = vpop.f32.mrf.mxu1  ;;  %v599_v51 = vadd.f32 %v1176_v35, %v1641_v39  ;;  %v800_v1 = vmul.f32 0.01, %v714_v50  ;;  %vm779_vm8 = vcmp.gt.f32.partialorder %v714_v50, 0.0  ;;  %v848_v12 = vadd.f32 %v847_v61, %v846_v7 }
 0x109   :  { %v1178_v20 = vpop.f32.mrf.mxu0 }
 0x10a   :  { %v1260_v22 = vpop.f32.mrf.mxu1  ;;  %v1179_v38 = vadd.f32 %v1178_v20, %v1177_v11  ;;  %v719_v3 = vadd.f32 %v1258_v58, %v599_v51  ;;  %v850_v30 = vadd.f32 %v849_v14, %v848_v12 }
 0x10b   :  { %v1180_v24 = vpop.f32.mrf.mxu0  ;;  %v1261_v63 = vadd.f32 %v1260_v22, %v1259_v15  ;;  %v1684_v15 = vsel %vm779_vm8, %v714_v50, %v800_v1 }
 0x10c   :  { %v1262_v28 = vpop.f32.mrf.mxu1  ;;  %v602_v56 = vadd.f32 %v1179_v38, %v1641_v39  ;;  %v801_v17 = vmul.f32 0.01, %v719_v3  ;;  %vm780_vm9 = vcmp.gt.f32.partialorder %v719_v3, 0.0  ;;  %v851_v31 = vsel %vm837_vm4, %v1684_v15, 0.0 }
 0x10d   :  { %v1181_v33 = vpop.f32.mrf.mxu0  ;;  %v852_v48 = vadd.f32 %v851_v31, %v850_v30 }
 0x10e   :  { %v1263_v36 = vpop.f32.mrf.mxu1  ;;  %v1182_v52 = vadd.f32 %v1181_v33, %v1180_v24  ;;  %v722_v9 = vadd.f32 %v1261_v63, %v602_v56  ;;  %v1690_v34 = vsel %vm780_vm9, %v719_v3, %v801_v17 }
 0x10f   :  { %v1183_v40 = vpop.f32.mrf.mxu0  ;;  %v1264_v8 = vadd.f32 %v1263_v36, %v1262_v28 }
 0x110   :  { %v1265_v44 = vpop.f32.mrf.mxu1  ;;  %v607_v4 = vadd.f32 %v1182_v52, %v1641_v39  ;;  %v802_v21 = vmul.f32 0.01, %v722_v9  ;;  %vm781_vm10 = vcmp.gt.f32.partialorder %v722_v9, 0.0 }
 0x111   :  { %v1184_v49 = vpop.f32.mrf.mxu0 }
 0x112   :  { %v1266_v54 = vpop.f32.mrf.mxu1  ;;  %v1185_v5 = vadd.f32 %v1184_v49, %v1183_v40  ;;  %v727_v18 = vadd.f32 %v1264_v8, %v607_v4  ;;  %v1692_v40 = vsel %vm781_vm10, %v722_v9, %v802_v21  ;;  %v853_v49 = vsel %vm837_vm4, %v1690_v34, 0.0 }
 0x113   :  { %v1186_v53 = vpop.f32.mrf.mxu0  ;;  %v1267_v26 = vadd.f32 %v1266_v54, %v1265_v44  ;;  %v855_v54 = vsel %vm837_vm4, %v1692_v40, 0.0  ;;  %v854_v63 = vadd.f32 %v853_v49, %v852_v48 }
 0x114   :  { %v1268_v59 = vpop.f32.mrf.mxu1  ;;  %v610_v19 = vadd.f32 %v1185_v5, %v1641_v39  ;;  %v803_v35 = vmul.f32 0.01, %v727_v18  ;;  %vm782_vm11 = vcmp.gt.f32.partialorder %v727_v18, 0.0 }
 0x115   :  { %v1187_v0 = vpop.f32.mrf.mxu0  ;;  %v856_v5 = vadd.f32 %v855_v54, %v854_v63 }
 0x116   :  { %v1269_v6 = vpop.f32.mrf.mxu1  ;;  %v1188_v10 = vadd.f32 %v1187_v0, %v1186_v53  ;;  %v730_v36 = vadd.f32 %v1267_v26, %v610_v19  ;;  %v1700_v55 = vsel %vm782_vm11, %v727_v18, %v803_v35 }
 0x117   :  { %v1189_v2 = vpop.f32.mrf.mxu0  ;;  %v1270_v32 = vadd.f32 %v1269_v6, %v1268_v59  ;;  %v857_v6 = vsel %vm837_vm4, %v1700_v55, 0.0 }
 0x118   :  { %v1271_v11 = vpop.f32.mrf.mxu1  ;;  %v615_v22 = vadd.f32 %v1188_v10, %v1641_v39  ;;  %v804_v56 = vmul.f32 0.01, %v730_v36  ;;  %vm783_vm12 = vcmp.gt.f32.partialorder %v730_v36, 0.0  ;;  %v858_v19 = vadd.f32 %v857_v6, %v856_v5 }
 0x119   :  { %v1190_v16 = vpop.f32.mrf.mxu0 }
 0x11a   :  { %v1272_v20 = vpop.f32.mrf.mxu1  ;;  %v1191_v23 = vadd.f32 %v1190_v16, %v1189_v2  ;;  %v735_v41 = vadd.f32 %v1270_v32, %v615_v22  ;;  %v1705_v7 = vsel %vm783_vm12, %v730_v36, %v804_v56 }
 0x11b   :  { %v1192_v24 = vpop.f32.mrf.mxu0  ;;  %v1273_v50 = vadd.f32 %v1272_v20, %v1271_v11  ;;  %v859_v21 = vsel %vm837_vm4, %v1705_v7, 0.0 }
 0x11c   :  { %v1274_v28 = vpop.f32.mrf.mxu1  ;;  %v618_v42 = vadd.f32 %v1191_v23, %v1641_v39  ;;  %v805_v58 = vmul.f32 0.01, %v735_v41  ;;  %vm784_vm13 = vcmp.gt.f32.partialorder %v735_v41, 0.0 }
 0x11d   :  { %v1193_v33 = vpop.f32.mrf.mxu0 }
 0x11e   :  { %v1194_v37 = vadd.f32 %v1193_v33, %v1192_v24  ;;  %v1275_v38 = vpop.f32.mrf.mxu1  ;;  %v738_v59 = vadd.f32 %v1273_v50, %v618_v42  ;;  %v1707_v2 = vsel %vm784_vm13, %v735_v41, %v805_v58 }
 0x11f   :  { %v1195_v43 = vpop.f32.mrf.mxu0  ;;  %v1276_v51 = vadd.f32 %v1275_v38, %v1274_v28  ;;  %v861_v22 = vsel %vm837_vm4, %v1707_v2, 0.0  ;;  %v860_v38 = vadd.f32 %v859_v21, %v858_v19 }
 0x120   :  { %v623_v44 = vadd.f32 %v1194_v37, %v1641_v39  ;;  %v1277_v45 = vpop.f32.mrf.mxu1  ;;  %v806_v8 = vmul.f32 0.01, %v738_v59  ;;  %vm785_vm14 = vcmp.gt.f32.partialorder %v738_v59, 0.0 }
 0x121   :  { %v1196_v52 = vpop.f32.mrf.mxu0  ;;  %v862_v48 = vadd.f32 %v861_v22, %v860_v38 }
 0x122   :  { %v1197_v53 = vadd.f32 %v1196_v52, %v1195_v43  ;;  %v1278_v57 = vpop.f32.mrf.mxu1  ;;  %v743_v60 = vadd.f32 %v1276_v51, %v623_v44  ;;  %v1714_v28 = vsel %vm785_vm14, %v738_v59, %v806_v8 }
 0x123   :  { %v1198_v61 = vpop.f32.mrf.mxu0  ;;  %v1279_v3 = vadd.f32 %v1278_v57, %v1277_v45  ;;  %v863_v42 = vsel %vm837_vm4, %v1714_v28, 0.0 }
 0x124   :  { %v626_v0 = vadd.f32 %v1197_v53, %v1641_v39  ;;  %v1280_v1 = vpop.f32.mrf.mxu1  ;;  %v807_v11 = vmul.f32 0.01, %v743_v60  ;;  %vm786_vm15 = vcmp.gt.f32.partialorder %v743_v60, 0.0  ;;  %v864_v58 = vadd.f32 %v863_v42, %v862_v48 }
 0x125   :  { %v1199_v4 = vpop.f32.mrf.mxu0 }
 0x126   :  { %v1200_v9 = vadd.f32 %v1199_v4, %v1198_v61  ;;  %v1281_v10 = vpop.f32.mrf.mxu1  ;;  %v746_v12 = vadd.f32 %v1279_v3, %v626_v0  ;;  %v1716_v30 = vsel %vm786_vm15, %v743_v60, %v807_v11 }
 0x127   :  { %v1201_v14 = vpop.f32.mrf.mxu0  ;;  %v1282_v17 = vadd.f32 %v1281_v10, %v1280_v1  ;;  %v865_v49 = vsel %vm837_vm4, %v1716_v30, 0.0 }
 0x128   :  { %v631_v16 = vadd.f32 %v1200_v9, %v1641_v39  ;;  %v1283_v18 = vpop.f32.mrf.mxu1  ;;  %vm787_vm0 = vcmp.gt.f32.partialorder %v746_v12, 0.0  ;;  %v808_v31 = vmul.f32 0.01, %v746_v12  ;;  %v866_v1 = vadd.f32 %v865_v49, %v864_v58 }
 0x129   :  { %v1202_v20 = vpop.f32.mrf.mxu0 }
 0x12a   :  { %v751_v23 = vadd.f32 %v1282_v17, %v631_v16  ;;  %v1203_v24 = vadd.f32 %v1202_v20, %v1201_v14  ;;  %v1284_v26 = vpop.f32.mrf.mxu1  ;;  %v1724_v50 = vsel %vm787_vm0, %v746_v12, %v808_v31 }
 0x12b   :  { %v1204_v32 = vpop.f32.mrf.mxu0  ;;  %v1285_v36 = vadd.f32 %v1284_v26, %v1283_v18  ;;  %v867_v60 = vsel %vm837_vm4, %v1724_v50, 0.0 }
 0x12c   :  { %vm788_vm1 = vcmp.gt.f32.partialorder %v751_v23, 0.0  ;;  %v809_v33 = vmul.f32 0.01, %v751_v23  ;;  %v634_v35 = vadd.f32 %v1203_v24, %v1641_v39  ;;  %v1286_v37 = vpop.f32.mrf.mxu1  ;;  %v868_v11 = vadd.f32 %v867_v60, %v866_v1 }
 0x12d   :  { %v1205_v41 = vpop.f32.mrf.mxu0 }
 0x12e   :  { %v754_v43 = vadd.f32 %v1285_v36, %v634_v35  ;;  %v1206_v44 = vadd.f32 %v1205_v41, %v1204_v32  ;;  %v1287_v45 = vpop.f32.mrf.mxu1  ;;  %v1726_v51 = vsel %vm788_vm1, %v751_v23, %v809_v33 }
 0x12f   :  { %v1207_v52 = vpop.f32.mrf.mxu0  ;;  %v1288_v53 = vadd.f32 %v1287_v45, %v1286_v37  ;;  %v869_v3 = vsel %vm837_vm4, %v1726_v51, 0.0 }
 0x130   :  { %vm789_vm2 = vcmp.gt.f32.partialorder %v754_v43, 0.0  ;;  %v810_v54 = vmul.f32 0.01, %v754_v43  ;;  %v639_v56 = vadd.f32 %v1206_v44, %v1641_v39  ;;  %v1289_v57 = vpop.f32.mrf.mxu1  ;;  %v870_v19 = vadd.f32 %v869_v3, %v868_v11 }
 0x131   :  { %v1208_v59 = vpop.f32.mrf.mxu0 }
 0x132   :  { %v759_v61 = vadd.f32 %v1288_v53, %v639_v56  ;;  %v1209_v63 = vadd.f32 %v1208_v59, %v1207_v52  ;;  %v1290_v0 = vpop.f32.mrf.mxu1  ;;  %v1733_v4 = vsel %vm789_vm2, %v754_v43, %v810_v54 }
 0x133   :  { %v1210_v5 = vpop.f32.mrf.mxu0  ;;  %v1291_v10 = vadd.f32 %v1290_v0, %v1289_v57  ;;  %v871_v20 = vsel %vm837_vm4, %v1733_v4, 0.0 }
 0x134   :  { %vm790_vm3 = vcmp.gt.f32.partialorder %v759_v61, 0.0  ;;  %v811_v6 = vmul.f32 0.01, %v759_v61  ;;  %v642_v9 = vadd.f32 %v1209_v63, %v1641_v39  ;;  %v1292_v8 = vpop.f32.mrf.mxu1  ;;  %v872_v33 = vadd.f32 %v871_v20, %v870_v19 }
 0x135   :  { %v1211_v12 = vpop.f32.mrf.mxu0 }
 0x136   :  { %v1736_v14 = vsel %vm790_vm3, %v759_v61, %v811_v6  ;;  %v762_v16 = vadd.f32 %v1291_v10, %v642_v9  ;;  %v1212_v17 = vadd.f32 %v1211_v12, %v1210_v5  ;;  %v1293_v18 = vpop.f32.mrf.mxu1 }
 0x137   :  { %v1213_v21 = vpop.f32.mrf.mxu0  ;;  %v1294_v24 = vadd.f32 %v1293_v18, %v1292_v8  ;;  %v873_v31 = vsel %vm837_vm4, %v1736_v14, 0.0 }
 0x138   :  { %vm791_vm5 = vcmp.gt.f32.partialorder %v762_v16, 0.0  ;;  %v812_v22 = vmul.f32 0.01, %v762_v16  ;;  %v647_v23 = vadd.f32 %v1212_v17, %v1641_v39  ;;  %v1295_v26 = vpop.f32.mrf.mxu1  ;;  %v874_v41 = vadd.f32 %v873_v31, %v872_v33 }
 0x139   :  { %v1214_v32 = vpop.f32.mrf.mxu0 }
 0x13a   :  { %v1743_v35 = vsel %vm791_vm5, %v762_v16, %v812_v22  ;;  %v767_v36 = vadd.f32 %v1294_v24, %v647_v23  ;;  %v1296_v37 = vpop.f32.mrf.mxu1 }
 0x13b   :  { %v875_v38 = vsel %vm837_vm4, %v1743_v35, 0.0 }
 0x13c   :  { %vm792_vm6 = vcmp.gt.f32.partialorder %v767_v36, 0.0  ;;  %v813_v42 = vmul.f32 0.01, %v767_v36  ;;  %v876_v43 = vadd.f32 %v875_v38, %v874_v41 }
 0x13e   :  { %v1747_v39 = vsel %vm792_vm6, %v767_v36, %v813_v42 }
 0x13f   :  { %v878_v44 = vsel %vm877_vm7, %v1747_v39, 0.0 }
 0x140   :  { %v879_v45 = vadd.f32 %v878_v44, %v876_v43 }
 0x142   :  { %v880_v48 = vrot.slane %v879_v45, 4 }
 0x144   :  { %v881_v49 = vadd.f32 %v880_v48, %v879_v45 }
 0x146   :  { %v882_v52 = vrot.slane %v881_v49, 2 }
 0x148   :  { %v883_v54 = vadd.f32 %v882_v52, %v881_v49 }
 0x14a   :  { %v884_v56 = vrot.slane %v883_v54, 1 }
 0x14c   :  { %v885_v53 = vadd.f32 %v884_v56, %v883_v54 }
 0x14e   :  { %v1751_v57 = vmul.f32 0.0061728396, %v885_v53 }
 0x150   :  { %v887_v58 = vsub.f32 %v1653_v25, %v1751_v57  ;;  %v888_v59 = vsub.f32 %v1649_v13, %v1751_v57  ;;  %v889_v60 = vsub.f32 %v1658_v27, %v1751_v57  ;;  %v890_v61 = vsub.f32 %v1660_v29, %v1751_v57 }
 0x151   :  { %v891_v1 = vsub.f32 %v1669_v46, %v1751_v57  ;;  %v892_v5 = vsub.f32 %v1671_v47, %v1751_v57  ;;  %v893_v11 = vsub.f32 %v1679_v62, %v1751_v57  ;;  %v894_v18 = vsub.f32 %v1684_v15, %v1751_v57 }
 0x152   :  { %v908_v63 = vmul.f32 %v887_v58, %v887_v58  ;;  %v909_v0 = vmul.f32 %v888_v59, %v888_v59  ;;  %v910_v3 = vmul.f32 %v889_v60, %v889_v60  ;;  %v911_v6 = vmul.f32 %v890_v61, %v890_v61 }
 0x153   :  { %v912_v12 = vmul.f32 %v891_v1, %v891_v1  ;;  %v913_v19 = vmul.f32 %v892_v5, %v892_v5  ;;  %v895_v22 = vsub.f32 %v1690_v34, %v1751_v57  ;;  %v914_v23 = vmul.f32 %v893_v11, %v893_v11 }
 0x154   :  { %v929_v9 = vsel %vm837_vm4, %v908_v63, 0.0  ;;  %v930_v10 = vsel %vm837_vm4, %v909_v0, 0.0  ;;  %v932_v16 = vsel %vm837_vm4, %v910_v3, 0.0  ;;  %v934_v20 = vsel %vm837_vm4, %v911_v6, 0.0 }
 0x155   :  { %v931_v8 = vadd.f32 %v930_v10, %v929_v9  ;;  %v936_v24 = vsel %vm837_vm4, %v912_v12, 0.0  ;;  %v896_v31 = vsub.f32 %v1692_v40, %v1751_v57  ;;  %v915_v32 = vmul.f32 %v894_v18, %v894_v18 }
 0x156   :  { %v938_v33 = vsel %vm837_vm4, %v913_v19, 0.0  ;;  %v897_v37 = vsub.f32 %v1700_v55, %v1751_v57  ;;  %v916_v38 = vmul.f32 %v895_v22, %v895_v22  ;;  %v940_v41 = vsel %vm837_vm4, %v914_v23, 0.0 }
 0x157   :  { %v933_v17 = vadd.f32 %v932_v16, %v931_v8  ;;  %v898_v43 = vsub.f32 %v1705_v7, %v1751_v57  ;;  %v917_v44 = vmul.f32 %v896_v31, %v896_v31  ;;  %v942_v45 = vsel %vm837_vm4, %v915_v32, 0.0 }
 0x158   :  { %v899_v49 = vsub.f32 %v1707_v2, %v1751_v57  ;;  %v918_v52 = vmul.f32 %v897_v37, %v897_v37  ;;  %v944_v54 = vsel %vm837_vm4, %v916_v38, 0.0  ;;  %v900_v53 = vsub.f32 %v1714_v28, %v1751_v57 }
 0x159   :  { %v935_v21 = vadd.f32 %v934_v20, %v933_v17  ;;  %v919_v58 = vmul.f32 %v898_v43, %v898_v43  ;;  %v946_v59 = vsel %vm837_vm4, %v917_v44, 0.0  ;;  %v901_v61 = vsub.f32 %v1716_v30, %v1751_v57 }
 0x15a   :  { %v920_v63 = vmul.f32 %v899_v49, %v899_v49  ;;  %v948_v0 = vsel %vm837_vm4, %v918_v52, 0.0  ;;  %v902_v3 = vsub.f32 %v1724_v50, %v1751_v57  ;;  %v921_v5 = vmul.f32 %v900_v53, %v900_v53 }
 0x15b   :  { %v937_v26 = vadd.f32 %v936_v24, %v935_v21  ;;  %v950_v6 = vsel %vm837_vm4, %v919_v58, 0.0  ;;  %v903_v10 = vsub.f32 %v1726_v51, %v1751_v57  ;;  %v922_v8 = vmul.f32 %v901_v61, %v901_v61 }
 0x15c   :  { %v952_v11 = vsel %vm837_vm4, %v920_v63, 0.0  ;;  %v904_v16 = vsub.f32 %v1733_v4, %v1751_v57  ;;  %v923_v17 = vmul.f32 %v902_v3, %v902_v3  ;;  %v954_v18 = vsel %vm837_vm4, %v921_v5, 0.0 }
 0x15d   :  { %v939_v36 = vadd.f32 %v938_v33, %v937_v26  ;;  %v905_v20 = vsub.f32 %v1736_v14, %v1751_v57  ;;  %v924_v21 = vmul.f32 %v903_v10, %v903_v10  ;;  %v956_v22 = vsel %vm837_vm4, %v922_v8, 0.0 }
 0x15e   :  { %v906_v24 = vsub.f32 %v1743_v35, %v1751_v57  ;;  %v925_v26 = vmul.f32 %v904_v16, %v904_v16  ;;  %v958_v31 = vsel %vm837_vm4, %v923_v17, 0.0  ;;  %v907_v33 = vsub.f32 %v1747_v39, %v1751_v57  ;;  %v836_v16 = vld [vmem:[%s1930_s2 + $0x2] sm:$0x1] }
 0x15f   :  { %v941_v42 = vadd.f32 %v940_v41, %v939_v36  ;;  %v926_v36 = vmul.f32 %v905_v20, %v905_v20  ;;  %v960_v37 = vsel %vm837_vm4, %v924_v21, 0.0  ;;  %v980_v3 = vlaneseq }
 0x160   :  { %v927_v41 = vmul.f32 %v906_v24, %v906_v24  ;;  %v928_v44 = vmul.f32 %v907_v33, %v907_v33 }
 0x161   :  { %v943_v48 = vadd.f32 %v942_v45, %v941_v42  ;;  %v962_v42 = vsel %vm837_vm4, %v925_v26, 0.0  ;;  %v964_v45 = vsel %vm837_vm4, %v926_v36, 0.0  ;;  %v981_v5 = vshrl.u32 %v980_v3, 7 }
 0x162   :  { %v966_v49 = vsel %vm837_vm4, %v927_v41, 0.0 }
 0x163   :  { %v945_v56 = vadd.f32 %v944_v54, %v943_v48  ;;  %v968_v54 = vsel %vm877_vm7, %v928_v44, 0.0  ;;  %v982_v10 = vsub.s32 0, %v981_v5 }
 0x165   :  { %v947_v60 = vadd.f32 %v946_v59, %v945_v56 }
 0x167   :  { %v949_v1 = vadd.f32 %v948_v0, %v947_v60 }
 0x169   :  { %v951_v9 = vadd.f32 %v950_v6, %v949_v1  ;;  %v835_v6 = vld [vmem:[%s1930_s2 + $0x1] sm:$0x1] }
 0x16b   :  { %v953_v12 = vadd.f32 %v952_v11, %v951_v9 }
 0x16d   :  { %v955_v19 = vadd.f32 %v954_v18, %v953_v12 }
 0x16f   :  { %v957_v23 = vadd.f32 %v956_v22, %v955_v19 }
 0x171   :  { %v959_v32 = vadd.f32 %v958_v31, %v957_v23 }
 0x173   :  { %v961_v38 = vadd.f32 %v960_v37, %v959_v32 }
 0x175   :  { %v963_v43 = vadd.f32 %v962_v42, %v961_v38 }
 0x177   :  { %v965_v48 = vadd.f32 %v964_v45, %v963_v43 }
 0x179   :  { %v967_v52 = vadd.f32 %v966_v49, %v965_v48 }
 0x17b   :  { %v969_v56 = vadd.f32 %v968_v54, %v967_v52 }
 0x17d   :  { %v970_v53 = vrot.slane %v969_v56, 4 }
 0x17f   :  { %v971_v58 = vadd.f32 %v970_v53, %v969_v56 }
 0x181   :  { %v972_v59 = vrot.slane %v971_v58, 2 }
 0x183   :  { %v973_v60 = vadd.f32 %v972_v59, %v971_v58 }
 0x185   :  { %v974_v61 = vrot.slane %v973_v60, 1 }
 0x187   :  { %v975_v63 = vadd.f32 %v974_v61, %v973_v60 }
 0x189   :  { %v976_v0 = vmul.f32 0.0061728396, %v975_v63 }
 0x18b   :  { %v977_v1 = vadd.f32 1e-05, %v976_v0 }
 0x18d   :  { %1394 = vrsqrt.f32 %v977_v1 }
 0x19a   :  { %v1395_v9 = vpop.eup %1394 }
 0x19b   :  { %v979_v8 = vmul.f32 %v1395_v9, %v835_v6 }
 0x19d   :  { %v983_v11 = vrot.slane %v979_v8, %v982_v10  ;;  %v1005_v12 = vmul.f32 %v979_v8, %v1751_v57 }
 0x19f   :  { %v984_v17 = vmul.f32 %v983_v11, %v1653_v25  ;;  %v985_v18 = vmul.f32 %v983_v11, %v1649_v13  ;;  %v986_v19 = vmul.f32 %v983_v11, %v1658_v27  ;;  %v987_v20 = vmul.f32 %v983_v11, %v1660_v29 }
 0x1a0   :  { %v988_v21 = vmul.f32 %v983_v11, %v1669_v46  ;;  %v989_v22 = vmul.f32 %v983_v11, %v1671_v47  ;;  %v990_v23 = vmul.f32 %v983_v11, %v1679_v62  ;;  %v991_v57 = vmul.f32 %v983_v11, %v1684_v15 }
 0x1a1   :  { %v992_v24 = vmul.f32 %v983_v11, %v1690_v34  ;;  %v993_v26 = vmul.f32 %v983_v11, %v1692_v40  ;;  %v1006_v31 = vsub.f32 %v836_v16, %v1005_v12  ;;  %v994_v25 = vmul.f32 %v983_v11, %v1700_v55 }
 0x1a2   :  { %v995_v13 = vmul.f32 %v983_v11, %v1705_v7  ;;  %v996_v27 = vmul.f32 %v983_v11, %v1707_v2  ;;  %v997_v29 = vmul.f32 %v983_v11, %v1714_v28  ;;  %v998_v46 = vmul.f32 %v983_v11, %v1716_v30 }
 0x1a3   :  { %v999_v47 = vmul.f32 %v983_v11, %v1724_v50  ;;  %v1000_v62 = vmul.f32 %v983_v11, %v1726_v51  ;;  %v1010_v15 = vrot.slane %v1006_v31, %v982_v10  ;;  %v1001_v34 = vmul.f32 %v983_v11, %v1733_v4 }
 0x1a4   :  { %v1002_v40 = vmul.f32 %v983_v11, %v1736_v14  ;;  %v1003_v32 = vmul.f32 %v983_v11, %v1743_v35  ;;  %v1004_v55 = vmul.f32 %v983_v11, %v1747_v39 }
 0x1a5   :  { %v1011_v7 = vadd.f32 %v1010_v15, %v984_v17  ;;  %v1012_v33 = vadd.f32 %v1010_v15, %v985_v18  ;;  %v1013_v2 = vadd.f32 %v1010_v15, %v986_v19  ;;  %v1014_v36 = vadd.f32 %v1010_v15, %v987_v20 }
 0x1a6   :  { %v1015_v28 = vadd.f32 %v1010_v15, %v988_v21  ;;  %v1016_v37 = vadd.f32 %v1010_v15, %v989_v22  ;;  %v1017_v30 = vadd.f32 %v1010_v15, %v990_v23  ;;  %v1018_v38 = vadd.f32 %v1010_v15, %v991_v57 }
 0x1a7   :  { %v1019_v50 = vadd.f32 %v1010_v15, %v992_v24  ;;  %v1020_v41 = vadd.f32 %v1010_v15, %v993_v26  ;;  %v1021_v51 = vadd.f32 %v1010_v15, %v994_v25  ;;  %v1022_v42 = vadd.f32 %v1010_v15, %v995_v13  ;;  %1032 = vst.msk [vmem:[%s1931_s3] sm:$0xff] %vm837_vm4, %v1011_v7 }
 0x1a8   :  { %1033 = vst.msk [vmem:[%s1931_s3 + $0x8] sm:$0xff] %vm837_vm4, %v1012_v33  ;;  %1034 = vst.msk [vmem:[%s1931_s3 + $0x10] sm:$0xff] %vm837_vm4, %v1013_v2  ;;  %v1023_v4 = vadd.f32 %v1010_v15, %v996_v27  ;;  %v1024_v14 = vadd.f32 %v1010_v15, %v997_v29  ;;  %v1025_v35 = vadd.f32 %v1010_v15, %v998_v46 }
 0x1a9   :  { %1035 = vst.msk [vmem:[%s1931_s3 + $0x18] sm:$0xff] %vm837_vm4, %v1014_v36  ;;  %v1026_v39 = vadd.f32 %v1010_v15, %v999_v47  ;;  %1036 = vst.msk [vmem:[%s1931_s3 + $0x20] sm:$0xff] %vm837_vm4, %v1015_v28  ;;  %v1027_v43 = vadd.f32 %v1010_v15, %v1000_v62  ;;  %v1028_v44 = vadd.f32 %v1010_v15, %v1001_v34 }
 0x1aa   :  { %1037 = vst.msk [vmem:[%s1931_s3 + $0x28] sm:$0xff] %vm837_vm4, %v1016_v37  ;;  %1038 = vst.msk [vmem:[%s1931_s3 + $0x30] sm:$0xff] %vm837_vm4, %v1017_v30  ;;  %v1029_v45 = vadd.f32 %v1010_v15, %v1002_v40  ;;  %v1030_v48 = vadd.f32 %v1010_v15, %v1003_v32  ;;  %v1031_v49 = vadd.f32 %v1010_v15, %v1004_v55 }
 0x1ab   :  { %1039 = vst.msk [vmem:[%s1931_s3 + $0x38] sm:$0xff] %vm837_vm4, %v1018_v38  ;;  %1040 = vst.msk [vmem:[%s1931_s3 + $0x40] sm:$0xff] %vm837_vm4, %v1019_v50 }
 0x1ac   :  { %1041 = vst.msk [vmem:[%s1931_s3 + $0x48] sm:$0xff] %vm837_vm4, %v1020_v41  ;;  %1042 = vst.msk [vmem:[%s1931_s3 + $0x50] sm:$0xff] %vm837_vm4, %v1021_v51 }
 0x1ad   :  { %1043 = vst.msk [vmem:[%s1931_s3 + $0x58] sm:$0xff] %vm837_vm4, %v1022_v42  ;;  %1044 = vst.msk [vmem:[%s1931_s3 + $0x60] sm:$0xff] %vm837_vm4, %v1023_v4 }
 0x1ae   :  { %1045 = vst.msk [vmem:[%s1931_s3 + $0x68] sm:$0xff] %vm837_vm4, %v1024_v14  ;;  %1046 = vst.msk [vmem:[%s1931_s3 + $0x70] sm:$0xff] %vm837_vm4, %v1025_v35 }
 0x1af   :  { %1047 = vst.msk [vmem:[%s1931_s3 + $0x78] sm:$0xff] %vm837_vm4, %v1026_v39  ;;  %1048 = vst.msk [vmem:[%s1931_s3 + $0x80] sm:$0xff] %vm837_vm4, %v1027_v43 }
 0x1b0   :  { %1049 = vst.msk [vmem:[%s1931_s3 + $0x88] sm:$0xff] %vm837_vm4, %v1028_v44  ;;  %1050 = vst.msk [vmem:[%s1931_s3 + $0x90] sm:$0xff] %vm837_vm4, %v1029_v45 }
 0x1b1   :  { %1051 = vst.msk [vmem:[%s1931_s3 + $0x98] sm:$0xff] %vm837_vm4, %v1030_v48 }
 0x1b2   :  { %1052 = vst.msk [vmem:[%s1931_s3 + $0xa0] sm:$0x3] %vm877_vm7, %v1031_v49 }

// kernel: dueling_qnet_forward.5
= control target key start
LH: loop header
LB: loop body
LE: loop exit
PB: predicated region body
PF: predicated region fallthrough
CT: control target
= control target key end

     0   :  { %13 = vsyncpa [#allocation7], 0  ;;  %s11454_s0 = inlined_call_operand.vmem [shape: bf16[32,576], index: 0, kind: input, shape index: {}]   ;;  %s11455_s1 = inlined_call_operand.vmem [shape: bf16[576,128], index: 1, kind: input, shape index: {}]   ;;  %s11456_s2 = inlined_call_operand.vmem [shape: f32[3,128], index: 2, kind: input, shape index: {}]   ;;  %s11457_s3 = inlined_call_operand.vmem [shape: bf16[2048,512], index: 3, kind: input, shape index: {}]   ;;  %s11458_s4 = inlined_call_operand.vmem [shape: f32[3,512], index: 4, kind: input, shape index: {}]   ;;  %s11459_s5 = inlined_call_operand.vmem [shape: bf16[512,128], index: 5, kind: input, shape index: {}]   ;;  %s11460_s6 = inlined_call_operand.vmem [shape: f32[1,2048], index: 6, kind: input, shape index: {}]   ;;  %s11461_s7 = inlined_call_operand.vmem [shape: f32[2,128], index: 7, kind: input, shape index: {}]   ;;  %s11462_s8 = inlined_call_operand.hbm [shape: f32[2,128], index: 8, kind: output, shape index: {}]  }
   0x1   :  { %v7313_v0 = vld [vmem:[%s11457_s3] sm:$0xff]  ;;  %v7318_v1 = vld [vmem:[%s11457_s3 + $0x8] sm:$0xff]  ;;  %v7323_v2 = vld [vmem:[%s11457_s3 + $0x10] sm:$0xff] }
   0x2   :  { %11945 = vst [vmem:[#allocation11_spill] sm:$0xff] %v7318_v1  ;;  %v7328_v3 = vld [vmem:[%s11457_s3 + $0x18] sm:$0xff]  ;;  %v7333_v4 = vld [vmem:[%s11457_s3 + $0x20] sm:$0xff]  ;;  %v7338_v5 = vld [vmem:[%s11457_s3 + $0x28] sm:$0xff] }
   0x3   :  { %11946 = vst [vmem:[#allocation12_spill] sm:$0xff] %v7328_v3  ;;  %11947 = vst [vmem:[#allocation13_spill] sm:$0xff] %v7338_v5  ;;  %v7343_v6 = vld [vmem:[%s11457_s3 + $0x30] sm:$0xff]  ;;  %v7348_v7 = vld [vmem:[%s11457_s3 + $0x38] sm:$0xff] }
   0x4   :  { %11948 = vst [vmem:[#allocation14_spill] sm:$0xff] %v7348_v7  ;;  %v7353_v8 = vld [vmem:[%s11457_s3 + $0x40] sm:$0xff]  ;;  %v7358_v9 = vld [vmem:[%s11457_s3 + $0x48] sm:$0xff]  ;;  %v7363_v10 = vld [vmem:[%s11457_s3 + $0x50] sm:$0xff] }
   0x5   :  { %11949 = vst [vmem:[#allocation15_spill] sm:$0xff] %v7358_v9  ;;  %v7368_v11 = vld [vmem:[%s11457_s3 + $0x58] sm:$0xff]  ;;  %v7373_v12 = vld [vmem:[%s11457_s3 + $0x60] sm:$0xff]  ;;  %v7378_v13 = vld [vmem:[%s11457_s3 + $0x68] sm:$0xff] }
   0x6   :  { %11950 = vst [vmem:[#allocation16_spill] sm:$0xff] %v7368_v11  ;;  %11951 = vst [vmem:[#allocation17_spill] sm:$0xff] %v7378_v13  ;;  %v7383_v14 = vld [vmem:[%s11457_s3 + $0x70] sm:$0xff]  ;;  %v7388_v15 = vld [vmem:[%s11457_s3 + $0x78] sm:$0xff] }
   0x7   :  { %11952 = vst [vmem:[#allocation18_spill] sm:$0xff] %v7388_v15  ;;  %v7393_v16 = vld [vmem:[%s11457_s3 + $0x80] sm:$0xff]  ;;  %v7398_v17 = vld [vmem:[%s11457_s3 + $0x88] sm:$0xff]  ;;  %v7403_v18 = vld [vmem:[%s11457_s3 + $0x90] sm:$0xff] }
   0x8   :  { %11953 = vst [vmem:[#allocation19_spill] sm:$0xff] %v7398_v17  ;;  %v7408_v19 = vld [vmem:[%s11457_s3 + $0x98] sm:$0xff]  ;;  %v7413_v20 = vld [vmem:[%s11457_s3 + $0xa0] sm:$0xff]  ;;  %v7418_v21 = vld [vmem:[%s11457_s3 + $0xa8] sm:$0xff] }
   0x9   :  { %11954 = vst [vmem:[#allocation20_spill] sm:$0xff] %v7408_v19  ;;  %11955 = vst [vmem:[#allocation21_spill] sm:$0xff] %v7418_v21  ;;  %v7423_v22 = vld [vmem:[%s11457_s3 + $0xb0] sm:$0xff]  ;;  %v7428_v23 = vld [vmem:[%s11457_s3 + $0xb8] sm:$0xff] }
   0xa   :  { %11956 = vst [vmem:[#allocation22_spill] sm:$0xff] %v7428_v23  ;;  %v7433_v24 = vld [vmem:[%s11457_s3 + $0xc0] sm:$0xff]  ;;  %v7438_v25 = vld [vmem:[%s11457_s3 + $0xc8] sm:$0xff]  ;;  %v7443_v26 = vld [vmem:[%s11457_s3 + $0xd0] sm:$0xff] }
   0xb   :  { %11957 = vst [vmem:[#allocation23_spill] sm:$0xff] %v7438_v25  ;;  %v7448_v27 = vld [vmem:[%s11457_s3 + $0xd8] sm:$0xff]  ;;  %v7453_v28 = vld [vmem:[%s11457_s3 + $0xe0] sm:$0xff]  ;;  %v7458_v29 = vld [vmem:[%s11457_s3 + $0xe8] sm:$0xff] }
   0xc   :  { %11958 = vst [vmem:[#allocation24_spill] sm:$0xff] %v7448_v27  ;;  %11959 = vst [vmem:[#allocation25_spill] sm:$0xff] %v7458_v29  ;;  %v7463_v30 = vld [vmem:[%s11457_s3 + $0xf0] sm:$0xff]  ;;  %v7468_v31 = vld [vmem:[%s11457_s3 + $0xf8] sm:$0xff] }
   0xd   :  { %11960 = vst [vmem:[#allocation26_spill] sm:$0xff] %v7468_v31  ;;  %v7473_v32 = vld [vmem:[%s11457_s3 + $0x100] sm:$0xff]  ;;  %v7478_v33 = vld [vmem:[%s11457_s3 + $0x108] sm:$0xff]  ;;  %v7483_v34 = vld [vmem:[%s11457_s3 + $0x110] sm:$0xff] }
   0xe   :  { %11961 = vst [vmem:[#allocation27_spill] sm:$0xff] %v7473_v32  ;;  %11962 = vst [vmem:[#allocation28_spill] sm:$0xff] %v7478_v33  ;;  %v7488_v35 = vld [vmem:[%s11457_s3 + $0x118] sm:$0xff]  ;;  %v7493_v36 = vld [vmem:[%s11457_s3 + $0x120] sm:$0xff] }
   0xf   :  { %11963 = vst [vmem:[#allocation29_spill] sm:$0xff] %v7483_v34  ;;  %11964 = vst [vmem:[#allocation30_spill] sm:$0xff] %v7488_v35  ;;  %v7498_v37 = vld [vmem:[%s11457_s3 + $0x128] sm:$0xff]  ;;  %v7503_v38 = vld [vmem:[%s11457_s3 + $0x130] sm:$0xff] }
  0x10   :  { %11965 = vst [vmem:[#allocation31_spill] sm:$0xff] %v7493_v36  ;;  %11966 = vst [vmem:[#allocation32_spill] sm:$0xff] %v7498_v37  ;;  %v7508_v39 = vld [vmem:[%s11457_s3 + $0x138] sm:$0xff]  ;;  %v7513_v40 = vld [vmem:[%s11457_s3 + $0x140] sm:$0xff] }
  0x11   :  { %11967 = vst [vmem:[#allocation33_spill] sm:$0xff] %v7503_v38  ;;  %11968 = vst [vmem:[#allocation34_spill] sm:$0xff] %v7508_v39  ;;  %v7518_v41 = vld [vmem:[%s11457_s3 + $0x148] sm:$0xff]  ;;  %v7523_v42 = vld [vmem:[%s11457_s3 + $0x150] sm:$0xff] }
  0x12   :  { %11969 = vst [vmem:[#allocation35_spill] sm:$0xff] %v7513_v40  ;;  %11970 = vst [vmem:[#allocation36_spill] sm:$0xff] %v7518_v41  ;;  %v7528_v43 = vld [vmem:[%s11457_s3 + $0x158] sm:$0xff]  ;;  %v7533_v44 = vld [vmem:[%s11457_s3 + $0x160] sm:$0xff] }
  0x13   :  { %11971 = vst [vmem:[#allocation37_spill] sm:$0xff] %v7523_v42  ;;  %11972 = vst [vmem:[#allocation38_spill] sm:$0xff] %v7528_v43  ;;  %v7538_v45 = vld [vmem:[%s11457_s3 + $0x168] sm:$0xff]  ;;  %v7543_v46 = vld [vmem:[%s11457_s3 + $0x170] sm:$0xff] }
  0x14   :  { %11973 = vst [vmem:[#allocation39_spill] sm:$0xff] %v7533_v44  ;;  %11974 = vst [vmem:[#allocation40_spill] sm:$0xff] %v7538_v45  ;;  %v7548_v47 = vld [vmem:[%s11457_s3 + $0x178] sm:$0xff]  ;;  %v7553_v48 = vld [vmem:[%s11457_s3 + $0x180] sm:$0xff] }
  0x15   :  { %11975 = vst [vmem:[#allocation41_spill] sm:$0xff] %v7543_v46  ;;  %11976 = vst [vmem:[#allocation42_spill] sm:$0xff] %v7548_v47  ;;  %v7558_v49 = vld [vmem:[%s11457_s3 + $0x188] sm:$0xff]  ;;  %v7563_v50 = vld [vmem:[%s11457_s3 + $0x190] sm:$0xff] }
  0x16   :  { %11977 = vst [vmem:[#allocation43_spill] sm:$0xff] %v7553_v48  ;;  %11978 = vst [vmem:[#allocation44_spill] sm:$0xff] %v7558_v49  ;;  %v7568_v51 = vld [vmem:[%s11457_s3 + $0x198] sm:$0xff]  ;;  %v7573_v52 = vld [vmem:[%s11457_s3 + $0x1a0] sm:$0xff] }
  0x17   :  { %11979 = vst [vmem:[#allocation45_spill] sm:$0xff] %v7563_v50  ;;  %11980 = vst [vmem:[#allocation46_spill] sm:$0xff] %v7568_v51  ;;  %v7578_v53 = vld [vmem:[%s11457_s3 + $0x1a8] sm:$0xff]  ;;  %v7583_v54 = vld [vmem:[%s11457_s3 + $0x1b0] sm:$0xff] }
  0x18   :  { %11981 = vst [vmem:[#allocation47_spill] sm:$0xff] %v7573_v52  ;;  %11982 = vst [vmem:[#allocation48_spill] sm:$0xff] %v7578_v53  ;;  %v7588_v55 = vld [vmem:[%s11457_s3 + $0x1b8] sm:$0xff]  ;;  %v7593_v56 = vld [vmem:[%s11457_s3 + $0x1c0] sm:$0xff] }
  0x19   :  { %11983 = vst [vmem:[#allocation49_spill] sm:$0xff] %v7583_v54  ;;  %11984 = vst [vmem:[#allocation50_spill] sm:$0xff] %v7588_v55  ;;  %v7598_v57 = vld [vmem:[%s11457_s3 + $0x1c8] sm:$0xff]  ;;  %v7603_v58 = vld [vmem:[%s11457_s3 + $0x1d0] sm:$0xff] }
  0x1a   :  { %11985 = vst [vmem:[#allocation51_spill] sm:$0xff] %v7593_v56  ;;  %11986 = vst [vmem:[#allocation52_spill] sm:$0xff] %v7598_v57  ;;  %v7608_v59 = vld [vmem:[%s11457_s3 + $0x1d8] sm:$0xff]  ;;  %v7613_v60 = vld [vmem:[%s11457_s3 + $0x1e0] sm:$0xff] }
  0x1b   :  { %11987 = vst [vmem:[#allocation53_spill] sm:$0xff] %v7603_v58  ;;  %11988 = vst [vmem:[#allocation54_spill] sm:$0xff] %v7608_v59  ;;  %v7618_v61 = vld [vmem:[%s11457_s3 + $0x1e8] sm:$0xff]  ;;  %v7623_v62 = vld [vmem:[%s11457_s3 + $0x1f0] sm:$0xff] }
  0x1c   :  { %11989 = vst [vmem:[#allocation55_spill] sm:$0xff] %v7613_v60  ;;  %11990 = vst [vmem:[#allocation56_spill] sm:$0xff] %v7618_v61  ;;  %v7628_v63 = vld [vmem:[%s11457_s3 + $0x1f8] sm:$0xff]  ;;  %v7633_v33 = vld [vmem:[%s11457_s3 + $0x200] sm:$0xff] }
  0x1d   :  { %11991 = vst [vmem:[#allocation57_spill] sm:$0xff] %v7628_v63  ;;  %v7638_v35 = vld [vmem:[%s11457_s3 + $0x208] sm:$0xff]  ;;  %v7643_v37 = vld [vmem:[%s11457_s3 + $0x210] sm:$0xff]  ;;  %v7648_v39 = vld [vmem:[%s11457_s3 + $0x218] sm:$0xff] }
  0x1e   :  { %11992 = vst [vmem:[#allocation58_spill] sm:$0xff] %v7638_v35  ;;  %11993 = vst [vmem:[#allocation59_spill] sm:$0xff] %v7648_v39  ;;  %v7653_v41 = vld [vmem:[%s11457_s3 + $0x220] sm:$0xff]  ;;  %v7658_v43 = vld [vmem:[%s11457_s3 + $0x228] sm:$0xff] }
  0x1f   :  { %11994 = vst [vmem:[#allocation60_spill] sm:$0xff] %v7658_v43  ;;  %v7663_v45 = vld [vmem:[%s11457_s3 + $0x230] sm:$0xff]  ;;  %v7668_v47 = vld [vmem:[%s11457_s3 + $0x238] sm:$0xff]  ;;  %v7673_v49 = vld [vmem:[%s11457_s3 + $0x240] sm:$0xff] }
  0x20   :  { %11995 = vst [vmem:[#allocation61_spill] sm:$0xff] %v7668_v47  ;;  %v7678_v51 = vld [vmem:[%s11457_s3 + $0x248] sm:$0xff]  ;;  %v7683_v53 = vld [vmem:[%s11457_s3 + $0x250] sm:$0xff]  ;;  %v7688_v55 = vld [vmem:[%s11457_s3 + $0x258] sm:$0xff] }
  0x21   :  { %11996 = vst [vmem:[#allocation62_spill] sm:$0xff] %v7678_v51  ;;  %11997 = vst [vmem:[#allocation63_spill] sm:$0xff] %v7688_v55  ;;  %v7693_v57 = vld [vmem:[%s11457_s3 + $0x260] sm:$0xff]  ;;  %v7698_v59 = vld [vmem:[%s11457_s3 + $0x268] sm:$0xff] }
  0x22   :  { %11998 = vst [vmem:[#allocation64_spill] sm:$0xff] %v7698_v59  ;;  %v7703_v61 = vld [vmem:[%s11457_s3 + $0x270] sm:$0xff]  ;;  %v7708_v63 = vld [vmem:[%s11457_s3 + $0x278] sm:$0xff]  ;;  %v7713_v35 = vld [vmem:[%s11457_s3 + $0x280] sm:$0xff] }
  0x23   :  { %11999 = vst [vmem:[#allocation65_spill] sm:$0xff] %v7708_v63  ;;  %v7718_v39 = vld [vmem:[%s11457_s3 + $0x288] sm:$0xff]  ;;  %v7723_v1 = vld [vmem:[%s11457_s3 + $0x290] sm:$0xff]  ;;  %v7728_v3 = vld [vmem:[%s11457_s3 + $0x298] sm:$0xff] }
  0x24   :  { %12000 = vst [vmem:[#allocation66_spill] sm:$0xff] %v7718_v39  ;;  %12001 = vst [vmem:[#allocation67_spill] sm:$0xff] %v7728_v3  ;;  %v7733_v43 = vld [vmem:[%s11457_s3 + $0x2a0] sm:$0xff]  ;;  %v7738_v47 = vld [vmem:[%s11457_s3 + $0x2a8] sm:$0xff] }
  0x25   :  { %12002 = vst [vmem:[#allocation68_spill] sm:$0xff] %v7738_v47  ;;  %v7743_v5 = vld [vmem:[%s11457_s3 + $0x2b0] sm:$0xff]  ;;  %v7748_v7 = vld [vmem:[%s11457_s3 + $0x2b8] sm:$0xff]  ;;  %v7753_v51 = vld [vmem:[%s11457_s3 + $0x2c0] sm:$0xff] }
  0x26   :  { %12003 = vst [vmem:[#allocation69_spill] sm:$0xff] %v7748_v7  ;;  %v7758_v55 = vld [vmem:[%s11457_s3 + $0x2c8] sm:$0xff]  ;;  %v7763_v9 = vld [vmem:[%s11457_s3 + $0x2d0] sm:$0xff]  ;;  %v7768_v11 = vld [vmem:[%s11457_s3 + $0x2d8] sm:$0xff] }
  0x27   :  { %12004 = vst [vmem:[#allocation70_spill] sm:$0xff] %v7758_v55  ;;  %12005 = vst [vmem:[#allocation71_spill] sm:$0xff] %v7768_v11  ;;  %v7773_v59 = vld [vmem:[%s11457_s3 + $0x2e0] sm:$0xff]  ;;  %v7778_v63 = vld [vmem:[%s11457_s3 + $0x2e8] sm:$0xff] }
  0x28   :  { %12006 = vst [vmem:[#allocation72_spill] sm:$0xff] %v7778_v63  ;;  %v7783_v13 = vld [vmem:[%s11457_s3 + $0x2f0] sm:$0xff]  ;;  %v7788_v15 = vld [vmem:[%s11457_s3 + $0x2f8] sm:$0xff]  ;;  %v7793_v39 = vld [vmem:[%s11457_s3 + $0x300] sm:$0xff] }
  0x29   :  { %12007 = vst [vmem:[#allocation73_spill] sm:$0xff] %v7788_v15  ;;  %12008 = vst [vmem:[#allocation74_spill] sm:$0xff] %v7793_v39  ;;  %v7798_v3 = vld [vmem:[%s11457_s3 + $0x308] sm:$0xff]  ;;  %v7803_v17 = vld [vmem:[%s11457_s3 + $0x310] sm:$0xff] }
  0x2a   :  { %12009 = vst [vmem:[#allocation75_spill] sm:$0xff] %v7798_v3  ;;  %12010 = vst [vmem:[#allocation76_spill] sm:$0xff] %v7803_v17  ;;  %v7808_v19 = vld [vmem:[%s11457_s3 + $0x318] sm:$0xff]  ;;  %v7813_v47 = vld [vmem:[%s11457_s3 + $0x320] sm:$0xff] }
  0x2b   :  { %12011 = vst [vmem:[#allocation77_spill] sm:$0xff] %v7808_v19  ;;  %12012 = vst [vmem:[#allocation78_spill] sm:$0xff] %v7813_v47  ;;  %v7818_v7 = vld [vmem:[%s11457_s3 + $0x328] sm:$0xff]  ;;  %v7823_v3 = vld [vmem:[%s11457_s3 + $0x330] sm:$0xff] }
  0x2c   :  { %12013 = vst [vmem:[#allocation79_spill] sm:$0xff] %v7818_v7  ;;  %12014 = vst [vmem:[#allocation80_spill] sm:$0xff] %v7823_v3  ;;  %v7828_v21 = vld [vmem:[%s11457_s3 + $0x338] sm:$0xff]  ;;  %v7833_v19 = vld [vmem:[%s11457_s3 + $0x340] sm:$0xff] }
  0x2d   :  { %12015 = vst [vmem:[#allocation81_spill] sm:$0xff] %v7828_v21  ;;  %12016 = vst [vmem:[#allocation82_spill] sm:$0xff] %v7833_v19  ;;  %v7838_v23 = vld [vmem:[%s11457_s3 + $0x348] sm:$0xff]  ;;  %v7843_v7 = vld [vmem:[%s11457_s3 + $0x350] sm:$0xff] }
  0x2e   :  { %12017 = vst [vmem:[#allocation83_spill] sm:$0xff] %v7838_v23  ;;  %12018 = vst [vmem:[#allocation84_spill] sm:$0xff] %v7843_v7  ;;  %v7848_v55 = vld [vmem:[%s11457_s3 + $0x358] sm:$0xff]  ;;  %v7853_v21 = vld [vmem:[%s11457_s3 + $0x360] sm:$0xff] }
  0x2f   :  { %12019 = vst [vmem:[#allocation85_spill] sm:$0xff] %v7848_v55  ;;  %12020 = vst [vmem:[#allocation86_spill] sm:$0xff] %v7853_v21  ;;  %v7858_v11 = vld [vmem:[%s11457_s3 + $0x368] sm:$0xff]  ;;  %v7863_v23 = vld [vmem:[%s11457_s3 + $0x370] sm:$0xff] }
  0x30   :  { %12021 = vst [vmem:[#allocation87_spill] sm:$0xff] %v7858_v11  ;;  %12022 = vst [vmem:[#allocation88_spill] sm:$0xff] %v7863_v23  ;;  %v7868_v25 = vld [vmem:[%s11457_s3 + $0x378] sm:$0xff]  ;;  %v7873_v55 = vld [vmem:[%s11457_s3 + $0x380] sm:$0xff] }
  0x31   :  { %12023 = vst [vmem:[#allocation89_spill] sm:$0xff] %v7868_v25  ;;  %12024 = vst [vmem:[#allocation90_spill] sm:$0xff] %v7873_v55  ;;  %v7878_v27 = vld [vmem:[%s11457_s3 + $0x388] sm:$0xff]  ;;  %v7883_v11 = vld [vmem:[%s11457_s3 + $0x390] sm:$0xff] }
  0x32   :  { %12025 = vst [vmem:[#allocation91_spill] sm:$0xff] %v7878_v27  ;;  %12026 = vst [vmem:[#allocation92_spill] sm:$0xff] %v7883_v11  ;;  %v7888_v63 = vld [vmem:[%s11457_s3 + $0x398] sm:$0xff]  ;;  %v7893_v25 = vld [vmem:[%s11457_s3 + $0x3a0] sm:$0xff] }
  0x33   :  { %12027 = vst [vmem:[#allocation93_spill] sm:$0xff] %v7888_v63  ;;  %12028 = vst [vmem:[#allocation94_spill] sm:$0xff] %v7893_v25  ;;  %v7898_v15 = vld [vmem:[%s11457_s3 + $0x3a8] sm:$0xff]  ;;  %v7903_v27 = vld [vmem:[%s11457_s3 + $0x3b0] sm:$0xff] }
  0x34   :  { %12029 = vst [vmem:[#allocation95_spill] sm:$0xff] %v7898_v15  ;;  %12030 = vst [vmem:[#allocation96_spill] sm:$0xff] %v7903_v27  ;;  %v7908_v29 = vld [vmem:[%s11457_s3 + $0x3b8] sm:$0xff]  ;;  %v7913_v63 = vld [vmem:[%s11457_s3 + $0x3c0] sm:$0xff] }
  0x35   :  { %12031 = vst [vmem:[#allocation97_spill] sm:$0xff] %v7908_v29  ;;  %12032 = vst [vmem:[#allocation98_spill] sm:$0xff] %v7913_v63  ;;  %v7918_v31 = vld [vmem:[%s11457_s3 + $0x3c8] sm:$0xff]  ;;  %v7923_v15 = vld [vmem:[%s11457_s3 + $0x3d0] sm:$0xff] }
  0x36   :  { %12033 = vst [vmem:[#allocation99_spill] sm:$0xff] %v7918_v31  ;;  %12034 = vst [vmem:[#allocation100_spill] sm:$0xff] %v7923_v15  ;;  %v7928_v39 = vld [vmem:[%s11457_s3 + $0x3d8] sm:$0xff]  ;;  %v7933_v29 = vld [vmem:[%s11457_s3 + $0x3e0] sm:$0xff] }
  0x37   :  { %12035 = vst [vmem:[#allocation101_spill] sm:$0xff] %v7928_v39  ;;  %12036 = vst [vmem:[#allocation102_spill] sm:$0xff] %v7933_v29  ;;  %v7938_v17 = vld [vmem:[%s11457_s3 + $0x3e8] sm:$0xff]  ;;  %v7943_v31 = vld [vmem:[%s11457_s3 + $0x3f0] sm:$0xff] }
  0x38   :  { %12037 = vst [vmem:[#allocation103_spill] sm:$0xff] %v7938_v17  ;;  %12038 = vst [vmem:[#allocation104_spill] sm:$0xff] %v7943_v31  ;;  %v7948_v32 = vld [vmem:[%s11457_s3 + $0x3f8] sm:$0xff]  ;;  %v7953_v39 = vld [vmem:[%s11457_s3 + $0x400] sm:$0xff] }
  0x39   :  { %12039 = vst [vmem:[#allocation105_spill] sm:$0xff] %v7948_v32  ;;  %12040 = vst [vmem:[#allocation106_spill] sm:$0xff] %v7953_v39  ;;  %v7958_v34 = vld [vmem:[%s11457_s3 + $0x408] sm:$0xff]  ;;  %v7963_v17 = vld [vmem:[%s11457_s3 + $0x410] sm:$0xff] }
  0x3a   :  { %12041 = vst [vmem:[#allocation107_spill] sm:$0xff] %v7958_v34  ;;  %12042 = vst [vmem:[#allocation108_spill] sm:$0xff] %v7963_v17  ;;  %v7968_v47 = vld [vmem:[%s11457_s3 + $0x418] sm:$0xff]  ;;  %v7973_v32 = vld [vmem:[%s11457_s3 + $0x420] sm:$0xff] }
  0x3b   :  { %12043 = vst [vmem:[#allocation109_spill] sm:$0xff] %v7968_v47  ;;  %12044 = vst [vmem:[#allocation110_spill] sm:$0xff] %v7973_v32  ;;  %v7978_v39 = vld [vmem:[%s11457_s3 + $0x428] sm:$0xff]  ;;  %v7983_v34 = vld [vmem:[%s11457_s3 + $0x430] sm:$0xff] }
  0x3c   :  { %12045 = vst [vmem:[#allocation111_spill] sm:$0xff] %v7978_v39  ;;  %12046 = vst [vmem:[#allocation112_spill] sm:$0xff] %v7983_v34  ;;  %v7988_v17 = vld [vmem:[%s11457_s3 + $0x438] sm:$0xff]  ;;  %v7993_v47 = vld [vmem:[%s11457_s3 + $0x440] sm:$0xff] }
  0x3d   :  { %12047 = vst [vmem:[#allocation113_spill] sm:$0xff] %v7988_v17  ;;  %12048 = vst [vmem:[#allocation114_spill] sm:$0xff] %v7993_v47  ;;  %v7998_v32 = vld [vmem:[%s11457_s3 + $0x448] sm:$0xff]  ;;  %v8003_v39 = vld [vmem:[%s11457_s3 + $0x450] sm:$0xff] }
  0x3e   :  { %12049 = vst [vmem:[#allocation115_spill] sm:$0xff] %v7998_v32  ;;  %12050 = vst [vmem:[#allocation116_spill] sm:$0xff] %v8003_v39  ;;  %v8008_v34 = vld [vmem:[%s11457_s3 + $0x458] sm:$0xff]  ;;  %v8013_v17 = vld [vmem:[%s11457_s3 + $0x460] sm:$0xff] }
  0x3f   :  { %12051 = vst [vmem:[#allocation117_spill] sm:$0xff] %v8008_v34  ;;  %12052 = vst [vmem:[#allocation118_spill] sm:$0xff] %v8013_v17  ;;  %v8018_v47 = vld [vmem:[%s11457_s3 + $0x468] sm:$0xff]  ;;  %v8023_v32 = vld [vmem:[%s11457_s3 + $0x470] sm:$0xff] }
  0x40   :  { %12053 = vst [vmem:[#allocation119_spill] sm:$0xff] %v8018_v47  ;;  %12054 = vst [vmem:[#allocation120_spill] sm:$0xff] %v8023_v32  ;;  %v8028_v39 = vld [vmem:[%s11457_s3 + $0x478] sm:$0xff]  ;;  %v8033_v34 = vld [vmem:[%s11457_s3 + $0x480] sm:$0xff] }
  0x41   :  { %12055 = vst [vmem:[#allocation121_spill] sm:$0xff] %v8028_v39  ;;  %12056 = vst [vmem:[#allocation122_spill] sm:$0xff] %v8033_v34  ;;  %v8038_v17 = vld [vmem:[%s11457_s3 + $0x488] sm:$0xff]  ;;  %v8043_v47 = vld [vmem:[%s11457_s3 + $0x490] sm:$0xff] }
  0x42   :  { %12057 = vst [vmem:[#allocation123_spill] sm:$0xff] %v8038_v17  ;;  %12058 = vst [vmem:[#allocation124_spill] sm:$0xff] %v8043_v47  ;;  %v8048_v32 = vld [vmem:[%s11457_s3 + $0x498] sm:$0xff]  ;;  %v8053_v39 = vld [vmem:[%s11457_s3 + $0x4a0] sm:$0xff] }
  0x43   :  { %12059 = vst [vmem:[#allocation125_spill] sm:$0xff] %v8048_v32  ;;  %12060 = vst [vmem:[#allocation126_spill] sm:$0xff] %v8053_v39  ;;  %v8058_v34 = vld [vmem:[%s11457_s3 + $0x4a8] sm:$0xff]  ;;  %v8063_v17 = vld [vmem:[%s11457_s3 + $0x4b0] sm:$0xff] }
  0x44   :  { %12061 = vst [vmem:[#allocation127_spill] sm:$0xff] %v8058_v34  ;;  %12062 = vst [vmem:[#allocation128_spill] sm:$0xff] %v8063_v17  ;;  %v8068_v47 = vld [vmem:[%s11457_s3 + $0x4b8] sm:$0xff]  ;;  %v8073_v32 = vld [vmem:[%s11457_s3 + $0x4c0] sm:$0xff] }
  0x45   :  { %12063 = vst [vmem:[#allocation129_spill] sm:$0xff] %v8068_v47  ;;  %12064 = vst [vmem:[#allocation130_spill] sm:$0xff] %v8073_v32  ;;  %v8078_v39 = vld [vmem:[%s11457_s3 + $0x4c8] sm:$0xff]  ;;  %v8083_v34 = vld [vmem:[%s11457_s3 + $0x4d0] sm:$0xff] }
  0x46   :  { %12065 = vst [vmem:[#allocation131_spill] sm:$0xff] %v8078_v39  ;;  %12066 = vst [vmem:[#allocation132_spill] sm:$0xff] %v8083_v34  ;;  %v8088_v17 = vld [vmem:[%s11457_s3 + $0x4d8] sm:$0xff]  ;;  %v8093_v47 = vld [vmem:[%s11457_s3 + $0x4e0] sm:$0xff] }
  0x47   :  { %12067 = vst [vmem:[#allocation133_spill] sm:$0xff] %v8088_v17  ;;  %12068 = vst [vmem:[#allocation134_spill] sm:$0xff] %v8093_v47  ;;  %v8098_v32 = vld [vmem:[%s11457_s3 + $0x4e8] sm:$0xff]  ;;  %v8103_v39 = vld [vmem:[%s11457_s3 + $0x4f0] sm:$0xff] }
  0x48   :  { %12069 = vst [vmem:[#allocation135_spill] sm:$0xff] %v8098_v32  ;;  %12070 = vst [vmem:[#allocation136_spill] sm:$0xff] %v8103_v39  ;;  %v8108_v34 = vld [vmem:[%s11457_s3 + $0x4f8] sm:$0xff]  ;;  %v8113_v17 = vld [vmem:[%s11457_s3 + $0x500] sm:$0xff] }
  0x49   :  { %12071 = vst [vmem:[#allocation137_spill] sm:$0xff] %v8108_v34  ;;  %12072 = vst [vmem:[#allocation138_spill] sm:$0xff] %v8113_v17  ;;  %v8118_v47 = vld [vmem:[%s11457_s3 + $0x508] sm:$0xff]  ;;  %v8123_v32 = vld [vmem:[%s11457_s3 + $0x510] sm:$0xff] }
  0x4a   :  { %12073 = vst [vmem:[#allocation139_spill] sm:$0xff] %v8118_v47  ;;  %12074 = vst [vmem:[#allocation140_spill] sm:$0xff] %v8123_v32  ;;  %v8128_v39 = vld [vmem:[%s11457_s3 + $0x518] sm:$0xff]  ;;  %v8133_v34 = vld [vmem:[%s11457_s3 + $0x520] sm:$0xff] }
  0x4b   :  { %12075 = vst [vmem:[#allocation141_spill] sm:$0xff] %v8128_v39  ;;  %12076 = vst [vmem:[#allocation142_spill] sm:$0xff] %v8133_v34  ;;  %v8138_v17 = vld [vmem:[%s11457_s3 + $0x528] sm:$0xff]  ;;  %v8143_v47 = vld [vmem:[%s11457_s3 + $0x530] sm:$0xff] }
  0x4c   :  { %12077 = vst [vmem:[#allocation143_spill] sm:$0xff] %v8138_v17  ;;  %12078 = vst [vmem:[#allocation144_spill] sm:$0xff] %v8143_v47  ;;  %v8148_v32 = vld [vmem:[%s11457_s3 + $0x538] sm:$0xff]  ;;  %v8153_v39 = vld [vmem:[%s11457_s3 + $0x540] sm:$0xff] }
  0x4d   :  { %12079 = vst [vmem:[#allocation145_spill] sm:$0xff] %v8148_v32  ;;  %12080 = vst [vmem:[#allocation146_spill] sm:$0xff] %v8153_v39  ;;  %v8158_v34 = vld [vmem:[%s11457_s3 + $0x548] sm:$0xff]  ;;  %v8163_v17 = vld [vmem:[%s11457_s3 + $0x550] sm:$0xff] }
  0x4e   :  { %12081 = vst [vmem:[#allocation147_spill] sm:$0xff] %v8158_v34  ;;  %12082 = vst [vmem:[#allocation148_spill] sm:$0xff] %v8163_v17  ;;  %v8168_v47 = vld [vmem:[%s11457_s3 + $0x558] sm:$0xff]  ;;  %v8173_v32 = vld [vmem:[%s11457_s3 + $0x560] sm:$0xff] }
  0x4f   :  { %12083 = vst [vmem:[#allocation149_spill] sm:$0xff] %v8168_v47  ;;  %12084 = vst [vmem:[#allocation150_spill] sm:$0xff] %v8173_v32  ;;  %v8178_v39 = vld [vmem:[%s11457_s3 + $0x568] sm:$0xff]  ;;  %v8183_v34 = vld [vmem:[%s11457_s3 + $0x570] sm:$0xff] }
  0x50   :  { %12085 = vst [vmem:[#allocation151_spill] sm:$0xff] %v8178_v39  ;;  %12086 = vst [vmem:[#allocation152_spill] sm:$0xff] %v8183_v34  ;;  %v8188_v17 = vld [vmem:[%s11457_s3 + $0x578] sm:$0xff]  ;;  %v8193_v47 = vld [vmem:[%s11457_s3 + $0x580] sm:$0xff] }
  0x51   :  { %12087 = vst [vmem:[#allocation153_spill] sm:$0xff] %v8188_v17  ;;  %12088 = vst [vmem:[#allocation154_spill] sm:$0xff] %v8193_v47  ;;  %v8198_v32 = vld [vmem:[%s11457_s3 + $0x588] sm:$0xff]  ;;  %v8203_v39 = vld [vmem:[%s11457_s3 + $0x590] sm:$0xff] }
  0x52   :  { %12089 = vst [vmem:[#allocation155_spill] sm:$0xff] %v8198_v32  ;;  %12090 = vst [vmem:[#allocation156_spill] sm:$0xff] %v8203_v39  ;;  %v8208_v34 = vld [vmem:[%s11457_s3 + $0x598] sm:$0xff]  ;;  %v8213_v17 = vld [vmem:[%s11457_s3 + $0x5a0] sm:$0xff] }
  0x53   :  { %12091 = vst [vmem:[#allocation157_spill] sm:$0xff] %v8208_v34  ;;  %12092 = vst [vmem:[#allocation158_spill] sm:$0xff] %v8213_v17  ;;  %v8218_v47 = vld [vmem:[%s11457_s3 + $0x5a8] sm:$0xff]  ;;  %v8223_v32 = vld [vmem:[%s11457_s3 + $0x5b0] sm:$0xff] }
  0x54   :  { %12093 = vst [vmem:[#allocation159_spill] sm:$0xff] %v8218_v47  ;;  %12094 = vst [vmem:[#allocation160_spill] sm:$0xff] %v8223_v32  ;;  %v8228_v39 = vld [vmem:[%s11457_s3 + $0x5b8] sm:$0xff]  ;;  %v8233_v34 = vld [vmem:[%s11457_s3 + $0x5c0] sm:$0xff] }
  0x55   :  { %12095 = vst [vmem:[#allocation161_spill] sm:$0xff] %v8228_v39  ;;  %12096 = vst [vmem:[#allocation162_spill] sm:$0xff] %v8233_v34  ;;  %v8238_v17 = vld [vmem:[%s11457_s3 + $0x5c8] sm:$0xff]  ;;  %v8243_v47 = vld [vmem:[%s11457_s3 + $0x5d0] sm:$0xff] }
  0x56   :  { %12097 = vst [vmem:[#allocation163_spill] sm:$0xff] %v8238_v17  ;;  %12098 = vst [vmem:[#allocation164_spill] sm:$0xff] %v8243_v47  ;;  %v8248_v32 = vld [vmem:[%s11457_s3 + $0x5d8] sm:$0xff]  ;;  %v8253_v39 = vld [vmem:[%s11457_s3 + $0x5e0] sm:$0xff] }
  0x57   :  { %12099 = vst [vmem:[#allocation165_spill] sm:$0xff] %v8248_v32  ;;  %12100 = vst [vmem:[#allocation166_spill] sm:$0xff] %v8253_v39  ;;  %v8258_v34 = vld [vmem:[%s11457_s3 + $0x5e8] sm:$0xff]  ;;  %v8263_v17 = vld [vmem:[%s11457_s3 + $0x5f0] sm:$0xff] }
  0x58   :  { %12101 = vst [vmem:[#allocation167_spill] sm:$0xff] %v8258_v34  ;;  %12102 = vst [vmem:[#allocation168_spill] sm:$0xff] %v8263_v17  ;;  %v8268_v47 = vld [vmem:[%s11457_s3 + $0x5f8] sm:$0xff]  ;;  %v8273_v32 = vld [vmem:[%s11457_s3 + $0x600] sm:$0xff] }
  0x59   :  { %12103 = vst [vmem:[#allocation169_spill] sm:$0xff] %v8268_v47  ;;  %12104 = vst [vmem:[#allocation170_spill] sm:$0xff] %v8273_v32  ;;  %v8278_v39 = vld [vmem:[%s11457_s3 + $0x608] sm:$0xff]  ;;  %v8283_v34 = vld [vmem:[%s11457_s3 + $0x610] sm:$0xff] }
  0x5a   :  { %12105 = vst [vmem:[#allocation171_spill] sm:$0xff] %v8278_v39  ;;  %12106 = vst [vmem:[#allocation172_spill] sm:$0xff] %v8283_v34  ;;  %v8288_v17 = vld [vmem:[%s11457_s3 + $0x618] sm:$0xff]  ;;  %v8293_v47 = vld [vmem:[%s11457_s3 + $0x620] sm:$0xff] }
  0x5b   :  { %12107 = vst [vmem:[#allocation173_spill] sm:$0xff] %v8288_v17  ;;  %12108 = vst [vmem:[#allocation174_spill] sm:$0xff] %v8293_v47  ;;  %v8298_v32 = vld [vmem:[%s11457_s3 + $0x628] sm:$0xff]  ;;  %v8303_v39 = vld [vmem:[%s11457_s3 + $0x630] sm:$0xff] }
  0x5c   :  { %12109 = vst [vmem:[#allocation175_spill] sm:$0xff] %v8298_v32  ;;  %12110 = vst [vmem:[#allocation176_spill] sm:$0xff] %v8303_v39  ;;  %v8308_v34 = vld [vmem:[%s11457_s3 + $0x638] sm:$0xff]  ;;  %v8313_v17 = vld [vmem:[%s11457_s3 + $0x640] sm:$0xff] }
  0x5d   :  { %12111 = vst [vmem:[#allocation177_spill] sm:$0xff] %v8308_v34  ;;  %12112 = vst [vmem:[#allocation178_spill] sm:$0xff] %v8313_v17  ;;  %v8318_v47 = vld [vmem:[%s11457_s3 + $0x648] sm:$0xff]  ;;  %v8323_v32 = vld [vmem:[%s11457_s3 + $0x650] sm:$0xff] }
  0x5e   :  { %12113 = vst [vmem:[#allocation179_spill] sm:$0xff] %v8318_v47  ;;  %12114 = vst [vmem:[#allocation180_spill] sm:$0xff] %v8323_v32  ;;  %v8328_v39 = vld [vmem:[%s11457_s3 + $0x658] sm:$0xff]  ;;  %v8333_v34 = vld [vmem:[%s11457_s3 + $0x660] sm:$0xff] }
  0x5f   :  { %12115 = vst [vmem:[#allocation181_spill] sm:$0xff] %v8328_v39  ;;  %12116 = vst [vmem:[#allocation182_spill] sm:$0xff] %v8333_v34  ;;  %v8338_v17 = vld [vmem:[%s11457_s3 + $0x668] sm:$0xff]  ;;  %v8343_v47 = vld [vmem:[%s11457_s3 + $0x670] sm:$0xff] }
  0x60   :  { %12117 = vst [vmem:[#allocation183_spill] sm:$0xff] %v8338_v17  ;;  %12118 = vst [vmem:[#allocation184_spill] sm:$0xff] %v8343_v47  ;;  %v8348_v32 = vld [vmem:[%s11457_s3 + $0x678] sm:$0xff]  ;;  %v8353_v39 = vld [vmem:[%s11457_s3 + $0x680] sm:$0xff] }
  0x61   :  { %12119 = vst [vmem:[#allocation185_spill] sm:$0xff] %v8348_v32  ;;  %12120 = vst [vmem:[#allocation186_spill] sm:$0xff] %v8353_v39  ;;  %v8358_v34 = vld [vmem:[%s11457_s3 + $0x688] sm:$0xff]  ;;  %v8363_v17 = vld [vmem:[%s11457_s3 + $0x690] sm:$0xff] }
  0x62   :  { %12121 = vst [vmem:[#allocation187_spill] sm:$0xff] %v8358_v34  ;;  %12122 = vst [vmem:[#allocation188_spill] sm:$0xff] %v8363_v17  ;;  %v8368_v47 = vld [vmem:[%s11457_s3 + $0x698] sm:$0xff]  ;;  %v8373_v32 = vld [vmem:[%s11457_s3 + $0x6a0] sm:$0xff] }
  0x63   :  { %12123 = vst [vmem:[#allocation189_spill] sm:$0xff] %v8368_v47  ;;  %12124 = vst [vmem:[#allocation190_spill] sm:$0xff] %v8373_v32  ;;  %v8378_v39 = vld [vmem:[%s11457_s3 + $0x6a8] sm:$0xff]  ;;  %v8383_v34 = vld [vmem:[%s11457_s3 + $0x6b0] sm:$0xff] }
  0x64   :  { %12125 = vst [vmem:[#allocation191_spill] sm:$0xff] %v8378_v39  ;;  %12126 = vst [vmem:[#allocation192_spill] sm:$0xff] %v8383_v34  ;;  %v8388_v17 = vld [vmem:[%s11457_s3 + $0x6b8] sm:$0xff]  ;;  %v8393_v47 = vld [vmem:[%s11457_s3 + $0x6c0] sm:$0xff] }
  0x65   :  { %12127 = vst [vmem:[#allocation193_spill] sm:$0xff] %v8388_v17  ;;  %12128 = vst [vmem:[#allocation194_spill] sm:$0xff] %v8393_v47  ;;  %v8398_v32 = vld [vmem:[%s11457_s3 + $0x6c8] sm:$0xff]  ;;  %v8403_v39 = vld [vmem:[%s11457_s3 + $0x6d0] sm:$0xff] }
  0x66   :  { %12129 = vst [vmem:[#allocation195_spill] sm:$0xff] %v8398_v32  ;;  %12130 = vst [vmem:[#allocation196_spill] sm:$0xff] %v8403_v39  ;;  %v8408_v34 = vld [vmem:[%s11457_s3 + $0x6d8] sm:$0xff]  ;;  %v8413_v17 = vld [vmem:[%s11457_s3 + $0x6e0] sm:$0xff] }
  0x67   :  { %12131 = vst [vmem:[#allocation197_spill] sm:$0xff] %v8408_v34  ;;  %12132 = vst [vmem:[#allocation198_spill] sm:$0xff] %v8413_v17  ;;  %v8418_v47 = vld [vmem:[%s11457_s3 + $0x6e8] sm:$0xff]  ;;  %v8423_v32 = vld [vmem:[%s11457_s3 + $0x6f0] sm:$0xff] }
  0x68   :  { %12133 = vst [vmem:[#allocation199_spill] sm:$0xff] %v8418_v47  ;;  %12134 = vst [vmem:[#allocation200_spill] sm:$0xff] %v8423_v32  ;;  %v8428_v39 = vld [vmem:[%s11457_s3 + $0x6f8] sm:$0xff]  ;;  %v8433_v34 = vld [vmem:[%s11457_s3 + $0x700] sm:$0xff] }
  0x69   :  { %12135 = vst [vmem:[#allocation201_spill] sm:$0xff] %v8428_v39  ;;  %12136 = vst [vmem:[#allocation202_spill] sm:$0xff] %v8433_v34  ;;  %v8438_v17 = vld [vmem:[%s11457_s3 + $0x708] sm:$0xff]  ;;  %v8443_v47 = vld [vmem:[%s11457_s3 + $0x710] sm:$0xff] }
  0x6a   :  { %12137 = vst [vmem:[#allocation203_spill] sm:$0xff] %v8438_v17  ;;  %12138 = vst [vmem:[#allocation204_spill] sm:$0xff] %v8443_v47  ;;  %v8448_v32 = vld [vmem:[%s11457_s3 + $0x718] sm:$0xff]  ;;  %v8453_v39 = vld [vmem:[%s11457_s3 + $0x720] sm:$0xff] }
  0x6b   :  { %12139 = vst [vmem:[#allocation205_spill] sm:$0xff] %v8448_v32  ;;  %12140 = vst [vmem:[#allocation206_spill] sm:$0xff] %v8453_v39  ;;  %v8458_v34 = vld [vmem:[%s11457_s3 + $0x728] sm:$0xff]  ;;  %v8463_v17 = vld [vmem:[%s11457_s3 + $0x730] sm:$0xff] }
  0x6c   :  { %12141 = vst [vmem:[#allocation207_spill] sm:$0xff] %v8458_v34  ;;  %12142 = vst [vmem:[#allocation208_spill] sm:$0xff] %v8463_v17  ;;  %v8468_v47 = vld [vmem:[%s11457_s3 + $0x738] sm:$0xff]  ;;  %v8473_v32 = vld [vmem:[%s11457_s3 + $0x740] sm:$0xff] }
  0x6d   :  { %12143 = vst [vmem:[#allocation209_spill] sm:$0xff] %v8468_v47  ;;  %12144 = vst [vmem:[#allocation210_spill] sm:$0xff] %v8473_v32  ;;  %v8478_v39 = vld [vmem:[%s11457_s3 + $0x748] sm:$0xff]  ;;  %v8483_v34 = vld [vmem:[%s11457_s3 + $0x750] sm:$0xff] }
  0x6e   :  { %12145 = vst [vmem:[#allocation211_spill] sm:$0xff] %v8478_v39  ;;  %12146 = vst [vmem:[#allocation212_spill] sm:$0xff] %v8483_v34  ;;  %v8488_v17 = vld [vmem:[%s11457_s3 + $0x758] sm:$0xff]  ;;  %v8493_v47 = vld [vmem:[%s11457_s3 + $0x760] sm:$0xff] }
  0x6f   :  { %12147 = vst [vmem:[#allocation213_spill] sm:$0xff] %v8488_v17  ;;  %12148 = vst [vmem:[#allocation214_spill] sm:$0xff] %v8493_v47  ;;  %v8498_v32 = vld [vmem:[%s11457_s3 + $0x768] sm:$0xff]  ;;  %v8503_v39 = vld [vmem:[%s11457_s3 + $0x770] sm:$0xff] }
  0x70   :  { %12149 = vst [vmem:[#allocation215_spill] sm:$0xff] %v8498_v32  ;;  %12150 = vst [vmem:[#allocation216_spill] sm:$0xff] %v8503_v39  ;;  %v8508_v34 = vld [vmem:[%s11457_s3 + $0x778] sm:$0xff]  ;;  %v8513_v17 = vld [vmem:[%s11457_s3 + $0x780] sm:$0xff] }
  0x71   :  { %12151 = vst [vmem:[#allocation217_spill] sm:$0xff] %v8508_v34  ;;  %12152 = vst [vmem:[#allocation218_spill] sm:$0xff] %v8513_v17  ;;  %v8518_v47 = vld [vmem:[%s11457_s3 + $0x788] sm:$0xff]  ;;  %v8523_v32 = vld [vmem:[%s11457_s3 + $0x790] sm:$0xff] }
  0x72   :  { %12153 = vst [vmem:[#allocation219_spill] sm:$0xff] %v8518_v47  ;;  %12154 = vst [vmem:[#allocation220_spill] sm:$0xff] %v8523_v32  ;;  %v8528_v39 = vld [vmem:[%s11457_s3 + $0x798] sm:$0xff]  ;;  %v8533_v34 = vld [vmem:[%s11457_s3 + $0x7a0] sm:$0xff] }
  0x73   :  { %12155 = vst [vmem:[#allocation221_spill] sm:$0xff] %v8528_v39  ;;  %12156 = vst [vmem:[#allocation222_spill] sm:$0xff] %v8533_v34  ;;  %v8538_v17 = vld [vmem:[%s11457_s3 + $0x7a8] sm:$0xff]  ;;  %v8543_v47 = vld [vmem:[%s11457_s3 + $0x7b0] sm:$0xff] }
  0x74   :  { %12157 = vst [vmem:[#allocation223_spill] sm:$0xff] %v8538_v17  ;;  %12158 = vst [vmem:[#allocation224_spill] sm:$0xff] %v8543_v47  ;;  %v8548_v32 = vld [vmem:[%s11457_s3 + $0x7b8] sm:$0xff]  ;;  %v8553_v39 = vld [vmem:[%s11457_s3 + $0x7c0] sm:$0xff] }
  0x75   :  { %12159 = vst [vmem:[#allocation225_spill] sm:$0xff] %v8548_v32  ;;  %12160 = vst [vmem:[#allocation226_spill] sm:$0xff] %v8553_v39  ;;  %v8558_v34 = vld [vmem:[%s11457_s3 + $0x7c8] sm:$0xff]  ;;  %v8563_v17 = vld [vmem:[%s11457_s3 + $0x7d0] sm:$0xff] }
  0x76   :  { %12161 = vst [vmem:[#allocation227_spill] sm:$0xff] %v8558_v34  ;;  %12162 = vst [vmem:[#allocation228_spill] sm:$0xff] %v8563_v17  ;;  %v8568_v47 = vld [vmem:[%s11457_s3 + $0x7d8] sm:$0xff]  ;;  %v8573_v32 = vld [vmem:[%s11457_s3 + $0x7e0] sm:$0xff] }
  0x77   :  { %12163 = vst [vmem:[#allocation229_spill] sm:$0xff] %v8568_v47  ;;  %12164 = vst [vmem:[#allocation230_spill] sm:$0xff] %v8573_v32  ;;  %v8578_v39 = vld [vmem:[%s11457_s3 + $0x7e8] sm:$0xff]  ;;  %v8583_v34 = vld [vmem:[%s11457_s3 + $0x7f0] sm:$0xff] }
  0x78   :  { %12165 = vst [vmem:[#allocation231_spill] sm:$0xff] %v8578_v39  ;;  %12166 = vst [vmem:[#allocation232_spill] sm:$0xff] %v8583_v34  ;;  %v8588_v17 = vld [vmem:[%s11457_s3 + $0x7f8] sm:$0xff]  ;;  %v8593_v47 = vld [vmem:[%s11457_s3 + $0x800] sm:$0xff] }
  0x79   :  { %12167 = vst [vmem:[#allocation233_spill] sm:$0xff] %v8588_v17  ;;  %12168 = vst [vmem:[#allocation234_spill] sm:$0xff] %v8593_v47  ;;  %v8598_v32 = vld [vmem:[%s11457_s3 + $0x808] sm:$0xff]  ;;  %v8603_v39 = vld [vmem:[%s11457_s3 + $0x810] sm:$0xff] }
  0x7a   :  { %12169 = vst [vmem:[#allocation235_spill] sm:$0xff] %v8598_v32  ;;  %12170 = vst [vmem:[#allocation236_spill] sm:$0xff] %v8603_v39  ;;  %v8608_v34 = vld [vmem:[%s11457_s3 + $0x818] sm:$0xff]  ;;  %v8613_v17 = vld [vmem:[%s11457_s3 + $0x820] sm:$0xff] }
  0x7b   :  { %12171 = vst [vmem:[#allocation237_spill] sm:$0xff] %v8608_v34  ;;  %12172 = vst [vmem:[#allocation238_spill] sm:$0xff] %v8613_v17  ;;  %v8618_v47 = vld [vmem:[%s11457_s3 + $0x828] sm:$0xff]  ;;  %v8623_v32 = vld [vmem:[%s11457_s3 + $0x830] sm:$0xff] }
  0x7c   :  { %12173 = vst [vmem:[#allocation239_spill] sm:$0xff] %v8618_v47  ;;  %12174 = vst [vmem:[#allocation240_spill] sm:$0xff] %v8623_v32  ;;  %v8628_v39 = vld [vmem:[%s11457_s3 + $0x838] sm:$0xff]  ;;  %v8633_v34 = vld [vmem:[%s11457_s3 + $0x840] sm:$0xff] }
  0x7d   :  { %12175 = vst [vmem:[#allocation241_spill] sm:$0xff] %v8628_v39  ;;  %12176 = vst [vmem:[#allocation242_spill] sm:$0xff] %v8633_v34  ;;  %v8638_v17 = vld [vmem:[%s11457_s3 + $0x848] sm:$0xff]  ;;  %v8643_v47 = vld [vmem:[%s11457_s3 + $0x850] sm:$0xff] }
  0x7e   :  { %12177 = vst [vmem:[#allocation243_spill] sm:$0xff] %v8638_v17  ;;  %12178 = vst [vmem:[#allocation244_spill] sm:$0xff] %v8643_v47  ;;  %v8648_v32 = vld [vmem:[%s11457_s3 + $0x858] sm:$0xff]  ;;  %v8653_v39 = vld [vmem:[%s11457_s3 + $0x860] sm:$0xff] }
  0x7f   :  { %12179 = vst [vmem:[#allocation245_spill] sm:$0xff] %v8648_v32  ;;  %12180 = vst [vmem:[#allocation246_spill] sm:$0xff] %v8653_v39  ;;  %v8658_v34 = vld [vmem:[%s11457_s3 + $0x868] sm:$0xff]  ;;  %v8663_v17 = vld [vmem:[%s11457_s3 + $0x870] sm:$0xff] }
  0x80   :  { %12181 = vst [vmem:[#allocation247_spill] sm:$0xff] %v8658_v34  ;;  %12182 = vst [vmem:[#allocation248_spill] sm:$0xff] %v8663_v17  ;;  %v8668_v47 = vld [vmem:[%s11457_s3 + $0x878] sm:$0xff]  ;;  %v8673_v32 = vld [vmem:[%s11457_s3 + $0x880] sm:$0xff] }
  0x81   :  { %12183 = vst [vmem:[#allocation249_spill] sm:$0xff] %v8668_v47  ;;  %12184 = vst [vmem:[#allocation250_spill] sm:$0xff] %v8673_v32  ;;  %v8678_v39 = vld [vmem:[%s11457_s3 + $0x888] sm:$0xff]  ;;  %v8683_v34 = vld [vmem:[%s11457_s3 + $0x890] sm:$0xff] }
  0x82   :  { %12185 = vst [vmem:[#allocation251_spill] sm:$0xff] %v8678_v39  ;;  %12186 = vst [vmem:[#allocation252_spill] sm:$0xff] %v8683_v34  ;;  %v8688_v17 = vld [vmem:[%s11457_s3 + $0x898] sm:$0xff]  ;;  %v8693_v47 = vld [vmem:[%s11457_s3 + $0x8a0] sm:$0xff] }
  0x83   :  { %12187 = vst [vmem:[#allocation253_spill] sm:$0xff] %v8688_v17  ;;  %12188 = vst [vmem:[#allocation254_spill] sm:$0xff] %v8693_v47  ;;  %v8698_v32 = vld [vmem:[%s11457_s3 + $0x8a8] sm:$0xff]  ;;  %v8703_v39 = vld [vmem:[%s11457_s3 + $0x8b0] sm:$0xff] }
  0x84   :  { %12189 = vst [vmem:[#allocation255_spill] sm:$0xff] %v8698_v32  ;;  %12190 = vst [vmem:[#allocation256_spill] sm:$0xff] %v8703_v39  ;;  %v8708_v34 = vld [vmem:[%s11457_s3 + $0x8b8] sm:$0xff]  ;;  %v8713_v17 = vld [vmem:[%s11457_s3 + $0x8c0] sm:$0xff] }
  0x85   :  { %12191 = vst [vmem:[#allocation257_spill] sm:$0xff] %v8708_v34  ;;  %12192 = vst [vmem:[#allocation258_spill] sm:$0xff] %v8713_v17  ;;  %v8718_v47 = vld [vmem:[%s11457_s3 + $0x8c8] sm:$0xff]  ;;  %v8723_v32 = vld [vmem:[%s11457_s3 + $0x8d0] sm:$0xff] }
  0x86   :  { %12193 = vst [vmem:[#allocation259_spill] sm:$0xff] %v8718_v47  ;;  %12194 = vst [vmem:[#allocation260_spill] sm:$0xff] %v8723_v32  ;;  %v8728_v39 = vld [vmem:[%s11457_s3 + $0x8d8] sm:$0xff]  ;;  %v8733_v34 = vld [vmem:[%s11457_s3 + $0x8e0] sm:$0xff] }
  0x87   :  { %12195 = vst [vmem:[#allocation261_spill] sm:$0xff] %v8728_v39  ;;  %12196 = vst [vmem:[#allocation262_spill] sm:$0xff] %v8733_v34  ;;  %v8738_v17 = vld [vmem:[%s11457_s3 + $0x8e8] sm:$0xff]  ;;  %v8743_v47 = vld [vmem:[%s11457_s3 + $0x8f0] sm:$0xff] }
  0x88   :  { %12197 = vst [vmem:[#allocation263_spill] sm:$0xff] %v8738_v17  ;;  %12198 = vst [vmem:[#allocation264_spill] sm:$0xff] %v8743_v47  ;;  %v8748_v32 = vld [vmem:[%s11457_s3 + $0x8f8] sm:$0xff]  ;;  %v8753_v39 = vld [vmem:[%s11457_s3 + $0x900] sm:$0xff] }
  0x89   :  { %12199 = vst [vmem:[#allocation265_spill] sm:$0xff] %v8748_v32  ;;  %12200 = vst [vmem:[#allocation266_spill] sm:$0xff] %v8753_v39  ;;  %v8758_v34 = vld [vmem:[%s11457_s3 + $0x908] sm:$0xff]  ;;  %v8763_v17 = vld [vmem:[%s11457_s3 + $0x910] sm:$0xff] }
  0x8a   :  { %12201 = vst [vmem:[#allocation267_spill] sm:$0xff] %v8758_v34  ;;  %12202 = vst [vmem:[#allocation268_spill] sm:$0xff] %v8763_v17  ;;  %v8768_v47 = vld [vmem:[%s11457_s3 + $0x918] sm:$0xff]  ;;  %v8773_v32 = vld [vmem:[%s11457_s3 + $0x920] sm:$0xff] }
  0x8b   :  { %12203 = vst [vmem:[#allocation269_spill] sm:$0xff] %v8768_v47  ;;  %12204 = vst [vmem:[#allocation270_spill] sm:$0xff] %v8773_v32  ;;  %v8778_v39 = vld [vmem:[%s11457_s3 + $0x928] sm:$0xff]  ;;  %v8783_v34 = vld [vmem:[%s11457_s3 + $0x930] sm:$0xff] }
  0x8c   :  { %12205 = vst [vmem:[#allocation271_spill] sm:$0xff] %v8778_v39  ;;  %12206 = vst [vmem:[#allocation272_spill] sm:$0xff] %v8783_v34  ;;  %v8788_v17 = vld [vmem:[%s11457_s3 + $0x938] sm:$0xff]  ;;  %v8793_v47 = vld [vmem:[%s11457_s3 + $0x940] sm:$0xff] }
  0x8d   :  { %12207 = vst [vmem:[#allocation273_spill] sm:$0xff] %v8788_v17  ;;  %12208 = vst [vmem:[#allocation274_spill] sm:$0xff] %v8793_v47  ;;  %v8798_v32 = vld [vmem:[%s11457_s3 + $0x948] sm:$0xff]  ;;  %v8803_v39 = vld [vmem:[%s11457_s3 + $0x950] sm:$0xff] }
  0x8e   :  { %12209 = vst [vmem:[#allocation275_spill] sm:$0xff] %v8798_v32  ;;  %12210 = vst [vmem:[#allocation276_spill] sm:$0xff] %v8803_v39  ;;  %v8808_v34 = vld [vmem:[%s11457_s3 + $0x958] sm:$0xff]  ;;  %v8813_v17 = vld [vmem:[%s11457_s3 + $0x960] sm:$0xff] }
  0x8f   :  { %12211 = vst [vmem:[#allocation277_spill] sm:$0xff] %v8808_v34  ;;  %12212 = vst [vmem:[#allocation278_spill] sm:$0xff] %v8813_v17  ;;  %v8818_v47 = vld [vmem:[%s11457_s3 + $0x968] sm:$0xff]  ;;  %v8823_v32 = vld [vmem:[%s11457_s3 + $0x970] sm:$0xff] }
  0x90   :  { %12213 = vst [vmem:[#allocation279_spill] sm:$0xff] %v8818_v47  ;;  %12214 = vst [vmem:[#allocation280_spill] sm:$0xff] %v8823_v32  ;;  %v8828_v39 = vld [vmem:[%s11457_s3 + $0x978] sm:$0xff]  ;;  %v8833_v34 = vld [vmem:[%s11457_s3 + $0x980] sm:$0xff] }
  0x91   :  { %12215 = vst [vmem:[#allocation281_spill] sm:$0xff] %v8828_v39  ;;  %12216 = vst [vmem:[#allocation282_spill] sm:$0xff] %v8833_v34  ;;  %v8838_v17 = vld [vmem:[%s11457_s3 + $0x988] sm:$0xff]  ;;  %v8843_v47 = vld [vmem:[%s11457_s3 + $0x990] sm:$0xff] }
  0x92   :  { %12217 = vst [vmem:[#allocation283_spill] sm:$0xff] %v8838_v17  ;;  %12218 = vst [vmem:[#allocation284_spill] sm:$0xff] %v8843_v47  ;;  %v8848_v32 = vld [vmem:[%s11457_s3 + $0x998] sm:$0xff]  ;;  %v8853_v39 = vld [vmem:[%s11457_s3 + $0x9a0] sm:$0xff] }
  0x93   :  { %12219 = vst [vmem:[#allocation285_spill] sm:$0xff] %v8848_v32  ;;  %12220 = vst [vmem:[#allocation286_spill] sm:$0xff] %v8853_v39  ;;  %v8858_v34 = vld [vmem:[%s11457_s3 + $0x9a8] sm:$0xff]  ;;  %v8863_v17 = vld [vmem:[%s11457_s3 + $0x9b0] sm:$0xff] }
  0x94   :  { %12221 = vst [vmem:[#allocation287_spill] sm:$0xff] %v8858_v34  ;;  %12222 = vst [vmem:[#allocation288_spill] sm:$0xff] %v8863_v17  ;;  %v8868_v47 = vld [vmem:[%s11457_s3 + $0x9b8] sm:$0xff]  ;;  %v8873_v32 = vld [vmem:[%s11457_s3 + $0x9c0] sm:$0xff] }
  0x95   :  { %12223 = vst [vmem:[#allocation289_spill] sm:$0xff] %v8868_v47  ;;  %12224 = vst [vmem:[#allocation290_spill] sm:$0xff] %v8873_v32  ;;  %v8878_v39 = vld [vmem:[%s11457_s3 + $0x9c8] sm:$0xff]  ;;  %v8883_v34 = vld [vmem:[%s11457_s3 + $0x9d0] sm:$0xff] }
  0x96   :  { %12225 = vst [vmem:[#allocation291_spill] sm:$0xff] %v8878_v39  ;;  %12226 = vst [vmem:[#allocation292_spill] sm:$0xff] %v8883_v34  ;;  %v8888_v17 = vld [vmem:[%s11457_s3 + $0x9d8] sm:$0xff]  ;;  %v8893_v47 = vld [vmem:[%s11457_s3 + $0x9e0] sm:$0xff] }
  0x97   :  { %12227 = vst [vmem:[#allocation293_spill] sm:$0xff] %v8888_v17  ;;  %12228 = vst [vmem:[#allocation294_spill] sm:$0xff] %v8893_v47  ;;  %v8898_v32 = vld [vmem:[%s11457_s3 + $0x9e8] sm:$0xff]  ;;  %v8903_v39 = vld [vmem:[%s11457_s3 + $0x9f0] sm:$0xff] }
  0x98   :  { %12229 = vst [vmem:[#allocation295_spill] sm:$0xff] %v8898_v32  ;;  %12230 = vst [vmem:[#allocation296_spill] sm:$0xff] %v8903_v39  ;;  %v8908_v34 = vld [vmem:[%s11457_s3 + $0x9f8] sm:$0xff]  ;;  %v8913_v17 = vld [vmem:[%s11457_s3 + $0xa00] sm:$0xff] }
  0x99   :  { %12231 = vst [vmem:[#allocation297_spill] sm:$0xff] %v8908_v34  ;;  %12232 = vst [vmem:[#allocation298_spill] sm:$0xff] %v8913_v17  ;;  %v8918_v47 = vld [vmem:[%s11457_s3 + $0xa08] sm:$0xff]  ;;  %v8923_v32 = vld [vmem:[%s11457_s3 + $0xa10] sm:$0xff] }
  0x9a   :  { %12233 = vst [vmem:[#allocation299_spill] sm:$0xff] %v8918_v47  ;;  %12234 = vst [vmem:[#allocation300_spill] sm:$0xff] %v8923_v32  ;;  %v8928_v39 = vld [vmem:[%s11457_s3 + $0xa18] sm:$0xff]  ;;  %v8933_v34 = vld [vmem:[%s11457_s3 + $0xa20] sm:$0xff] }
  0x9b   :  { %12235 = vst [vmem:[#allocation301_spill] sm:$0xff] %v8928_v39  ;;  %12236 = vst [vmem:[#allocation302_spill] sm:$0xff] %v8933_v34  ;;  %v8938_v17 = vld [vmem:[%s11457_s3 + $0xa28] sm:$0xff]  ;;  %v8943_v47 = vld [vmem:[%s11457_s3 + $0xa30] sm:$0xff] }
  0x9c   :  { %12237 = vst [vmem:[#allocation303_spill] sm:$0xff] %v8938_v17  ;;  %12238 = vst [vmem:[#allocation304_spill] sm:$0xff] %v8943_v47  ;;  %v8948_v32 = vld [vmem:[%s11457_s3 + $0xa38] sm:$0xff]  ;;  %v8953_v39 = vld [vmem:[%s11457_s3 + $0xa40] sm:$0xff] }
  0x9d   :  { %12239 = vst [vmem:[#allocation305_spill] sm:$0xff] %v8948_v32  ;;  %12240 = vst [vmem:[#allocation306_spill] sm:$0xff] %v8953_v39  ;;  %v8958_v34 = vld [vmem:[%s11457_s3 + $0xa48] sm:$0xff]  ;;  %v8963_v17 = vld [vmem:[%s11457_s3 + $0xa50] sm:$0xff] }
  0x9e   :  { %12241 = vst [vmem:[#allocation307_spill] sm:$0xff] %v8958_v34  ;;  %12242 = vst [vmem:[#allocation308_spill] sm:$0xff] %v8963_v17  ;;  %v8968_v47 = vld [vmem:[%s11457_s3 + $0xa58] sm:$0xff]  ;;  %v8973_v32 = vld [vmem:[%s11457_s3 + $0xa60] sm:$0xff] }
  0x9f   :  { %12243 = vst [vmem:[#allocation309_spill] sm:$0xff] %v8968_v47  ;;  %12244 = vst [vmem:[#allocation310_spill] sm:$0xff] %v8973_v32  ;;  %v8978_v39 = vld [vmem:[%s11457_s3 + $0xa68] sm:$0xff]  ;;  %v8983_v34 = vld [vmem:[%s11457_s3 + $0xa70] sm:$0xff] }
  0xa0   :  { %12245 = vst [vmem:[#allocation311_spill] sm:$0xff] %v8978_v39  ;;  %12246 = vst [vmem:[#allocation312_spill] sm:$0xff] %v8983_v34  ;;  %v8988_v17 = vld [vmem:[%s11457_s3 + $0xa78] sm:$0xff]  ;;  %v8993_v47 = vld [vmem:[%s11457_s3 + $0xa80] sm:$0xff] }
  0xa1   :  { %12247 = vst [vmem:[#allocation313_spill] sm:$0xff] %v8988_v17  ;;  %12248 = vst [vmem:[#allocation314_spill] sm:$0xff] %v8993_v47  ;;  %v8998_v32 = vld [vmem:[%s11457_s3 + $0xa88] sm:$0xff]  ;;  %v9003_v39 = vld [vmem:[%s11457_s3 + $0xa90] sm:$0xff] }
  0xa2   :  { %12249 = vst [vmem:[#allocation315_spill] sm:$0xff] %v8998_v32  ;;  %12250 = vst [vmem:[#allocation316_spill] sm:$0xff] %v9003_v39  ;;  %v9008_v34 = vld [vmem:[%s11457_s3 + $0xa98] sm:$0xff]  ;;  %v9013_v17 = vld [vmem:[%s11457_s3 + $0xaa0] sm:$0xff] }
  0xa3   :  { %12251 = vst [vmem:[#allocation317_spill] sm:$0xff] %v9008_v34  ;;  %12252 = vst [vmem:[#allocation318_spill] sm:$0xff] %v9013_v17  ;;  %v9018_v47 = vld [vmem:[%s11457_s3 + $0xaa8] sm:$0xff]  ;;  %v9023_v32 = vld [vmem:[%s11457_s3 + $0xab0] sm:$0xff] }
  0xa4   :  { %12253 = vst [vmem:[#allocation319_spill] sm:$0xff] %v9018_v47  ;;  %12254 = vst [vmem:[#allocation320_spill] sm:$0xff] %v9023_v32  ;;  %v9028_v39 = vld [vmem:[%s11457_s3 + $0xab8] sm:$0xff]  ;;  %v9033_v34 = vld [vmem:[%s11457_s3 + $0xac0] sm:$0xff] }
  0xa5   :  { %12255 = vst [vmem:[#allocation321_spill] sm:$0xff] %v9028_v39  ;;  %12256 = vst [vmem:[#allocation322_spill] sm:$0xff] %v9033_v34  ;;  %v9038_v17 = vld [vmem:[%s11457_s3 + $0xac8] sm:$0xff]  ;;  %v9043_v47 = vld [vmem:[%s11457_s3 + $0xad0] sm:$0xff] }
  0xa6   :  { %12257 = vst [vmem:[#allocation323_spill] sm:$0xff] %v9038_v17  ;;  %12258 = vst [vmem:[#allocation324_spill] sm:$0xff] %v9043_v47  ;;  %v9048_v32 = vld [vmem:[%s11457_s3 + $0xad8] sm:$0xff]  ;;  %v9053_v39 = vld [vmem:[%s11457_s3 + $0xae0] sm:$0xff] }
  0xa7   :  { %12259 = vst [vmem:[#allocation325_spill] sm:$0xff] %v9048_v32  ;;  %12260 = vst [vmem:[#allocation326_spill] sm:$0xff] %v9053_v39  ;;  %v9058_v34 = vld [vmem:[%s11457_s3 + $0xae8] sm:$0xff]  ;;  %v9063_v17 = vld [vmem:[%s11457_s3 + $0xaf0] sm:$0xff] }
  0xa8   :  { %12261 = vst [vmem:[#allocation327_spill] sm:$0xff] %v9058_v34  ;;  %12262 = vst [vmem:[#allocation328_spill] sm:$0xff] %v9063_v17  ;;  %v9068_v47 = vld [vmem:[%s11457_s3 + $0xaf8] sm:$0xff]  ;;  %v9073_v32 = vld [vmem:[%s11457_s3 + $0xb00] sm:$0xff] }
  0xa9   :  { %12263 = vst [vmem:[#allocation329_spill] sm:$0xff] %v9068_v47  ;;  %12264 = vst [vmem:[#allocation330_spill] sm:$0xff] %v9073_v32  ;;  %v9078_v39 = vld [vmem:[%s11457_s3 + $0xb08] sm:$0xff]  ;;  %v9083_v34 = vld [vmem:[%s11457_s3 + $0xb10] sm:$0xff] }
  0xaa   :  { %12265 = vst [vmem:[#allocation331_spill] sm:$0xff] %v9078_v39  ;;  %12266 = vst [vmem:[#allocation332_spill] sm:$0xff] %v9083_v34  ;;  %v9088_v17 = vld [vmem:[%s11457_s3 + $0xb18] sm:$0xff]  ;;  %v9093_v47 = vld [vmem:[%s11457_s3 + $0xb20] sm:$0xff] }
  0xab   :  { %12267 = vst [vmem:[#allocation333_spill] sm:$0xff] %v9088_v17  ;;  %12268 = vst [vmem:[#allocation334_spill] sm:$0xff] %v9093_v47  ;;  %v9098_v32 = vld [vmem:[%s11457_s3 + $0xb28] sm:$0xff]  ;;  %v9103_v39 = vld [vmem:[%s11457_s3 + $0xb30] sm:$0xff] }
  0xac   :  { %12269 = vst [vmem:[#allocation335_spill] sm:$0xff] %v9098_v32  ;;  %12270 = vst [vmem:[#allocation336_spill] sm:$0xff] %v9103_v39  ;;  %v9108_v34 = vld [vmem:[%s11457_s3 + $0xb38] sm:$0xff]  ;;  %v9113_v17 = vld [vmem:[%s11457_s3 + $0xb40] sm:$0xff] }
  0xad   :  { %12271 = vst [vmem:[#allocation337_spill] sm:$0xff] %v9108_v34  ;;  %12272 = vst [vmem:[#allocation338_spill] sm:$0xff] %v9113_v17  ;;  %v9118_v47 = vld [vmem:[%s11457_s3 + $0xb48] sm:$0xff]  ;;  %v9123_v32 = vld [vmem:[%s11457_s3 + $0xb50] sm:$0xff] }
  0xae   :  { %12273 = vst [vmem:[#allocation339_spill] sm:$0xff] %v9118_v47  ;;  %12274 = vst [vmem:[#allocation340_spill] sm:$0xff] %v9123_v32  ;;  %v9128_v39 = vld [vmem:[%s11457_s3 + $0xb58] sm:$0xff]  ;;  %v9133_v34 = vld [vmem:[%s11457_s3 + $0xb60] sm:$0xff] }
  0xaf   :  { %12275 = vst [vmem:[#allocation341_spill] sm:$0xff] %v9128_v39  ;;  %12276 = vst [vmem:[#allocation342_spill] sm:$0xff] %v9133_v34  ;;  %v9138_v17 = vld [vmem:[%s11457_s3 + $0xb68] sm:$0xff]  ;;  %v9143_v47 = vld [vmem:[%s11457_s3 + $0xb70] sm:$0xff] }
  0xb0   :  { %12277 = vst [vmem:[#allocation343_spill] sm:$0xff] %v9138_v17  ;;  %12278 = vst [vmem:[#allocation344_spill] sm:$0xff] %v9143_v47  ;;  %v9148_v32 = vld [vmem:[%s11457_s3 + $0xb78] sm:$0xff]  ;;  %v9153_v39 = vld [vmem:[%s11457_s3 + $0xb80] sm:$0xff] }
  0xb1   :  { %12279 = vst [vmem:[#allocation345_spill] sm:$0xff] %v9148_v32  ;;  %12280 = vst [vmem:[#allocation346_spill] sm:$0xff] %v9153_v39  ;;  %v9158_v34 = vld [vmem:[%s11457_s3 + $0xb88] sm:$0xff]  ;;  %v9163_v17 = vld [vmem:[%s11457_s3 + $0xb90] sm:$0xff] }
  0xb2   :  { %12281 = vst [vmem:[#allocation347_spill] sm:$0xff] %v9158_v34  ;;  %12282 = vst [vmem:[#allocation348_spill] sm:$0xff] %v9163_v17  ;;  %v9168_v47 = vld [vmem:[%s11457_s3 + $0xb98] sm:$0xff]  ;;  %v9173_v32 = vld [vmem:[%s11457_s3 + $0xba0] sm:$0xff] }
  0xb3   :  { %12283 = vst [vmem:[#allocation349_spill] sm:$0xff] %v9168_v47  ;;  %12284 = vst [vmem:[#allocation350_spill] sm:$0xff] %v9173_v32  ;;  %v9178_v39 = vld [vmem:[%s11457_s3 + $0xba8] sm:$0xff]  ;;  %v9183_v34 = vld [vmem:[%s11457_s3 + $0xbb0] sm:$0xff] }
  0xb4   :  { %12285 = vst [vmem:[#allocation351_spill] sm:$0xff] %v9178_v39  ;;  %12286 = vst [vmem:[#allocation352_spill] sm:$0xff] %v9183_v34  ;;  %v9188_v17 = vld [vmem:[%s11457_s3 + $0xbb8] sm:$0xff]  ;;  %v9193_v47 = vld [vmem:[%s11457_s3 + $0xbc0] sm:$0xff] }
  0xb5   :  { %12287 = vst [vmem:[#allocation353_spill] sm:$0xff] %v9188_v17  ;;  %12288 = vst [vmem:[#allocation354_spill] sm:$0xff] %v9193_v47  ;;  %v9198_v32 = vld [vmem:[%s11457_s3 + $0xbc8] sm:$0xff]  ;;  %v9203_v39 = vld [vmem:[%s11457_s3 + $0xbd0] sm:$0xff] }
  0xb6   :  { %12289 = vst [vmem:[#allocation355_spill] sm:$0xff] %v9198_v32  ;;  %12290 = vst [vmem:[#allocation356_spill] sm:$0xff] %v9203_v39  ;;  %v9208_v34 = vld [vmem:[%s11457_s3 + $0xbd8] sm:$0xff]  ;;  %v9213_v17 = vld [vmem:[%s11457_s3 + $0xbe0] sm:$0xff] }
  0xb7   :  { %12291 = vst [vmem:[#allocation357_spill] sm:$0xff] %v9208_v34  ;;  %12292 = vst [vmem:[#allocation358_spill] sm:$0xff] %v9213_v17  ;;  %v9218_v47 = vld [vmem:[%s11457_s3 + $0xbe8] sm:$0xff]  ;;  %v9223_v32 = vld [vmem:[%s11457_s3 + $0xbf0] sm:$0xff] }
  0xb8   :  { %12293 = vst [vmem:[#allocation359_spill] sm:$0xff] %v9218_v47  ;;  %12294 = vst [vmem:[#allocation360_spill] sm:$0xff] %v9223_v32  ;;  %v9228_v39 = vld [vmem:[%s11457_s3 + $0xbf8] sm:$0xff]  ;;  %v9233_v34 = vld [vmem:[%s11457_s3 + $0xc00] sm:$0xff] }
  0xb9   :  { %12295 = vst [vmem:[#allocation361_spill] sm:$0xff] %v9228_v39  ;;  %12296 = vst [vmem:[#allocation362_spill] sm:$0xff] %v9233_v34  ;;  %v9238_v17 = vld [vmem:[%s11457_s3 + $0xc08] sm:$0xff]  ;;  %v9243_v47 = vld [vmem:[%s11457_s3 + $0xc10] sm:$0xff] }
  0xba   :  { %12297 = vst [vmem:[#allocation363_spill] sm:$0xff] %v9238_v17  ;;  %12298 = vst [vmem:[#allocation364_spill] sm:$0xff] %v9243_v47  ;;  %v9248_v32 = vld [vmem:[%s11457_s3 + $0xc18] sm:$0xff]  ;;  %v9253_v39 = vld [vmem:[%s11457_s3 + $0xc20] sm:$0xff] }
  0xbb   :  { %12299 = vst [vmem:[#allocation365_spill] sm:$0xff] %v9248_v32  ;;  %12300 = vst [vmem:[#allocation366_spill] sm:$0xff] %v9253_v39  ;;  %v9258_v34 = vld [vmem:[%s11457_s3 + $0xc28] sm:$0xff]  ;;  %v9263_v17 = vld [vmem:[%s11457_s3 + $0xc30] sm:$0xff] }
  0xbc   :  { %12301 = vst [vmem:[#allocation367_spill] sm:$0xff] %v9258_v34  ;;  %12302 = vst [vmem:[#allocation368_spill] sm:$0xff] %v9263_v17  ;;  %v9268_v47 = vld [vmem:[%s11457_s3 + $0xc38] sm:$0xff]  ;;  %v9273_v32 = vld [vmem:[%s11457_s3 + $0xc40] sm:$0xff] }
  0xbd   :  { %12303 = vst [vmem:[#allocation369_spill] sm:$0xff] %v9268_v47  ;;  %12304 = vst [vmem:[#allocation370_spill] sm:$0xff] %v9273_v32  ;;  %v9278_v39 = vld [vmem:[%s11457_s3 + $0xc48] sm:$0xff]  ;;  %v9283_v34 = vld [vmem:[%s11457_s3 + $0xc50] sm:$0xff] }
  0xbe   :  { %12305 = vst [vmem:[#allocation371_spill] sm:$0xff] %v9278_v39  ;;  %12306 = vst [vmem:[#allocation372_spill] sm:$0xff] %v9283_v34  ;;  %v9288_v17 = vld [vmem:[%s11457_s3 + $0xc58] sm:$0xff]  ;;  %v9293_v47 = vld [vmem:[%s11457_s3 + $0xc60] sm:$0xff] }
  0xbf   :  { %12307 = vst [vmem:[#allocation373_spill] sm:$0xff] %v9288_v17  ;;  %12308 = vst [vmem:[#allocation374_spill] sm:$0xff] %v9293_v47  ;;  %v9298_v32 = vld [vmem:[%s11457_s3 + $0xc68] sm:$0xff]  ;;  %v9303_v39 = vld [vmem:[%s11457_s3 + $0xc70] sm:$0xff] }
  0xc0   :  { %12309 = vst [vmem:[#allocation375_spill] sm:$0xff] %v9298_v32  ;;  %12310 = vst [vmem:[#allocation376_spill] sm:$0xff] %v9303_v39  ;;  %v9308_v34 = vld [vmem:[%s11457_s3 + $0xc78] sm:$0xff]  ;;  %v9313_v17 = vld [vmem:[%s11457_s3 + $0xc80] sm:$0xff] }
  0xc1   :  { %12311 = vst [vmem:[#allocation377_spill] sm:$0xff] %v9308_v34  ;;  %12312 = vst [vmem:[#allocation378_spill] sm:$0xff] %v9313_v17  ;;  %v9318_v47 = vld [vmem:[%s11457_s3 + $0xc88] sm:$0xff]  ;;  %v9323_v32 = vld [vmem:[%s11457_s3 + $0xc90] sm:$0xff] }
  0xc2   :  { %12313 = vst [vmem:[#allocation379_spill] sm:$0xff] %v9318_v47  ;;  %12314 = vst [vmem:[#allocation380_spill] sm:$0xff] %v9323_v32  ;;  %v9328_v39 = vld [vmem:[%s11457_s3 + $0xc98] sm:$0xff]  ;;  %v9333_v34 = vld [vmem:[%s11457_s3 + $0xca0] sm:$0xff] }
  0xc3   :  { %12315 = vst [vmem:[#allocation381_spill] sm:$0xff] %v9328_v39  ;;  %12316 = vst [vmem:[#allocation382_spill] sm:$0xff] %v9333_v34  ;;  %v9338_v17 = vld [vmem:[%s11457_s3 + $0xca8] sm:$0xff]  ;;  %v9343_v47 = vld [vmem:[%s11457_s3 + $0xcb0] sm:$0xff] }
  0xc4   :  { %12317 = vst [vmem:[#allocation383_spill] sm:$0xff] %v9338_v17  ;;  %12318 = vst [vmem:[#allocation384_spill] sm:$0xff] %v9343_v47  ;;  %v9348_v32 = vld [vmem:[%s11457_s3 + $0xcb8] sm:$0xff]  ;;  %v9353_v39 = vld [vmem:[%s11457_s3 + $0xcc0] sm:$0xff] }
  0xc5   :  { %12319 = vst [vmem:[#allocation385_spill] sm:$0xff] %v9348_v32  ;;  %12320 = vst [vmem:[#allocation386_spill] sm:$0xff] %v9353_v39  ;;  %v9358_v34 = vld [vmem:[%s11457_s3 + $0xcc8] sm:$0xff]  ;;  %v9363_v17 = vld [vmem:[%s11457_s3 + $0xcd0] sm:$0xff] }
  0xc6   :  { %12321 = vst [vmem:[#allocation387_spill] sm:$0xff] %v9358_v34  ;;  %12322 = vst [vmem:[#allocation388_spill] sm:$0xff] %v9363_v17  ;;  %v9368_v47 = vld [vmem:[%s11457_s3 + $0xcd8] sm:$0xff]  ;;  %v9373_v32 = vld [vmem:[%s11457_s3 + $0xce0] sm:$0xff] }
  0xc7   :  { %12323 = vst [vmem:[#allocation389_spill] sm:$0xff] %v9368_v47  ;;  %12324 = vst [vmem:[#allocation390_spill] sm:$0xff] %v9373_v32  ;;  %v9378_v39 = vld [vmem:[%s11457_s3 + $0xce8] sm:$0xff]  ;;  %v9383_v34 = vld [vmem:[%s11457_s3 + $0xcf0] sm:$0xff] }
  0xc8   :  { %12325 = vst [vmem:[#allocation391_spill] sm:$0xff] %v9378_v39  ;;  %12326 = vst [vmem:[#allocation392_spill] sm:$0xff] %v9383_v34  ;;  %v9388_v17 = vld [vmem:[%s11457_s3 + $0xcf8] sm:$0xff]  ;;  %v9393_v47 = vld [vmem:[%s11457_s3 + $0xd00] sm:$0xff] }
  0xc9   :  { %12327 = vst [vmem:[#allocation393_spill] sm:$0xff] %v9388_v17  ;;  %12328 = vst [vmem:[#allocation394_spill] sm:$0xff] %v9393_v47  ;;  %v9398_v32 = vld [vmem:[%s11457_s3 + $0xd08] sm:$0xff]  ;;  %v9403_v39 = vld [vmem:[%s11457_s3 + $0xd10] sm:$0xff] }
  0xca   :  { %12329 = vst [vmem:[#allocation395_spill] sm:$0xff] %v9398_v32  ;;  %12330 = vst [vmem:[#allocation396_spill] sm:$0xff] %v9403_v39  ;;  %v9408_v34 = vld [vmem:[%s11457_s3 + $0xd18] sm:$0xff]  ;;  %v9413_v17 = vld [vmem:[%s11457_s3 + $0xd20] sm:$0xff] }
  0xcb   :  { %12331 = vst [vmem:[#allocation397_spill] sm:$0xff] %v9408_v34  ;;  %12332 = vst [vmem:[#allocation398_spill] sm:$0xff] %v9413_v17  ;;  %v9418_v47 = vld [vmem:[%s11457_s3 + $0xd28] sm:$0xff]  ;;  %v9423_v32 = vld [vmem:[%s11457_s3 + $0xd30] sm:$0xff] }
  0xcc   :  { %12333 = vst [vmem:[#allocation399_spill] sm:$0xff] %v9418_v47  ;;  %12334 = vst [vmem:[#allocation400_spill] sm:$0xff] %v9423_v32  ;;  %v9428_v39 = vld [vmem:[%s11457_s3 + $0xd38] sm:$0xff]  ;;  %v9433_v34 = vld [vmem:[%s11457_s3 + $0xd40] sm:$0xff] }
  0xcd   :  { %12335 = vst [vmem:[#allocation401_spill] sm:$0xff] %v9428_v39  ;;  %12336 = vst [vmem:[#allocation402_spill] sm:$0xff] %v9433_v34  ;;  %v9438_v17 = vld [vmem:[%s11457_s3 + $0xd48] sm:$0xff]  ;;  %v9443_v47 = vld [vmem:[%s11457_s3 + $0xd50] sm:$0xff] }
  0xce   :  { %12337 = vst [vmem:[#allocation403_spill] sm:$0xff] %v9438_v17  ;;  %12338 = vst [vmem:[#allocation404_spill] sm:$0xff] %v9443_v47  ;;  %v9448_v32 = vld [vmem:[%s11457_s3 + $0xd58] sm:$0xff]  ;;  %v9453_v39 = vld [vmem:[%s11457_s3 + $0xd60] sm:$0xff] }
  0xcf   :  { %12339 = vst [vmem:[#allocation405_spill] sm:$0xff] %v9448_v32  ;;  %12340 = vst [vmem:[#allocation406_spill] sm:$0xff] %v9453_v39  ;;  %v9458_v34 = vld [vmem:[%s11457_s3 + $0xd68] sm:$0xff]  ;;  %v9463_v17 = vld [vmem:[%s11457_s3 + $0xd70] sm:$0xff] }
  0xd0   :  { %12341 = vst [vmem:[#allocation407_spill] sm:$0xff] %v9458_v34  ;;  %12342 = vst [vmem:[#allocation408_spill] sm:$0xff] %v9463_v17  ;;  %v9468_v47 = vld [vmem:[%s11457_s3 + $0xd78] sm:$0xff]  ;;  %v9473_v32 = vld [vmem:[%s11457_s3 + $0xd80] sm:$0xff] }
  0xd1   :  { %12343 = vst [vmem:[#allocation409_spill] sm:$0xff] %v9468_v47  ;;  %12344 = vst [vmem:[#allocation410_spill] sm:$0xff] %v9473_v32  ;;  %v9478_v39 = vld [vmem:[%s11457_s3 + $0xd88] sm:$0xff]  ;;  %v9483_v34 = vld [vmem:[%s11457_s3 + $0xd90] sm:$0xff] }
  0xd2   :  { %12345 = vst [vmem:[#allocation411_spill] sm:$0xff] %v9478_v39  ;;  %12346 = vst [vmem:[#allocation412_spill] sm:$0xff] %v9483_v34  ;;  %v9488_v17 = vld [vmem:[%s11457_s3 + $0xd98] sm:$0xff]  ;;  %v9493_v47 = vld [vmem:[%s11457_s3 + $0xda0] sm:$0xff] }
  0xd3   :  { %12347 = vst [vmem:[#allocation413_spill] sm:$0xff] %v9488_v17  ;;  %12348 = vst [vmem:[#allocation414_spill] sm:$0xff] %v9493_v47  ;;  %v9498_v32 = vld [vmem:[%s11457_s3 + $0xda8] sm:$0xff]  ;;  %v9503_v39 = vld [vmem:[%s11457_s3 + $0xdb0] sm:$0xff] }
  0xd4   :  { %12349 = vst [vmem:[#allocation415_spill] sm:$0xff] %v9498_v32  ;;  %12350 = vst [vmem:[#allocation416_spill] sm:$0xff] %v9503_v39  ;;  %v9508_v34 = vld [vmem:[%s11457_s3 + $0xdb8] sm:$0xff]  ;;  %v9513_v17 = vld [vmem:[%s11457_s3 + $0xdc0] sm:$0xff] }
  0xd5   :  { %12351 = vst [vmem:[#allocation417_spill] sm:$0xff] %v9508_v34  ;;  %12352 = vst [vmem:[#allocation418_spill] sm:$0xff] %v9513_v17  ;;  %v9518_v47 = vld [vmem:[%s11457_s3 + $0xdc8] sm:$0xff]  ;;  %v9523_v32 = vld [vmem:[%s11457_s3 + $0xdd0] sm:$0xff] }
  0xd6   :  { %12353 = vst [vmem:[#allocation419_spill] sm:$0xff] %v9518_v47  ;;  %12354 = vst [vmem:[#allocation420_spill] sm:$0xff] %v9523_v32  ;;  %v9528_v39 = vld [vmem:[%s11457_s3 + $0xdd8] sm:$0xff]  ;;  %v9533_v34 = vld [vmem:[%s11457_s3 + $0xde0] sm:$0xff] }
  0xd7   :  { %12355 = vst [vmem:[#allocation421_spill] sm:$0xff] %v9528_v39  ;;  %12356 = vst [vmem:[#allocation422_spill] sm:$0xff] %v9533_v34  ;;  %v9538_v17 = vld [vmem:[%s11457_s3 + $0xde8] sm:$0xff]  ;;  %v9543_v47 = vld [vmem:[%s11457_s3 + $0xdf0] sm:$0xff] }
  0xd8   :  { %12357 = vst [vmem:[#allocation423_spill] sm:$0xff] %v9538_v17  ;;  %12358 = vst [vmem:[#allocation424_spill] sm:$0xff] %v9543_v47  ;;  %v9548_v32 = vld [vmem:[%s11457_s3 + $0xdf8] sm:$0xff]  ;;  %v9553_v39 = vld [vmem:[%s11457_s3 + $0xe00] sm:$0xff] }
  0xd9   :  { %12359 = vst [vmem:[#allocation425_spill] sm:$0xff] %v9548_v32  ;;  %12360 = vst [vmem:[#allocation426_spill] sm:$0xff] %v9553_v39  ;;  %v9558_v34 = vld [vmem:[%s11457_s3 + $0xe08] sm:$0xff]  ;;  %v9563_v17 = vld [vmem:[%s11457_s3 + $0xe10] sm:$0xff] }
  0xda   :  { %12361 = vst [vmem:[#allocation427_spill] sm:$0xff] %v9558_v34  ;;  %12362 = vst [vmem:[#allocation428_spill] sm:$0xff] %v9563_v17  ;;  %v9568_v47 = vld [vmem:[%s11457_s3 + $0xe18] sm:$0xff]  ;;  %v9573_v32 = vld [vmem:[%s11457_s3 + $0xe20] sm:$0xff] }
  0xdb   :  { %12363 = vst [vmem:[#allocation429_spill] sm:$0xff] %v9568_v47  ;;  %12364 = vst [vmem:[#allocation430_spill] sm:$0xff] %v9573_v32  ;;  %v9578_v39 = vld [vmem:[%s11457_s3 + $0xe28] sm:$0xff]  ;;  %v9583_v34 = vld [vmem:[%s11457_s3 + $0xe30] sm:$0xff] }
  0xdc   :  { %12365 = vst [vmem:[#allocation431_spill] sm:$0xff] %v9578_v39  ;;  %12366 = vst [vmem:[#allocation432_spill] sm:$0xff] %v9583_v34  ;;  %v9588_v17 = vld [vmem:[%s11457_s3 + $0xe38] sm:$0xff]  ;;  %v9593_v47 = vld [vmem:[%s11457_s3 + $0xe40] sm:$0xff] }
  0xdd   :  { %12367 = vst [vmem:[#allocation433_spill] sm:$0xff] %v9588_v17  ;;  %12368 = vst [vmem:[#allocation434_spill] sm:$0xff] %v9593_v47  ;;  %v9598_v32 = vld [vmem:[%s11457_s3 + $0xe48] sm:$0xff]  ;;  %v9603_v39 = vld [vmem:[%s11457_s3 + $0xe50] sm:$0xff] }
  0xde   :  { %12369 = vst [vmem:[#allocation435_spill] sm:$0xff] %v9598_v32  ;;  %12370 = vst [vmem:[#allocation436_spill] sm:$0xff] %v9603_v39  ;;  %v9608_v34 = vld [vmem:[%s11457_s3 + $0xe58] sm:$0xff]  ;;  %v9613_v17 = vld [vmem:[%s11457_s3 + $0xe60] sm:$0xff] }
  0xdf   :  { %12371 = vst [vmem:[#allocation437_spill] sm:$0xff] %v9608_v34  ;;  %12372 = vst [vmem:[#allocation438_spill] sm:$0xff] %v9613_v17  ;;  %v9618_v47 = vld [vmem:[%s11457_s3 + $0xe68] sm:$0xff]  ;;  %v9623_v32 = vld [vmem:[%s11457_s3 + $0xe70] sm:$0xff] }
  0xe0   :  { %12373 = vst [vmem:[#allocation439_spill] sm:$0xff] %v9618_v47  ;;  %12374 = vst [vmem:[#allocation440_spill] sm:$0xff] %v9623_v32  ;;  %v9628_v39 = vld [vmem:[%s11457_s3 + $0xe78] sm:$0xff]  ;;  %v9633_v34 = vld [vmem:[%s11457_s3 + $0xe80] sm:$0xff] }
  0xe1   :  { %12375 = vst [vmem:[#allocation441_spill] sm:$0xff] %v9628_v39  ;;  %12376 = vst [vmem:[#allocation442_spill] sm:$0xff] %v9633_v34  ;;  %v9638_v17 = vld [vmem:[%s11457_s3 + $0xe88] sm:$0xff]  ;;  %v9643_v47 = vld [vmem:[%s11457_s3 + $0xe90] sm:$0xff] }
  0xe2   :  { %12377 = vst [vmem:[#allocation443_spill] sm:$0xff] %v9638_v17  ;;  %12378 = vst [vmem:[#allocation444_spill] sm:$0xff] %v9643_v47  ;;  %v9648_v32 = vld [vmem:[%s11457_s3 + $0xe98] sm:$0xff]  ;;  %v9653_v39 = vld [vmem:[%s11457_s3 + $0xea0] sm:$0xff] }
  0xe3   :  { %12379 = vst [vmem:[#allocation445_spill] sm:$0xff] %v9648_v32  ;;  %12380 = vst [vmem:[#allocation446_spill] sm:$0xff] %v9653_v39  ;;  %v9658_v34 = vld [vmem:[%s11457_s3 + $0xea8] sm:$0xff]  ;;  %v9663_v17 = vld [vmem:[%s11457_s3 + $0xeb0] sm:$0xff] }
  0xe4   :  { %12381 = vst [vmem:[#allocation447_spill] sm:$0xff] %v9658_v34  ;;  %12382 = vst [vmem:[#allocation448_spill] sm:$0xff] %v9663_v17  ;;  %v9668_v47 = vld [vmem:[%s11457_s3 + $0xeb8] sm:$0xff]  ;;  %v9673_v32 = vld [vmem:[%s11457_s3 + $0xec0] sm:$0xff] }
  0xe5   :  { %12383 = vst [vmem:[#allocation449_spill] sm:$0xff] %v9668_v47  ;;  %12384 = vst [vmem:[#allocation450_spill] sm:$0xff] %v9673_v32  ;;  %v9678_v39 = vld [vmem:[%s11457_s3 + $0xec8] sm:$0xff]  ;;  %v9683_v34 = vld [vmem:[%s11457_s3 + $0xed0] sm:$0xff] }
  0xe6   :  { %12385 = vst [vmem:[#allocation451_spill] sm:$0xff] %v9678_v39  ;;  %12386 = vst [vmem:[#allocation452_spill] sm:$0xff] %v9683_v34  ;;  %v9688_v17 = vld [vmem:[%s11457_s3 + $0xed8] sm:$0xff]  ;;  %v9693_v47 = vld [vmem:[%s11457_s3 + $0xee0] sm:$0xff] }
  0xe7   :  { %12387 = vst [vmem:[#allocation453_spill] sm:$0xff] %v9688_v17  ;;  %12388 = vst [vmem:[#allocation454_spill] sm:$0xff] %v9693_v47  ;;  %v9698_v32 = vld [vmem:[%s11457_s3 + $0xee8] sm:$0xff]  ;;  %v9703_v39 = vld [vmem:[%s11457_s3 + $0xef0] sm:$0xff] }
  0xe8   :  { %12389 = vst [vmem:[#allocation455_spill] sm:$0xff] %v9698_v32  ;;  %12390 = vst [vmem:[#allocation456_spill] sm:$0xff] %v9703_v39  ;;  %v9708_v34 = vld [vmem:[%s11457_s3 + $0xef8] sm:$0xff]  ;;  %v9713_v17 = vld [vmem:[%s11457_s3 + $0xf00] sm:$0xff] }
  0xe9   :  { %12391 = vst [vmem:[#allocation457_spill] sm:$0xff] %v9708_v34  ;;  %12392 = vst [vmem:[#allocation458_spill] sm:$0xff] %v9713_v17  ;;  %v9718_v47 = vld [vmem:[%s11457_s3 + $0xf08] sm:$0xff]  ;;  %v9723_v32 = vld [vmem:[%s11457_s3 + $0xf10] sm:$0xff] }
  0xea   :  { %12393 = vst [vmem:[#allocation459_spill] sm:$0xff] %v9718_v47  ;;  %12394 = vst [vmem:[#allocation460_spill] sm:$0xff] %v9723_v32  ;;  %v9728_v39 = vld [vmem:[%s11457_s3 + $0xf18] sm:$0xff]  ;;  %v9733_v34 = vld [vmem:[%s11457_s3 + $0xf20] sm:$0xff] }
  0xeb   :  { %12395 = vst [vmem:[#allocation461_spill] sm:$0xff] %v9728_v39  ;;  %12396 = vst [vmem:[#allocation462_spill] sm:$0xff] %v9733_v34  ;;  %v9738_v17 = vld [vmem:[%s11457_s3 + $0xf28] sm:$0xff]  ;;  %v9743_v47 = vld [vmem:[%s11457_s3 + $0xf30] sm:$0xff] }
  0xec   :  { %12397 = vst [vmem:[#allocation463_spill] sm:$0xff] %v9738_v17  ;;  %12398 = vst [vmem:[#allocation464_spill] sm:$0xff] %v9743_v47  ;;  %v9748_v32 = vld [vmem:[%s11457_s3 + $0xf38] sm:$0xff]  ;;  %v9753_v39 = vld [vmem:[%s11457_s3 + $0xf40] sm:$0xff] }
  0xed   :  { %12399 = vst [vmem:[#allocation465_spill] sm:$0xff] %v9748_v32  ;;  %12400 = vst [vmem:[#allocation466_spill] sm:$0xff] %v9753_v39  ;;  %v9758_v34 = vld [vmem:[%s11457_s3 + $0xf48] sm:$0xff]  ;;  %v9763_v17 = vld [vmem:[%s11457_s3 + $0xf50] sm:$0xff] }
  0xee   :  { %12401 = vst [vmem:[#allocation467_spill] sm:$0xff] %v9758_v34  ;;  %12402 = vst [vmem:[#allocation468_spill] sm:$0xff] %v9763_v17  ;;  %v9768_v47 = vld [vmem:[%s11457_s3 + $0xf58] sm:$0xff]  ;;  %v9773_v32 = vld [vmem:[%s11457_s3 + $0xf60] sm:$0xff] }
  0xef   :  { %12403 = vst [vmem:[#allocation469_spill] sm:$0xff] %v9768_v47  ;;  %12404 = vst [vmem:[#allocation470_spill] sm:$0xff] %v9773_v32  ;;  %v9778_v39 = vld [vmem:[%s11457_s3 + $0xf68] sm:$0xff]  ;;  %v9783_v34 = vld [vmem:[%s11457_s3 + $0xf70] sm:$0xff] }
  0xf0   :  { %12405 = vst [vmem:[#allocation471_spill] sm:$0xff] %v9778_v39  ;;  %12406 = vst [vmem:[#allocation472_spill] sm:$0xff] %v9783_v34  ;;  %v9788_v17 = vld [vmem:[%s11457_s3 + $0xf78] sm:$0xff]  ;;  %v9793_v47 = vld [vmem:[%s11457_s3 + $0xf80] sm:$0xff] }
  0xf1   :  { %12407 = vst [vmem:[#allocation473_spill] sm:$0xff] %v9788_v17  ;;  %12408 = vst [vmem:[#allocation474_spill] sm:$0xff] %v9793_v47  ;;  %v9798_v32 = vld [vmem:[%s11457_s3 + $0xf88] sm:$0xff]  ;;  %v9803_v39 = vld [vmem:[%s11457_s3 + $0xf90] sm:$0xff] }
  0xf2   :  { %12409 = vst [vmem:[#allocation475_spill] sm:$0xff] %v9798_v32  ;;  %12410 = vst [vmem:[#allocation476_spill] sm:$0xff] %v9803_v39  ;;  %v9808_v34 = vld [vmem:[%s11457_s3 + $0xf98] sm:$0xff]  ;;  %v9813_v17 = vld [vmem:[%s11457_s3 + $0xfa0] sm:$0xff] }
  0xf3   :  { %12411 = vst [vmem:[#allocation477_spill] sm:$0xff] %v9808_v34  ;;  %12412 = vst [vmem:[#allocation478_spill] sm:$0xff] %v9813_v17  ;;  %v9818_v47 = vld [vmem:[%s11457_s3 + $0xfa8] sm:$0xff]  ;;  %v9823_v32 = vld [vmem:[%s11457_s3 + $0xfb0] sm:$0xff] }
  0xf4   :  { %12413 = vst [vmem:[#allocation479_spill] sm:$0xff] %v9818_v47  ;;  %12414 = vst [vmem:[#allocation480_spill] sm:$0xff] %v9823_v32  ;;  %v9828_v39 = vld [vmem:[%s11457_s3 + $0xfb8] sm:$0xff]  ;;  %v9833_v34 = vld [vmem:[%s11457_s3 + $0xfc0] sm:$0xff] }
  0xf5   :  { %12415 = vst [vmem:[#allocation481_spill] sm:$0xff] %v9828_v39  ;;  %12416 = vst [vmem:[#allocation482_spill] sm:$0xff] %v9833_v34  ;;  %v9838_v17 = vld [vmem:[%s11457_s3 + $0xfc8] sm:$0xff]  ;;  %v9843_v47 = vld [vmem:[%s11457_s3 + $0xfd0] sm:$0xff] }
  0xf6   :  { %12417 = vst [vmem:[#allocation483_spill] sm:$0xff] %v9838_v17  ;;  %12418 = vst [vmem:[#allocation484_spill] sm:$0xff] %v9843_v47  ;;  %v9848_v32 = vld [vmem:[%s11457_s3 + $0xfd8] sm:$0xff]  ;;  %v9853_v39 = vld [vmem:[%s11457_s3 + $0xfe0] sm:$0xff] }
  0xf7   :  { %12419 = vst [vmem:[#allocation485_spill] sm:$0xff] %v9848_v32  ;;  %12420 = vst [vmem:[#allocation486_spill] sm:$0xff] %v9853_v39  ;;  %v9858_v34 = vld [vmem:[%s11457_s3 + $0xfe8] sm:$0xff]  ;;  %v9863_v17 = vld [vmem:[%s11457_s3 + $0xff0] sm:$0xff] }
  0xf8   :  { %12421 = vst [vmem:[#allocation487_spill] sm:$0xff] %v9858_v34  ;;  %12422 = vst [vmem:[#allocation488_spill] sm:$0xff] %v9863_v17  ;;  %v9868_v47 = vld [vmem:[%s11457_s3 + $0xff8] sm:$0xff] }
  0xf9   :  { %12423 = vst [vmem:[#allocation489_spill] sm:$0xff] %v9868_v47 }
  0xfa   :  { %1093 = vsyncadd [#allocation5], 65536  ;;  %v7145_v32 = vld [vmem:[%s11455_s1 + $0x78] sm:$0xff]   ;;  %v7149_v47 = vld [vmem:[%s11455_s1 + $0x70] sm:$0xff]   ;;  %vm1449_vm0 = vcmask 523264   ;;  %vm1938_vm5 = vcmask 1041408  }
  0xfb   :  { %v7146_v39 = vld [vmem:[%s11455_s1 + $0x38] sm:$0xff]   ;;  %7024 = vmatprep.subr.bf16.mxu0 %v7145_v32  ;;  %v7150_v3 = vld [vmem:[%s11455_s1 + $0x30] sm:$0xff]   ;;  %v7183_v36 = vld [vmem:[%s11454_s0 + $0xc] ss:$20 sps:$4 sm:$0xff]  }
  0xfc   :  { %v7147_v34 = vld [vmem:[%s11455_s1 + $0xf8] sm:$0xff]   ;;  %7025 = vmatpush3.bf16.msra.mxu0 %v7146_v39  ;;  %v7151_v32 = vld [vmem:[%s11455_s1 + $0xf0] sm:$0xff]   ;;  %1537 = vmatprep.mubr.bf16.mxu1 %v7183_v36 }
  0xfd   :  { %v7148_v17 = vld [vmem:[%s11455_s1 + $0xb8] sm:$0xff]   ;;  %7052 = vmatprep.subr.bf16.mxu1 %v7147_v34  ;;  %7026 = vmatprep.subr.bf16.mxu0 %v7149_v47  ;;  %v7152_v39 = vld [vmem:[%s11455_s1 + $0xb0] sm:$0xff]   ;;  %v7153_v34 = vld [vmem:[%s11455_s1 + $0x68] sm:$0xff]  }
  0xfe   :  { %7053 = vmatpush3.bf16.msra.mxu1 %v7148_v17  ;;  %v7154_v17 = vld [vmem:[%s11455_s1 + $0x28] sm:$0xff]  }
  0xff   :  { %7054 = vmatprep.subr.bf16.mxu1 %v7151_v32  ;;  %v7155_v47 = vld [vmem:[%s11455_s1 + $0xe8] sm:$0xff]   ;;  %v7157_v32 = vld [vmem:[%s11455_s1 + $0x60] sm:$0xff]  }
 0x100   :  { %7027 = vmatpush3.bf16.msra.mxu0 %v7150_v3  ;;  %v7156_v3 = vld [vmem:[%s11455_s1 + $0xa8] sm:$0xff]  }
 0x101   :  { %7028 = vmatprep.subr.bf16.mxu0 %v7153_v34  ;;  %v7159_v34 = vld [vmem:[%s11455_s1 + $0xe0] sm:$0xff]   ;;  %v7189_v36 = vld [vmem:[%s11454_s0 + $0x34] ss:$20 sps:$4 sm:$0xff]  }
 0x102   :  { %7055 = vmatpush3.bf16.msra.mxu1 %v7152_v39  ;;  %v7158_v39 = vld [vmem:[%s11455_s1 + $0x20] sm:$0xff]  }
 0x103   :  { %7056 = vmatprep.subr.bf16.mxu1 %v7155_v47  ;;  %v7161_v47 = vld [vmem:[%s11455_s1 + $0x58] sm:$0xff]  }
 0x104   :  { %7029 = vmatpush3.bf16.msra.mxu0 %v7154_v17  ;;  %v7160_v17 = vld [vmem:[%s11455_s1 + $0xa0] sm:$0xff]  }
 0x105   :  { %7030 = vmatprep.subr.bf16.mxu0 %v7157_v32  ;;  %v7163_v32 = vld [vmem:[%s11455_s1 + $0xd8] sm:$0xff]  }
 0x106   :  { %7057 = vmatpush3.bf16.msra.mxu1 %v7156_v3  ;;  %v7162_v3 = vld [vmem:[%s11455_s1 + $0x18] sm:$0xff]  }
 0x107   :  { %7058 = vmatprep.subr.bf16.mxu1 %v7159_v34  ;;  %v7165_v34 = vld [vmem:[%s11455_s1 + $0x50] sm:$0xff]  }
 0x108   :  { %7031 = vmatpush3.bf16.msra.mxu0 %v7158_v39  ;;  %v7164_v39 = vld [vmem:[%s11455_s1 + $0x98] sm:$0xff]  }
 0x109   :  { %7032 = vmatprep.subr.bf16.mxu0 %v7161_v47  ;;  %v7167_v47 = vld [vmem:[%s11455_s1 + $0xd0] sm:$0xff]  }
 0x10a   :  { %7059 = vmatpush3.bf16.msra.mxu1 %v7160_v17  ;;  %v7166_v17 = vld [vmem:[%s11455_s1 + $0x10] sm:$0xff]  }
 0x10b   :  { %7060 = vmatprep.subr.bf16.mxu1 %v7163_v32  ;;  %v7169_v32 = vld [vmem:[%s11455_s1 + $0x48] sm:$0xff]  }
 0x10c   :  { %7033 = vmatpush3.bf16.msra.mxu0 %v7162_v3  ;;  %v7168_v3 = vld [vmem:[%s11455_s1 + $0x90] sm:$0xff]  }
 0x10d   :  { %7034 = vmatprep.subr.bf16.mxu0 %v7165_v34  ;;  %v7171_v34 = vld [vmem:[%s11455_s1 + $0xc8] sm:$0xff]  }
 0x10e   :  { %7061 = vmatpush3.bf16.msra.mxu1 %v7164_v39  ;;  %v7170_v39 = vld [vmem:[%s11455_s1 + $0x8] sm:$0xff]  }
 0x10f   :  { %7062 = vmatprep.subr.bf16.mxu1 %v7167_v47  ;;  %v7173_v47 = vld [vmem:[%s11455_s1 + $0x40] sm:$0xff]  }
 0x110   :  { %7035 = vmatpush3.bf16.msra.mxu0 %v7166_v17  ;;  %v7172_v17 = vld [vmem:[%s11455_s1 + $0x88] sm:$0xff]  }
 0x111   :  { %7036 = vmatprep.subr.bf16.mxu0 %v7169_v32  ;;  %v7175_v32 = vld [vmem:[%s11455_s1 + $0xc0] sm:$0xff]  }
 0x112   :  { %7063 = vmatpush3.bf16.msra.mxu1 %v7168_v3  ;;  %v7174_v3 = vld [vmem:[%s11455_s1] sm:$0xff]  }
 0x113   :  { %7064 = vmatprep.subr.bf16.mxu1 %v7171_v34  ;;  %v7178_v34 = vld [vmem:[%s11454_s0 + $0x4] ss:$20 sps:$4 sm:$0xff]  }
 0x114   :  { %7037 = vmatpush3.bf16.msra.mxu0 %v7170_v39  ;;  %v7176_v39 = vld [vmem:[%s11454_s0] ss:$20 sps:$4 sm:$0xff]   ;;  %1488 = vmatprep.mubr.bf16.mxu0 %v7178_v34 }
 0x115   :  { %7038 = vmatprep.subr.bf16.mxu0 %v7173_v47  ;;  %v7180_v47 = vld [vmem:[%s11455_s1 + $0x118] sm:$0xff]   ;;  %v7185_v34 = vld [vmem:[%s11454_s0 + $0x2c] ss:$20 sps:$4 sm:$0xff]  }
 0x116   :  { %7065 = vmatpush3.bf16.msra.mxu1 %v7172_v17  ;;  %v7179_v17 = vld [vmem:[%s11455_s1 + $0x80] sm:$0xff]  }
 0x117   :  { %7066 = vmatprep.subr.bf16.mxu1 %v7175_v32  ;;  %v7184_v32 = vld [vmem:[%s11455_s1 + $0x110] sm:$0xff]  }
 0x118   :  { %7039 = vmatpush3.bf16.msra.mxu0 %v7174_v3  ;;  %v7181_v3 = vld [vmem:[%s11454_s0 + $0x8] ss:$20 sps:$4 sm:$0xff]  }
 0x119   :  { %7130 = vmatprep.subr.bf16.mxu0 %v7180_v47 }
 0x11a   :  { %7067 = vmatpush3.bf16.msra.mxu1 %v7179_v17  ;;  %v7188_v17 = vld [vmem:[%s11455_s1 + $0x108] sm:$0xff]  }
 0x11b   :  { %1489 = vmatmul.mubr.bf16.vlgmr.msra.gmra.mxu0 %v7176_v39  ;;  %v7187_v39 = vld [vmem:[%s11454_s0 + $0x28] ss:$20 sps:$4 sm:$0xff]  }
 0x11c   :  { %7131 = vmatpush3.bf16.msra.mxu0 %v7180_v47  ;;  %1496 = vmatprep.mubr.bf16.mxu0 %v7185_v34  ;;  %v7191_v47 = vld [vmem:[%s11454_s0 + $0x30] ss:$20 sps:$4 sm:$0xff]  }
 0x11d   :  { %1538 = vmatmul.mubr.bf16.vlgmr.msra.gmra.mxu1 %v7181_v3  ;;  %7132 = vmatprep.subr.bf16.mxu0 %v7184_v32  ;;  %v7192_v3 = vld [vmem:[%s11455_s1 + $0x100] sm:$0xff]  }
 0x11e   :  { %1545 = vmatprep.mubr.bf16.mxu1 %v7189_v36  ;;  %v7193_v34 = vld [vmem:[%s11454_s0 + $0x10] ss:$20 sps:$4 sm:$0xff]  }
 0x120   :  { %7133 = vmatpush3.bf16.msra.mxu0 %v7184_v32  ;;  %v7194_v32 = vld [vmem:[%s11454_s0 + $0x38] ss:$20 sps:$4 sm:$0xff]  }
 0x121   :  { %7134 = vmatprep.subr.bf16.mxu0 %v7188_v17 }
 0x123   :  { %1497 = vmatmul.mubr.bf16.gmra.mxu0 %v7187_v39 }
 0x124   :  { %7138 = vmatprep.mubr.msk.bf16.mxu0 %vm1449_vm0, %v7193_v34  ;;  %7135 = vmatpush3.bf16.msra.mxu0 %v7188_v17  ;;  %v6426_v17 = vld [vmem:[%s11456_s2] ss:$0 sm:$0xff] }
 0x125   :  { %1546 = vmatmul.mubr.bf16.gmra.mxu1 %v7191_v47  ;;  %7136 = vmatprep.subr.bf16.mxu0 %v7192_v3 }
 0x128   :  { %7137 = vmatpush3.bf16.msra.mxu0 %v7192_v3 }
 0x12b   :  { %7139 = vmatmul.mubr.msk.bf16.vlgmr.msra.gmra.mxu0 %vm1449_vm0, %v7194_v32 }
 0x1db   :  { %v7040_v38 = vpop.f32.mrf.mxu0 }
 0x1dd   :  { %v7041_v19 = vpop.f32.mrf.mxu0  ;;  %v7068_v7 = vpop.f32.mrf.mxu1 }
 0x1de   :  { %v7042_v44 = vadd.f32 %v7041_v19, %v7040_v38 }
 0x1df   :  { %v7043_v40 = vpop.f32.mrf.mxu0  ;;  %v7069_v36 = vpop.f32.mrf.mxu1 }
 0x1e0   :  { %v1491_v3 = vadd.f32 %v7042_v44, %v6426_v17  ;;  %v7070_v32 = vadd.f32 %v7069_v36, %v7068_v7 }
 0x1e1   :  { %v7044_v42 = vpop.f32.mrf.mxu0  ;;  %v7071_v21 = vpop.f32.mrf.mxu1 }
 0x1e2   :  { %v7045_v48 = vadd.f32 %v7044_v42, %v7043_v40  ;;  %v1540_v15 = vadd.f32 %v7070_v32, %v1491_v3 }
 0x1e3   :  { %v7046_v23 = vpop.f32.mrf.mxu0  ;;  %v7072_v39 = vpop.f32.mrf.mxu1 }
 0x1e4   :  { %v1494_v56 = vadd.f32 %v7045_v48, %v6426_v17  ;;  %v7073_v58 = vadd.f32 %v7072_v39, %v7071_v21 }
 0x1e5   :  { %v7047_v47 = vpop.f32.mrf.mxu0  ;;  %v7074_v46 = vpop.f32.mrf.mxu1 }
 0x1e6   :  { %v7048_v34 = vadd.f32 %v7047_v47, %v7046_v23  ;;  %v1543_v36 = vadd.f32 %v7073_v58, %v1494_v56 }
 0x1e7   :  { %v7049_v55 = vpop.f32.mrf.mxu0  ;;  %v7075_v11 = vpop.f32.mrf.mxu1 }
 0x1e8   :  { %v1499_v50 = vadd.f32 %v7048_v34, %v6426_v17  ;;  %v7076_v25 = vadd.f32 %v7075_v11, %v7074_v46 }
 0x1e9   :  { %v7050_v27 = vpop.f32.mrf.mxu0  ;;  %v7077_v54 = vpop.f32.mrf.mxu1 }
 0x1ea   :  { %v7051_v52 = vadd.f32 %v7050_v27, %v7049_v55  ;;  %v1548_v31 = vadd.f32 %v7076_v25, %v1499_v50 }
 0x1eb   :  { %v7078_v19 = vpop.f32.mrf.mxu1  ;;  %v7140_v38 = vpop.f32.mrf.mxu0 }
 0x1ec   :  { %v1502_v63 = vadd.f32 %v7051_v52, %v6426_v17  ;;  %v7079_v29 = vadd.f32 %v7078_v19, %v7077_v54  ;;  %v1597_v7 = vadd.f32 %v7140_v38, %v1548_v31 }
 0x1ed   :  { %v1588_v23 = vpop.f32.mrf.mxu0 }
 0x1ee   :  { %v1589_v47 = vadd.f32 %v1588_v23, %v1540_v15  ;;  %v1551_v60 = vadd.f32 %v7079_v29, %v1502_v63  ;;  %v1609_v27 = vmul.f32 0.01, %v1597_v7  ;;  %vm1605_vm3 = vcmp.gt.f32.partialorder %v1597_v7, 0.0 }
 0x1ef   :  { %v7141_v44 = vpop.f32.mrf.mxu0 }
 0x1f0   :  { %v1607_v42 = vmul.f32 0.01, %v1589_v47  ;;  %v1600_v11 = vadd.f32 %v7141_v44, %v1551_v60  ;;  %vm1603_vm1 = vcmp.gt.f32.partialorder %v1589_v47, 0.0  ;;  %v1613_v50 = vsel %vm1605_vm3, %v1597_v7, %v1609_v27 }
 0x1f1   :  { %v1591_v40 = vpop.f32.mrf.mxu0 }
 0x1f2   :  { %v1592_v46 = vadd.f32 %v1591_v40, %v1543_v36  ;;  %v1611_v55 = vsel %vm1603_vm1, %v1589_v47, %v1607_v42  ;;  %v1610_v48 = vmul.f32 0.01, %v1600_v11  ;;  %vm1606_vm4 = vcmp.gt.f32.partialorder %v1600_v11, 0.0 }
 0x1f4   :  { %vm1604_vm2 = vcmp.gt.f32.partialorder %v1592_v46, 0.0  ;;  %v1608_v52 = vmul.f32 0.01, %v1592_v46  ;;  %v1614_v29 = vsel %vm1606_vm4, %v1600_v11, %v1610_v48 }
 0x1f6   :  { %v1612_v21 = vsel %vm1604_vm2, %v1592_v46, %v1608_v52 }
 0x1f7   :  { %v1617_v25 = vadd.f32 %v1612_v21, %v1611_v55 }
 0x1f9   :  { %v1618_v15 = vadd.f32 %v1617_v25, %v1613_v50 }
 0x1fb   :  { %v1619_v54 = vadd.f32 %v1618_v15, %v1614_v29 }
 0x1fd   :  { %v1620_v31 = vrot.slane %v1619_v54, 4 }
 0x1ff   :  { %v1621_v56 = vadd.f32 %v1620_v31, %v1619_v54  ;;  %v1648_v54 = vlaneseq }
 0x201   :  { %v1622_v58 = vrot.slane %v1621_v56, 2  ;;  %v10011_v31 = vshrl.u32 %v1648_v54, 7 }
 0x203   :  { %v1623_v63 = vadd.f32 %v1622_v58, %v1621_v56  ;;  %12424 = vst [vmem:[#allocation490_spill] sm:$0xff] %v10011_v31  ;;  %v1615_v56 = vld [vmem:[%s11456_s2 + $0x1] sm:$0x1]  ;;  %v10017_v58 = vsub.s32 0, %v10011_v31 }
 0x205   :  { %v1624_v60 = vrot.slane %v1623_v63, 1 }
 0x207   :  { %v1625_v39 = vadd.f32 %v1624_v60, %v1623_v63 }
 0x209   :  { %v1626_v17 = vmul.f32 0.03125, %v1625_v39  ;;  %v1616_v39 = vld [vmem:[%s11456_s2 + $0x2] sm:$0x1] }
 0x20b   :  { %v1627_v34 = vsub.f32 %v1611_v55, %v1626_v17  ;;  %v1628_v3 = vsub.f32 %v1612_v21, %v1626_v17  ;;  %v1629_v32 = vsub.f32 %v1613_v50, %v1626_v17  ;;  %v1630_v19 = vsub.f32 %v1614_v29, %v1626_v17 }
 0x20d   :  { %v1631_v38 = vmul.f32 %v1627_v34, %v1627_v34  ;;  %v1632_v23 = vmul.f32 %v1628_v3, %v1628_v3  ;;  %v1633_v47 = vmul.f32 %v1629_v32, %v1629_v32  ;;  %v1634_v36 = vmul.f32 %v1630_v19, %v1630_v19 }
 0x20e   :  { %v7262_v19 = vmov 1983009808  }
 0x20f   :  { %v1635_v44 = vadd.f32 %v1632_v23, %v1631_v38  ;;  %v1777_v38 = vunpack.c.l.s4 %v7262_v19 }
 0x211   :  { %v1636_v7 = vadd.f32 %v1635_v44, %v1633_v47  ;;  %v10024_v47 = vsub.s32 1, %v10011_v31  ;;  %v10027_v44 = vsub.s32 2, %v10011_v31 }
 0x213   :  { %v1637_v40 = vadd.f32 %v1636_v7, %v1634_v36  ;;  %v10030_v36 = vsub.s32 3, %v10011_v31 }
 0x215   :  { %v1638_v42 = vrot.slane %v1637_v40, 4  ;;  %12425 = vst [vmem:[#allocation491_spill] sm:$0xff] %v10030_v36 }
 0x217   :  { %v1639_v11 = vadd.f32 %v1638_v42, %v1637_v40 }
 0x219   :  { %v1640_v46 = vrot.slane %v1639_v11, 2 }
 0x21b   :  { %v1641_v27 = vadd.f32 %v1640_v46, %v1639_v11  ;;  %v1732_v46 = vsub.s32 5, %v10011_v31 }
 0x21d   :  { %v1642_v52 = vrot.slane %v1641_v27, 1 }
 0x21f   :  { %v1643_v48 = vadd.f32 %v1642_v52, %v1641_v27  ;;  %v1736_v27 = vsub.s32 6, %v10011_v31  ;;  %v1740_v52 = vsub.s32 7, %v10011_v31 }
 0x221   :  { %v1644_v25 = vmul.f32 0.03125, %v1643_v48 }
 0x223   :  { %v1645_v15 = vadd.f32 1e-05, %v1644_v25 }
 0x225   :  { %7195 = vrsqrt.f32 %v1645_v15 }
 0x232   :  { %v7196_v63 = vpop.eup %7195 }
 0x233   :  { %v1647_v60 = vmul.f32 %v7196_v63, %v1615_v56 }
 0x235   :  { %v1651_v34 = vrot.slane %v1647_v60, %v10017_v58  ;;  %v1656_v3 = vmul.f32 %v1647_v60, %v1626_v17  ;;  %v1706_v17 = vld [vmem:[%s11460_s6] sm:$0xff] }
 0x236   :  { %v1717_v54 = vrot.slane %v1706_v17, %v10024_v47  ;;  %v1721_v56 = vrot.slane %v1706_v17, %v10027_v44  ;;  %v1725_v63 = vrot.slane %v1706_v17, %v10030_v36 }
 0x237   :  { %v1657_v32 = vsub.f32 %v1616_v39, %v1656_v3  ;;  %v1652_v23 = vmul.f32 %v1651_v34, %v1611_v55  ;;  %v1653_v7 = vmul.f32 %v1651_v34, %v1612_v21  ;;  %v1654_v40 = vmul.f32 %v1651_v34, %v1613_v50 }
 0x238   :  { %v1655_v42 = vmul.f32 %v1651_v34, %v1614_v29  ;;  %v1728_v55 = vsub.s32 4, %v10011_v31  ;;  %v1713_v50 = vrot.slane %v1706_v17, %v10017_v58  ;;  %v1778_v29 = vunpack.c.0.s8 %v1777_v38 }
 0x239   :  { %v1661_v11 = vrot.slane %v1657_v32, %v10017_v58  ;;  %v1733_v39 = vrot.slane %v1706_v17, %v1732_v46  ;;  %v1737_v34 = vrot.slane %v1706_v17, %v1736_v27  ;;  %v1741_v3 = vrot.slane %v1706_v17, %v1740_v52 }
 0x23a   :  { %v1729_v60 = vrot.slane %v1706_v17, %v1728_v55  ;;  %v10045_v32 = vsub.s32 %v1778_v29, %v10011_v31  ;;  %v1774_v19 = vcombine.low %v1713_v50, %v1717_v54 }
 0x23b   :  { %v1662_v48 = vadd.f32 %v1661_v11, %v1652_v23  ;;  %v1663_v25 = vadd.f32 %v1661_v11, %v1653_v7  ;;  %v1664_v15 = vadd.f32 %v1661_v11, %v1654_v40  ;;  %v1665_v21 = vadd.f32 %v1661_v11, %v1655_v42  ;;  %v1707_v7 = vld [vmem:[%s11460_s6 + $0x8] sm:$0xff] }
 0x23c   :  { %v1775_v23 = vcombine.low %v1721_v56, %v1725_v63  ;;  %v1791_v38 = vcombine.low %v1729_v60, %v1733_v39  ;;  %v1792_v40 = vcombine.low %v1737_v34, %v1741_v3  ;;  %v1745_v17 = vrot.slane %v1707_v7, %v10017_v58 }
 0x23d   :  { %1666 = vst [vmem:[#allocation3] sm:$0xff] %v1662_v48  ;;  %1667 = vst [vmem:[#allocation3 + $0x8] sm:$0xff] %v1663_v25  ;;  %v1753_v29 = vrot.slane %v1707_v7, %v10027_v44  ;;  %v1757_v54 = vrot.slane %v1707_v7, %v10030_v36  ;;  %v1773_v31 = vrot.slane %v1707_v7, %v1740_v52 }
 0x23e   :  { %1668 = vst [vmem:[#allocation3 + $0x10] sm:$0xff] %v1664_v15  ;;  %1669 = vst [vmem:[#allocation3 + $0x18] sm:$0xff] %v1665_v21  ;;  %v1749_v15 = vrot.slane %v1707_v7, %v10024_v47  ;;  %v1782_v21 = vrot.slane %v1774_v19, %v10045_v32  ;;  %v1789_v50 = vrot.slane %v1775_v23, %v10045_v32 }
 0x23f   :  { %v1799_v56 = vrot.slane %v1791_v38, %v10045_v32  ;;  %v1806_v63 = vrot.slane %v1792_v40, %v10045_v32  ;;  %v1809_v3 = vcombine.low %v1753_v29, %v1757_v54  ;;  %v1761_v19 = vrot.slane %v1707_v7, %v1728_v55 }
 0x240   :  { %v1790_v60 = vcombine.low %v1782_v21, %v1789_v50  ;;  %v1808_v34 = vcombine.low %v1745_v17, %v1749_v15  ;;  %v1769_v23 = vrot.slane %v1707_v7, %v1736_v27 }
 0x241   :  { %v1807_v39 = vcombine.low %v1799_v56, %v1806_v63  ;;  %v1823_v38 = vrot.slane %v1809_v3, %v10045_v32 }
 0x242   :  { %v1816_v36 = vrot.slane %v1808_v34, %v10045_v32 }
 0x244   :  { %v1670_v42 = vld [vmem:[#allocation3] sm:$0xff]   ;;  %v1678_v11 = vld [vmem:[#allocation3 + $0x8] sm:$0xff]   ;;  %v1824_v29 = vcombine.low %v1816_v36, %v1823_v38 }
 0x245   :  { %v1686_v48 = vld [vmem:[#allocation3 + $0x10] sm:$0xff]   ;;  %1671 = vst [vmem:[#allocation4] sm:$0xff] %v1670_v42   ;;  %1679 = vst [vmem:[#allocation4 + $0x8] sm:$0xff] %v1678_v11   ;;  %v1694_v25 = vld [vmem:[#allocation3 + $0x18] sm:$0xff]  }
 0x246   :  { %1687 = vst [vmem:[#allocation4 + $0x10] sm:$0xff] %v1686_v48   ;;  %1695 = vst [vmem:[#allocation4 + $0x18] sm:$0xff] %v1694_v25   ;;  %v1765_v48 = vrot.slane %v1707_v7, %v1732_v46  ;;  %v1826_v46 = vcombine.low %v1769_v23, %v1773_v31 }
 0x248   :  { %v1825_v55 = vcombine.low %v1761_v19, %v1765_v48  ;;  %v1840_v3 = vrot.slane %v1826_v46, %v10045_v32 }
 0x24a   :  { %v1833_v34 = vrot.slane %v1825_v55, %v10045_v32 }
 0x24c   :  { %v10058_v42 = vld [vmem:[#allocation4] sm:$0xff]  ;;  %v10060_v11 = vld [vmem:[#allocation4 + $0x8] sm:$0xff] }
 0x24d   :  { %v1846_v25 = vmul.f32 %v1790_v60, %v10058_v42  ;;  %v1847_v40 = vmul.f32 %v1807_v39, %v10060_v11  ;;  %v10071_v63 = vld [vmem:[#allocation4 + $0x10] sm:$0xff]  ;;  %v10082_v46 = vld [vmem:[#allocation4 + $0x18] sm:$0xff] }
 0x24e   :  { %v1848_v31 = vmul.f32 %v1824_v29, %v10071_v63 }
 0x24f   :  { %v1854_v21 = vcombine.high %v1846_v25, %v1846_v25  ;;  %v1861_v17 = vrot.slane %v1846_v25, %v10045_v32  ;;  %v1871_v27 = vcombine.high %v1847_v40, %v1847_v40  ;;  %v1878_v52 = vrot.slane %v1847_v40, %v10045_v32 }
 0x250   :  { %v1841_v40 = vcombine.low %v1833_v34, %v1840_v3 }
 0x251   :  { %v1868_v15 = vrot.slane %v1854_v21, %v10045_v32  ;;  %v1869_v50 = vcombine.high %v1861_v17, %v1861_v17  ;;  %v1939_v7 = vsel %vm1938_vm5, %v1861_v17, 0.0  ;;  %v1885_v19 = vrot.slane %v1871_v27, %v10045_v32 }
 0x252   :  { %v1886_v48 = vcombine.high %v1878_v52, %v1878_v52  ;;  %v1946_v38 = vsel %vm1938_vm5, %v1878_v52, 0.0 }
 0x253   :  { %v1870_v54 = vcombine.high %v1868_v15, %v1868_v15  ;;  %v1940_v56 = vsel %vm1938_vm5, %v1869_v50, 0.0  ;;  %v1942_v39 = vsel %vm1938_vm5, %v1868_v15, 0.0  ;;  %v1887_v17 = vcombine.high %v1885_v19, %v1885_v19 }
 0x254   :  { %v1941_v60 = vadd.f32 %v1940_v56, %v1939_v7  ;;  %v1888_v50 = vcombine.high %v1848_v31, %v1848_v31  ;;  %v1895_v15 = vrot.slane %v1848_v31, %v10045_v32  ;;  %v1948_v55 = vsel %vm1938_vm5, %v1886_v48, 0.0 }
 0x255   :  { %v1944_v23 = vsel %vm1938_vm5, %v1870_v54, 0.0  ;;  %v1950_v29 = vsel %vm1938_vm5, %v1885_v19, 0.0  ;;  %v1849_v56 = vmul.f32 %v1841_v40, %v10082_v46  ;;  %v1952_v52 = vsel %vm1938_vm5, %v1887_v17, 0.0 }
 0x256   :  { %v1943_v36 = vadd.f32 %v1942_v39, %v1941_v60  ;;  %v1902_v54 = vrot.slane %v1888_v50, %v10045_v32  ;;  %v1903_v60 = vcombine.high %v1895_v15, %v1895_v15  ;;  %v1954_v34 = vsel %vm1938_vm5, %v1895_v15, 0.0 }
 0x257   :  { %v1905_v31 = vcombine.high %v1849_v56, %v1849_v56  ;;  %v1912_v48 = vrot.slane %v1849_v56, %v10045_v32 }
 0x258   :  { %v1945_v25 = vadd.f32 %v1944_v23, %v1943_v36  ;;  %v1904_v36 = vcombine.high %v1902_v54, %v1902_v54  ;;  %v1956_v23 = vsel %vm1938_vm5, %v1903_v60, 0.0  ;;  %v1958_v19 = vsel %vm1938_vm5, %v1902_v54, 0.0 }
 0x259   :  { %v1919_v40 = vrot.slane %v1905_v31, %v10045_v32  ;;  %v6567_v31 = vcombine.low %v7773_v59, %v7783_v13 }
 0x25a   :  { %v1947_v21 = vadd.f32 %v1946_v38, %v1945_v25  ;;  %v1960_v50 = vsel %vm1938_vm5, %v1904_v36, 0.0  ;;  %v6503_v36 = vcombine.low %v7453_v28, %v7463_v30 }
 0x25b   :  { %v1966_v56 = vsel %vm1938_vm5, %v1919_v40, 0.0 }
 0x25c   :  { %v1949_v7 = vadd.f32 %v1948_v55, %v1947_v21  ;;  %v1920_v21 = vcombine.high %v1912_v48, %v1912_v48  ;;  %v1962_v55 = vsel %vm1938_vm5, %v1912_v48, 0.0 }
 0x25e   :  { %v1951_v27 = vadd.f32 %v1950_v29, %v1949_v7  ;;  %v1921_v7 = vcombine.high %v1919_v40, %v1919_v40  ;;  %v1964_v29 = vsel %vm1938_vm5, %v1920_v21, 0.0 }
 0x260   :  { %v1953_v39 = vadd.f32 %v1952_v52, %v1951_v27  ;;  %v1968_v52 = vsel %vm1938_vm5, %v1921_v7, 0.0 }
 0x262   :  { %v1955_v3 = vadd.f32 %v1954_v34, %v1953_v39  ;;  %v6504_v34 = vcombine.high %v7453_v28, %v7463_v30 }
 0x264   :  { %v1957_v25 = vadd.f32 %v1956_v23, %v1955_v3  ;;  %v6568_v3 = vcombine.high %v7773_v59, %v7783_v13 }
 0x266   :  { %v1959_v38 = vadd.f32 %v1958_v19, %v1957_v25 }
 0x268   :  { %v1961_v17 = vadd.f32 %v1960_v50, %v1959_v38 }
 0x26a   :  { %v1963_v15 = vadd.f32 %v1962_v55, %v1961_v17 }
 0x26c   :  { %v1965_v27 = vadd.f32 %v1964_v29, %v1963_v15 }
 0x26e   :  { %v1967_v60 = vadd.f32 %v1966_v56, %v1965_v27 }
 0x270   :  { %v1969_v54 = vadd.f32 %v1968_v52, %v1967_v60 }
 0x272   :  { %1970 = vadd.xlane.f32.xlu0 %v1969_v54 }
 0x2fb   :  { %v10098_v39 = vpop.xlane.xlu0 %1970 }
 0x2fc   :  { %7258 = dma.done.wait [#allocation5], 65536 }
 0x2fd   :  { %7259 = vsyncadd [#allocation5], 4294901760  ;;  %v6500_v48 = vcombine.high %v7433_v24, %v7443_v26  ;;  %v6564_v23 = vcombine.high %v7753_v51, %v7763_v9  ;;  %5174 = vmatprep.subr.bf16.mxu1 %v6504_v34  ;;  %5215 = vmatprep.subr.bf16.mxu0 %v6568_v3  ;;  %v6499_v25 = vcombine.low %v7433_v24, %v7443_v26  ;;  %v12427_v17 = vld [vmem:[#allocation104_spill] sm:$0xff]  ;;  %v12428_v55 = vld [vmem:[#allocation102_spill] sm:$0xff]  ;;  %s7264_s18 = smov [#allocation6]  }
 0x2fe   :  { %5175 = vmatpush1.bf16.msra.mxu1 %v6503_v36  ;;  %5216 = vmatpush1.bf16.msra.mxu0 %v6567_v31  ;;  %v6563_v28 = vcombine.low %v7753_v51, %v7763_v9  ;;  %v6496_v13 = vcombine.high %v7413_v20, %v7423_v22  ;;  %v6560_v30 = vcombine.high %v7733_v43, %v7743_v5  ;;  %v12432_v27 = vld [vmem:[#allocation98_spill] sm:$0xff]  ;;  %v12434_v54 = vld [vmem:[#allocation47_spill] sm:$0xff]  ;;  %v12435_v3 = vld [vmem:[#allocation96_spill] sm:$0xff]  ;;  %s6404_s19 = sshll.u32 %s7264_s18, 4  ;;  %s6405_s19 = int_to_ptr.vmem [resolvable:$true] %s6404_s19 }
 0x2ff   :  { %5176 = vmatprep.subr.bf16.mxu1 %v6500_v48  ;;  %5217 = vmatprep.subr.bf16.mxu0 %v6564_v23  ;;  %v6495_v59 = vcombine.low %v7413_v20, %v7423_v22  ;;  %v6559_v19 = vcombine.low %v7733_v43, %v7743_v5  ;;  %v6492_v9 = vcombine.high %v7393_v16, %v7403_v18  ;;  %v12436_v36 = vld [vmem:[#allocation94_spill] sm:$0xff]  ;;  %s7238_s20 = scalar_lea.vmem %s6405_s19, 32  ;;  %p7243_p1 = scmp.lt.s32.totalorder %s6405_s19, %s6405_s19 }
 0x300   :  { %v6556_v24 = vcombine.high %v7713_v35, %v7723_v1  ;;  %v6491_v26 = vcombine.low %v7393_v16, %v7403_v18  ;;  %v6555_v51 = vcombine.low %v7713_v35, %v7723_v1  ;;  %v6488_v5 = vcombine.high %v7373_v12, %v7383_v14  ;;  %p7239_p0 = scmp.ne.s32.totalorder %s6405_s19, %s7238_s20  ;;  %p7244_p2 = scmp.lt.s32.totalorder %s7238_s20, %s7238_s20 }
 0x301   :  { %v6552_v20 = vcombine.high %v7693_v57, %v7703_v61  ;;  %v6487_v22 = vcombine.low %v7373_v12, %v7383_v14  ;;  %v6551_v43 = vcombine.low %v7693_v57, %v7703_v61  ;;  %v6484_v1 = vcombine.high %v7353_v8, %v7363_v10 }
 0x302   :  { %5177 = vmatpush1.bf16.msra.mxu1 %v6499_v25  ;;  %5218 = vmatpush1.bf16.msra.mxu0 %v6563_v28  ;;  %v6548_v16 = vcombine.high %v7673_v49, %v7683_v53  ;;  %v10146_v18 = vrot.slane %v10058_v42, %v10045_v32  ;;  %v1980_v35 = vcombine.high %v10058_v42, %v10058_v42  ;;  %v12437_v25 = vld [vmem:[#allocation45_spill] sm:$0xff]  ;;  %v12438_v28 = vld [vmem:[#allocation43_spill] sm:$0xff]  ;;  %p7245_p3 = por %p7244_p2, %p7243_p1 }
 0x303   :  { %5178 = vmatprep.subr.bf16.mxu1 %v6496_v13  ;;  %5219 = vmatprep.subr.bf16.mxu0 %v6560_v30  ;;  %v6483_v12 = vcombine.low %v7353_v8, %v7363_v10  ;;  %v6547_v14 = vcombine.low %v7673_v49, %v7683_v53  ;;  %v6480_v57 = vcombine.high %v7333_v4, %v7343_v6  ;;  %v12439_v30 = vld [vmem:[#allocation92_spill] sm:$0xff] }
 0x304   :  { %v6544_v61 = vcombine.high %v7653_v41, %v7663_v45  ;;  %v1995_v38 = vcombine.high %v10146_v18, %v10146_v18  ;;  %v10161_v42 = vrot.slane %v1980_v35, %v10045_v32  ;;  %v6479_v10 = vcombine.low %v7333_v4, %v7343_v6  ;;  %v12445_v35 = vld [vmem:[#allocation37_spill] sm:$0xff]  ;;  %p7246_p4 = pnand %p7245_p3, %p7239_p0 }
 0x305   :  { %v6543_v49 = vcombine.low %v7653_v41, %v7663_v45  ;;  %v6476_v53 = vcombine.high %v7313_v0, %v7323_v2  ;;  %v6540_v21 = vcombine.high %v7633_v33, %v7643_v37  ;;  %v6475_v4 = vcombine.low %v7313_v0, %v7323_v2  ;;  %v12426_v41 = vld [vmem:[#allocation55_spill] sm:$0xff]  ;;  %v12429_v0 = vld [vmem:[#allocation53_spill] sm:$0xff] }
 0x306   :  { %5179 = vmatpush1.bf16.msra.mxu1 %v6495_v59  ;;  %5220 = vmatpush1.bf16.msra.mxu0 %v6559_v19  ;;  %v10163_v40 = vpack.c.bf16 %v1995_v38, %v1995_v38  ;;  %v1996_v8 = vcombine.high %v10161_v42, %v10161_v42  ;;  %v6539_v6 = vcombine.low %v7633_v33, %v7643_v37  ;;  %v12430_v2 = vld [vmem:[#allocation51_spill] sm:$0xff]  ;;  %v12431_v37 = vld [vmem:[#allocation100_spill] sm:$0xff]  ;;  %v12440_v59 = vld [vmem:[#allocation90_spill] sm:$0xff] }
 0x307   :  { %5180 = vmatprep.subr.bf16.mxu1 %v6492_v9  ;;  %5221 = vmatprep.subr.bf16.mxu0 %v6556_v24  ;;  %v6536_v45 = vcombine.high %v12426_v41, %v7623_v62  ;;  %v6600_v15 = vcombine.high %v12428_v55, %v12427_v17  ;;  %v6535_v7 = vcombine.low %v12426_v41, %v7623_v62  ;;  %v12433_v62 = vld [vmem:[#allocation49_spill] sm:$0xff] }
 0x308   :  { %v10175_v50 = vpack.c.bf16 %v1996_v8, %v1996_v8  ;;  %5206 = vmatprep.mubr.bf16.mxu1 %v10163_v40  ;;  %v6599_v29 = vcombine.low %v12428_v55, %v12427_v17  ;;  %v6532_v33 = vcombine.high %v12430_v2, %v12429_v0  ;;  %v6596_v56 = vcombine.high %v12432_v27, %v12431_v37 }
 0x309   :  { %v6531_v60 = vcombine.low %v12430_v2, %v12429_v0  ;;  %v6595_v52 = vcombine.low %v12432_v27, %v12431_v37  ;;  %v6528_v34 = vcombine.high %v12434_v54, %v12433_v62  ;;  %v6592_v31 = vcombine.high %v12436_v36, %v12435_v3  ;;  %v12455_v0 = vld [vmem:[#allocation76_spill] sm:$0xff]  ;;  %v12456_v2 = vld [vmem:[#allocation74_spill] sm:$0xff] }
 0x30a   :  { %5181 = vmatpush1.bf16.msra.mxu1 %v6491_v26  ;;  %5222 = vmatpush1.bf16.msra.mxu0 %v6555_v51  ;;  %v6527_v48 = vcombine.low %v12434_v54, %v12433_v62  ;;  %v6591_v23 = vcombine.low %v12436_v36, %v12435_v3  ;;  %v6524_v13 = vcombine.high %v12438_v28, %v12437_v25  ;;  %v12441_v26 = vld [vmem:[#allocation41_spill] sm:$0xff]  ;;  %v12442_v51 = vld [vmem:[#allocation39_spill] sm:$0xff]  ;;  %v12458_v62 = vld [vmem:[#allocation134_spill] sm:$0xff] }
 0x30b   :  { %5182 = vmatprep.subr.bf16.mxu1 %v6488_v5  ;;  %5223 = vmatprep.subr.bf16.mxu0 %v6552_v20  ;;  %v6588_v19 = vcombine.high %v12440_v59, %v12439_v30  ;;  %v6523_v9 = vcombine.low %v12438_v28, %v12437_v25  ;;  %v6587_v24 = vcombine.low %v12440_v59, %v12439_v30  ;;  %v12443_v20 = vld [vmem:[#allocation88_spill] sm:$0xff]  ;;  %v12460_v3 = vld [vmem:[#allocation198_spill] sm:$0xff] }
 0x30c   :  { %5247 = vmatprep.mubr.bf16.mxu0 %v10175_v50  ;;  %v6520_v5 = vcombine.high %v12442_v51, %v12441_v26  ;;  %v10247_v37 = vrot.slane %v10060_v11, %v10045_v32  ;;  %v12462_v30 = vld [vmem:[#allocation130_spill] sm:$0xff] }
 0x30e   :  { %5183 = vmatpush1.bf16.msra.mxu1 %v6487_v22  ;;  %5224 = vmatpush1.bf16.msra.mxu0 %v6551_v43  ;;  %v12444_v22 = vld [vmem:[#allocation86_spill] sm:$0xff]  ;;  %v2012_v36 = vcombine.high %v10247_v37, %v10247_v37 }
 0x30f   :  { %5184 = vmatprep.subr.bf16.mxu1 %v6484_v1  ;;  %5225 = vmatprep.subr.bf16.mxu0 %v6548_v16  ;;  %v6584_v43 = vcombine.high %v12444_v22, %v12443_v20  ;;  %v6519_v1 = vcombine.low %v12442_v51, %v12441_v26  ;;  %v6583_v16 = vcombine.low %v12444_v22, %v12443_v20  ;;  %v12466_v20 = vld [vmem:[#allocation126_spill] sm:$0xff] }
 0x312   :  { %5185 = vmatpush1.bf16.msra.mxu1 %v6483_v12  ;;  %5226 = vmatpush1.bf16.msra.mxu0 %v6547_v14  ;;  %v12446_v12 = vld [vmem:[#allocation35_spill] sm:$0xff] }
 0x313   :  { %5186 = vmatprep.subr.bf16.mxu1 %v6480_v57  ;;  %5227 = vmatprep.subr.bf16.mxu0 %v6544_v61  ;;  %v6516_v14 = vcombine.high %v12446_v12, %v12445_v35  ;;  %v12447_v57 = vld [vmem:[#allocation84_spill] sm:$0xff]  ;;  %v12448_v61 = vld [vmem:[#allocation82_spill] sm:$0xff]  ;;  %v6515_v8 = vcombine.low %v12446_v12, %v12445_v35 }
 0x314   :  { %v6580_v38 = vcombine.high %v12448_v61, %v12447_v57 }
 0x316   :  { %5187 = vmatpush1.bf16.msra.mxu1 %v6479_v10  ;;  %5228 = vmatpush1.bf16.msra.mxu0 %v6543_v49  ;;  %v6579_v10 = vcombine.low %v12448_v61, %v12447_v57  ;;  %v12449_v49 = vld [vmem:[#allocation33_spill] sm:$0xff]  ;;  %v12470_v57 = vld [vmem:[#allocation122_spill] sm:$0xff] }
 0x317   :  { %5188 = vmatprep.subr.bf16.mxu1 %v6476_v53  ;;  %5229 = vmatprep.subr.bf16.mxu0 %v6540_v21  ;;  %v12450_v53 = vld [vmem:[#allocation31_spill] sm:$0xff] }
 0x318   :  { %v6512_v21 = vcombine.high %v12450_v53, %v12449_v49  ;;  %v6511_v17 = vcombine.low %v12450_v53, %v12449_v49 }
 0x31a   :  { %5189 = vmatpush1.bf16.msra.mxu1 %v6475_v4  ;;  %5230 = vmatpush1.bf16.msra.mxu0 %v6539_v6  ;;  %v12451_v4 = vld [vmem:[#allocation80_spill] sm:$0xff]  ;;  %v12452_v6 = vld [vmem:[#allocation78_spill] sm:$0xff] }
 0x31b   :  { %5190 = vmatprep.subr.bf16.mxu1 %v6536_v45  ;;  %5231 = vmatprep.subr.bf16.mxu0 %v6600_v15  ;;  %v6576_v41 = vcombine.high %v12452_v6, %v12451_v4  ;;  %v1997_v45 = vcombine.high %v10060_v11, %v10060_v11  ;;  %v6575_v55 = vcombine.low %v12452_v6, %v12451_v4  ;;  %v12453_v15 = vld [vmem:[#allocation29_spill] sm:$0xff]  ;;  %v12474_v4 = vld [vmem:[#allocation118_spill] sm:$0xff] }
 0x31d   :  { %v10250_v27 = vrot.slane %v1997_v45, %v10045_v32  ;;  %v12476_v45 = vld [vmem:[#allocation182_spill] sm:$0xff] }
 0x31e   :  { %5191 = vmatpush2.bf16.msra.mxu1 %v6535_v7  ;;  %5232 = vmatpush2.bf16.msra.mxu0 %v6599_v29  ;;  %v12454_v7 = vld [vmem:[#allocation27_spill] sm:$0xff] }
 0x31f   :  { %5192 = vmatprep.subr.bf16.mxu1 %v6532_v33  ;;  %5233 = vmatprep.subr.bf16.mxu0 %v6596_v56  ;;  %v6508_v29 = vcombine.high %v12454_v7, %v12453_v15  ;;  %v6572_v33 = vcombine.high %v12456_v2, %v12455_v0  ;;  %v6507_v56 = vcombine.low %v12454_v7, %v12453_v15  ;;  %v12477_v7 = vld [vmem:[#allocation116_spill] sm:$0xff] }
 0x322   :  { %5193 = vmatpush2.bf16.msra.mxu1 %v6531_v60  ;;  %5234 = vmatpush2.bf16.msra.mxu0 %v6595_v52  ;;  %v6571_v60 = vcombine.low %v12456_v2, %v12455_v0  ;;  %v12457_v52 = vld [vmem:[#allocation136_spill] sm:$0xff] }
 0x323   :  { %5194 = vmatprep.subr.bf16.mxu1 %v6528_v34  ;;  %5235 = vmatprep.subr.bf16.mxu0 %v6592_v31  ;;  %v6632_v54 = vcombine.high %v12458_v62, %v12457_v52  ;;  %v12459_v34 = vld [vmem:[#allocation200_spill] sm:$0xff]  ;;  %v2013_v31 = vcombine.high %v10250_v27, %v10250_v27  ;;  %v6631_v25 = vcombine.low %v12458_v62, %v12457_v52 }
 0x324   :  { %v6696_v11 = vcombine.high %v12460_v3, %v12459_v34  ;;  %v6695_v28 = vcombine.low %v12460_v3, %v12459_v34  ;;  %v12479_v2 = vld [vmem:[#allocation180_spill] sm:$0xff] }
 0x325   :  { %v12481_v62 = vld [vmem:[#allocation112_spill] sm:$0xff] }
 0x326   :  { %5195 = vmatpush2.bf16.msra.mxu1 %v6527_v48  ;;  %5236 = vmatpush2.bf16.msra.mxu0 %v6591_v23  ;;  %v10266_v48 = vpack.c.bf16 %v10146_v18, %v10146_v18  ;;  %v10270_v23 = vpack.c.bf16 %v10161_v42, %v10161_v42  ;;  %v12464_v18 = vld [vmem:[#allocation194_spill] sm:$0xff]  ;;  %v10282_v42 = vpack.c.bf16 %v2013_v31, %v2013_v31  ;;  %v12483_v3 = vld [vmem:[#allocation176_spill] sm:$0xff] }
 0x327   :  { %5196 = vmatprep.subr.bf16.mxu1 %v6524_v13  ;;  %5237 = vmatprep.subr.bf16.mxu0 %v6588_v19  ;;  %v12461_v13 = vld [vmem:[#allocation132_spill] sm:$0xff] }
 0x328   :  { %v6628_v59 = vcombine.high %v12462_v30, %v12461_v13  ;;  %v12463_v19 = vld [vmem:[#allocation196_spill] sm:$0xff]  ;;  %v6627_v26 = vcombine.low %v12462_v30, %v12461_v13  ;;  %v12486_v13 = vld [vmem:[#allocation106_spill] sm:$0xff] }
 0x329   :  { %v6691_v51 = vcombine.low %v12464_v18, %v12463_v19 }
 0x32a   :  { %5197 = vmatpush2.bf16.msra.mxu1 %v6523_v9  ;;  %5238 = vmatpush2.bf16.msra.mxu0 %v6587_v24  ;;  %v6692_v9 = vcombine.high %v12464_v18, %v12463_v19  ;;  %v10280_v24 = vpack.c.bf16 %v2012_v36, %v2012_v36  ;;  %v12488_v19 = vld [vmem:[#allocation170_spill] sm:$0xff] }
 0x32b   :  { %5198 = vmatprep.subr.bf16.mxu1 %v6520_v5  ;;  %5239 = vmatprep.subr.bf16.mxu0 %v6584_v43  ;;  %v12465_v5 = vld [vmem:[#allocation128_spill] sm:$0xff] }
 0x32c   :  { %v6624_v22 = vcombine.high %v12466_v20, %v12465_v5  ;;  %v12467_v43 = vld [vmem:[#allocation192_spill] sm:$0xff]  ;;  %v6623_v35 = vcombine.low %v12466_v20, %v12465_v5  ;;  %v12490_v5 = vld [vmem:[#allocation166_spill] sm:$0xff] }
 0x32e   :  { %5199 = vmatpush2.bf16.msra.mxu1 %v6519_v1  ;;  %5240 = vmatpush2.bf16.msra.mxu0 %v6583_v16  ;;  %v12468_v1 = vld [vmem:[#allocation190_spill] sm:$0xff] }
 0x32f   :  { %5200 = vmatprep.subr.bf16.mxu1 %v6516_v14  ;;  %5241 = vmatprep.subr.bf16.mxu0 %v6580_v38  ;;  %v6688_v16 = vcombine.high %v12468_v1, %v12467_v43  ;;  %v6687_v12 = vcombine.low %v12468_v1, %v12467_v43  ;;  %v12469_v14 = vld [vmem:[#allocation124_spill] sm:$0xff]  ;;  %v12492_v43 = vld [vmem:[#allocation230_spill] sm:$0xff] }
 0x330   :  { %v6620_v61 = vcombine.high %v12470_v57, %v12469_v14  ;;  %v12471_v38 = vld [vmem:[#allocation188_spill] sm:$0xff]  ;;  %v6619_v49 = vcombine.low %v12470_v57, %v12469_v14  ;;  %v12494_v14 = vld [vmem:[#allocation162_spill] sm:$0xff] }
 0x332   :  { %5201 = vmatpush2.bf16.msra.mxu1 %v6515_v8  ;;  %5242 = vmatpush2.bf16.msra.mxu0 %v6579_v10  ;;  %v12472_v8 = vld [vmem:[#allocation186_spill] sm:$0xff] }
 0x333   :  { %5202 = vmatprep.subr.bf16.mxu1 %v6512_v21  ;;  %5243 = vmatprep.subr.bf16.mxu0 %v6576_v41  ;;  %v6684_v10 = vcombine.high %v12472_v8, %v12471_v38  ;;  %v6683_v53 = vcombine.low %v12472_v8, %v12471_v38  ;;  %v12473_v21 = vld [vmem:[#allocation120_spill] sm:$0xff]  ;;  %v12496_v38 = vld [vmem:[#allocation226_spill] sm:$0xff] }
 0x334   :  { %v6616_v6 = vcombine.high %v12474_v4, %v12473_v21  ;;  %v12475_v41 = vld [vmem:[#allocation184_spill] sm:$0xff] }
 0x335   :  { %v6679_v15 = vcombine.low %v12476_v45, %v12475_v41 }
 0x336   :  { %5203 = vmatpush2.bf16.msra.mxu1 %v6511_v17  ;;  %5244 = vmatpush2.bf16.msra.mxu0 %v6575_v55  ;;  %v6680_v17 = vcombine.high %v12476_v45, %v12475_v41  ;;  %v6615_v55 = vcombine.low %v12474_v4, %v12473_v21  ;;  %v12498_v21 = vld [vmem:[#allocation158_spill] sm:$0xff] }
 0x337   :  { %5204 = vmatprep.subr.bf16.mxu1 %v6508_v29  ;;  %5245 = vmatprep.subr.bf16.mxu0 %v6572_v33  ;;  %v12478_v29 = vld [vmem:[#allocation114_spill] sm:$0xff] }
 0x338   :  { %v6612_v0 = vcombine.high %v12478_v29, %v12477_v7  ;;  %v12480_v33 = vld [vmem:[#allocation178_spill] sm:$0xff] }
 0x339   :  { %v6675_v52 = vcombine.low %v12480_v33, %v12479_v2  ;;  %v12500_v41 = vld [vmem:[#allocation222_spill] sm:$0xff] }
 0x33a   :  { %5205 = vmatpush2.bf16.msra.mxu1 %v6507_v56  ;;  %5246 = vmatpush2.bf16.msra.mxu0 %v6571_v60  ;;  %v6676_v56 = vcombine.high %v12480_v33, %v12479_v2  ;;  %v6611_v60 = vcombine.low %v12478_v29, %v12477_v7  ;;  %v12502_v7 = vld [vmem:[#allocation154_spill] sm:$0xff] }
 0x33b   :  { %5256 = vmatprep.subr.bf16.mxu1 %v6632_v54  ;;  %5297 = vmatprep.subr.bf16.mxu0 %v6696_v11  ;;  %v12482_v54 = vld [vmem:[#allocation110_spill] sm:$0xff] }
 0x33c   :  { %v6608_v34 = vcombine.high %v12482_v54, %v12481_v62  ;;  %v12484_v11 = vld [vmem:[#allocation174_spill] sm:$0xff]  ;;  %v6607_v31 = vcombine.low %v12482_v54, %v12481_v62 }
 0x33d   :  { %5207 = vmatmul.mubr.bf16.vlgmr.msra.gmra.mxu1 %v10266_v48  ;;  %5248 = vmatmul.mubr.bf16.vlgmr.msra.gmra.mxu0 %v10270_v23  ;;  %v6672_v36 = vcombine.high %v12484_v11, %v12483_v3  ;;  %v12504_v2 = vld [vmem:[#allocation218_spill] sm:$0xff] }
 0x33e   :  { %5257 = vmatpush1.bf16.msra.mxu1 %v6631_v25  ;;  %5298 = vmatpush1.bf16.msra.mxu0 %v6695_v28  ;;  %v6671_v25 = vcombine.low %v12484_v11, %v12483_v3  ;;  %v12485_v28 = vld [vmem:[#allocation108_spill] sm:$0xff]  ;;  %v12506_v62 = vld [vmem:[#allocation150_spill] sm:$0xff] }
 0x33f   :  { %5258 = vmatprep.subr.bf16.mxu1 %v6628_v59  ;;  %5299 = vmatprep.subr.bf16.mxu0 %v6692_v9  ;;  %v6604_v30 = vcombine.high %v12486_v13, %v12485_v28  ;;  %v12487_v59 = vld [vmem:[#allocation172_spill] sm:$0xff]  ;;  %v6603_v9 = vcombine.low %v12486_v13, %v12485_v28  ;;  %v12508_v3 = vld [vmem:[#allocation214_spill] sm:$0xff] }
 0x340   :  { %5288 = vmatprep.mubr.bf16.mxu1 %v10280_v24  ;;  %5329 = vmatprep.mubr.bf16.mxu0 %v10282_v42  ;;  %v6668_v18 = vcombine.high %v12488_v19, %v12487_v59  ;;  %v12510_v28 = vld [vmem:[#allocation146_spill] sm:$0xff] }
 0x342   :  { %5259 = vmatpush1.bf16.msra.mxu1 %v6627_v26  ;;  %5300 = vmatpush1.bf16.msra.mxu0 %v6691_v51  ;;  %v6667_v26 = vcombine.low %v12488_v19, %v12487_v59  ;;  %v12489_v51 = vld [vmem:[#allocation168_spill] sm:$0xff]  ;;  %v12512_v59 = vld [vmem:[#allocation210_spill] sm:$0xff] }
 0x343   :  { %5260 = vmatprep.subr.bf16.mxu1 %v6624_v22  ;;  %5301 = vmatprep.subr.bf16.mxu0 %v6688_v16  ;;  %v6664_v20 = vcombine.high %v12490_v5, %v12489_v51  ;;  %v12491_v22 = vld [vmem:[#allocation232_spill] sm:$0xff]  ;;  %v6663_v16 = vcombine.low %v12490_v5, %v12489_v51  ;;  %v12514_v51 = vld [vmem:[#allocation142_spill] sm:$0xff] }
 0x344   :  { %v6728_v1 = vcombine.high %v12492_v43, %v12491_v22 }
 0x346   :  { %5261 = vmatpush1.bf16.msra.mxu1 %v6623_v35  ;;  %5302 = vmatpush1.bf16.msra.mxu0 %v6687_v12  ;;  %v6727_v35 = vcombine.low %v12492_v43, %v12491_v22  ;;  %v12493_v12 = vld [vmem:[#allocation164_spill] sm:$0xff]  ;;  %v12516_v22 = vld [vmem:[#allocation206_spill] sm:$0xff] }
 0x347   :  { %5262 = vmatprep.subr.bf16.mxu1 %v6620_v61  ;;  %5303 = vmatprep.subr.bf16.mxu0 %v6684_v10  ;;  %v6660_v57 = vcombine.high %v12494_v14, %v12493_v12  ;;  %v12495_v61 = vld [vmem:[#allocation228_spill] sm:$0xff]  ;;  %v6659_v10 = vcombine.low %v12494_v14, %v12493_v12  ;;  %v12518_v14 = vld [vmem:[#allocation138_spill] sm:$0xff] }
 0x348   :  { %v6724_v8 = vcombine.high %v12496_v38, %v12495_v61  ;;  %v12517_v12 = vld [vmem:[#allocation140_spill] sm:$0xff] }
 0x34a   :  { %5263 = vmatpush1.bf16.msra.mxu1 %v6619_v49  ;;  %5304 = vmatpush1.bf16.msra.mxu0 %v6683_v53  ;;  %v6723_v49 = vcombine.low %v12496_v38, %v12495_v61  ;;  %v12497_v53 = vld [vmem:[#allocation160_spill] sm:$0xff]  ;;  %v12520_v38 = vld [vmem:[#allocation202_spill] sm:$0xff] }
 0x34b   :  { %5264 = vmatprep.subr.bf16.mxu1 %v6616_v6  ;;  %5305 = vmatprep.subr.bf16.mxu0 %v6680_v17  ;;  %v6656_v4 = vcombine.high %v12498_v21, %v12497_v53  ;;  %v12499_v6 = vld [vmem:[#allocation224_spill] sm:$0xff]  ;;  %v6655_v17 = vcombine.low %v12498_v21, %v12497_v53  ;;  %v6635_v53 = vcombine.low %v12518_v14, %v12517_v12 }
 0x34c   :  { %v6720_v45 = vcombine.high %v12500_v41, %v12499_v6  ;;  %v12519_v61 = vld [vmem:[#allocation204_spill] sm:$0xff] }
 0x34d   :  { %v6699_v21 = vcombine.low %v12520_v38, %v12519_v61 }
 0x34e   :  { %5265 = vmatpush1.bf16.msra.mxu1 %v6615_v55  ;;  %5306 = vmatpush1.bf16.msra.mxu0 %v6679_v15  ;;  %v6719_v55 = vcombine.low %v12500_v41, %v12499_v6  ;;  %v12501_v15 = vld [vmem:[#allocation156_spill] sm:$0xff]  ;;  %v12522_v6 = vld [vmem:[#allocation262_spill] sm:$0xff] }
 0x34f   :  { %5266 = vmatprep.subr.bf16.mxu1 %v6612_v0  ;;  %5307 = vmatprep.subr.bf16.mxu0 %v6676_v56  ;;  %v6652_v29 = vcombine.high %v12502_v7, %v12501_v15  ;;  %v12503_v0 = vld [vmem:[#allocation220_spill] sm:$0xff]  ;;  %v6651_v56 = vcombine.low %v12502_v7, %v12501_v15  ;;  %v10423_v7 = vpack.c.bf16 %v10247_v37, %v10247_v37  ;;  %v12528_v37 = vld [vmem:[#allocation322_spill] sm:$0xff] }
 0x350   :  { %v6716_v33 = vcombine.high %v12504_v2, %v12503_v0 }
 0x352   :  { %5267 = vmatpush1.bf16.msra.mxu1 %v6611_v60  ;;  %5308 = vmatpush1.bf16.msra.mxu0 %v6675_v52  ;;  %v6715_v60 = vcombine.low %v12504_v2, %v12503_v0  ;;  %v12505_v52 = vld [vmem:[#allocation152_spill] sm:$0xff] }
 0x353   :  { %5268 = vmatprep.subr.bf16.mxu1 %v6608_v34  ;;  %5309 = vmatprep.subr.bf16.mxu0 %v6672_v36  ;;  %v6648_v54 = vcombine.high %v12506_v62, %v12505_v52  ;;  %v12507_v34 = vld [vmem:[#allocation216_spill] sm:$0xff]  ;;  %v6647_v36 = vcombine.low %v12506_v62, %v12505_v52 }
 0x354   :  { %v6712_v11 = vcombine.high %v12508_v3, %v12507_v34  ;;  %v12527_v52 = vld [vmem:[#allocation324_spill] sm:$0xff] }
 0x355   :  { %v6820_v62 = vcombine.high %v12528_v37, %v12527_v52 }
 0x356   :  { %5269 = vmatpush1.bf16.msra.mxu1 %v6607_v31  ;;  %5310 = vmatpush1.bf16.msra.mxu0 %v6671_v25  ;;  %v6711_v31 = vcombine.low %v12508_v3, %v12507_v34  ;;  %v12509_v25 = vld [vmem:[#allocation148_spill] sm:$0xff]  ;;  %v6819_v3 = vcombine.low %v12528_v37, %v12527_v52  ;;  %v12550_v52 = vld [vmem:[#allocation234_spill] sm:$0xff] }
 0x357   :  { %5270 = vmatprep.subr.bf16.mxu1 %v6604_v30  ;;  %5311 = vmatprep.subr.bf16.mxu0 %v6668_v18  ;;  %v6644_v13 = vcombine.high %v12510_v28, %v12509_v25  ;;  %v12511_v30 = vld [vmem:[#allocation212_spill] sm:$0xff]  ;;  %v6643_v18 = vcombine.low %v12510_v28, %v12509_v25  ;;  %v12532_v28 = vld [vmem:[#allocation318_spill] sm:$0xff] }
 0x358   :  { %v6708_v19 = vcombine.high %v12512_v59, %v12511_v30  ;;  %v12531_v25 = vld [vmem:[#allocation320_spill] sm:$0xff] }
 0x35a   :  { %5271 = vmatpush1.bf16.msra.mxu1 %v6603_v9  ;;  %5312 = vmatpush1.bf16.msra.mxu0 %v6667_v26  ;;  %v6707_v9 = vcombine.low %v12512_v59, %v12511_v30  ;;  %v12513_v26 = vld [vmem:[#allocation144_spill] sm:$0xff]  ;;  %v6815_v59 = vcombine.low %v12532_v28, %v12531_v25 }
 0x35b   :  { %5272 = vmatprep.subr.bf16.mxu1 %v6664_v20  ;;  %5313 = vmatprep.subr.bf16.mxu0 %v6728_v1  ;;  %v6640_v5 = vcombine.high %v12514_v51, %v12513_v26  ;;  %v12515_v20 = vld [vmem:[#allocation208_spill] sm:$0xff]  ;;  %v2014_v1 = vcombine.high %v10071_v63, %v10071_v63 }
 0x35c   :  { %v6704_v43 = vcombine.high %v12516_v22, %v12515_v20 }
 0x35e   :  { %5273 = vmatpush2.bf16.msra.mxu1 %v6663_v16  ;;  %5314 = vmatpush2.bf16.msra.mxu0 %v6727_v35  ;;  %v6639_v16 = vcombine.low %v12514_v51, %v12513_v26  ;;  %v6703_v35 = vcombine.low %v12516_v22, %v12515_v20  ;;  %v12535_v26 = vld [vmem:[#allocation316_spill] sm:$0xff]  ;;  %v12536_v51 = vld [vmem:[#allocation314_spill] sm:$0xff] }
 0x35f   :  { %5274 = vmatprep.subr.bf16.mxu1 %v6660_v57  ;;  %5315 = vmatprep.subr.bf16.mxu0 %v6724_v8  ;;  %v6636_v57 = vcombine.high %v12518_v14, %v12517_v12  ;;  %v6700_v8 = vcombine.high %v12520_v38, %v12519_v61  ;;  %v6811_v22 = vcombine.low %v12536_v51, %v12535_v26  ;;  %v12540_v12 = vld [vmem:[#allocation310_spill] sm:$0xff]  ;;  %v12541_v38 = vld [vmem:[#allocation244_spill] sm:$0xff] }
 0x362   :  { %5275 = vmatpush2.bf16.msra.mxu1 %v6659_v10  ;;  %5316 = vmatpush2.bf16.msra.mxu0 %v6723_v49  ;;  %v10404_v10 = vrot.slane %v10071_v63, %v10045_v32  ;;  %v10407_v49 = vrot.slane %v2014_v1, %v10045_v32  ;;  %v12538_v1 = vld [vmem:[#allocation246_spill] sm:$0xff] }
 0x363   :  { %5276 = vmatprep.subr.bf16.mxu1 %v6656_v4  ;;  %5317 = vmatprep.subr.bf16.mxu0 %v6720_v45  ;;  %v12521_v4 = vld [vmem:[#allocation264_spill] sm:$0xff] }
 0x364   :  { %v6760_v41 = vcombine.high %v12522_v6, %v12521_v4  ;;  %v12523_v45 = vld [vmem:[#allocation328_spill] sm:$0xff]  ;;  %v2030_v15 = vcombine.high %v10407_v49, %v10407_v49  ;;  %v6759_v0 = vcombine.low %v12522_v6, %v12521_v4  ;;  %v12544_v4 = vld [vmem:[#allocation306_spill] sm:$0xff] }
 0x366   :  { %5277 = vmatpush2.bf16.msra.mxu1 %v6655_v17  ;;  %5318 = vmatpush2.bf16.msra.mxu0 %v6719_v55  ;;  %v12524_v17 = vld [vmem:[#allocation326_spill] sm:$0xff]  ;;  %v2029_v55 = vcombine.high %v10404_v10, %v10404_v10 }
 0x367   :  { %5278 = vmatprep.subr.bf16.mxu1 %v6652_v29  ;;  %5319 = vmatprep.subr.bf16.mxu0 %v6716_v33  ;;  %v6824_v63 = vcombine.high %v12524_v17, %v12523_v45  ;;  %v10427_v29 = vpack.c.bf16 %v10250_v27, %v10250_v27  ;;  %v6823_v2 = vcombine.low %v12524_v17, %v12523_v45  ;;  %v12525_v33 = vld [vmem:[#allocation260_spill] sm:$0xff] }
 0x368   :  { %v10439_v27 = vpack.c.bf16 %v2030_v15, %v2030_v15  ;;  %v12545_v17 = vld [vmem:[#allocation240_spill] sm:$0xff] }
 0x369   :  { %v12547_v15 = vld [vmem:[#allocation304_spill] sm:$0xff] }
 0x36a   :  { %5279 = vmatpush2.bf16.msra.mxu1 %v6651_v56  ;;  %5320 = vmatpush2.bf16.msra.mxu0 %v6715_v60  ;;  %v12526_v56 = vld [vmem:[#allocation258_spill] sm:$0xff] }
 0x36b   :  { %5280 = vmatprep.subr.bf16.mxu1 %v6648_v54  ;;  %5321 = vmatprep.subr.bf16.mxu0 %v6712_v11  ;;  %v6756_v60 = vcombine.high %v12526_v56, %v12525_v33  ;;  %v10437_v54 = vpack.c.bf16 %v2029_v55, %v2029_v55  ;;  %v6755_v34 = vcombine.low %v12526_v56, %v12525_v33  ;;  %v12529_v11 = vld [vmem:[#allocation256_spill] sm:$0xff] }
 0x36e   :  { %5281 = vmatpush2.bf16.msra.mxu1 %v6647_v36  ;;  %5322 = vmatpush2.bf16.msra.mxu0 %v6711_v31  ;;  %v12530_v36 = vld [vmem:[#allocation254_spill] sm:$0xff] }
 0x36f   :  { %5282 = vmatprep.subr.bf16.mxu1 %v6644_v13  ;;  %5323 = vmatprep.subr.bf16.mxu0 %v6708_v19  ;;  %v6752_v31 = vcombine.high %v12530_v36, %v12529_v11  ;;  %v6816_v13 = vcombine.high %v12532_v28, %v12531_v25  ;;  %v6751_v30 = vcombine.low %v12530_v36, %v12529_v11  ;;  %v12533_v19 = vld [vmem:[#allocation252_spill] sm:$0xff]  ;;  %v12554_v25 = vld [vmem:[#allocation294_spill] sm:$0xff] }
 0x372   :  { %5283 = vmatpush2.bf16.msra.mxu1 %v6643_v18  ;;  %5324 = vmatpush2.bf16.msra.mxu0 %v6707_v9  ;;  %v12534_v18 = vld [vmem:[#allocation250_spill] sm:$0xff] }
 0x373   :  { %5284 = vmatprep.subr.bf16.mxu1 %v6640_v5  ;;  %5325 = vmatprep.subr.bf16.mxu0 %v6704_v43  ;;  %v6748_v9 = vcombine.high %v12534_v18, %v12533_v19  ;;  %v6812_v5 = vcombine.high %v12536_v51, %v12535_v26  ;;  %v6747_v20 = vcombine.low %v12534_v18, %v12533_v19  ;;  %v12537_v43 = vld [vmem:[#allocation248_spill] sm:$0xff]  ;;  %v12558_v26 = vld [vmem:[#allocation290_spill] sm:$0xff] }
 0x376   :  { %5285 = vmatpush2.bf16.msra.mxu1 %v6639_v16  ;;  %5326 = vmatpush2.bf16.msra.mxu0 %v6703_v35  ;;  %v6744_v16 = vcombine.high %v12538_v1, %v12537_v43  ;;  %v12539_v35 = vld [vmem:[#allocation312_spill] sm:$0xff] }
 0x377   :  { %5286 = vmatprep.subr.bf16.mxu1 %v6636_v57  ;;  %5327 = vmatprep.subr.bf16.mxu0 %v6700_v8  ;;  %v6808_v14 = vcombine.high %v12540_v12, %v12539_v35  ;;  %v6743_v57 = vcombine.low %v12538_v1, %v12537_v43  ;;  %v6807_v61 = vcombine.low %v12540_v12, %v12539_v35  ;;  %v12542_v8 = vld [vmem:[#allocation242_spill] sm:$0xff] }
 0x378   :  { %v12562_v35 = vld [vmem:[#allocation286_spill] sm:$0xff] }
 0x37a   :  { %5287 = vmatpush2.bf16.msra.mxu1 %v6635_v53  ;;  %5328 = vmatpush2.bf16.msra.mxu0 %v6699_v21  ;;  %v6740_v53 = vcombine.high %v12542_v8, %v12541_v38  ;;  %v12543_v21 = vld [vmem:[#allocation308_spill] sm:$0xff] }
 0x37b   :  { %5338 = vmatprep.subr.bf16.mxu1 %v6760_v41  ;;  %5379 = vmatprep.subr.bf16.mxu0 %v6824_v63  ;;  %v6804_v6 = vcombine.high %v12544_v4, %v12543_v21  ;;  %v6739_v41 = vcombine.low %v12542_v8, %v12541_v38  ;;  %v6803_v45 = vcombine.low %v12544_v4, %v12543_v21  ;;  %v12546_v63 = vld [vmem:[#allocation238_spill] sm:$0xff] }
 0x37c   :  { %v6736_v55 = vcombine.high %v12546_v63, %v12545_v17  ;;  %v6735_v33 = vcombine.low %v12546_v63, %v12545_v17  ;;  %v12566_v21 = vld [vmem:[#allocation282_spill] sm:$0xff] }
 0x37d   :  { %5289 = vmatmul.mubr.bf16.vlgmr.msra.gmra.mxu1 %v10423_v7  ;;  %5330 = vmatmul.mubr.bf16.vlgmr.msra.gmra.mxu0 %v10427_v29 }
 0x37e   :  { %5339 = vmatpush1.bf16.msra.mxu1 %v6759_v0  ;;  %5380 = vmatpush1.bf16.msra.mxu0 %v6823_v2  ;;  %v12548_v0 = vld [vmem:[#allocation302_spill] sm:$0xff] }
 0x37f   :  { %5340 = vmatprep.subr.bf16.mxu1 %v6756_v60  ;;  %5381 = vmatprep.subr.bf16.mxu0 %v6820_v62  ;;  %v6800_v2 = vcombine.high %v12548_v0, %v12547_v15  ;;  %v6799_v56 = vcombine.low %v12548_v0, %v12547_v15  ;;  %v12549_v60 = vld [vmem:[#allocation236_spill] sm:$0xff]  ;;  %v12570_v15 = vld [vmem:[#allocation278_spill] sm:$0xff] }
 0x380   :  { %5370 = vmatprep.mubr.bf16.mxu1 %v10437_v54  ;;  %5411 = vmatprep.mubr.bf16.mxu0 %v10439_v27  ;;  %v6732_v37 = vcombine.high %v12550_v52, %v12549_v60  ;;  %v12551_v62 = vld [vmem:[#allocation300_spill] sm:$0xff]  ;;  %v6731_v11 = vcombine.low %v12550_v52, %v12549_v60 }
 0x382   :  { %5341 = vmatpush1.bf16.msra.mxu1 %v6755_v34  ;;  %5382 = vmatpush1.bf16.msra.mxu0 %v6819_v3  ;;  %v12552_v34 = vld [vmem:[#allocation298_spill] sm:$0xff] }
 0x383   :  { %5342 = vmatprep.subr.bf16.mxu1 %v6752_v31  ;;  %5383 = vmatprep.subr.bf16.mxu0 %v6816_v13  ;;  %v6796_v3 = vcombine.high %v12552_v34, %v12551_v62  ;;  %v6795_v36 = vcombine.low %v12552_v34, %v12551_v62  ;;  %v12553_v31 = vld [vmem:[#allocation296_spill] sm:$0xff]  ;;  %v12574_v62 = vld [vmem:[#allocation274_spill] sm:$0xff] }
 0x384   :  { %v6792_v28 = vcombine.high %v12554_v25, %v12553_v31  ;;  %v12555_v13 = vld [vmem:[#allocation360_spill] sm:$0xff]  ;;  %v6791_v19 = vcombine.low %v12554_v25, %v12553_v31 }
 0x386   :  { %5343 = vmatpush1.bf16.msra.mxu1 %v6751_v30  ;;  %5384 = vmatpush1.bf16.msra.mxu0 %v6815_v59  ;;  %v12556_v30 = vld [vmem:[#allocation358_spill] sm:$0xff] }
 0x387   :  { %5344 = vmatprep.subr.bf16.mxu1 %v6748_v9  ;;  %5385 = vmatprep.subr.bf16.mxu0 %v6812_v5  ;;  %v6856_v59 = vcombine.high %v12556_v30, %v12555_v13  ;;  %v6855_v18 = vcombine.low %v12556_v30, %v12555_v13  ;;  %v12557_v9 = vld [vmem:[#allocation292_spill] sm:$0xff]  ;;  %v12578_v13 = vld [vmem:[#allocation270_spill] sm:$0xff] }
 0x388   :  { %v6788_v51 = vcombine.high %v12558_v26, %v12557_v9  ;;  %v12559_v5 = vld [vmem:[#allocation356_spill] sm:$0xff]  ;;  %v6787_v43 = vcombine.low %v12558_v26, %v12557_v9  ;;  %v2031_v9 = vcombine.high %v10082_v46, %v10082_v46 }
 0x38a   :  { %5345 = vmatpush1.bf16.msra.mxu1 %v6747_v20  ;;  %5386 = vmatpush1.bf16.msra.mxu0 %v6811_v22  ;;  %v12560_v20 = vld [vmem:[#allocation354_spill] sm:$0xff] }
 0x38b   :  { %5346 = vmatprep.subr.bf16.mxu1 %v6744_v16  ;;  %5387 = vmatprep.subr.bf16.mxu0 %v6808_v14  ;;  %v6852_v22 = vcombine.high %v12560_v20, %v12559_v5  ;;  %v6851_v1 = vcombine.low %v12560_v20, %v12559_v5  ;;  %v12561_v16 = vld [vmem:[#allocation288_spill] sm:$0xff]  ;;  %v12582_v20 = vld [vmem:[#allocation266_spill] sm:$0xff] }
 0x38c   :  { %v6784_v12 = vcombine.high %v12562_v35, %v12561_v16  ;;  %v12563_v14 = vld [vmem:[#allocation352_spill] sm:$0xff]  ;;  %v6783_v38 = vcombine.low %v12562_v35, %v12561_v16  ;;  %v10561_v35 = vrot.slane %v10082_v46, %v10045_v32 }
 0x38d   :  { %v12581_v5 = vld [vmem:[#allocation268_spill] sm:$0xff] }
 0x38e   :  { %5347 = vmatpush1.bf16.msra.mxu1 %v6743_v57  ;;  %5388 = vmatpush1.bf16.msra.mxu0 %v6807_v61  ;;  %v12564_v57 = vld [vmem:[#allocation350_spill] sm:$0xff] }
 0x38f   :  { %5348 = vmatprep.subr.bf16.mxu1 %v6740_v53  ;;  %5389 = vmatprep.subr.bf16.mxu0 %v6804_v6  ;;  %v6848_v61 = vcombine.high %v12564_v57, %v12563_v14  ;;  %v6847_v8 = vcombine.low %v12564_v57, %v12563_v14  ;;  %v12565_v53 = vld [vmem:[#allocation284_spill] sm:$0xff]  ;;  %v6763_v14 = vcombine.low %v12582_v20, %v12581_v5 }
 0x390   :  { %v6780_v4 = vcombine.high %v12566_v21, %v12565_v53  ;;  %v12567_v6 = vld [vmem:[#allocation348_spill] sm:$0xff]  ;;  %v6779_v17 = vcombine.low %v12566_v21, %v12565_v53  ;;  %v12588_v21 = vld [vmem:[#allocation454_spill] sm:$0xff] }
 0x391   :  { %v12587_v53 = vld [vmem:[#allocation456_spill] sm:$0xff] }
 0x392   :  { %5349 = vmatpush1.bf16.msra.mxu1 %v6739_v41  ;;  %5390 = vmatpush1.bf16.msra.mxu0 %v6803_v45  ;;  %v12568_v41 = vld [vmem:[#allocation346_spill] sm:$0xff]  ;;  %v6952_v46 = vcombine.high %v12588_v21, %v12587_v53 }
 0x393   :  { %5350 = vmatprep.subr.bf16.mxu1 %v6736_v55  ;;  %5391 = vmatprep.subr.bf16.mxu0 %v6800_v2  ;;  %v6844_v45 = vcombine.high %v12568_v41, %v12567_v6  ;;  %v6843_v63 = vcombine.low %v12568_v41, %v12567_v6  ;;  %v12569_v55 = vld [vmem:[#allocation280_spill] sm:$0xff]  ;;  %v10580_v6 = vpack.c.bf16 %v10404_v10, %v10404_v10  ;;  %v12592_v10 = vld [vmem:[#allocation450_spill] sm:$0xff] }
 0x394   :  { %v6776_v0 = vcombine.high %v12570_v15, %v12569_v55  ;;  %v12571_v2 = vld [vmem:[#allocation344_spill] sm:$0xff]  ;;  %v6775_v60 = vcombine.low %v12570_v15, %v12569_v55  ;;  %v10584_v41 = vpack.c.bf16 %v10407_v49, %v10407_v49  ;;  %v12590_v55 = vld [vmem:[#allocation386_spill] sm:$0xff] }
 0x396   :  { %5351 = vmatpush1.bf16.msra.mxu1 %v6735_v33  ;;  %5392 = vmatpush1.bf16.msra.mxu0 %v6799_v56  ;;  %v12572_v33 = vld [vmem:[#allocation342_spill] sm:$0xff] }
 0x397   :  { %5352 = vmatprep.subr.bf16.mxu1 %v6732_v37  ;;  %5393 = vmatprep.subr.bf16.mxu0 %v6796_v3  ;;  %v6840_v56 = vcombine.high %v12572_v33, %v12571_v2  ;;  %v6839_v52 = vcombine.low %v12572_v33, %v12571_v2  ;;  %v12573_v37 = vld [vmem:[#allocation276_spill] sm:$0xff] }
 0x398   :  { %v6772_v34 = vcombine.high %v12574_v62, %v12573_v37  ;;  %v12575_v3 = vld [vmem:[#allocation340_spill] sm:$0xff]  ;;  %v6771_v31 = vcombine.low %v12574_v62, %v12573_v37  ;;  %v12594_v37 = vld [vmem:[#allocation382_spill] sm:$0xff] }
 0x39a   :  { %5353 = vmatpush1.bf16.msra.mxu1 %v6731_v11  ;;  %5394 = vmatpush1.bf16.msra.mxu0 %v6795_v36  ;;  %v12576_v11 = vld [vmem:[#allocation338_spill] sm:$0xff] }
 0x39b   :  { %5354 = vmatprep.subr.bf16.mxu1 %v6792_v28  ;;  %5395 = vmatprep.subr.bf16.mxu0 %v6856_v59  ;;  %v6836_v36 = vcombine.high %v12576_v11, %v12575_v3  ;;  %v6835_v25 = vcombine.low %v12576_v11, %v12575_v3  ;;  %v12577_v28 = vld [vmem:[#allocation272_spill] sm:$0xff]  ;;  %v12596_v3 = vld [vmem:[#allocation446_spill] sm:$0xff] }
 0x39c   :  { %v6768_v30 = vcombine.high %v12578_v13, %v12577_v28  ;;  %v12579_v59 = vld [vmem:[#allocation336_spill] sm:$0xff]  ;;  %v6767_v26 = vcombine.low %v12578_v13, %v12577_v28  ;;  %v12598_v28 = vld [vmem:[#allocation378_spill] sm:$0xff] }
 0x39e   :  { %5355 = vmatpush2.bf16.msra.mxu1 %v6791_v19  ;;  %5396 = vmatpush2.bf16.msra.mxu0 %v6855_v18  ;;  %v12580_v19 = vld [vmem:[#allocation334_spill] sm:$0xff] }
 0x39f   :  { %5356 = vmatprep.subr.bf16.mxu1 %v6788_v51  ;;  %5397 = vmatprep.subr.bf16.mxu0 %v6852_v22  ;;  %v6832_v18 = vcombine.high %v12580_v19, %v12579_v59  ;;  %v6831_v51 = vcombine.low %v12580_v19, %v12579_v59  ;;  %v6764_v22 = vcombine.high %v12582_v20, %v12581_v5  ;;  %v12600_v59 = vld [vmem:[#allocation442_spill] sm:$0xff]  ;;  %v12603_v20 = vld [vmem:[#allocation440_spill] sm:$0xff] }
 0x3a2   :  { %5357 = vmatpush2.bf16.msra.mxu1 %v6787_v43  ;;  %5398 = vmatpush2.bf16.msra.mxu0 %v6851_v1  ;;  %v12583_v43 = vld [vmem:[#allocation332_spill] sm:$0xff]  ;;  %v12584_v1 = vld [vmem:[#allocation330_spill] sm:$0xff] }
 0x3a3   :  { %5358 = vmatprep.subr.bf16.mxu1 %v6784_v12  ;;  %5399 = vmatprep.subr.bf16.mxu0 %v6848_v61  ;;  %v6828_v16 = vcombine.high %v12584_v1, %v12583_v43  ;;  %v10564_v12 = vrot.slane %v2031_v9, %v10045_v32  ;;  %v6827_v57 = vcombine.low %v12584_v1, %v12583_v43  ;;  %v12585_v61 = vld [vmem:[#allocation392_spill] sm:$0xff] }
 0x3a4   :  { %v2046_v32 = vcombine.high %v10561_v35, %v10561_v35 }
 0x3a6   :  { %5359 = vmatpush2.bf16.msra.mxu1 %v6783_v38  ;;  %5400 = vmatpush2.bf16.msra.mxu0 %v6847_v8  ;;  %v12586_v38 = vld [vmem:[#allocation390_spill] sm:$0xff]  ;;  %v10594_v33 = vpack.c.bf16 %v2046_v32, %v2046_v32  ;;  %v12609_v32 = vld [vmem:[#allocation368_spill] sm:$0xff] }
 0x3a7   :  { %5360 = vmatprep.subr.bf16.mxu1 %v6780_v4  ;;  %5401 = vmatprep.subr.bf16.mxu0 %v6844_v45  ;;  %v6888_v8 = vcombine.high %v12586_v38, %v12585_v61  ;;  %v2047_v4 = vcombine.high %v10564_v12, %v10564_v12  ;;  %v6887_v45 = vcombine.low %v12586_v38, %v12585_v61  ;;  %v12607_v38 = vld [vmem:[#allocation436_spill] sm:$0xff] }
 0x3a9   :  { %v10596_v49 = vpack.c.bf16 %v2047_v4, %v2047_v4  ;;  %v12610_v4 = vld [vmem:[#allocation366_spill] sm:$0xff] }
 0x3aa   :  { %5361 = vmatpush2.bf16.msra.mxu1 %v6779_v17  ;;  %5402 = vmatpush2.bf16.msra.mxu0 %v6843_v63  ;;  %v6951_v17 = vcombine.low %v12588_v21, %v12587_v53  ;;  %v12589_v63 = vld [vmem:[#allocation388_spill] sm:$0xff] }
 0x3ab   :  { %5362 = vmatprep.subr.bf16.mxu1 %v6776_v0  ;;  %5403 = vmatprep.subr.bf16.mxu0 %v6840_v56  ;;  %v6884_v15 = vcombine.high %v12590_v55, %v12589_v63  ;;  %v12591_v0 = vld [vmem:[#allocation452_spill] sm:$0xff]  ;;  %v6883_v56 = vcombine.low %v12590_v55, %v12589_v63  ;;  %v12612_v63 = vld [vmem:[#allocation430_spill] sm:$0xff] }
 0x3ac   :  { %v6948_v2 = vcombine.high %v12592_v10, %v12591_v0 }
 0x3ae   :  { %5363 = vmatpush2.bf16.msra.mxu1 %v6775_v60  ;;  %5404 = vmatpush2.bf16.msra.mxu0 %v6839_v52  ;;  %v6947_v60 = vcombine.low %v12592_v10, %v12591_v0  ;;  %v12593_v52 = vld [vmem:[#allocation384_spill] sm:$0xff] }
 0x3af   :  { %5364 = vmatprep.subr.bf16.mxu1 %v6772_v34  ;;  %5405 = vmatprep.subr.bf16.mxu0 %v6836_v36  ;;  %v6880_v62 = vcombine.high %v12594_v37, %v12593_v52  ;;  %v12595_v34 = vld [vmem:[#allocation448_spill] sm:$0xff]  ;;  %v6879_v36 = vcombine.low %v12594_v37, %v12593_v52  ;;  %v12616_v52 = vld [vmem:[#allocation426_spill] sm:$0xff] }
 0x3b0   :  { %v6944_v11 = vcombine.high %v12596_v3, %v12595_v34  ;;  %v12613_v10 = vld [vmem:[#allocation364_spill] sm:$0xff] }
 0x3b2   :  { %5365 = vmatpush2.bf16.msra.mxu1 %v6771_v31  ;;  %5406 = vmatpush2.bf16.msra.mxu0 %v6835_v25  ;;  %v6943_v31 = vcombine.low %v12596_v3, %v12595_v34  ;;  %v12597_v25 = vld [vmem:[#allocation380_spill] sm:$0xff] }
 0x3b3   :  { %5366 = vmatprep.subr.bf16.mxu1 %v6768_v30  ;;  %5407 = vmatprep.subr.bf16.mxu0 %v6832_v18  ;;  %v6876_v13 = vcombine.high %v12598_v28, %v12597_v25  ;;  %v12599_v30 = vld [vmem:[#allocation444_spill] sm:$0xff]  ;;  %v6875_v18 = vcombine.low %v12598_v28, %v12597_v25  ;;  %v12620_v25 = vld [vmem:[#allocation486_spill] sm:$0xff] }
 0x3b4   :  { %v6940_v19 = vcombine.high %v12600_v59, %v12599_v30  ;;  %v6939_v9 = vcombine.low %v12600_v59, %v12599_v30  ;;  %v12617_v3 = vld [vmem:[#allocation424_spill] sm:$0xff] }
 0x3b5   :  { %v12621_v59 = vld [vmem:[#allocation420_spill] sm:$0xff] }
 0x3b6   :  { %5367 = vmatpush2.bf16.msra.mxu1 %v6767_v26  ;;  %5408 = vmatpush2.bf16.msra.mxu0 %v6831_v51  ;;  %v12601_v26 = vld [vmem:[#allocation376_spill] sm:$0xff]  ;;  %v12602_v51 = vld [vmem:[#allocation374_spill] sm:$0xff] }
 0x3b7   :  { %5368 = vmatprep.subr.bf16.mxu1 %v6764_v22  ;;  %5409 = vmatprep.subr.bf16.mxu0 %v6828_v16  ;;  %v6872_v5 = vcombine.high %v12602_v51, %v12601_v26  ;;  %v12604_v22 = vld [vmem:[#allocation438_spill] sm:$0xff]  ;;  %v6871_v1 = vcombine.low %v12602_v51, %v12601_v26 }
 0x3b8   :  { %v6936_v43 = vcombine.high %v12604_v22, %v12603_v20  ;;  %v6935_v16 = vcombine.low %v12604_v22, %v12603_v20  ;;  %v12624_v26 = vld [vmem:[#allocation482_spill] sm:$0xff]  ;;  %v12625_v22 = vld [vmem:[#allocation416_spill] sm:$0xff] }
 0x3ba   :  { %5369 = vmatpush2.bf16.msra.mxu1 %v6763_v14  ;;  %5410 = vmatpush2.bf16.msra.mxu0 %v6827_v57  ;;  %v12605_v14 = vld [vmem:[#allocation372_spill] sm:$0xff]  ;;  %v12606_v57 = vld [vmem:[#allocation370_spill] sm:$0xff] }
 0x3bb   :  { %5420 = vmatprep.subr.bf16.mxu1 %v6888_v8  ;;  %5461 = vmatprep.subr.bf16.mxu0 %v6952_v46  ;;  %v6868_v61 = vcombine.high %v12606_v57, %v12605_v14  ;;  %v12608_v8 = vld [vmem:[#allocation434_spill] sm:$0xff]  ;;  %v6867_v21 = vcombine.low %v12606_v57, %v12605_v14 }
 0x3bc   :  { %v6932_v53 = vcombine.high %v12608_v8, %v12607_v38  ;;  %v6931_v46 = vcombine.low %v12608_v8, %v12607_v38  ;;  %v12628_v14 = vld [vmem:[#allocation478_spill] sm:$0xff]  ;;  %v12629_v8 = vld [vmem:[#allocation412_spill] sm:$0xff] }
 0x3bd   :  { %5371 = vmatmul.mubr.bf16.vlgmr.msra.gmra.mxu1 %v10580_v6  ;;  %5412 = vmatmul.mubr.bf16.vlgmr.msra.gmra.mxu0 %v10584_v41 }
 0x3be   :  { %5421 = vmatpush1.bf16.msra.mxu1 %v6887_v45  ;;  %5462 = vmatpush1.bf16.msra.mxu0 %v6951_v17  ;;  %v6864_v45 = vcombine.high %v12610_v4, %v12609_v32  ;;  %v12611_v17 = vld [vmem:[#allocation432_spill] sm:$0xff] }
 0x3bf   :  { %5422 = vmatprep.subr.bf16.mxu1 %v6884_v15  ;;  %5463 = vmatprep.subr.bf16.mxu0 %v6948_v2  ;;  %v6928_v55 = vcombine.high %v12612_v63, %v12611_v17  ;;  %v6863_v15 = vcombine.low %v12610_v4, %v12609_v32  ;;  %v6927_v0 = vcombine.low %v12612_v63, %v12611_v17  ;;  %v12614_v2 = vld [vmem:[#allocation362_spill] sm:$0xff]  ;;  %v12633_v63 = vld [vmem:[#allocation408_spill] sm:$0xff] }
 0x3c0   :  { %5452 = vmatprep.mubr.bf16.mxu1 %v10594_v33  ;;  %5493 = vmatprep.mubr.bf16.mxu0 %v10596_v49  ;;  %v12632_v32 = vld [vmem:[#allocation474_spill] sm:$0xff] }
 0x3c2   :  { %5423 = vmatpush1.bf16.msra.mxu1 %v6883_v56  ;;  %5464 = vmatpush1.bf16.msra.mxu0 %v6947_v60  ;;  %v6860_v56 = vcombine.high %v12614_v2, %v12613_v10  ;;  %v12615_v60 = vld [vmem:[#allocation428_spill] sm:$0xff] }
 0x3c3   :  { %5424 = vmatprep.subr.bf16.mxu1 %v6880_v62  ;;  %5465 = vmatprep.subr.bf16.mxu0 %v6944_v11  ;;  %v6924_v37 = vcombine.high %v12616_v52, %v12615_v60  ;;  %v6859_v62 = vcombine.low %v12614_v2, %v12613_v10  ;;  %v6923_v34 = vcombine.low %v12616_v52, %v12615_v60  ;;  %v12618_v11 = vld [vmem:[#allocation422_spill] sm:$0xff]  ;;  %v12637_v52 = vld [vmem:[#allocation404_spill] sm:$0xff] }
 0x3c4   :  { %v12636_v10 = vld [vmem:[#allocation470_spill] sm:$0xff] }
 0x3c6   :  { %5425 = vmatpush1.bf16.msra.mxu1 %v6879_v36  ;;  %5466 = vmatpush1.bf16.msra.mxu0 %v6943_v31  ;;  %v6920_v36 = vcombine.high %v12618_v11, %v12617_v3  ;;  %v12619_v31 = vld [vmem:[#allocation488_spill] sm:$0xff] }
 0x3c7   :  { %5426 = vmatprep.subr.bf16.mxu1 %v6876_v13  ;;  %5467 = vmatprep.subr.bf16.mxu0 %v6940_v19  ;;  %v6984_v28 = vcombine.high %v12620_v25, %v12619_v31  ;;  %v6919_v13 = vcombine.low %v12618_v11, %v12617_v3  ;;  %v6983_v30 = vcombine.low %v12620_v25, %v12619_v31  ;;  %v12622_v19 = vld [vmem:[#allocation418_spill] sm:$0xff]  ;;  %v12641_v25 = vld [vmem:[#allocation400_spill] sm:$0xff] }
 0x3c8   :  { %v12640_v3 = vld [vmem:[#allocation466_spill] sm:$0xff] }
 0x3ca   :  { %5427 = vmatpush1.bf16.msra.mxu1 %v6875_v18  ;;  %5468 = vmatpush1.bf16.msra.mxu0 %v6939_v9  ;;  %v6916_v18 = vcombine.high %v12622_v19, %v12621_v59  ;;  %v12623_v9 = vld [vmem:[#allocation484_spill] sm:$0xff] }
 0x3cb   :  { %5428 = vmatprep.subr.bf16.mxu1 %v6872_v5  ;;  %5469 = vmatprep.subr.bf16.mxu0 %v6936_v43  ;;  %v6980_v51 = vcombine.high %v12624_v26, %v12623_v9  ;;  %v6915_v5 = vcombine.low %v12622_v19, %v12621_v59  ;;  %v6979_v20 = vcombine.low %v12624_v26, %v12623_v9  ;;  %v12626_v43 = vld [vmem:[#allocation414_spill] sm:$0xff]  ;;  %v12645_v26 = vld [vmem:[#allocation396_spill] sm:$0xff] }
 0x3cc   :  { %v12644_v59 = vld [vmem:[#allocation462_spill] sm:$0xff] }
 0x3ce   :  { %5429 = vmatpush1.bf16.msra.mxu1 %v6871_v1  ;;  %5470 = vmatpush1.bf16.msra.mxu0 %v6935_v16  ;;  %v6912_v1 = vcombine.high %v12626_v43, %v12625_v22  ;;  %v12627_v16 = vld [vmem:[#allocation480_spill] sm:$0xff] }
 0x3cf   :  { %5430 = vmatprep.subr.bf16.mxu1 %v6868_v61  ;;  %5471 = vmatprep.subr.bf16.mxu0 %v6932_v53  ;;  %v6976_v57 = vcombine.high %v12628_v14, %v12627_v16  ;;  %v6911_v61 = vcombine.low %v12626_v43, %v12625_v22  ;;  %v6975_v38 = vcombine.low %v12628_v14, %v12627_v16  ;;  %v12630_v53 = vld [vmem:[#allocation410_spill] sm:$0xff] }
 0x3d0   :  { %v12648_v22 = vld [vmem:[#allocation458_spill] sm:$0xff] }
 0x3d1   :  { %v2592_v14 = vld [vmem:[%s11458_s4] ss:$4 sm:$0xf] }
 0x3d2   :  { %5431 = vmatpush1.bf16.msra.mxu1 %v6867_v21  ;;  %5472 = vmatpush1.bf16.msra.mxu0 %v6931_v46  ;;  %v6908_v21 = vcombine.high %v12630_v53, %v12629_v8  ;;  %v12631_v46 = vld [vmem:[#allocation476_spill] sm:$0xff] }
 0x3d3   :  { %5432 = vmatprep.subr.bf16.mxu1 %v6864_v45  ;;  %5473 = vmatprep.subr.bf16.mxu0 %v6928_v55  ;;  %v6972_v4 = vcombine.high %v12632_v32, %v12631_v46  ;;  %v6907_v45 = vcombine.low %v12630_v53, %v12629_v8  ;;  %v6971_v17 = vcombine.low %v12632_v32, %v12631_v46  ;;  %v12634_v55 = vld [vmem:[#allocation406_spill] sm:$0xff]  ;;  %v12651_v8 = vld [vmem:[#allocation73_spill] sm:$0xff]  ;;  %v12652_v53 = vld [vmem:[#allocation72_spill] sm:$0xff] }
 0x3d4   :  { %v10727_v46 = vpack.c.bf16 %v10561_v35, %v10561_v35  ;;  %v10731_v32 = vpack.c.bf16 %v10564_v12, %v10564_v12  ;;  %v2601_v12 = vrot.slane %v2592_v14, %v10024_v47 }
 0x3d6   :  { %5433 = vmatpush1.bf16.msra.mxu1 %v6863_v15  ;;  %5474 = vmatpush1.bf16.msra.mxu0 %v6927_v0  ;;  %v6904_v15 = vcombine.high %v12634_v55, %v12633_v63  ;;  %v12635_v0 = vld [vmem:[#allocation472_spill] sm:$0xff] }
 0x3d7   :  { %5434 = vmatprep.subr.bf16.mxu1 %v6860_v56  ;;  %5475 = vmatprep.subr.bf16.mxu0 %v6924_v37  ;;  %v6968_v2 = vcombine.high %v12636_v10, %v12635_v0  ;;  %v6903_v56 = vcombine.low %v12634_v55, %v12633_v63  ;;  %v6967_v60 = vcombine.low %v12636_v10, %v12635_v0  ;;  %v12638_v37 = vld [vmem:[#allocation402_spill] sm:$0xff]  ;;  %v12653_v63 = vld [vmem:[#allocation24_spill] sm:$0xff]  ;;  %v12654_v55 = vld [vmem:[#allocation23_spill] sm:$0xff] }
 0x3d8   :  { %v6502_v35 = vcombine.high %v12654_v55, %v12653_v63  ;;  %v12656_v0 = vld [vmem:[#allocation70_spill] sm:$0xff] }
 0x3da   :  { %5435 = vmatpush1.bf16.msra.mxu1 %v6859_v62  ;;  %5476 = vmatpush1.bf16.msra.mxu0 %v6923_v34  ;;  %v6900_v62 = vcombine.high %v12638_v37, %v12637_v52  ;;  %v12639_v34 = vld [vmem:[#allocation468_spill] sm:$0xff] }
 0x3db   :  { %5436 = vmatprep.subr.bf16.mxu1 %v6920_v36  ;;  %5477 = vmatprep.subr.bf16.mxu0 %v6984_v28  ;;  %v6964_v11 = vcombine.high %v12640_v3, %v12639_v34  ;;  %v6899_v36 = vcombine.low %v12638_v37, %v12637_v52  ;;  %v6963_v31 = vcombine.low %v12640_v3, %v12639_v34  ;;  %v12642_v28 = vld [vmem:[#allocation398_spill] sm:$0xff] }
 0x3dc   :  { %v6501_v52 = vcombine.low %v12654_v55, %v12653_v63  ;;  %v12657_v3 = vld [vmem:[#allocation22_spill] sm:$0xff]  ;;  %v12670_v63 = vld [vmem:[#allocation15_spill] sm:$0xff] }
 0x3de   :  { %5437 = vmatpush2.bf16.msra.mxu1 %v6919_v13  ;;  %5478 = vmatpush2.bf16.msra.mxu0 %v6983_v30  ;;  %v6896_v13 = vcombine.high %v12642_v28, %v12641_v25  ;;  %v12643_v30 = vld [vmem:[#allocation464_spill] sm:$0xff] }
 0x3df   :  { %5438 = vmatprep.subr.bf16.mxu1 %v6916_v18  ;;  %5479 = vmatprep.subr.bf16.mxu0 %v6980_v51  ;;  %v6960_v19 = vcombine.high %v12644_v59, %v12643_v30  ;;  %v6895_v18 = vcombine.low %v12642_v28, %v12641_v25  ;;  %v6959_v9 = vcombine.low %v12644_v59, %v12643_v30  ;;  %v12646_v51 = vld [vmem:[#allocation394_spill] sm:$0xff]  ;;  %v12660_v25 = vld [vmem:[#allocation68_spill] sm:$0xff] }
 0x3e2   :  { %5439 = vmatpush2.bf16.msra.mxu1 %v6915_v5  ;;  %5480 = vmatpush2.bf16.msra.mxu0 %v6979_v20  ;;  %v6892_v5 = vcombine.high %v12646_v51, %v12645_v26  ;;  %v12647_v20 = vld [vmem:[#allocation460_spill] sm:$0xff] }
 0x3e3   :  { %5440 = vmatprep.subr.bf16.mxu1 %v6912_v1  ;;  %5481 = vmatprep.subr.bf16.mxu0 %v6976_v57  ;;  %v6956_v43 = vcombine.high %v12648_v22, %v12647_v20  ;;  %v6891_v1 = vcombine.low %v12646_v51, %v12645_v26  ;;  %v6955_v16 = vcombine.low %v12648_v22, %v12647_v20  ;;  %v12649_v57 = vld [vmem:[#allocation26_spill] sm:$0xff]  ;;  %v12661_v20 = vld [vmem:[#allocation20_spill] sm:$0xff] }
 0x3e6   :  { %5441 = vmatpush2.bf16.msra.mxu1 %v6911_v61  ;;  %5482 = vmatpush2.bf16.msra.mxu0 %v6975_v38  ;;  %v12650_v61 = vld [vmem:[#allocation25_spill] sm:$0xff] }
 0x3e7   :  { %5442 = vmatprep.subr.bf16.mxu1 %v6908_v21  ;;  %5483 = vmatprep.subr.bf16.mxu0 %v6972_v4  ;;  %v6506_v38 = vcombine.high %v12650_v61, %v12649_v57  ;;  %v6570_v21 = vcombine.high %v12652_v53, %v12651_v8  ;;  %v2597_v4 = vrot.slane %v2592_v14, %v10017_v58 }
 0x3ea   :  { %5443 = vmatpush2.bf16.msra.mxu1 %v6907_v45  ;;  %5484 = vmatpush2.bf16.msra.mxu0 %v6971_v17  ;;  %v6505_v45 = vcombine.low %v12650_v61, %v12649_v57  ;;  %v6569_v17 = vcombine.low %v12652_v53, %v12651_v8  ;;  %v12665_v57 = vld [vmem:[#allocation18_spill] sm:$0xff]  ;;  %v12666_v61 = vld [vmem:[#allocation17_spill] sm:$0xff]  ;;  %v12668_v53 = vld [vmem:[#allocation64_spill] sm:$0xff] }
 0x3eb   :  { %5444 = vmatprep.subr.bf16.mxu1 %v6904_v15  ;;  %5485 = vmatprep.subr.bf16.mxu0 %v6968_v2  ;;  %v12655_v15 = vld [vmem:[#allocation71_spill] sm:$0xff]  ;;  %v12667_v8 = vld [vmem:[#allocation65_spill] sm:$0xff] }
 0x3ec   :  { %v6566_v10 = vcombine.high %v12656_v0, %v12655_v15  ;;  %v6565_v37 = vcombine.low %v12656_v0, %v12655_v15  ;;  %v12672_v15 = vld [vmem:[#allocation62_spill] sm:$0xff] }
 0x3ee   :  { %5445 = vmatpush2.bf16.msra.mxu1 %v6903_v56  ;;  %5486 = vmatpush2.bf16.msra.mxu0 %v6967_v60 }
 0x3ef   :  { %5446 = vmatprep.subr.bf16.mxu1 %v6900_v62  ;;  %5487 = vmatprep.subr.bf16.mxu0 %v6964_v11  ;;  %v12658_v11 = vld [vmem:[#allocation21_spill] sm:$0xff] }
 0x3f2   :  { %5447 = vmatpush2.bf16.msra.mxu1 %v6899_v36  ;;  %5488 = vmatpush2.bf16.msra.mxu0 %v6963_v31  ;;  %v6498_v36 = vcombine.high %v12658_v11, %v12657_v3  ;;  %v12659_v31 = vld [vmem:[#allocation69_spill] sm:$0xff] }
 0x3f3   :  { %5448 = vmatprep.subr.bf16.mxu1 %v6896_v13  ;;  %5489 = vmatprep.subr.bf16.mxu0 %v6960_v19  ;;  %v6562_v28 = vcombine.high %v12660_v25, %v12659_v31  ;;  %v6561_v26 = vcombine.low %v12660_v25, %v12659_v31  ;;  %v12679_v25 = vld [vmem:[#allocation59_spill] sm:$0xff] }
 0x3f6   :  { %5449 = vmatpush2.bf16.msra.mxu1 %v6895_v18  ;;  %5490 = vmatpush2.bf16.msra.mxu0 %v6959_v9  ;;  %v6497_v9 = vcombine.low %v12658_v11, %v12657_v3  ;;  %v12677_v11 = vld [vmem:[#allocation12_spill] sm:$0xff] }
 0x3f7   :  { %5450 = vmatprep.subr.bf16.mxu1 %v6892_v5  ;;  %5491 = vmatprep.subr.bf16.mxu0 %v6956_v43  ;;  %v12664_v43 = vld [vmem:[#allocation66_spill] sm:$0xff] }
 0x3fa   :  { %5451 = vmatpush2.bf16.msra.mxu1 %v6891_v1  ;;  %5492 = vmatpush2.bf16.msra.mxu0 %v6955_v16 }
 0x3fb   :  { %5502 = vmatprep.subr.bf16.mxu1 %v6506_v38  ;;  %5543 = vmatprep.subr.bf16.mxu0 %v6570_v21  ;;  %v6490_v38 = vcombine.high %v12666_v61, %v12665_v57  ;;  %v6554_v21 = vcombine.high %v12668_v53, %v12667_v8 }
 0x3fd   :  { %v5208_v2 = vpop.f32.mrf.mxu1  ;;  %v5249_v56 = vpop.f32.mrf.mxu0  ;;  %5453 = vmatmul.mubr.bf16.vlgmr.msra.gmra.mxu1 %v10727_v46  ;;  %5494 = vmatmul.mubr.bf16.vlgmr.msra.gmra.mxu0 %v10731_v32 }
 0x3fe   :  { %v5209_v60 = vadd.f32 %v5208_v2, %v2597_v4  ;;  %5503 = vmatpush1.bf16.msra.mxu1 %v6505_v45  ;;  %5544 = vmatpush1.bf16.msra.mxu0 %v6569_v17  ;;  %v6489_v4 = vcombine.low %v12666_v61, %v12665_v57  ;;  %v6553_v45 = vcombine.low %v12668_v53, %v12667_v8  ;;  %v12669_v17 = vld [vmem:[#allocation16_spill] sm:$0xff]  ;;  %v12673_v2 = vld [vmem:[#allocation14_spill] sm:$0xff]  ;;  %v12688_v57 = vld [vmem:[#allocation99_spill] sm:$0xff] }
 0x3ff   :  { %v5210_v62 = vpop.f32.mrf.mxu1  ;;  %v5251_v34 = vpop.f32.mrf.mxu0  ;;  %5504 = vmatprep.subr.bf16.mxu1 %v6502_v35  ;;  %5545 = vmatprep.subr.bf16.mxu0 %v6566_v10  ;;  %v6486_v55 = vcombine.high %v12670_v63, %v12669_v17  ;;  %v12671_v35 = vld [vmem:[#allocation63_spill] sm:$0xff]  ;;  %v6485_v10 = vcombine.low %v12670_v63, %v12669_v17  ;;  %v12689_v53 = vld [vmem:[#allocation50_spill] sm:$0xff] }
 0x400   :  { %v10753_v13 = vadd.f32 %v5249_v56, %v5209_v60  ;;  %v5211_v30 = vadd.f32 %v5210_v62, %v2601_v12  ;;  %5534 = vmatprep.mubr.bf16.mxu1 %v10163_v40  ;;  %5575 = vmatprep.mubr.bf16.mxu0 %v10175_v50  ;;  %v12662_v40 = vld [vmem:[#allocation19_spill] sm:$0xff]  ;;  %v6550_v0 = vcombine.high %v12672_v15, %v12671_v35  ;;  %v12674_v56 = vld [vmem:[#allocation13_spill] sm:$0xff] }
 0x401   :  { %v5212_v59 = vpop.f32.mrf.mxu1  ;;  %v5253_v19 = vpop.f32.mrf.mxu0  ;;  %v6494_v22 = vcombine.high %v12662_v40, %v12661_v20  ;;  %v12663_v50 = vld [vmem:[#allocation67_spill] sm:$0xff]  ;;  %v6493_v16 = vcombine.low %v12662_v40, %v12661_v20  ;;  %v6549_v12 = vcombine.low %v12672_v15, %v12671_v35  ;;  %v6482_v60 = vcombine.high %v12674_v56, %v12673_v2  ;;  %v12693_v15 = vld [vmem:[#allocation46_spill] sm:$0xff] }
 0x402   :  { %v10757_v18 = vadd.f32 %v5251_v34, %v5211_v30  ;;  %5505 = vmatpush1.bf16.msra.mxu1 %v6501_v52  ;;  %5546 = vmatpush1.bf16.msra.mxu0 %v6565_v37  ;;  %v6558_v1 = vcombine.high %v12664_v43, %v12663_v50  ;;  %v6557_v14 = vcombine.low %v12664_v43, %v12663_v50  ;;  %v12675_v52 = vld [vmem:[#allocation61_spill] sm:$0xff]  ;;  %v12676_v37 = vld [vmem:[#allocation60_spill] sm:$0xff]  ;;  %v12684_v20 = vld [vmem:[#allocation103_spill] sm:$0xff] }
 0x403   :  { %v5213_v51 = vpop.f32.mrf.mxu1  ;;  %v5254_v5 = vpop.f32.mrf.mxu0  ;;  %5506 = vmatprep.subr.bf16.mxu1 %v6498_v36  ;;  %5547 = vmatprep.subr.bf16.mxu0 %v6562_v28  ;;  %v6546_v62 = vcombine.high %v12676_v37, %v12675_v52  ;;  %v6481_v34 = vcombine.low %v12674_v56, %v12673_v2  ;;  %v6545_v3 = vcombine.low %v12676_v37, %v12675_v52  ;;  %v12678_v36 = vld [vmem:[#allocation11_spill] sm:$0xff]  ;;  %v12680_v28 = vld [vmem:[#allocation58_spill] sm:$0xff] }
 0x404   :  { %v6478_v31 = vcombine.high %v12678_v36, %v12677_v11  ;;  %v6542_v30 = vcombine.high %v12680_v28, %v12679_v25  ;;  %v6477_v59 = vcombine.low %v12678_v36, %v12677_v11  ;;  %v6541_v19 = vcombine.low %v12680_v28, %v12679_v25  ;;  %v12683_v5 = vld [vmem:[#allocation105_spill] sm:$0xff]  ;;  %v12685_v43 = vld [vmem:[#allocation54_spill] sm:$0xff]  ;;  %v12692_v17 = vld [vmem:[#allocation95_spill] sm:$0xff] }
 0x405   :  { %v6602_v40 = vcombine.high %v12684_v20, %v12683_v5  ;;  %v6601_v50 = vcombine.low %v12684_v20, %v12683_v5  ;;  %v12696_v2 = vld [vmem:[#allocation91_spill] sm:$0xff]  ;;  %v12697_v37 = vld [vmem:[#allocation42_spill] sm:$0xff] }
 0x406   :  { %5507 = vmatpush1.bf16.msra.mxu1 %v6497_v9  ;;  %5548 = vmatpush1.bf16.msra.mxu0 %v6561_v26  ;;  %v12681_v9 = vld [vmem:[#allocation57_spill] sm:$0xff]  ;;  %v12682_v26 = vld [vmem:[#allocation56_spill] sm:$0xff]  ;;  %v12700_v11 = vld [vmem:[#allocation87_spill] sm:$0xff] }
 0x407   :  { %5508 = vmatprep.subr.bf16.mxu1 %v6494_v22  ;;  %5549 = vmatprep.subr.bf16.mxu0 %v6558_v1  ;;  %v6538_v51 = vcombine.high %v12682_v26, %v12681_v9  ;;  %v6537_v22 = vcombine.low %v12682_v26, %v12681_v9  ;;  %v12686_v1 = vld [vmem:[#allocation52_spill] sm:$0xff]  ;;  %v12701_v28 = vld [vmem:[#allocation38_spill] sm:$0xff]  ;;  %v12704_v9 = vld [vmem:[#allocation83_spill] sm:$0xff] }
 0x408   :  { %v12705_v20 = vld [vmem:[#allocation34_spill] sm:$0xff] }
 0x40a   :  { %5509 = vmatpush1.bf16.msra.mxu1 %v6493_v16  ;;  %5550 = vmatpush1.bf16.msra.mxu0 %v6557_v14  ;;  %v6534_v16 = vcombine.high %v12686_v1, %v12685_v43  ;;  %v12687_v14 = vld [vmem:[#allocation101_spill] sm:$0xff] }
 0x40b   :  { %5510 = vmatprep.subr.bf16.mxu1 %v6490_v38  ;;  %5551 = vmatprep.subr.bf16.mxu0 %v6554_v21  ;;  %v6598_v61 = vcombine.high %v12688_v57, %v12687_v14  ;;  %v6533_v38 = vcombine.low %v12686_v1, %v12685_v43  ;;  %v6597_v8 = vcombine.low %v12688_v57, %v12687_v14  ;;  %v12690_v21 = vld [vmem:[#allocation48_spill] sm:$0xff]  ;;  %v12708_v43 = vld [vmem:[#allocation79_spill] sm:$0xff]  ;;  %v12709_v57 = vld [vmem:[#allocation30_spill] sm:$0xff] }
 0x40e   :  { %5511 = vmatpush1.bf16.msra.mxu1 %v6489_v4  ;;  %5552 = vmatpush1.bf16.msra.mxu0 %v6553_v45  ;;  %v6530_v4 = vcombine.high %v12690_v21, %v12689_v53  ;;  %v12691_v45 = vld [vmem:[#allocation97_spill] sm:$0xff] }
 0x40f   :  { %5512 = vmatprep.subr.bf16.mxu1 %v6486_v55  ;;  %5553 = vmatprep.subr.bf16.mxu0 %v6550_v0  ;;  %v6594_v63 = vcombine.high %v12692_v17, %v12691_v45  ;;  %v6529_v55 = vcombine.low %v12690_v21, %v12689_v53  ;;  %v6593_v35 = vcombine.low %v12692_v17, %v12691_v45  ;;  %v12694_v0 = vld [vmem:[#allocation44_spill] sm:$0xff]  ;;  %v12712_v53 = vld [vmem:[#allocation75_spill] sm:$0xff]  ;;  %v12713_v17 = vld [vmem:[#allocation137_spill] sm:$0xff] }
 0x412   :  { %5513 = vmatpush1.bf16.msra.mxu1 %v6485_v10  ;;  %5554 = vmatpush1.bf16.msra.mxu0 %v6549_v12  ;;  %v6526_v10 = vcombine.high %v12694_v0, %v12693_v15  ;;  %v12695_v12 = vld [vmem:[#allocation93_spill] sm:$0xff] }
 0x413   :  { %5514 = vmatprep.subr.bf16.mxu1 %v6482_v60  ;;  %5555 = vmatprep.subr.bf16.mxu0 %v6546_v62  ;;  %v6590_v56 = vcombine.high %v12696_v2, %v12695_v12  ;;  %v6525_v60 = vcombine.low %v12694_v0, %v12693_v15  ;;  %v6589_v52 = vcombine.low %v12696_v2, %v12695_v12  ;;  %v12698_v62 = vld [vmem:[#allocation40_spill] sm:$0xff]  ;;  %v12716_v15 = vld [vmem:[#allocation199_spill] sm:$0xff]  ;;  %v12717_v2 = vld [vmem:[#allocation133_spill] sm:$0xff] }
 0x416   :  { %5515 = vmatpush1.bf16.msra.mxu1 %v6481_v34  ;;  %5556 = vmatpush1.bf16.msra.mxu0 %v6545_v3  ;;  %v6522_v34 = vcombine.high %v12698_v62, %v12697_v37  ;;  %v12699_v3 = vld [vmem:[#allocation89_spill] sm:$0xff] }
 0x417   :  { %5516 = vmatprep.subr.bf16.mxu1 %v6478_v31  ;;  %5557 = vmatprep.subr.bf16.mxu0 %v6542_v30  ;;  %v6586_v36 = vcombine.high %v12700_v11, %v12699_v3  ;;  %v6521_v31 = vcombine.low %v12698_v62, %v12697_v37  ;;  %v6585_v25 = vcombine.low %v12700_v11, %v12699_v3  ;;  %v12702_v30 = vld [vmem:[#allocation36_spill] sm:$0xff]  ;;  %v12720_v37 = vld [vmem:[#allocation195_spill] sm:$0xff] }
 0x41a   :  { %5517 = vmatpush1.bf16.msra.mxu1 %v6477_v59  ;;  %5558 = vmatpush1.bf16.msra.mxu0 %v6541_v19  ;;  %v6518_v59 = vcombine.high %v12702_v30, %v12701_v28  ;;  %v12703_v19 = vld [vmem:[#allocation85_spill] sm:$0xff] }
 0x41b   :  { %5518 = vmatprep.subr.bf16.mxu1 %v6538_v51  ;;  %5559 = vmatprep.subr.bf16.mxu0 %v6602_v40  ;;  %v6582_v26 = vcombine.high %v12704_v9, %v12703_v19  ;;  %v6517_v51 = vcombine.low %v12702_v30, %v12701_v28  ;;  %v6581_v5 = vcombine.low %v12704_v9, %v12703_v19  ;;  %v12706_v40 = vld [vmem:[#allocation32_spill] sm:$0xff]  ;;  %v12721_v30 = vld [vmem:[#allocation129_spill] sm:$0xff]  ;;  %v12724_v9 = vld [vmem:[#allocation191_spill] sm:$0xff] }
 0x41e   :  { %5519 = vmatpush2.bf16.msra.mxu1 %v6537_v22  ;;  %5560 = vmatpush2.bf16.msra.mxu0 %v6601_v50  ;;  %v6514_v22 = vcombine.high %v12706_v40, %v12705_v20  ;;  %v12707_v50 = vld [vmem:[#allocation81_spill] sm:$0xff] }
 0x41f   :  { %5520 = vmatprep.subr.bf16.mxu1 %v6534_v16  ;;  %5561 = vmatprep.subr.bf16.mxu0 %v6598_v61  ;;  %v6578_v1 = vcombine.high %v12708_v43, %v12707_v50  ;;  %v6513_v16 = vcombine.low %v12706_v40, %v12705_v20  ;;  %v6577_v14 = vcombine.low %v12708_v43, %v12707_v50  ;;  %v12710_v61 = vld [vmem:[#allocation28_spill] sm:$0xff] }
 0x422   :  { %5521 = vmatpush2.bf16.msra.mxu1 %v6533_v38  ;;  %5562 = vmatpush2.bf16.msra.mxu0 %v6597_v8  ;;  %v6510_v38 = vcombine.high %v12710_v61, %v12709_v57  ;;  %v12711_v8 = vld [vmem:[#allocation77_spill] sm:$0xff] }
 0x423   :  { %5522 = vmatprep.subr.bf16.mxu1 %v6530_v4  ;;  %5563 = vmatprep.subr.bf16.mxu0 %v6594_v63  ;;  %v6574_v21 = vcombine.high %v12712_v53, %v12711_v8  ;;  %v6509_v4 = vcombine.low %v12710_v61, %v12709_v57  ;;  %v6573_v45 = vcombine.low %v12712_v53, %v12711_v8  ;;  %v12714_v63 = vld [vmem:[#allocation135_spill] sm:$0xff] }
 0x424   :  { %v12730_v8 = vld [vmem:[#allocation119_spill] sm:$0xff] }
 0x426   :  { %5523 = vmatpush2.bf16.msra.mxu1 %v6529_v55  ;;  %5564 = vmatpush2.bf16.msra.mxu0 %v6593_v35  ;;  %v6634_v55 = vcombine.high %v12714_v63, %v12713_v17  ;;  %v12715_v35 = vld [vmem:[#allocation201_spill] sm:$0xff] }
 0x427   :  { %5524 = vmatprep.subr.bf16.mxu1 %v6526_v10  ;;  %5565 = vmatprep.subr.bf16.mxu0 %v6590_v56  ;;  %v6698_v0 = vcombine.high %v12716_v15, %v12715_v35  ;;  %v6633_v10 = vcombine.low %v12714_v63, %v12713_v17  ;;  %v6697_v12 = vcombine.low %v12716_v15, %v12715_v35  ;;  %v12718_v56 = vld [vmem:[#allocation131_spill] sm:$0xff] }
 0x428   :  { %v12734_v35 = vld [vmem:[#allocation115_spill] sm:$0xff] }
 0x42a   :  { %5525 = vmatpush2.bf16.msra.mxu1 %v6525_v60  ;;  %5566 = vmatpush2.bf16.msra.mxu0 %v6589_v52  ;;  %v6630_v60 = vcombine.high %v12718_v56, %v12717_v2  ;;  %v12719_v52 = vld [vmem:[#allocation197_spill] sm:$0xff] }
 0x42b   :  { %5526 = vmatprep.subr.bf16.mxu1 %v6522_v34  ;;  %5567 = vmatprep.subr.bf16.mxu0 %v6586_v36  ;;  %v6694_v62 = vcombine.high %v12720_v37, %v12719_v52  ;;  %v6629_v36 = vcombine.low %v12718_v56, %v12717_v2 }
 0x42e   :  { %5527 = vmatpush2.bf16.msra.mxu1 %v6521_v31  ;;  %5568 = vmatpush2.bf16.msra.mxu0 %v6585_v25  ;;  %v6693_v31 = vcombine.low %v12720_v37, %v12719_v52  ;;  %v12738_v52 = vld [vmem:[#allocation111_spill] sm:$0xff] }
 0x42f   :  { %5528 = vmatprep.subr.bf16.mxu1 %v6518_v59  ;;  %5569 = vmatprep.subr.bf16.mxu0 %v6582_v26  ;;  %v12722_v59 = vld [vmem:[#allocation127_spill] sm:$0xff] }
 0x430   :  { %v6626_v19 = vcombine.high %v12722_v59, %v12721_v30  ;;  %v6625_v40 = vcombine.low %v12722_v59, %v12721_v30  ;;  %v12743_v30 = vld [vmem:[#allocation173_spill] sm:$0xff]  ;;  %v12744_v59 = vld [vmem:[#allocation171_spill] sm:$0xff] }
 0x432   :  { %5529 = vmatpush2.bf16.msra.mxu1 %v6517_v51  ;;  %5570 = vmatpush2.bf16.msra.mxu0 %v6581_v5 }
 0x433   :  { %5530 = vmatprep.subr.bf16.mxu1 %v6514_v22  ;;  %5571 = vmatprep.subr.bf16.mxu0 %v6578_v1 }
 0x436   :  { %5531 = vmatpush2.bf16.msra.mxu1 %v6513_v16  ;;  %5572 = vmatpush2.bf16.msra.mxu0 %v6577_v14  ;;  %v12728_v16 = vld [vmem:[#allocation187_spill] sm:$0xff] }
 0x437   :  { %5532 = vmatprep.subr.bf16.mxu1 %v6510_v38  ;;  %5573 = vmatprep.subr.bf16.mxu0 %v6574_v21  ;;  %v12729_v38 = vld [vmem:[#allocation121_spill] sm:$0xff] }
 0x438   :  { %v6618_v53 = vcombine.high %v12730_v8, %v12729_v38  ;;  %v12731_v21 = vld [vmem:[#allocation185_spill] sm:$0xff]  ;;  %v6617_v17 = vcombine.low %v12730_v8, %v12729_v38  ;;  %v12754_v8 = vld [vmem:[#allocation159_spill] sm:$0xff] }
 0x439   :  { %v12753_v38 = vld [vmem:[#allocation161_spill] sm:$0xff] }
 0x43a   :  { %5533 = vmatpush2.bf16.msra.mxu1 %v6509_v4  ;;  %5574 = vmatpush2.bf16.msra.mxu0 %v6573_v45  ;;  %v12732_v4 = vld [vmem:[#allocation183_spill] sm:$0xff] }
 0x43b   :  { %5584 = vmatprep.subr.bf16.mxu1 %v6634_v55  ;;  %5625 = vmatprep.subr.bf16.mxu0 %v6698_v0  ;;  %v6682_v45 = vcombine.high %v12732_v4, %v12731_v21  ;;  %v6681_v63 = vcombine.low %v12732_v4, %v12731_v21  ;;  %v12733_v55 = vld [vmem:[#allocation117_spill] sm:$0xff]  ;;  %v12756_v4 = vld [vmem:[#allocation223_spill] sm:$0xff] }
 0x43c   :  { %v6614_v15 = vcombine.high %v12734_v35, %v12733_v55  ;;  %v12735_v0 = vld [vmem:[#allocation181_spill] sm:$0xff]  ;;  %v6613_v2 = vcombine.low %v12734_v35, %v12733_v55  ;;  %v12758_v35 = vld [vmem:[#allocation155_spill] sm:$0xff] }
 0x43d   :  { %v5290_v34 = vpop.f32.mrf.mxu1  ;;  %v5331_v3 = vpop.f32.mrf.mxu0  ;;  %5535 = vmatmul.mubr.bf16.vlgmr.msra.gmra.mxu1 %v10266_v48  ;;  %5576 = vmatmul.mubr.bf16.vlgmr.msra.gmra.mxu0 %v10270_v23  ;;  %v12723_v48 = vld [vmem:[#allocation193_spill] sm:$0xff] }
 0x43e   :  { %v5291_v11 = vadd.f32 %v5290_v34, %v10753_v13  ;;  %5585 = vmatpush1.bf16.msra.mxu1 %v6633_v10  ;;  %5626 = vmatpush1.bf16.msra.mxu0 %v6697_v12  ;;  %v6690_v23 = vcombine.high %v12724_v9, %v12723_v48  ;;  %v6689_v22 = vcombine.low %v12724_v9, %v12723_v48  ;;  %v12736_v10 = vld [vmem:[#allocation179_spill] sm:$0xff]  ;;  %v12755_v21 = vld [vmem:[#allocation225_spill] sm:$0xff] }
 0x43f   :  { %v5292_v25 = vpop.f32.mrf.mxu1  ;;  %v5333_v28 = vpop.f32.mrf.mxu0  ;;  %5586 = vmatprep.subr.bf16.mxu1 %v6630_v60  ;;  %5627 = vmatprep.subr.bf16.mxu0 %v6694_v62  ;;  %v6678_v12 = vcombine.high %v12736_v10, %v12735_v0  ;;  %v6677_v56 = vcombine.low %v12736_v10, %v12735_v0  ;;  %v12737_v60 = vld [vmem:[#allocation113_spill] sm:$0xff]  ;;  %v12740_v34 = vld [vmem:[#allocation175_spill] sm:$0xff]  ;;  %v6669_v9 = vcombine.low %v12744_v59, %v12743_v30 }
 0x440   :  { %v10890_v26 = vadd.f32 %v5331_v3, %v5291_v11  ;;  %v5293_v13 = vadd.f32 %v5292_v25, %v10757_v18  ;;  %5616 = vmatprep.mubr.bf16.mxu1 %v10280_v24  ;;  %5657 = vmatprep.mubr.bf16.mxu0 %v10282_v42  ;;  %v12725_v18 = vld [vmem:[#allocation125_spill] sm:$0xff]  ;;  %v12726_v24 = vld [vmem:[#allocation123_spill] sm:$0xff]  ;;  %v6610_v37 = vcombine.high %v12738_v52, %v12737_v60 }
 0x441   :  { %v5294_v51 = vpop.f32.mrf.mxu1  ;;  %v5335_v5 = vpop.f32.mrf.mxu0  ;;  %v6622_v1 = vcombine.high %v12726_v24, %v12725_v18  ;;  %v12727_v42 = vld [vmem:[#allocation189_spill] sm:$0xff]  ;;  %v6621_v57 = vcombine.low %v12726_v24, %v12725_v18  ;;  %v6609_v11 = vcombine.low %v12738_v52, %v12737_v60  ;;  %v12742_v25 = vld [vmem:[#allocation107_spill] sm:$0xff] }
 0x442   :  { %v10895_v20 = vadd.f32 %v5333_v28, %v5293_v13  ;;  %5587 = vmatpush1.bf16.msra.mxu1 %v6629_v36  ;;  %5628 = vmatpush1.bf16.msra.mxu0 %v6693_v31  ;;  %v6686_v14 = vcombine.high %v12728_v16, %v12727_v42  ;;  %v6685_v61 = vcombine.low %v12728_v16, %v12727_v42  ;;  %v12739_v62 = vld [vmem:[#allocation177_spill] sm:$0xff]  ;;  %v12746_v13 = vld [vmem:[#allocation167_spill] sm:$0xff] }
 0x443   :  { %v5295_v50 = vpop.f32.mrf.mxu1  ;;  %v5336_v43 = vpop.f32.mrf.mxu0  ;;  %5588 = vmatprep.subr.bf16.mxu1 %v6626_v19  ;;  %5629 = vmatprep.subr.bf16.mxu0 %v6690_v23  ;;  %v6674_v3 = vcombine.high %v12740_v34, %v12739_v62  ;;  %v6673_v36 = vcombine.low %v12740_v34, %v12739_v62  ;;  %v12741_v31 = vld [vmem:[#allocation109_spill] sm:$0xff]  ;;  %v6670_v19 = vcombine.high %v12744_v59, %v12743_v30  ;;  %v12750_v24 = vld [vmem:[#allocation163_spill] sm:$0xff] }
 0x444   :  { %v6606_v28 = vcombine.high %v12742_v25, %v12741_v31  ;;  %v6605_v48 = vcombine.low %v12742_v25, %v12741_v31  ;;  %v12745_v23 = vld [vmem:[#allocation169_spill] sm:$0xff]  ;;  %v12752_v16 = vld [vmem:[#allocation227_spill] sm:$0xff] }
 0x445   :  { %v6666_v51 = vcombine.high %v12746_v13, %v12745_v23  ;;  %v12747_v5 = vld [vmem:[#allocation233_spill] sm:$0xff]  ;;  %v6665_v50 = vcombine.low %v12746_v13, %v12745_v23  ;;  %v12760_v10 = vld [vmem:[#allocation219_spill] sm:$0xff] }
 0x446   :  { %5589 = vmatpush1.bf16.msra.mxu1 %v6625_v40  ;;  %5630 = vmatpush1.bf16.msra.mxu0 %v6689_v22  ;;  %v12748_v40 = vld [vmem:[#allocation231_spill] sm:$0xff]  ;;  %v12749_v18 = vld [vmem:[#allocation165_spill] sm:$0xff] }
 0x447   :  { %5590 = vmatprep.subr.bf16.mxu1 %v6622_v1  ;;  %5631 = vmatprep.subr.bf16.mxu0 %v6686_v14  ;;  %v6730_v22 = vcombine.high %v12748_v40, %v12747_v5  ;;  %v6729_v43 = vcombine.low %v12748_v40, %v12747_v5  ;;  %v6662_v1 = vcombine.high %v12750_v24, %v12749_v18  ;;  %v12751_v42 = vld [vmem:[#allocation229_spill] sm:$0xff]  ;;  %v12762_v52 = vld [vmem:[#allocation151_spill] sm:$0xff] }
 0x448   :  { %v6726_v14 = vcombine.high %v12752_v16, %v12751_v42  ;;  %v12757_v55 = vld [vmem:[#allocation157_spill] sm:$0xff]  ;;  %v12764_v34 = vld [vmem:[#allocation215_spill] sm:$0xff] }
 0x449   :  { %v12759_v0 = vld [vmem:[#allocation221_spill] sm:$0xff]  ;;  %v12766_v25 = vld [vmem:[#allocation147_spill] sm:$0xff] }
 0x44a   :  { %5591 = vmatpush1.bf16.msra.mxu1 %v6621_v57  ;;  %5632 = vmatpush1.bf16.msra.mxu0 %v6685_v61  ;;  %v6661_v57 = vcombine.low %v12750_v24, %v12749_v18  ;;  %v6725_v61 = vcombine.low %v12752_v16, %v12751_v42  ;;  %v12761_v60 = vld [vmem:[#allocation153_spill] sm:$0xff]  ;;  %v12768_v59 = vld [vmem:[#allocation211_spill] sm:$0xff] }
 0x44b   :  { %5592 = vmatprep.subr.bf16.mxu1 %v6618_v53  ;;  %5633 = vmatprep.subr.bf16.mxu0 %v6682_v45  ;;  %v6658_v53 = vcombine.high %v12754_v8, %v12753_v38  ;;  %v6722_v45 = vcombine.high %v12756_v4, %v12755_v21  ;;  %v12763_v62 = vld [vmem:[#allocation217_spill] sm:$0xff]  ;;  %v12770_v13 = vld [vmem:[#allocation143_spill] sm:$0xff] }
 0x44c   :  { %v12765_v31 = vld [vmem:[#allocation149_spill] sm:$0xff]  ;;  %v12772_v40 = vld [vmem:[#allocation207_spill] sm:$0xff] }
 0x44d   :  { %v12767_v30 = vld [vmem:[#allocation213_spill] sm:$0xff]  ;;  %v12774_v24 = vld [vmem:[#allocation139_spill] sm:$0xff] }
 0x44e   :  { %5593 = vmatpush1.bf16.msra.mxu1 %v6617_v17  ;;  %5634 = vmatpush1.bf16.msra.mxu0 %v6681_v63  ;;  %v6657_v17 = vcombine.low %v12754_v8, %v12753_v38  ;;  %v6721_v63 = vcombine.low %v12756_v4, %v12755_v21  ;;  %v12769_v23 = vld [vmem:[#allocation145_spill] sm:$0xff]  ;;  %v12776_v16 = vld [vmem:[#allocation203_spill] sm:$0xff] }
 0x44f   :  { %5594 = vmatprep.subr.bf16.mxu1 %v6614_v15  ;;  %5635 = vmatprep.subr.bf16.mxu0 %v6678_v12  ;;  %v6654_v15 = vcombine.high %v12758_v35, %v12757_v55  ;;  %v6718_v12 = vcombine.high %v12760_v10, %v12759_v0  ;;  %v12771_v5 = vld [vmem:[#allocation209_spill] sm:$0xff]  ;;  %v12778_v8 = vld [vmem:[#allocation263_spill] sm:$0xff] }
 0x450   :  { %v12773_v18 = vld [vmem:[#allocation141_spill] sm:$0xff]  ;;  %v12780_v4 = vld [vmem:[#allocation327_spill] sm:$0xff] }
 0x451   :  { %v12775_v42 = vld [vmem:[#allocation205_spill] sm:$0xff] }
 0x452   :  { %5595 = vmatpush1.bf16.msra.mxu1 %v6613_v2  ;;  %5636 = vmatpush1.bf16.msra.mxu0 %v6677_v56  ;;  %v6653_v2 = vcombine.low %v12758_v35, %v12757_v55  ;;  %v6717_v56 = vcombine.low %v12760_v10, %v12759_v0  ;;  %v12777_v38 = vld [vmem:[#allocation265_spill] sm:$0xff]  ;;  %v12782_v35 = vld [vmem:[#allocation259_spill] sm:$0xff] }
 0x453   :  { %5596 = vmatprep.subr.bf16.mxu1 %v6610_v37  ;;  %5637 = vmatprep.subr.bf16.mxu0 %v6674_v3  ;;  %v6650_v37 = vcombine.high %v12762_v52, %v12761_v60  ;;  %v6714_v3 = vcombine.high %v12764_v34, %v12763_v62  ;;  %v12779_v21 = vld [vmem:[#allocation329_spill] sm:$0xff]  ;;  %v12784_v10 = vld [vmem:[#allocation323_spill] sm:$0xff] }
 0x454   :  { %v12781_v55 = vld [vmem:[#allocation261_spill] sm:$0xff] }
 0x455   :  { %v12783_v0 = vld [vmem:[#allocation325_spill] sm:$0xff] }
 0x456   :  { %5597 = vmatpush1.bf16.msra.mxu1 %v6609_v11  ;;  %5638 = vmatpush1.bf16.msra.mxu0 %v6673_v36  ;;  %v6649_v11 = vcombine.low %v12762_v52, %v12761_v60  ;;  %v6713_v36 = vcombine.low %v12764_v34, %v12763_v62  ;;  %v6757_v52 = vcombine.low %v12782_v35, %v12781_v55 }
 0x457   :  { %5598 = vmatprep.subr.bf16.mxu1 %v6606_v28  ;;  %5639 = vmatprep.subr.bf16.mxu0 %v6670_v19  ;;  %v6646_v28 = vcombine.high %v12766_v25, %v12765_v31  ;;  %v6710_v19 = vcombine.high %v12768_v59, %v12767_v30 }
 0x45a   :  { %5599 = vmatpush1.bf16.msra.mxu1 %v6605_v48  ;;  %5640 = vmatpush1.bf16.msra.mxu0 %v6669_v9  ;;  %v6645_v48 = vcombine.low %v12766_v25, %v12765_v31  ;;  %v6709_v9 = vcombine.low %v12768_v59, %v12767_v30  ;;  %v12788_v31 = vld [vmem:[#allocation319_spill] sm:$0xff] }
 0x45b   :  { %5600 = vmatprep.subr.bf16.mxu1 %v6666_v51  ;;  %5641 = vmatprep.subr.bf16.mxu0 %v6730_v22  ;;  %v6642_v51 = vcombine.high %v12770_v13, %v12769_v23  ;;  %v6706_v22 = vcombine.high %v12772_v40, %v12771_v5 }
 0x45e   :  { %5601 = vmatpush2.bf16.msra.mxu1 %v6665_v50  ;;  %5642 = vmatpush2.bf16.msra.mxu0 %v6729_v43  ;;  %v6641_v50 = vcombine.low %v12770_v13, %v12769_v23  ;;  %v6705_v43 = vcombine.low %v12772_v40, %v12771_v5 }
 0x45f   :  { %5602 = vmatprep.subr.bf16.mxu1 %v6662_v1  ;;  %5643 = vmatprep.subr.bf16.mxu0 %v6726_v14  ;;  %v6638_v1 = vcombine.high %v12774_v24, %v12773_v18  ;;  %v6702_v14 = vcombine.high %v12776_v16, %v12775_v42 }
 0x462   :  { %5603 = vmatpush2.bf16.msra.mxu1 %v6661_v57  ;;  %5644 = vmatpush2.bf16.msra.mxu0 %v6725_v61  ;;  %v6637_v57 = vcombine.low %v12774_v24, %v12773_v18  ;;  %v6701_v61 = vcombine.low %v12776_v16, %v12775_v42  ;;  %v12795_v24 = vld [vmem:[#allocation313_spill] sm:$0xff] }
 0x463   :  { %5604 = vmatprep.subr.bf16.mxu1 %v6658_v53  ;;  %5645 = vmatprep.subr.bf16.mxu0 %v6722_v45  ;;  %v6762_v53 = vcombine.high %v12778_v8, %v12777_v38  ;;  %v6826_v45 = vcombine.high %v12780_v4, %v12779_v21 }
 0x466   :  { %5605 = vmatpush2.bf16.msra.mxu1 %v6657_v17  ;;  %5646 = vmatpush2.bf16.msra.mxu0 %v6721_v63  ;;  %v6761_v17 = vcombine.low %v12778_v8, %v12777_v38  ;;  %v6825_v63 = vcombine.low %v12780_v4, %v12779_v21  ;;  %v12799_v8 = vld [vmem:[#allocation309_spill] sm:$0xff] }
 0x467   :  { %5606 = vmatprep.subr.bf16.mxu1 %v6654_v15  ;;  %5647 = vmatprep.subr.bf16.mxu0 %v6718_v12  ;;  %v6758_v15 = vcombine.high %v12782_v35, %v12781_v55  ;;  %v6822_v12 = vcombine.high %v12784_v10, %v12783_v0  ;;  %v12803_v35 = vld [vmem:[#allocation305_spill] sm:$0xff] }
 0x46a   :  { %5607 = vmatpush2.bf16.msra.mxu1 %v6653_v2  ;;  %5648 = vmatpush2.bf16.msra.mxu0 %v6717_v56 }
 0x46b   :  { %5608 = vmatprep.subr.bf16.mxu1 %v6650_v37  ;;  %5649 = vmatprep.subr.bf16.mxu0 %v6714_v3  ;;  %v6821_v37 = vcombine.low %v12784_v10, %v12783_v0  ;;  %v12785_v3 = vld [vmem:[#allocation257_spill] sm:$0xff] }
 0x46e   :  { %5609 = vmatpush2.bf16.msra.mxu1 %v6649_v11  ;;  %5650 = vmatpush2.bf16.msra.mxu0 %v6713_v36  ;;  %v12786_v11 = vld [vmem:[#allocation255_spill] sm:$0xff] }
 0x46f   :  { %5610 = vmatprep.subr.bf16.mxu1 %v6646_v28  ;;  %5651 = vmatprep.subr.bf16.mxu0 %v6710_v19  ;;  %v6754_v36 = vcombine.high %v12786_v11, %v12785_v3  ;;  %v6753_v19 = vcombine.low %v12786_v11, %v12785_v3  ;;  %v12809_v11 = vld [vmem:[#allocation297_spill] sm:$0xff] }
 0x472   :  { %5611 = vmatpush2.bf16.msra.mxu1 %v6645_v48  ;;  %5652 = vmatpush2.bf16.msra.mxu0 %v6709_v9 }
 0x473   :  { %5612 = vmatprep.subr.bf16.mxu1 %v6642_v51  ;;  %5653 = vmatprep.subr.bf16.mxu0 %v6706_v22  ;;  %v12792_v51 = vld [vmem:[#allocation315_spill] sm:$0xff] }
 0x476   :  { %5613 = vmatpush2.bf16.msra.mxu1 %v6641_v50  ;;  %5654 = vmatpush2.bf16.msra.mxu0 %v6705_v43  ;;  %v12793_v50 = vld [vmem:[#allocation249_spill] sm:$0xff]  ;;  %v12794_v43 = vld [vmem:[#allocation247_spill] sm:$0xff] }
 0x477   :  { %5614 = vmatprep.subr.bf16.mxu1 %v6638_v1  ;;  %5655 = vmatprep.subr.bf16.mxu0 %v6702_v14  ;;  %v6746_v18 = vcombine.high %v12794_v43, %v12793_v50  ;;  %v12796_v1 = vld [vmem:[#allocation311_spill] sm:$0xff]  ;;  %v6745_v16 = vcombine.low %v12794_v43, %v12793_v50 }
 0x478   :  { %v6810_v42 = vcombine.high %v12796_v1, %v12795_v24  ;;  %v6809_v14 = vcombine.low %v12796_v1, %v12795_v24  ;;  %v12820_v50 = vld [vmem:[#allocation351_spill] sm:$0xff]  ;;  %v12821_v1 = vld [vmem:[#allocation285_spill] sm:$0xff] }
 0x47a   :  { %5615 = vmatpush2.bf16.msra.mxu1 %v6637_v57  ;;  %5656 = vmatpush2.bf16.msra.mxu0 %v6701_v61  ;;  %v12797_v57 = vld [vmem:[#allocation245_spill] sm:$0xff]  ;;  %v12798_v61 = vld [vmem:[#allocation243_spill] sm:$0xff] }
 0x47b   :  { %5666 = vmatprep.subr.bf16.mxu1 %v6762_v53  ;;  %5707 = vmatprep.subr.bf16.mxu0 %v6826_v45  ;;  %v6742_v38 = vcombine.high %v12798_v61, %v12797_v57  ;;  %v12800_v53 = vld [vmem:[#allocation307_spill] sm:$0xff]  ;;  %v6741_v4 = vcombine.low %v12798_v61, %v12797_v57 }
 0x47c   :  { %v6806_v21 = vcombine.high %v12800_v53, %v12799_v8  ;;  %v6805_v45 = vcombine.low %v12800_v53, %v12799_v8  ;;  %v12824_v57 = vld [vmem:[#allocation347_spill] sm:$0xff]  ;;  %v12825_v53 = vld [vmem:[#allocation281_spill] sm:$0xff] }
 0x47d   :  { %v5372_v2 = vpop.f32.mrf.mxu1  ;;  %v5413_v56 = vpop.f32.mrf.mxu0  ;;  %5617 = vmatmul.mubr.bf16.vlgmr.msra.gmra.mxu1 %v10423_v7  ;;  %5658 = vmatmul.mubr.bf16.vlgmr.msra.gmra.mxu0 %v10427_v29  ;;  %v12787_v7 = vld [vmem:[#allocation321_spill] sm:$0xff] }
 0x47e   :  { %v5373_v60 = vadd.f32 %v5372_v2, %v10890_v26  ;;  %5667 = vmatpush1.bf16.msra.mxu1 %v6761_v17  ;;  %5708 = vmatpush1.bf16.msra.mxu0 %v6825_v63  ;;  %v6818_v29 = vcombine.high %v12788_v31, %v12787_v7  ;;  %v6817_v48 = vcombine.low %v12788_v31, %v12787_v7  ;;  %v12801_v17 = vld [vmem:[#allocation241_spill] sm:$0xff]  ;;  %v12802_v63 = vld [vmem:[#allocation239_spill] sm:$0xff] }
 0x47f   :  { %v5374_v62 = vpop.f32.mrf.mxu1  ;;  %v5415_v34 = vpop.f32.mrf.mxu0  ;;  %5668 = vmatprep.subr.bf16.mxu1 %v6758_v15  ;;  %5709 = vmatprep.subr.bf16.mxu0 %v6822_v12  ;;  %v6738_v55 = vcombine.high %v12802_v63, %v12801_v17  ;;  %v12804_v15 = vld [vmem:[#allocation303_spill] sm:$0xff]  ;;  %v6737_v10 = vcombine.low %v12802_v63, %v12801_v17  ;;  %v12805_v2 = vld [vmem:[#allocation237_spill] sm:$0xff] }
 0x480   :  { %v11028_v25 = vadd.f32 %v5413_v56, %v5373_v60  ;;  %v5375_v26 = vadd.f32 %v5374_v62, %v10895_v20  ;;  %5698 = vmatprep.mubr.bf16.mxu1 %v10437_v54  ;;  %5739 = vmatprep.mubr.bf16.mxu0 %v10439_v27  ;;  %v12789_v20 = vld [vmem:[#allocation253_spill] sm:$0xff]  ;;  %v12790_v54 = vld [vmem:[#allocation251_spill] sm:$0xff]  ;;  %v6802_v0 = vcombine.high %v12804_v15, %v12803_v35 }
 0x481   :  { %v5376_v28 = vpop.f32.mrf.mxu1  ;;  %v5417_v30 = vpop.f32.mrf.mxu0  ;;  %v6750_v13 = vcombine.high %v12790_v54, %v12789_v20  ;;  %v12791_v27 = vld [vmem:[#allocation317_spill] sm:$0xff]  ;;  %v6749_v40 = vcombine.low %v12790_v54, %v12789_v20  ;;  %v6801_v12 = vcombine.low %v12804_v15, %v12803_v35  ;;  %v12806_v56 = vld [vmem:[#allocation235_spill] sm:$0xff] }
 0x482   :  { %v11033_v59 = vadd.f32 %v5415_v34, %v5375_v26  ;;  %5669 = vmatpush1.bf16.msra.mxu1 %v6757_v52  ;;  %5710 = vmatpush1.bf16.msra.mxu0 %v6821_v37  ;;  %v6814_v5 = vcombine.high %v12792_v51, %v12791_v27  ;;  %v6813_v22 = vcombine.low %v12792_v51, %v12791_v27  ;;  %v12807_v52 = vld [vmem:[#allocation301_spill] sm:$0xff]  ;;  %v12808_v37 = vld [vmem:[#allocation299_spill] sm:$0xff] }
 0x483   :  { %v5377_v9 = vpop.f32.mrf.mxu1  ;;  %v5418_v23 = vpop.f32.mrf.mxu0  ;;  %5670 = vmatprep.subr.bf16.mxu1 %v6754_v36  ;;  %5711 = vmatprep.subr.bf16.mxu0 %v6818_v29  ;;  %v6734_v60 = vcombine.high %v12806_v56, %v12805_v2  ;;  %v6798_v62 = vcombine.high %v12808_v37, %v12807_v52  ;;  %v6733_v34 = vcombine.low %v12806_v56, %v12805_v2  ;;  %v12810_v36 = vld [vmem:[#allocation295_spill] sm:$0xff]  ;;  %v12811_v31 = vld [vmem:[#allocation361_spill] sm:$0xff] }
 0x484   :  { %v6797_v3 = vcombine.low %v12808_v37, %v12807_v52  ;;  %v6794_v7 = vcombine.high %v12810_v36, %v12809_v11  ;;  %v12812_v29 = vld [vmem:[#allocation359_spill] sm:$0xff]  ;;  %v6793_v28 = vcombine.low %v12810_v36, %v12809_v11  ;;  %v12815_v23 = vld [vmem:[#allocation357_spill] sm:$0xff] }
 0x485   :  { %v6858_v26 = vcombine.high %v12812_v29, %v12811_v31  ;;  %v6857_v30 = vcombine.low %v12812_v29, %v12811_v31  ;;  %v12816_v20 = vld [vmem:[#allocation355_spill] sm:$0xff]  ;;  %v12817_v51 = vld [vmem:[#allocation289_spill] sm:$0xff] }
 0x486   :  { %5671 = vmatpush1.bf16.msra.mxu1 %v6753_v19  ;;  %5712 = vmatpush1.bf16.msra.mxu0 %v6817_v48  ;;  %v12813_v19 = vld [vmem:[#allocation293_spill] sm:$0xff]  ;;  %v12814_v48 = vld [vmem:[#allocation291_spill] sm:$0xff]  ;;  %v6854_v54 = vcombine.high %v12816_v20, %v12815_v23  ;;  %v6853_v27 = vcombine.low %v12816_v20, %v12815_v23 }
 0x487   :  { %5672 = vmatprep.subr.bf16.mxu1 %v6750_v13  ;;  %5713 = vmatprep.subr.bf16.mxu0 %v6814_v5  ;;  %v6790_v9 = vcombine.high %v12814_v48, %v12813_v19  ;;  %v6789_v13 = vcombine.low %v12814_v48, %v12813_v19  ;;  %v12818_v5 = vld [vmem:[#allocation287_spill] sm:$0xff]  ;;  %v12829_v15 = vld [vmem:[#allocation277_spill] sm:$0xff] }
 0x488   :  { %v12828_v17 = vld [vmem:[#allocation343_spill] sm:$0xff]  ;;  %v12833_v37 = vld [vmem:[#allocation273_spill] sm:$0xff] }
 0x489   :  { %v12832_v2 = vld [vmem:[#allocation339_spill] sm:$0xff]  ;;  %v12837_v29 = vld [vmem:[#allocation269_spill] sm:$0xff] }
 0x48a   :  { %5673 = vmatpush1.bf16.msra.mxu1 %v6749_v40  ;;  %5714 = vmatpush1.bf16.msra.mxu0 %v6813_v22  ;;  %v6786_v40 = vcombine.high %v12818_v5, %v12817_v51  ;;  %v12819_v22 = vld [vmem:[#allocation353_spill] sm:$0xff]  ;;  %v12836_v11 = vld [vmem:[#allocation335_spill] sm:$0xff] }
 0x48b   :  { %5674 = vmatprep.subr.bf16.mxu1 %v6746_v18  ;;  %5715 = vmatprep.subr.bf16.mxu0 %v6810_v42  ;;  %v6850_v43 = vcombine.high %v12820_v50, %v12819_v22  ;;  %v6785_v18 = vcombine.low %v12818_v5, %v12817_v51  ;;  %v6849_v24 = vcombine.low %v12820_v50, %v12819_v22  ;;  %v12822_v42 = vld [vmem:[#allocation283_spill] sm:$0xff]  ;;  %v12841_v20 = vld [vmem:[#allocation393_spill] sm:$0xff] }
 0x48c   :  { %v12840_v19 = vld [vmem:[#allocation331_spill] sm:$0xff]  ;;  %v12845_v50 = vld [vmem:[#allocation389_spill] sm:$0xff] }
 0x48d   :  { %v12844_v51 = vld [vmem:[#allocation455_spill] sm:$0xff] }
 0x48e   :  { %5675 = vmatpush1.bf16.msra.mxu1 %v6745_v16  ;;  %5716 = vmatpush1.bf16.msra.mxu0 %v6809_v14  ;;  %v6782_v16 = vcombine.high %v12822_v42, %v12821_v1  ;;  %v12823_v14 = vld [vmem:[#allocation349_spill] sm:$0xff] }
 0x48f   :  { %5676 = vmatprep.subr.bf16.mxu1 %v6742_v38  ;;  %5717 = vmatprep.subr.bf16.mxu0 %v6806_v21  ;;  %v6846_v61 = vcombine.high %v12824_v57, %v12823_v14  ;;  %v6781_v38 = vcombine.low %v12822_v42, %v12821_v1  ;;  %v6845_v8 = vcombine.low %v12824_v57, %v12823_v14  ;;  %v12826_v21 = vld [vmem:[#allocation279_spill] sm:$0xff] }
 0x490   :  { %v12848_v1 = vld [vmem:[#allocation451_spill] sm:$0xff] }
 0x492   :  { %5677 = vmatpush1.bf16.msra.mxu1 %v6741_v4  ;;  %5718 = vmatpush1.bf16.msra.mxu0 %v6805_v45  ;;  %v6778_v4 = vcombine.high %v12826_v21, %v12825_v53  ;;  %v12827_v45 = vld [vmem:[#allocation345_spill] sm:$0xff] }
 0x493   :  { %5678 = vmatprep.subr.bf16.mxu1 %v6738_v55  ;;  %5719 = vmatprep.subr.bf16.mxu0 %v6802_v0  ;;  %v6842_v63 = vcombine.high %v12828_v17, %v12827_v45  ;;  %v6777_v55 = vcombine.low %v12826_v21, %v12825_v53  ;;  %v6841_v35 = vcombine.low %v12828_v17, %v12827_v45  ;;  %v12830_v0 = vld [vmem:[#allocation275_spill] sm:$0xff]  ;;  %v12849_v21 = vld [vmem:[#allocation385_spill] sm:$0xff] }
 0x494   :  { %v12852_v17 = vld [vmem:[#allocation447_spill] sm:$0xff] }
 0x496   :  { %5679 = vmatpush1.bf16.msra.mxu1 %v6737_v10  ;;  %5720 = vmatpush1.bf16.msra.mxu0 %v6801_v12  ;;  %v6774_v10 = vcombine.high %v12830_v0, %v12829_v15  ;;  %v12831_v12 = vld [vmem:[#allocation341_spill] sm:$0xff] }
 0x497   :  { %5680 = vmatprep.subr.bf16.mxu1 %v6734_v60  ;;  %5721 = vmatprep.subr.bf16.mxu0 %v6798_v62  ;;  %v6838_v56 = vcombine.high %v12832_v2, %v12831_v12  ;;  %v6773_v60 = vcombine.low %v12830_v0, %v12829_v15  ;;  %v6837_v52 = vcombine.low %v12832_v2, %v12831_v12  ;;  %v12834_v62 = vld [vmem:[#allocation271_spill] sm:$0xff] }
 0x49a   :  { %5681 = vmatpush1.bf16.msra.mxu1 %v6733_v34  ;;  %5722 = vmatpush1.bf16.msra.mxu0 %v6797_v3  ;;  %v6770_v34 = vcombine.high %v12834_v62, %v12833_v37  ;;  %v12835_v3 = vld [vmem:[#allocation337_spill] sm:$0xff] }
 0x49b   :  { %5682 = vmatprep.subr.bf16.mxu1 %v6794_v7  ;;  %5723 = vmatprep.subr.bf16.mxu0 %v6858_v26  ;;  %v6834_v36 = vcombine.high %v12836_v11, %v12835_v3  ;;  %v6769_v7 = vcombine.low %v12834_v62, %v12833_v37  ;;  %v6833_v31 = vcombine.low %v12836_v11, %v12835_v3  ;;  %v12838_v26 = vld [vmem:[#allocation267_spill] sm:$0xff] }
 0x49c   :  { %v12858_v3 = vld [vmem:[#allocation375_spill] sm:$0xff] }
 0x49e   :  { %5683 = vmatpush2.bf16.msra.mxu1 %v6793_v28  ;;  %5724 = vmatpush2.bf16.msra.mxu0 %v6857_v30  ;;  %v6766_v28 = vcombine.high %v12838_v26, %v12837_v29  ;;  %v12839_v30 = vld [vmem:[#allocation333_spill] sm:$0xff] }
 0x49f   :  { %5684 = vmatprep.subr.bf16.mxu1 %v6790_v9  ;;  %5725 = vmatprep.subr.bf16.mxu0 %v6854_v54  ;;  %v6830_v48 = vcombine.high %v12840_v19, %v12839_v30  ;;  %v6765_v9 = vcombine.low %v12838_v26, %v12837_v29  ;;  %v6829_v23 = vcombine.low %v12840_v19, %v12839_v30  ;;  %v12842_v54 = vld [vmem:[#allocation391_spill] sm:$0xff] }
 0x4a0   :  { %v12862_v30 = vld [vmem:[#allocation371_spill] sm:$0xff] }
 0x4a2   :  { %5685 = vmatpush2.bf16.msra.mxu1 %v6789_v13  ;;  %5726 = vmatpush2.bf16.msra.mxu0 %v6853_v27  ;;  %v6890_v13 = vcombine.high %v12842_v54, %v12841_v20  ;;  %v12843_v27 = vld [vmem:[#allocation457_spill] sm:$0xff] }
 0x4a3   :  { %5686 = vmatprep.subr.bf16.mxu1 %v6786_v40  ;;  %5727 = vmatprep.subr.bf16.mxu0 %v6850_v43  ;;  %v6954_v5 = vcombine.high %v12844_v51, %v12843_v27  ;;  %v6889_v40 = vcombine.low %v12842_v54, %v12841_v20  ;;  %v6953_v22 = vcombine.low %v12844_v51, %v12843_v27  ;;  %v12846_v43 = vld [vmem:[#allocation387_spill] sm:$0xff] }
 0x4a4   :  { %v12866_v27 = vld [vmem:[#allocation367_spill] sm:$0xff] }
 0x4a6   :  { %5687 = vmatpush2.bf16.msra.mxu1 %v6785_v18  ;;  %5728 = vmatpush2.bf16.msra.mxu0 %v6849_v24  ;;  %v6886_v18 = vcombine.high %v12846_v43, %v12845_v50  ;;  %v12847_v24 = vld [vmem:[#allocation453_spill] sm:$0xff] }
 0x4a7   :  { %5688 = vmatprep.subr.bf16.mxu1 %v6782_v16  ;;  %5729 = vmatprep.subr.bf16.mxu0 %v6846_v61  ;;  %v6950_v42 = vcombine.high %v12848_v1, %v12847_v24  ;;  %v6885_v61 = vcombine.low %v12846_v43, %v12845_v50 }
 0x4aa   :  { %5689 = vmatpush2.bf16.msra.mxu1 %v6781_v38  ;;  %5730 = vmatpush2.bf16.msra.mxu0 %v6845_v8  ;;  %v6949_v38 = vcombine.low %v12848_v1, %v12847_v24  ;;  %v12870_v24 = vld [vmem:[#allocation363_spill] sm:$0xff] }
 0x4ab   :  { %5690 = vmatprep.subr.bf16.mxu1 %v6778_v4  ;;  %5731 = vmatprep.subr.bf16.mxu0 %v6842_v63  ;;  %v12850_v4 = vld [vmem:[#allocation383_spill] sm:$0xff] }
 0x4ac   :  { %v6882_v45 = vcombine.high %v12850_v4, %v12849_v21  ;;  %v6881_v0 = vcombine.low %v12850_v4, %v12849_v21  ;;  %v12875_v21 = vld [vmem:[#allocation489_spill] sm:$0xff]  ;;  %v12876_v4 = vld [vmem:[#allocation487_spill] sm:$0xff] }
 0x4ae   :  { %5691 = vmatpush2.bf16.msra.mxu1 %v6777_v55  ;;  %5732 = vmatpush2.bf16.msra.mxu0 %v6841_v35 }
 0x4af   :  { %5692 = vmatprep.subr.bf16.mxu1 %v6774_v10  ;;  %5733 = vmatprep.subr.bf16.mxu0 %v6838_v56 }
 0x4b2   :  { %5693 = vmatpush2.bf16.msra.mxu1 %v6773_v60  ;;  %5734 = vmatpush2.bf16.msra.mxu0 %v6837_v52  ;;  %v12856_v60 = vld [vmem:[#allocation443_spill] sm:$0xff] }
 0x4b3   :  { %5694 = vmatprep.subr.bf16.mxu1 %v6770_v34  ;;  %5735 = vmatprep.subr.bf16.mxu0 %v6834_v36  ;;  %v12857_v34 = vld [vmem:[#allocation377_spill] sm:$0xff] }
 0x4b4   :  { %v6874_v11 = vcombine.high %v12858_v3, %v12857_v34  ;;  %v12859_v36 = vld [vmem:[#allocation441_spill] sm:$0xff]  ;;  %v6873_v29 = vcombine.low %v12858_v3, %v12857_v34  ;;  %v12886_v3 = vld [vmem:[#allocation411_spill] sm:$0xff] }
 0x4b5   :  { %v12885_v34 = vld [vmem:[#allocation413_spill] sm:$0xff] }
 0x4b6   :  { %5695 = vmatpush2.bf16.msra.mxu1 %v6769_v7  ;;  %5736 = vmatpush2.bf16.msra.mxu0 %v6833_v31  ;;  %v12860_v7 = vld [vmem:[#allocation439_spill] sm:$0xff] }
 0x4b7   :  { %5696 = vmatprep.subr.bf16.mxu1 %v6766_v28  ;;  %5737 = vmatprep.subr.bf16.mxu0 %v6830_v48  ;;  %v6938_v31 = vcombine.high %v12860_v7, %v12859_v36  ;;  %v6937_v26 = vcombine.low %v12860_v7, %v12859_v36  ;;  %v12861_v28 = vld [vmem:[#allocation373_spill] sm:$0xff]  ;;  %v12888_v7 = vld [vmem:[#allocation475_spill] sm:$0xff] }
 0x4b8   :  { %v6870_v19 = vcombine.high %v12862_v30, %v12861_v28  ;;  %v12863_v48 = vld [vmem:[#allocation437_spill] sm:$0xff]  ;;  %v6869_v20 = vcombine.low %v12862_v30, %v12861_v28  ;;  %v12890_v30 = vld [vmem:[#allocation407_spill] sm:$0xff] }
 0x4b9   :  { %v12887_v36 = vld [vmem:[#allocation477_spill] sm:$0xff] }
 0x4ba   :  { %5697 = vmatpush2.bf16.msra.mxu1 %v6765_v9  ;;  %5738 = vmatpush2.bf16.msra.mxu0 %v6829_v23  ;;  %v12864_v9 = vld [vmem:[#allocation435_spill] sm:$0xff]  ;;  %v12889_v28 = vld [vmem:[#allocation409_spill] sm:$0xff] }
 0x4bb   :  { %5748 = vmatprep.subr.bf16.mxu1 %v6890_v13  ;;  %5789 = vmatprep.subr.bf16.mxu0 %v6954_v5  ;;  %v6934_v23 = vcombine.high %v12864_v9, %v12863_v48  ;;  %v6933_v54 = vcombine.low %v12864_v9, %v12863_v48  ;;  %v12865_v13 = vld [vmem:[#allocation369_spill] sm:$0xff]  ;;  %v12892_v9 = vld [vmem:[#allocation471_spill] sm:$0xff] }
 0x4bc   :  { %v6866_v51 = vcombine.high %v12866_v27, %v12865_v13  ;;  %v12867_v5 = vld [vmem:[#allocation433_spill] sm:$0xff]  ;;  %v6865_v50 = vcombine.low %v12866_v27, %v12865_v13  ;;  %v12894_v27 = vld [vmem:[#allocation403_spill] sm:$0xff] }
 0x4bd   :  { %v5454_v16 = vpop.f32.mrf.mxu1  ;;  %v5495_v14 = vpop.f32.mrf.mxu0  ;;  %5699 = vmatmul.mubr.bf16.vlgmr.msra.gmra.mxu1 %v10580_v6  ;;  %5740 = vmatmul.mubr.bf16.vlgmr.msra.gmra.mxu0 %v10584_v41  ;;  %v12851_v6 = vld [vmem:[#allocation449_spill] sm:$0xff] }
 0x4be   :  { %v5455_v57 = vadd.f32 %v5454_v16, %v11028_v25  ;;  %5749 = vmatpush1.bf16.msra.mxu1 %v6889_v40  ;;  %5790 = vmatpush1.bf16.msra.mxu0 %v6953_v22  ;;  %v6946_v41 = vcombine.high %v12852_v17, %v12851_v6  ;;  %v6945_v10 = vcombine.low %v12852_v17, %v12851_v6  ;;  %v12868_v40 = vld [vmem:[#allocation431_spill] sm:$0xff]  ;;  %v12891_v48 = vld [vmem:[#allocation473_spill] sm:$0xff] }
 0x4bf   :  { %v5456_v8 = vpop.f32.mrf.mxu1  ;;  %v5497_v53 = vpop.f32.mrf.mxu0  ;;  %5750 = vmatprep.subr.bf16.mxu1 %v6886_v18  ;;  %5791 = vmatprep.subr.bf16.mxu0 %v6950_v42  ;;  %v6930_v22 = vcombine.high %v12868_v40, %v12867_v5  ;;  %v6929_v43 = vcombine.low %v12868_v40, %v12867_v5  ;;  %v12869_v18 = vld [vmem:[#allocation365_spill] sm:$0xff]  ;;  %v12872_v16 = vld [vmem:[#allocation427_spill] sm:$0xff]  ;;  %v6985_v17 = vcombine.low %v12876_v4, %v12875_v21 }
 0x4c0   :  { %v11166_v63 = vadd.f32 %v5495_v14, %v5455_v57  ;;  %v5457_v25 = vadd.f32 %v5456_v8, %v11033_v59  ;;  %5780 = vmatprep.mubr.bf16.mxu1 %v10594_v33  ;;  %5821 = vmatprep.mubr.bf16.mxu0 %v10596_v49  ;;  %v12853_v59 = vld [vmem:[#allocation381_spill] sm:$0xff]  ;;  %v12854_v33 = vld [vmem:[#allocation379_spill] sm:$0xff]  ;;  %v6862_v1 = vcombine.high %v12870_v24, %v12869_v18 }
 0x4c1   :  { %v5458_v55 = vpop.f32.mrf.mxu1  ;;  %v5499_v35 = vpop.f32.mrf.mxu0  ;;  %v6878_v56 = vcombine.high %v12854_v33, %v12853_v59  ;;  %v12855_v49 = vld [vmem:[#allocation445_spill] sm:$0xff]  ;;  %v6877_v37 = vcombine.low %v12854_v33, %v12853_v59  ;;  %v6861_v57 = vcombine.low %v12870_v24, %v12869_v18  ;;  %v12874_v8 = vld [vmem:[#allocation423_spill] sm:$0xff] }
 0x4c2   :  { %v11171_v15 = vadd.f32 %v5497_v53, %v5457_v25  ;;  %5751 = vmatpush1.bf16.msra.mxu1 %v6885_v61  ;;  %5792 = vmatpush1.bf16.msra.mxu0 %v6949_v38  ;;  %v6942_v52 = vcombine.high %v12856_v60, %v12855_v49  ;;  %v6941_v62 = vcombine.low %v12856_v60, %v12855_v49  ;;  %v12871_v42 = vld [vmem:[#allocation429_spill] sm:$0xff]  ;;  %v12878_v25 = vld [vmem:[#allocation419_spill] sm:$0xff] }
 0x4c3   :  { %v5459_v12 = vpop.f32.mrf.mxu1  ;;  %v5500_v2 = vpop.f32.mrf.mxu0  ;;  %5752 = vmatprep.subr.bf16.mxu1 %v6882_v45  ;;  %5793 = vmatprep.subr.bf16.mxu0 %v6946_v41  ;;  %v6926_v14 = vcombine.high %v12872_v16, %v12871_v42  ;;  %v6925_v61 = vcombine.low %v12872_v16, %v12871_v42  ;;  %v12873_v38 = vld [vmem:[#allocation425_spill] sm:$0xff]  ;;  %v6986_v45 = vcombine.high %v12876_v4, %v12875_v21  ;;  %v12882_v33 = vld [vmem:[#allocation415_spill] sm:$0xff] }
 0x4c4   :  { %v6922_v53 = vcombine.high %v12874_v8, %v12873_v38  ;;  %v6921_v6 = vcombine.low %v12874_v8, %v12873_v38  ;;  %v12877_v41 = vld [vmem:[#allocation421_spill] sm:$0xff]  ;;  %v12884_v60 = vld [vmem:[#allocation479_spill] sm:$0xff] }
 0x4c5   :  { %v6918_v55 = vcombine.high %v12878_v25, %v12877_v41  ;;  %v12879_v35 = vld [vmem:[#allocation485_spill] sm:$0xff]  ;;  %v6917_v12 = vcombine.low %v12878_v25, %v12877_v41  ;;  %v12896_v40 = vld [vmem:[#allocation467_spill] sm:$0xff] }
 0x4c6   :  { %5753 = vmatpush1.bf16.msra.mxu1 %v6881_v0  ;;  %5794 = vmatpush1.bf16.msra.mxu0 %v6945_v10  ;;  %v12880_v0 = vld [vmem:[#allocation483_spill] sm:$0xff]  ;;  %v12881_v59 = vld [vmem:[#allocation417_spill] sm:$0xff] }
 0x4c7   :  { %5754 = vmatprep.subr.bf16.mxu1 %v6878_v56  ;;  %5795 = vmatprep.subr.bf16.mxu0 %v6942_v52  ;;  %v6982_v10 = vcombine.high %v12880_v0, %v12879_v35  ;;  %v6981_v2 = vcombine.low %v12880_v0, %v12879_v35  ;;  %v6914_v56 = vcombine.high %v12882_v33, %v12881_v59  ;;  %v12883_v49 = vld [vmem:[#allocation481_spill] sm:$0xff]  ;;  %v12898_v24 = vld [vmem:[#allocation399_spill] sm:$0xff] }
 0x4c8   :  { %v6978_v52 = vcombine.high %v12884_v60, %v12883_v49  ;;  %v12893_v13 = vld [vmem:[#allocation405_spill] sm:$0xff]  ;;  %v12900_v16 = vld [vmem:[#allocation463_spill] sm:$0xff] }
 0x4c9   :  { %v12895_v5 = vld [vmem:[#allocation469_spill] sm:$0xff]  ;;  %v12902_v8 = vld [vmem:[#allocation395_spill] sm:$0xff] }
 0x4ca   :  { %5755 = vmatpush1.bf16.msra.mxu1 %v6877_v37  ;;  %5796 = vmatpush1.bf16.msra.mxu0 %v6941_v62  ;;  %v6913_v37 = vcombine.low %v12882_v33, %v12881_v59  ;;  %v6977_v62 = vcombine.low %v12884_v60, %v12883_v49  ;;  %v12897_v18 = vld [vmem:[#allocation401_spill] sm:$0xff]  ;;  %v12904_v4 = vld [vmem:[#allocation459_spill] sm:$0xff] }
 0x4cb   :  { %5756 = vmatprep.subr.bf16.mxu1 %v6874_v11  ;;  %5797 = vmatprep.subr.bf16.mxu0 %v6938_v31  ;;  %v6910_v11 = vcombine.high %v12886_v3, %v12885_v34  ;;  %v6974_v31 = vcombine.high %v12888_v7, %v12887_v36  ;;  %v12899_v42 = vld [vmem:[#allocation465_spill] sm:$0xff]  ;;  %v7237_v41 = vld [vmem:[%s11458_s4] ss:$4 sm:$0xf] }
 0x4cc   :  { %v12901_v38 = vld [vmem:[#allocation397_spill] sm:$0xff]  ;;  %v2605_v25 = vrot.slane %v7237_v41, %v10027_v44 }
 0x4cd   :  { %v12903_v21 = vld [vmem:[#allocation461_spill] sm:$0xff] }
 0x4ce   :  { %5757 = vmatpush1.bf16.msra.mxu1 %v6873_v29  ;;  %5798 = vmatpush1.bf16.msra.mxu0 %v6937_v26  ;;  %v6909_v29 = vcombine.low %v12886_v3, %v12885_v34  ;;  %v6973_v26 = vcombine.low %v12888_v7, %v12887_v36 }
 0x4cf   :  { %5758 = vmatprep.subr.bf16.mxu1 %v6870_v19  ;;  %5799 = vmatprep.subr.bf16.mxu0 %v6934_v23  ;;  %v6906_v19 = vcombine.high %v12890_v30, %v12889_v28  ;;  %v6970_v23 = vcombine.high %v12892_v9, %v12891_v48 }
 0x4d2   :  { %5759 = vmatpush1.bf16.msra.mxu1 %v6869_v20  ;;  %5800 = vmatpush1.bf16.msra.mxu0 %v6933_v54  ;;  %v6905_v20 = vcombine.low %v12890_v30, %v12889_v28  ;;  %v6969_v54 = vcombine.low %v12892_v9, %v12891_v48  ;;  %v7198_v48 = vld [vmem:[%s11459_s5 + $0xf8] sm:$0xff]  }
 0x4d3   :  { %5760 = vmatprep.subr.bf16.mxu1 %v6866_v51  ;;  %5801 = vmatprep.subr.bf16.mxu0 %v6930_v22  ;;  %v6902_v51 = vcombine.high %v12894_v27, %v12893_v13  ;;  %v6966_v22 = vcombine.high %v12896_v40, %v12895_v5  ;;  %v7199_v9 = vld [vmem:[%s11459_s5 + $0x38] sm:$0xff]  }
 0x4d6   :  { %5761 = vmatpush1.bf16.msra.mxu1 %v6865_v50  ;;  %5802 = vmatpush1.bf16.msra.mxu0 %v6929_v43  ;;  %v6901_v50 = vcombine.low %v12894_v27, %v12893_v13  ;;  %v6965_v43 = vcombine.low %v12896_v40, %v12895_v5  ;;  %v7203_v13 = vld [vmem:[%s11459_s5 + $0x30] sm:$0xff]  }
 0x4d7   :  { %5762 = vmatprep.subr.bf16.mxu1 %v6862_v1  ;;  %5803 = vmatprep.subr.bf16.mxu0 %v6926_v14  ;;  %v6898_v1 = vcombine.high %v12898_v24, %v12897_v18  ;;  %v6962_v14 = vcombine.high %v12900_v16, %v12899_v42  ;;  %v7204_v27 = vld [vmem:[%s11459_s5 + $0xb0] sm:$0xff]  }
 0x4da   :  { %5763 = vmatpush1.bf16.msra.mxu1 %v6861_v57  ;;  %5804 = vmatpush1.bf16.msra.mxu0 %v6925_v61  ;;  %v6897_v57 = vcombine.low %v12898_v24, %v12897_v18  ;;  %v6961_v61 = vcombine.low %v12900_v16, %v12899_v42  ;;  %v7206_v18 = vld [vmem:[%s11459_s5 + $0xe8] sm:$0xff]  }
 0x4db   :  { %5764 = vmatprep.subr.bf16.mxu1 %v6922_v53  ;;  %5805 = vmatprep.subr.bf16.mxu0 %v6986_v45  ;;  %v6894_v53 = vcombine.high %v12902_v8, %v12901_v38  ;;  %v6958_v45 = vcombine.high %v12904_v4, %v12903_v21  ;;  %v7208_v42 = vld [vmem:[%s11459_s5 + $0xa8] sm:$0xff]  }
 0x4de   :  { %5765 = vmatpush2.bf16.msra.mxu1 %v6921_v6  ;;  %5806 = vmatpush2.bf16.msra.mxu0 %v6985_v17  ;;  %v6893_v6 = vcombine.low %v12902_v8, %v12901_v38  ;;  %v6957_v17 = vcombine.low %v12904_v4, %v12903_v21  ;;  %v7209_v38 = vld [vmem:[%s11459_s5 + $0x60] sm:$0xff]   ;;  %v7213_v4 = vld [vmem:[%s11459_s5 + $0x58] sm:$0xff]  }
 0x4df   :  { %5766 = vmatprep.subr.bf16.mxu1 %v6918_v55  ;;  %5807 = vmatprep.subr.bf16.mxu0 %v6982_v10  ;;  %v12905_v55 = vld [vmem:[#allocation491_spill] sm:$0xff] }
 0x4e0   :  { %v2609_v35 = vrot.slane %v7237_v41, %v12905_v55  ;;  %v7210_v8 = vld [vmem:[%s11459_s5 + $0xe0] sm:$0xff]   ;;  %v7217_v41 = vld [vmem:[%s11459_s5 + $0x50] sm:$0xff]  }
 0x4e1   :  { %v7212_v21 = vld [vmem:[%s11459_s5 + $0xa0] sm:$0xff]  }
 0x4e2   :  { %5767 = vmatpush2.bf16.msra.mxu1 %v6917_v12  ;;  %5808 = vmatpush2.bf16.msra.mxu0 %v6981_v2 }
 0x4e3   :  { %5768 = vmatprep.subr.bf16.mxu1 %v6914_v56  ;;  %5809 = vmatprep.subr.bf16.mxu0 %v6978_v52 }
 0x4e6   :  { %5769 = vmatpush2.bf16.msra.mxu1 %v6913_v37  ;;  %5810 = vmatpush2.bf16.msra.mxu0 %v6977_v62 }
 0x4e7   :  { %5770 = vmatprep.subr.bf16.mxu1 %v6910_v11  ;;  %5811 = vmatprep.subr.bf16.mxu0 %v6974_v31 }
 0x4ea   :  { %5771 = vmatpush2.bf16.msra.mxu1 %v6909_v29  ;;  %5812 = vmatpush2.bf16.msra.mxu0 %v6973_v26 }
 0x4eb   :  { %5772 = vmatprep.subr.bf16.mxu1 %v6906_v19  ;;  %5813 = vmatprep.subr.bf16.mxu0 %v6970_v23  ;;  %v7197_v19 = vld [vmem:[%s11459_s5 + $0x78] sm:$0xff]  }
 0x4ec   :  { %v7200_v23 = vld [vmem:[%s11459_s5 + $0xb8] sm:$0xff]  }
 0x4ee   :  { %5773 = vmatpush2.bf16.msra.mxu1 %v6905_v20  ;;  %5814 = vmatpush2.bf16.msra.mxu0 %v6969_v54  ;;  %v7201_v20 = vld [vmem:[%s11459_s5 + $0x70] sm:$0xff]  }
 0x4ef   :  { %5774 = vmatprep.subr.bf16.mxu1 %v6902_v51  ;;  %5815 = vmatprep.subr.bf16.mxu0 %v6966_v22  ;;  %v7202_v54 = vld [vmem:[%s11459_s5 + $0xf0] sm:$0xff]  }
 0x4f2   :  { %5775 = vmatpush2.bf16.msra.mxu1 %v6901_v50  ;;  %5816 = vmatpush2.bf16.msra.mxu0 %v6965_v43  ;;  %v7205_v43 = vld [vmem:[%s11459_s5 + $0x68] sm:$0xff]  }
 0x4f3   :  { %5776 = vmatprep.subr.bf16.mxu1 %v6898_v1  ;;  %5817 = vmatprep.subr.bf16.mxu0 %v6962_v14  ;;  %v7207_v1 = vld [vmem:[%s11459_s5 + $0x28] sm:$0xff]  }
 0x4f6   :  { %5777 = vmatpush2.bf16.msra.mxu1 %v6897_v57  ;;  %5818 = vmatpush2.bf16.msra.mxu0 %v6961_v61 }
 0x4f7   :  { %5778 = vmatprep.subr.bf16.mxu1 %v6894_v53  ;;  %5819 = vmatprep.subr.bf16.mxu0 %v6958_v45  ;;  %v7211_v53 = vld [vmem:[%s11459_s5 + $0x20] sm:$0xff]   ;;  %v7214_v45 = vld [vmem:[%s11459_s5 + $0xd8] sm:$0xff]  }
 0x4fa   :  { %5779 = vmatpush2.bf16.msra.mxu1 %v6893_v6  ;;  %5820 = vmatpush2.bf16.msra.mxu0 %v6957_v17  ;;  %v7215_v6 = vld [vmem:[%s11459_s5 + $0x18] sm:$0xff]  }
 0x4fb   :  { %7086 = vmatprep.subr.bf16.mxu1 %v7197_v19  ;;  %7108 = vmatprep.subr.bf16.mxu0 %v7198_v48  ;;  %v7216_v17 = vld [vmem:[%s11459_s5 + $0x98] sm:$0xff]  }
 0x4fd   :  { %v5536_v0 = vpop.f32.mrf.mxu1  ;;  %v5577_v10 = vpop.f32.mrf.mxu0  ;;  %5781 = vmatmul.mubr.bf16.vlgmr.msra.gmra.mxu1 %v10727_v46  ;;  %5822 = vmatmul.mubr.bf16.vlgmr.msra.gmra.mxu0 %v10731_v32 }
 0x4fe   :  { %v5537_v12 = vadd.f32 %v5536_v0, %v2605_v25  ;;  %7087 = vmatpush3.bf16.msra.mxu1 %v7199_v9  ;;  %7109 = vmatpush3.bf16.msra.mxu0 %v7200_v23  ;;  %v7218_v25 = vld [vmem:[%s11459_s5 + $0xd0] sm:$0xff]  }
 0x4ff   :  { %v5538_v2 = vpop.f32.mrf.mxu1  ;;  %v5579_v59 = vpop.f32.mrf.mxu0  ;;  %7088 = vmatprep.subr.bf16.mxu1 %v7201_v20  ;;  %7110 = vmatprep.subr.bf16.mxu0 %v7202_v54  ;;  %v7220_v0 = vld [vmem:[%s11459_s5 + $0x90] sm:$0xff]  }
 0x500   :  { %v5578_v33 = vadd.f32 %v5577_v10, %v5537_v12  ;;  %v5539_v56 = vadd.f32 %v5538_v2, %v2609_v35  ;;  %v7219_v35 = vld [vmem:[%s11459_s5 + $0x10] sm:$0xff]   ;;  %v7221_v10 = vld [vmem:[%s11459_s5 + $0x48] sm:$0xff]  }
 0x501   :  { %v5540_v49 = vpop.f32.mrf.mxu1  ;;  %v5581_v60 = vpop.f32.mrf.mxu0  ;;  %v7222_v12 = vld [vmem:[%s11459_s5 + $0xc8] sm:$0xff]  }
 0x502   :  { %v5580_v52 = vadd.f32 %v5579_v59, %v5539_v56  ;;  %7089 = vmatpush3.bf16.msra.mxu1 %v7203_v13  ;;  %7111 = vmatpush3.bf16.msra.mxu0 %v7204_v27  ;;  %v7223_v2 = vld [vmem:[%s11459_s5 + $0x8] sm:$0xff]   ;;  %v7226_v56 = vld [vmem:[%s11459_s5 + $0xc0] sm:$0xff]  }
 0x503   :  { %v5541_v37 = vpop.f32.mrf.mxu1  ;;  %v5582_v62 = vpop.f32.mrf.mxu0  ;;  %7090 = vmatprep.subr.bf16.mxu1 %v7205_v43  ;;  %7112 = vmatprep.subr.bf16.mxu0 %v7206_v18  ;;  %v7224_v59 = vld [vmem:[%s11459_s5 + $0x88] sm:$0xff]   ;;  %v7227_v49 = vld [vmem:[%s11459_s5] sm:$0xff]  }
 0x504   :  { %v7228_v60 = vld [vmem:[%s11459_s5 + $0x80] sm:$0xff]   ;;  %v5834_v37 = vsel %vm1938_vm5, %v11166_v63, 0.0 }
 0x506   :  { %7091 = vmatpush3.bf16.msra.mxu1 %v7207_v1  ;;  %7113 = vmatpush3.bf16.msra.mxu0 %v7208_v42 }
 0x507   :  { %7092 = vmatprep.subr.bf16.mxu1 %v7209_v38  ;;  %7114 = vmatprep.subr.bf16.mxu0 %v7210_v8 }
 0x50a   :  { %7093 = vmatpush3.bf16.msra.mxu1 %v7211_v53  ;;  %7115 = vmatpush3.bf16.msra.mxu0 %v7212_v21 }
 0x50b   :  { %7094 = vmatprep.subr.bf16.mxu1 %v7213_v4  ;;  %7116 = vmatprep.subr.bf16.mxu0 %v7214_v45 }
 0x50e   :  { %7095 = vmatpush3.bf16.msra.mxu1 %v7215_v6  ;;  %7117 = vmatpush3.bf16.msra.mxu0 %v7216_v17 }
 0x50f   :  { %7096 = vmatprep.subr.bf16.mxu1 %v7217_v41  ;;  %7118 = vmatprep.subr.bf16.mxu0 %v7218_v25 }
 0x512   :  { %7097 = vmatpush3.bf16.msra.mxu1 %v7219_v35  ;;  %7119 = vmatpush3.bf16.msra.mxu0 %v7220_v0 }
 0x513   :  { %7098 = vmatprep.subr.bf16.mxu1 %v7221_v10  ;;  %7120 = vmatprep.subr.bf16.mxu0 %v7222_v12 }
 0x516   :  { %7099 = vmatpush3.bf16.msra.mxu1 %v7223_v2  ;;  %7121 = vmatpush3.bf16.msra.mxu0 %v7224_v59 }
 0x517   :  { %7122 = vmatprep.subr.bf16.mxu0 %v7226_v56 }
 0x51a   :  { %7123 = vmatpush3.bf16.msra.mxu0 %v7228_v60 }
 0x53d   :  { %v5618_v34 = vpop.f32.mrf.mxu1  ;;  %v5659_v3 = vpop.f32.mrf.mxu0 }
 0x53e   :  { %v5619_v11 = vadd.f32 %v5618_v34, %v5578_v33  ;;  %v7225_v33 = vld [vmem:[%s11459_s5 + $0x40] sm:$0xff]   ;;  %v5835_v34 = vrot.slane %v5834_v37, 4 }
 0x53f   :  { %v5620_v36 = vpop.f32.mrf.mxu1  ;;  %v5661_v7 = vpop.f32.mrf.mxu0  ;;  %7100 = vmatprep.subr.bf16.mxu1 %v7225_v33 }
 0x540   :  { %v5660_v31 = vadd.f32 %v5659_v3, %v5619_v11  ;;  %v5621_v29 = vadd.f32 %v5620_v36, %v5580_v52  ;;  %7101 = vmatpush3.bf16.msra.mxu1 %v7227_v49  ;;  %v5841_v52 = vsel %vm1938_vm5, %v11171_v15, 0.0  ;;  %v5836_v11 = vadd.f32 %v5835_v34, %v5834_v37 }
 0x541   :  { %v5622_v46 = vpop.f32.mrf.mxu1  ;;  %v5663_v26 = vpop.f32.mrf.mxu0  ;;  %v5842_v62 = vrot.slane %v5841_v52, 4 }
 0x542   :  { %v11288_v32 = vadd.f32 %v5661_v7, %v5621_v29  ;;  %v5837_v7 = vrot.slane %v5836_v11, 2 }
 0x543   :  { %v5623_v28 = vpop.f32.mrf.mxu1  ;;  %v5664_v30 = vpop.f32.mrf.mxu0  ;;  %v5843_v3 = vadd.f32 %v5842_v62, %v5841_v52 }
 0x544   :  { %v5838_v29 = vadd.f32 %v5837_v7, %v5836_v11 }
 0x545   :  { %v5844_v36 = vrot.slane %v5843_v3, 2 }
 0x546   :  { %v5839_v26 = vrot.slane %v5838_v29, 1 }
 0x548   :  { %v5840_v30 = vadd.f32 %v5839_v26, %v5838_v29 }
 0x54a   :  { %v11398_v48 = vmul.f32 0.5, %v5840_v30 }
 0x54c   :  { %v5866_v20 = vsub.f32 %v11166_v63, %v11398_v48 }
 0x57d   :  { %v5700_v51 = vpop.f32.mrf.mxu1  ;;  %v5741_v5 = vpop.f32.mrf.mxu0 }
 0x57e   :  { %v5701_v40 = vadd.f32 %v5700_v51, %v5660_v31  ;;  %v5845_v31 = vadd.f32 %v5844_v36, %v5843_v3 }
 0x57f   :  { %v11314_v22 = vpop.f32.mrf.mxu1  ;;  %v11316_v50 = vpop.f32.mrf.mxu0 }
 0x580   :  { %v11324_v24 = vadd.f32 %v5741_v5, %v5701_v40  ;;  %v5846_v46 = vrot.slane %v5845_v31, 1  ;;  %v5703_v23 = vadd.f32 %v11314_v22, %v11288_v32  ;;  %v5870_v40 = vmul.f32 %v5866_v20, %v5866_v20 }
 0x581   :  { %v5704_v16 = vpop.f32.mrf.mxu1  ;;  %v5745_v14 = vpop.f32.mrf.mxu0 }
 0x582   :  { %v5847_v28 = vadd.f32 %v5846_v46, %v5845_v31  ;;  %v5744_v51 = vadd.f32 %v11316_v50, %v5703_v23 }
 0x583   :  { %v5705_v57 = vpop.f32.mrf.mxu1  ;;  %v5746_v61 = vpop.f32.mrf.mxu0 }
 0x584   :  { %v11396_v19 = vmul.f32 0.5, %v5847_v28  ;;  %v5874_v61 = vsel %vm1938_vm5, %v5870_v40, 0.0 }
 0x585   :  { %v5875_v45 = vrot.slane %v5874_v61, 4 }
 0x586   :  { %v5867_v9 = vsub.f32 %v11171_v15, %v11396_v19 }
 0x587   :  { %v5876_v0 = vadd.f32 %v5875_v45, %v5874_v61 }
 0x588   :  { %v5871_v54 = vmul.f32 %v5867_v9, %v5867_v9 }
 0x589   :  { %v5877_v56 = vrot.slane %v5876_v0, 2 }
 0x58a   :  { %v5881_v16 = vsel %vm1938_vm5, %v5871_v54, 0.0 }
 0x58b   :  { %v5882_v8 = vrot.slane %v5881_v16, 4  ;;  %v5878_v34 = vadd.f32 %v5877_v56, %v5876_v0 }
 0x58d   :  { %v5883_v41 = vadd.f32 %v5882_v8, %v5881_v16  ;;  %v5879_v29 = vrot.slane %v5878_v34, 1 }
 0x58f   :  { %v5884_v2 = vrot.slane %v5883_v41, 2  ;;  %v5880_v23 = vadd.f32 %v5879_v29, %v5878_v34 }
 0x591   :  { %v5885_v52 = vadd.f32 %v5884_v2, %v5883_v41  ;;  %v6987_v2 = vld [vmem:[%s11458_s4 + $0x1] ss:$4 sm:$0xf] }
 0x593   :  { %v5886_v36 = vrot.slane %v5885_v52, 1 }
 0x595   :  { %v5887_v28 = vadd.f32 %v5886_v36, %v5885_v52 }
 0x5bd   :  { %v5782_v13 = vpop.f32.mrf.mxu1  ;;  %v5823_v27 = vpop.f32.mrf.mxu0 }
 0x5be   :  { %v5783_v5 = vadd.f32 %v5782_v13, %v11324_v24  ;;  %v5903_v13 = vmul.f32 0.5, %v5887_v28 }
 0x5bf   :  { %v5784_v43 = vpop.f32.mrf.mxu1  ;;  %v5825_v18 = vpop.f32.mrf.mxu0 }
 0x5c0   :  { %v11408_v1 = vadd.f32 %v5823_v27, %v5783_v5  ;;  %v5785_v42 = vadd.f32 %v5784_v43, %v5744_v51  ;;  %v5902_v5 = vmul.f32 0.5, %v5880_v23 }
 0x5c1   :  { %v5786_v14 = vpop.f32.mrf.mxu1  ;;  %v5827_v32 = vpop.f32.mrf.mxu0 }
 0x5c2   :  { %v5848_v22 = vsel %vm1938_vm5, %v11408_v1, 0.0  ;;  %v11413_v57 = vadd.f32 %v5825_v18, %v5785_v42  ;;  %v5907_v18 = vadd.f32 1e-05, %v5903_v13  ;;  %v5906_v14 = vadd.f32 1e-05, %v5902_v5 }
 0x5c3   :  { %v5849_v50 = vrot.slane %v5848_v22, 4  ;;  %v5787_v38 = vpop.f32.mrf.mxu1  ;;  %v5828_v24 = vpop.f32.mrf.mxu0 }
 0x5c4   :  { %v5855_v53 = vsel %vm1938_vm5, %v11413_v57, 0.0  ;;  %7229 = vrsqrt.f32 %v5907_v18  ;;  %v7263_v24 = vmov 1966171168  }
 0x5c5   :  { %v5850_v21 = vadd.f32 %v5849_v50, %v5848_v22  ;;  %v5856_v4 = vrot.slane %v5855_v53, 4  ;;  %7231 = vrsqrt.f32 %v5906_v14  ;;  %v5921_v8 = vunpack.c.l.s4 %v7263_v24 }
 0x5c7   :  { %v5851_v6 = vrot.slane %v5850_v21, 2  ;;  %v5857_v17 = vadd.f32 %v5856_v4, %v5855_v53  ;;  %v5922_v53 = vunpack.c.0.s8 %v5921_v8 }
 0x5c9   :  { %v5852_v25 = vadd.f32 %v5851_v6, %v5850_v21  ;;  %v5858_v35 = vrot.slane %v5857_v17, 2 }
 0x5cb   :  { %v5853_v10 = vrot.slane %v5852_v25, 1  ;;  %v5859_v12 = vadd.f32 %v5858_v35, %v5857_v17  ;;  %v12906_v17 = vld [vmem:[#allocation490_spill] sm:$0xff] }
 0x5cc   :  { %v5925_v41 = vsub.s32 %v5922_v53, %v12906_v17 }
 0x5cd   :  { %v5854_v59 = vadd.f32 %v5853_v10, %v5852_v25  ;;  %v5860_v33 = vrot.slane %v5859_v12, 1 }
 0x5cf   :  { %v5864_v49 = vmul.f32 0.5, %v5854_v59  ;;  %v5861_v60 = vadd.f32 %v5860_v33, %v5859_v12 }
 0x5d1   :  { %v5868_v37 = vsub.f32 %v11408_v1, %v5864_v49  ;;  %v5865_v62 = vmul.f32 0.5, %v5861_v60  ;;  %v7230_v21 = vpop.eup %7229 }
 0x5d2   :  { %v7232_v4 = vpop.eup %7231 }
 0x5d3   :  { %v5872_v3 = vmul.f32 %v5868_v37, %v5868_v37  ;;  %v5869_v11 = vsub.f32 %v11413_v57, %v5865_v62  ;;  %v5918_v6 = vcombine.low %v7232_v4, %v7230_v21 }
 0x5d5   :  { %v5888_v7 = vsel %vm1938_vm5, %v5872_v3, 0.0  ;;  %v5873_v31 = vmul.f32 %v5869_v11, %v5869_v11  ;;  %v5926_v0 = vrot.slane %v5918_v6, %v5925_v41 }
 0x5d6   :  { %v5889_v46 = vrot.slane %v5888_v7, 4 }
 0x5d7   :  { %v5895_v26 = vsel %vm1938_vm5, %v5873_v31, 0.0 }
 0x5d8   :  { %v5890_v30 = vadd.f32 %v5889_v46, %v5888_v7  ;;  %v5896_v9 = vrot.slane %v5895_v26, 4 }
 0x5da   :  { %v5891_v20 = vrot.slane %v5890_v30, 2  ;;  %v5897_v54 = vadd.f32 %v5896_v9, %v5895_v26 }
 0x5dc   :  { %v5892_v27 = vadd.f32 %v5891_v20, %v5890_v30  ;;  %v5898_v51 = vrot.slane %v5897_v54, 2  ;;  %v6988_v30 = vld [vmem:[%s11458_s4 + $0x2] ss:$4 sm:$0xf] }
 0x5de   :  { %v5893_v40 = vrot.slane %v5892_v27, 1  ;;  %v5899_v43 = vadd.f32 %v5898_v51, %v5897_v54 }
 0x5e0   :  { %v5894_v42 = vadd.f32 %v5893_v40, %v5892_v27  ;;  %v5900_v16 = vrot.slane %v5899_v43, 1 }
 0x5e2   :  { %v5904_v32 = vmul.f32 0.5, %v5894_v42  ;;  %v5901_v22 = vadd.f32 %v5900_v16, %v5899_v43 }
 0x5e4   :  { %v5908_v61 = vadd.f32 1e-05, %v5904_v32  ;;  %v5905_v50 = vmul.f32 0.5, %v5901_v22  ;;  %v6989_v22 = vld [vmem:[%s11461_s7] ss:$0 sm:$0xff] }
 0x5e6   :  { %v5909_v38 = vadd.f32 1e-05, %v5905_v50  ;;  %7233 = vrsqrt.f32 %v5908_v61 }
 0x5e8   :  { %7235 = vrsqrt.f32 %v5909_v38 }
 0x5f3   :  { %v7234_v45 = vpop.eup %7233 }
 0x5f5   :  { %v7236_v25 = vpop.eup %7235 }
 0x5f6   :  { %v5919_v35 = vcombine.low %v7234_v45, %v7236_v25 }
 0x5f8   :  { %v5933_v10 = vrot.slane %v5919_v35, %v5925_v41 }
 0x5fa   :  { %v5934_v12 = vcombine.low %v5926_v0, %v5933_v10 }
 0x5fc   :  { %v5941_v59 = vrot.slane %v5934_v12, %v5925_v41 }
 0x5fe   :  { %v5943_v33 = vmul.f32 %v6987_v2, %v5941_v59 }
 0x600   :  { %v5948_v56 = vrot.slane %v5943_v33, %v10017_v58  ;;  %v5952_v60 = vrot.slane %v5943_v33, %v10024_v47  ;;  %v5956_v52 = vrot.slane %v5943_v33, %v10027_v44  ;;  %v5960_v37 = vrot.slane %v5943_v33, %v12905_v55 }
 0x602   :  { %v5968_v34 = vmul.f32 %v5960_v37, %v11413_v57  ;;  %v5969_v3 = vmul.f32 %v5948_v56, %v11398_v48  ;;  %v5970_v11 = vmul.f32 %v5952_v60, %v11396_v19  ;;  %v5971_v36 = vmul.f32 %v5956_v52, %v5864_v49 }
 0x603   :  { %v5972_v7 = vmul.f32 %v5960_v37, %v5865_v62  ;;  %v5966_v20 = vmul.f32 %v5952_v60, %v11171_v15  ;;  %v5965_v57 = vmul.f32 %v5948_v56, %v11166_v63  ;;  %v5967_v48 = vmul.f32 %v5956_v52, %v11408_v1 }
 0x604   :  { %v5977_v31 = vcombine.low %v5969_v3, %v5970_v11 }
 0x605   :  { %v5978_v29 = vcombine.low %v5971_v36, %v5972_v7 }
 0x606   :  { %v5985_v46 = vrot.slane %v5977_v31, %v5925_v41 }
 0x607   :  { %v5992_v26 = vrot.slane %v5978_v29, %v5925_v41 }
 0x609   :  { %v5993_v28 = vcombine.low %v5985_v46, %v5992_v26 }
 0x60b   :  { %v6000_v9 = vrot.slane %v5993_v28, %v5925_v41  ;;  %v7022_v41 = vld [vmem:[%s11461_s7 + $0x1] ss:$0 sm:$0xff] }
 0x60c   :  { %v6394_v25 = vadd.f32 %v7022_v41, %v10098_v39 }
 0x60d   :  { %v6002_v23 = vsub.f32 %v6988_v30, %v6000_v9 }
 0x60f   :  { %v6019_v19 = vrot.slane %v6002_v23, %v12905_v55  ;;  %v6011_v49 = vrot.slane %v6002_v23, %v10024_v47  ;;  %v6007_v62 = vrot.slane %v6002_v23, %v10017_v58  ;;  %v6015_v54 = vrot.slane %v6002_v23, %v10027_v44 }
 0x611   :  { %v6027_v13 = vadd.f32 %v6019_v19, %v5968_v34  ;;  %v6025_v27 = vadd.f32 %v6011_v49, %v5966_v20  ;;  %v6024_v51 = vadd.f32 %v6007_v62, %v5965_v57  ;;  %v6026_v5 = vadd.f32 %v6015_v54, %v5967_v48 }
 0x613   :  { %vm6029_vm6 = vcmp.gt.f32.partialorder %v6025_v27, 0.0  ;;  %v6033_v40 = vmul.f32 0.01, %v6025_v27  ;;  %vm6031_vm7 = vcmp.gt.f32.partialorder %v6027_v13, 0.0  ;;  %v6035_v15 = vmul.f32 0.01, %v6027_v13 }
 0x614   :  { %vm6028_vm8 = vcmp.gt.f32.partialorder %v6024_v51, 0.0  ;;  %v6032_v63 = vmul.f32 0.01, %v6024_v51  ;;  %vm6030_vm9 = vcmp.gt.f32.partialorder %v6026_v5, 0.0  ;;  %v6034_v1 = vmul.f32 0.01, %v6026_v5 }
 0x615   :  { %v6037_v43 = vsel %vm6029_vm6, %v6025_v27, %v6033_v40  ;;  %v6039_v55 = vsel %vm6031_vm7, %v6027_v13, %v6035_v15 }
 0x616   :  { %v6041_v18 = vpack.c.bf16 %v6037_v43, %v6037_v43  ;;  %v6043_v47 = vpack.c.bf16 %v6039_v55, %v6039_v55  ;;  %v6036_v42 = vsel %vm6028_vm8, %v6024_v51, %v6032_v63  ;;  %v6038_v58 = vsel %vm6030_vm9, %v6026_v5, %v6034_v1 }
 0x617   :  { %v6040_v16 = vpack.c.bf16 %v6036_v42, %v6036_v42  ;;  %v6042_v44 = vpack.c.bf16 %v6038_v58, %v6038_v58 }
 0x618   :  { %6337 = vmatprep.mubr.bf16.mxu1 %v6041_v18  ;;  %6377 = vmatprep.mubr.bf16.mxu0 %v6043_v47 }
 0x619   :  { %6338 = vmatmul.mubr.bf16.vlgmr.msra.gmra.mxu1 %v6040_v16  ;;  %6378 = vmatmul.mubr.bf16.vlgmr.msra.gmra.mxu0 %v6042_v44 }
 0x6d9   :  { %v7102_v14 = vpop.f32.mrf.mxu1  ;;  %v7124_v32 = vpop.f32.mrf.mxu0 }
 0x6db   :  { %v7103_v61 = vpop.f32.mrf.mxu1  ;;  %v7125_v50 = vpop.f32.mrf.mxu0 }
 0x6dc   :  { %v7104_v38 = vadd.f32 %v7103_v61, %v7102_v14  ;;  %v7126_v21 = vadd.f32 %v7125_v50, %v7124_v32 }
 0x6dd   :  { %v7105_v24 = vpop.f32.mrf.mxu1  ;;  %v7127_v8 = vpop.f32.mrf.mxu0 }
 0x6de   :  { %v6340_v53 = vadd.f32 %v7104_v38, %v6989_v22 }
 0x6df   :  { %v7106_v4 = vpop.f32.mrf.mxu1  ;;  %v7128_v45 = vpop.f32.mrf.mxu0 }
 0x6e0   :  { %v6380_v6 = vadd.f32 %v7126_v21, %v6340_v53 }
 0x6e2   :  { %v6385_v17 = vsel %vm1938_vm5, %v6380_v6, 0.0  ;;  %v6395_v10 = vadd.f32 %v6394_v25, %v6380_v6 }
 0x6e3   :  { %6386 = vadd.xlane.f32.xlu0 %v6385_v17 }
 0x76c   :  { %v6387_v35 = vpop.xlane.xlu0 %6386 }
 0x76d   :  { %v6388_v0 = vmul.f32 0.25, %v6387_v35 }
 0x76f   :  { %v6396_v12 = vsub.f32 %v6395_v10, %v6388_v0 }
 0x771   :  { %6397 = vst [vmem:[#allocation6] sm:$0x3] %v6396_v12 }
 0x772   :  { %7249 = shalt.err (!%p7246_p4)
}
 0x773   :  { %6407 = dma.vmem_to_hbm [thread:$0]  %s6405_s19, 32, %s11462_s8, [#allocation7]  }
 0x774   :  { %7260 = dma.done.wait [#allocation7], 32  }
 0x775   :  { %7261 = vsyncadd [#allocation7], 4294967264 }
 0x776   :  { %6411 = vsyncpa [#allocation7], 1 }
 0x777   :  { %6412 = vsyncmov [#allocation5] }
 0x77a   :  { %s6413_s7 = vpop.sfrf %6412 }
 0x77b   :  { %p7023_p5 = scmp.ne.s32.totalorder %s6413_s7, 0 }
 0x77d   :  { %6417 = shalt.err (%p7023_p5)  }

</bundles_post_ra>
